<compile_context>
chip_gen: v5e
topology: v5e:2x2
jax: 0.10.0
libtpu: 0.0.40
codegen_flags: <defaults>
</compile_context>

<pallas_src>
import math

import jax
import jax.numpy as jnp
from jax.experimental import pallas as pl
from jax.experimental.pallas import tpu as pltpu

SMEM = pltpu.MemorySpace.SMEM

_LANES = 128
_TM_MAX = 2048           # rows per fused head/focal tile
_TR_MAX = 2048           # rows per small-loss reduction tile
_LOG_EPS = math.log(1e-4)
_LOG_1M_EPS = math.log(1.0 - 1e-4)


# ----------------------------- small helpers --------------------------------

def _round_up(n, m):
    return -(-n // m) * m


def _plan_rows(n):
    """Rows (multiple of 8) and tile-rows for a flattened length-n reduction."""
    rows = max(1, _round_up(n, _LANES) // _LANES)
    rows = _round_up(rows, 8)
    if rows <= _TR_MAX:
        return rows, rows
    return _round_up(rows, _TR_MAX), _TR_MAX


def _slab(a, rows):
    """Flatten, zero-pad to rows*128 and reshape to a lane/sublane dense slab."""
    flat = a.reshape(-1).astype(jnp.float32)
    pad = rows * _LANES - flat.size
    if pad:
        flat = jnp.pad(flat, (0, pad))
    return flat.reshape(rows, _LANES)


def _focal_terms(x, gt):
    """CenterNet focal-loss per-element terms from logits (clamped sigmoid fused).

    t = softplus(-x):  log(sigmoid) = -t,  log(1-sigmoid) = -x - t,
    sigmoid = exp(-t); the 1e-4 clamp of net_utils.sigmoid is applied in the
    log domain (equivalent, numerically stable, no exp overflow).
    """
    t = jnp.maximum(-x, 0.0) + jnp.log1p(jnp.exp(-jnp.abs(x)))
    log_p = jnp.clip(-t, _LOG_EPS, _LOG_1M_EPS)
    log_q = jnp.clip(-x - t, _LOG_EPS, _LOG_1M_EPS)
    pred = jnp.clip(jnp.exp(-t), 1e-4, 1.0 - 1e-4)
    pos = (gt == 1.0).astype(jnp.float32)
    neg = (gt < 1.0).astype(jnp.float32)
    gm = 1.0 - gt
    neg_w = gm * gm * gm * gm
    omp = 1.0 - pred
    pos_term = log_p * (omp * omp) * pos
    neg_term = log_q * (pred * pred) * neg_w * neg
    return pos_term, neg_term, pos


def _focal_from_sums(pos_sum, neg_sum, num_pos):
    return jnp.where(num_pos == 0, -neg_sum,
                     -(pos_sum + neg_sum) / jnp.maximum(num_pos, 1.0))


# --------------------- fused 1x1-conv head + ct focal loss -------------------

def _make_head_focal_kernel(cin, num_cls, n_valid_rows, rows_pad, tm):
    use_vpu = cin <= 8
    need_row_mask = (n_valid_rows != rows_pad)

    def kernel(x_ref, w_ref, b_ref, g_ref, head_ref, sums_ref):
        ri = pl.program_id(0)

        @pl.when(ri == 0)
        def _():
            sums_ref[0] = 0.0
            sums_ref[1] = 0.0
            sums_ref[2] = 0.0

        tm_, cout_p = head_ref.shape
        if use_vpu:
            # degenerate-K 1x1 conv: unrolled VPU broadcast-FMA, skip the MXU.
            acc = jnp.broadcast_to(b_ref[...].astype(jnp.float32), (tm_, cout_p))
            for c in range(cin):
                acc = acc + (x_ref[:, c:c + 1].astype(jnp.float32)
                             * w_ref[c:c + 1, :].astype(jnp.float32))
        else:
            acc = (jnp.dot(x_ref[...], w_ref[...],
                           preferred_element_type=jnp.float32)
                   + b_ref[...].astype(jnp.float32))

        head_ref[...] = acc.astype(head_ref.dtype)

        # ct_hm focal loss on the first num_cls channels while the head tile is
        # still in registers (no HBM round-trip of the padded head).
        logits = acc[:, :num_cls]
        gt = g_ref[...]
        pos_term, neg_term, pos = _focal_terms(logits, gt)
        # gt pad rows are 0 -> pos/pos_term already vanish there.
        sums_ref[0] += jnp.sum(pos_term)
        sums_ref[2] += jnp.sum(pos)
        if need_row_mask:
            last = pl.num_programs(0) - 1

            @pl.when(ri != last)
            def _():
                sums_ref[1] += jnp.sum(neg_term)

            @pl.when(ri == last)
            def _():
                rows = (ri * tm
                        + jax.lax.broadcasted_iota(jnp.int32, (tm_, num_cls), 0))
                mask = (rows < n_valid_rows).astype(jnp.float32)
                sums_ref[1] += jnp.sum(neg_term * mask)
        else:
            sums_ref[1] += jnp.sum(neg_term)

    return kernel


def fused_head_ct_focal(x2d, ct_gt2d, w, bias, num_cls, tm_max=_TM_MAX):
    """1x1-conv head (Cin -> num_cls+2, lane-padded to 128) fused with the
    CenterNet focal loss over the first num_cls channels.

    Returns (head_slab bf16 (m_pad, 128k), sums f32 (3,) = [pos, neg, num_pos]).
    """
    m, cin = x2d.shape
    cout = w.shape[1]
    cout_p = _round_up(max(cout, 1), _LANES)
    m8 = _round_up(m, 8)
    tm = min(tm_max, m8)
    m_p = _round_up(m8, tm)

    x_p = x2d.astype(jnp.bfloat16)
    g_p = ct_gt2d.astype(jnp.float32)
    if m_p != m:
        x_p = jnp.pad(x_p, ((0, m_p - m), (0, 0)))
        g_p = jnp.pad(g_p, ((0, m_p - m), (0, 0)))
    w_p = jnp.pad(w.astype(jnp.bfloat16), ((0, 0), (0, cout_p - cout)))
    b_p = jnp.pad(bias.astype(jnp.float32).reshape(1, cout),
                  ((0, 0), (0, cout_p - cout)))

    head, sums = pl.pallas_call(
        _make_head_focal_kernel(cin, num_cls, m, m_p, tm),
        out_shape=(jax.ShapeDtypeStruct((m_p, cout_p), jnp.bfloat16),
                   jax.ShapeDtypeStruct((3,), jnp.float32)),
        grid=(m_p // tm,),
        in_specs=[pl.BlockSpec((tm, cin), lambda r: (r, 0)),
                  pl.BlockSpec((cin, cout_p), lambda r: (0, 0)),
                  pl.BlockSpec((1, cout_p), lambda r: (0, 0)),
                  pl.BlockSpec((tm, num_cls), lambda r: (r, 0))],
        out_specs=(pl.BlockSpec((tm, cout_p), lambda r: (r, 0)),
                   pl.BlockSpec(memory_space=SMEM)),
        compiler_params=pltpu.CompilerParams(
            dimension_semantics=("arbitrary",)),
    )(x_p, w_p, b_p, g_p)
    return head, sums


# ------------------- IndL1Loss1d('smooth_l1') for the wh head ----------------

def _make_wh_ind_kernel(hw, num_cls, n_wh):
    def kernel(ind_ref, head_hbm, gt_ref, w_ref, o_ref, gat_ref, sem):
        b = pl.program_id(0)

        @pl.when(b == 0)
        def _():
            o_ref[0] = 0.0
            o_ref[1] = 0.0

        n_obj = gat_ref.shape[0]
        small = n_obj <= 16

        def issue(m, carry):
            idx = jnp.clip(ind_ref[b, m], 0, hw - 1)   # OOB-safe for pad objects
            row = b * hw + idx
            pltpu.make_async_copy(head_hbm.at[row], gat_ref.at[m],
                                  sem.at[m]).start()
            return carry

        jax.lax.fori_loop(0, n_obj, issue, 0, unroll=small)

        def wait(m, carry):
            pltpu.make_async_copy(head_hbm.at[0], gat_ref.at[m],
                                  sem.at[m]).wait()
            return carry

        jax.lax.fori_loop(0, n_obj, wait, 0, unroll=small)

        gathered = gat_ref[...].astype(jnp.float32)          # (n_obj, 1, 128)
        wh_pred = gathered[:, 0, num_cls:num_cls + n_wh]     # (n_obj, n_wh)
        w = w_ref[0]                                         # (n_obj, 1)
        d = (wh_pred - gt_ref[0]) * w
        ad = jnp.abs(d)
        sl = jnp.where(ad < 1.0, 0.5 * d * d, ad - 0.5)
        o_ref[0] += jnp.sum(sl)
        o_ref[1] += jnp.sum(w)

    return kernel


def wh_ind_smooth_l1(head_slab, hw, num_cls, gt_wh, ct_ind, ct_01):
    """net_utils.IndL1Loss1d('smooth_l1') reading wh rows straight out of the
    lane-dense head slab in HBM (row gather via async copies)."""
    bsz, n_obj = ct_ind.shape
    n_wh = gt_wh.shape[2]
    m_p, cout_p = head_slab.shape
    head3 = head_slab.reshape(m_p, 1, cout_p)   # unit dim -> aligned row slices

    grid_spec = pltpu.PrefetchScalarGridSpec(
        num_scalar_prefetch=1,
        grid=(bsz,),
        in_specs=[pl.BlockSpec(memory_space=pl.ANY),
                  pl.BlockSpec((1, n_obj, n_wh), lambda i, ind: (i, 0, 0)),
                  pl.BlockSpec((1, n_obj, 1), lambda i, ind: (i, 0, 0))],
        out_specs=pl.BlockSpec(memory_space=SMEM),
        scratch_shapes=[pltpu.VMEM((n_obj, 1, cout_p), head_slab.dtype),
                        pltpu.SemaphoreType.DMA((n_obj,))],
    )
    s = pl.pallas_call(
        _make_wh_ind_kernel(hw, num_cls, n_wh),
        out_shape=jax.ShapeDtypeStruct((2,), jnp.float32),
        grid_spec=grid_spec,
        compiler_params=pltpu.CompilerParams(dimension_semantics=("arbitrary",)),
    )(ct_ind.astype(jnp.int32), head3,
      gt_wh.astype(jnp.float32),
      ct_01.astype(jnp.float32).reshape(bsz, n_obj, 1))
    return s[0] / (s[1] * n_wh + 1e-4)


# ------------- one batched kernel for all polygon (small) losses -------------

def _small_loss_kernel(kind_ref, p_ref, g_ref, w_ref, o_ref):
    gi = pl.program_id(0)
    ri = pl.program_id(1)

    @pl.when(ri == 0)
    def _():
        o_ref[gi, 0] = 0.0
        o_ref[gi, 1] = 0.0
        o_ref[gi, 2] = 0.0

    p = p_ref[0]
    g = g_ref[0]
    w = w_ref[0]

    @pl.when(kind_ref[gi] == 0)
    def _():                                   # weighted smooth-L1 (beta = 1)
        d = (p - g) * w
        ad = jnp.abs(d)
        sl = jnp.where(ad < 1.0, 0.5 * d * d, ad - 0.5)
        o_ref[gi, 0] += jnp.sum(sl)
        o_ref[gi, 1] += jnp.sum(w)

    @pl.when(kind_ref[gi] == 1)
    def _():                                   # weighted focal (sigmoid fused)
        pos_term, neg_term, pos = _focal_terms(p, g)
        o_ref[gi, 0] += jnp.sum(pos_term * w)
        o_ref[gi, 1] += jnp.sum(neg_term * w)
        o_ref[gi, 2] += jnp.sum(pos)


def batched_small_losses(preds, gts, ws, kinds):
    """One pallas_call for every small polygon loss group.

    kinds[i] == 0 -> [sum(smooth_l1((p-g)*w)), sum(w), 0]
    kinds[i] == 1 -> [pos_sum, neg_sum, num_pos]
    """
    n_max = max(a.size for a in preds)
    rows, tr = _plan_rows(n_max)
    P = jnp.stack([_slab(a, rows) for a in preds])
    G = jnp.stack([_slab(a, rows) for a in gts])
    W = jnp.stack([_slab(a, rows) for a in ws])
    kind = jnp.asarray(kinds, jnp.int32)
    ng = len(preds)

    grid_spec = pltpu.PrefetchScalarGridSpec(
        num_scalar_prefetch=1,
        grid=(ng, rows // tr),
        in_specs=[pl.BlockSpec((1, tr, _LANES), lambda g, r, k: (g, r, 0))] * 3,
        out_specs=pl.BlockSpec(memory_space=SMEM),
    )
    return pl.pallas_call(
        _small_loss_kernel,
        out_shape=jax.ShapeDtypeStruct((ng, 3), jnp.float32),
        grid_spec=grid_spec,
        compiler_params=pltpu.CompilerParams(
            dimension_semantics=("arbitrary", "arbitrary")),
    )(kind, P, G, W)


def get_cls_01(x, k):
    # TODO(synk): poly_utils.get_cls_01 source not provided; assumed circular
    # dilation of the positive mask by radius k along the contour-vertex axis.
    m = (x > 0).astype(jnp.float32)
    out = m
    for s in range(1, k + 1):
        out = jnp.maximum(out, jnp.roll(m, s, axis=-1))
        out = jnp.maximum(out, jnp.roll(m, -s, axis=-1))
    return out


# ----------------------------- NetworkWrapper.forward ------------------------

def network_wrapper_forward(params, batch, num_cls, is_cls=True):
    inp = batch['inp']                                    # (B, Cin, H, W)
    B, Cin, H, W = inp.shape
    HW = H * W

    # TODO(synk): `self.net` is an external module handed to __init__ (backbone
    # + snake/GCN heads).  A deterministic 1x1-conv Pallas stand-in produces
    # the ct_hm / wh heads (channels-last, lane-dense); polygon / extreme-point
    # outputs of the real net are passed through as synthetic tensors.
    x2d = jnp.transpose(inp, (0, 2, 3, 1)).reshape(B * HW, Cin)
    ct_gt2d = jnp.transpose(batch['ct_hm'], (0, 2, 3, 1)).reshape(B * HW, num_cls)
    head, ct_sums = fused_head_ct_focal(
        x2d, ct_gt2d, params['w_head'], params['b_head'], num_cls)

    output = {
        # channels-last (B, HW, C) views of the head (bf16) for the output dict
        'ct_hm': head[:B * HW, :num_cls].reshape(B, HW, num_cls),
        'wh': head[:B * HW, num_cls:num_cls + 2].reshape(B, HW, 2),
        'ex_pred': batch['ex_pred'],
        'i_gt_4py': batch['i_gt_4py'],
        'py_pred': [batch['py_pred'][i] for i in range(batch['py_pred'].shape[0])],
        'py_gt': [batch['py_gt'][i] for i in range(batch['py_gt'].shape[0])],
        'py_cls': [batch['py_cls'][i] for i in range(batch['py_cls'].shape[0])],
        'gt_cls': [batch['gt_cls'][i] for i in range(batch['gt_cls'].shape[0])],
        'iter_01': [batch['iter_01'][i] for i in range(batch['iter_01'].shape[0])],
    }

    scalar_stats = {}
    loss = 0.0

    # ct focal loss (partial sums came out of the fused head kernel).
    ct_loss = _focal_from_sums(ct_sums[0], ct_sums[1], ct_sums[2])
    scalar_stats['ct_loss'] = ct_loss
    loss = loss + ct_loss

    # wh IndL1Loss1d (smooth_l1) gathering rows straight from the head slab.
    wh_loss = wh_ind_smooth_l1(head, HW, num_cls, batch['wh'],
                               batch['ct_ind'], batch['ct_01'])
    scalar_stats['wh_loss'] = wh_loss
    loss = loss + 0.1 * wh_loss

    # ---- all polygon losses batched into ONE pallas_call ----
    py_pred, py_gt = output['py_pred'], output['py_gt']
    py_cls, gt_cls = output['py_cls'], output['gt_cls']
    iter_01 = output['iter_01']
    n_pred = len(py_pred)
    n_cls = len(py_cls)

    preds = [output['ex_pred']]
    gts = [output['i_gt_4py']]
    ws = [jnp.ones_like(output['ex_pred'])]
    kinds = [0]

    it0 = gt_cls[0][..., 0]
    w0 = jnp.where(it0 > 0, jnp.full_like(it0, 1.0), jnp.full_like(it0, 0.1))
    preds.append(py_pred[0]); gts.append(py_gt[0])
    ws.append(jnp.broadcast_to(w0[..., None], py_pred[0].shape)); kinds.append(0)

    preds.append(py_cls[0]); gts.append(gt_cls[0])
    ws.append(jnp.ones_like(py_cls[0])); kinds.append(1)

    for i in range(n_pred - 1):
        it = iter_01[i]
        # (the reference computes a get_cls_01-based weight here and immediately
        #  overwrites it with the where() below -> only the where() matters)
        wi = jnp.where(it > 0, jnp.full_like(it, 1.0), jnp.full_like(it, 0.1))
        preds.append(py_pred[i + 1]); gts.append(py_gt[i + 1])
        ws.append(jnp.broadcast_to(wi[..., None], py_pred[i + 1].shape))
        kinds.append(0)

        cls01 = get_cls_01(it, 2)
        preds.append(py_cls[i + 1]); gts.append(gt_cls[i + 1])
        ws.append(jnp.broadcast_to(cls01[..., None], py_cls[i + 1].shape))
        kinds.append(1)

    sums = batched_small_losses(preds, gts, ws, kinds)        # (ng, 3)

    sl_idx = [i for i, k in enumerate(kinds) if k == 0]       # ex + py iters
    cl_idx = [i for i, k in enumerate(kinds) if k == 1]       # cls iters

    # ex: torch smooth_l1_loss default 'mean' over all elements.
    ex_loss = sums[sl_idx[0], 0] / float(output['ex_pred'].size)
    # TODO(synk): poly_utils.SmoothL1Loss source not provided; implemented as
    # weighted-mean smooth-L1: sum(sl * w) / (sum(w) + 1e-4).
    py_rows = jnp.asarray(sl_idx[1:], jnp.int32)
    py_terms = sums[py_rows, 0] / (sums[py_rows, 1] + 1e-4)
    py_loss = jnp.sum(py_terms) / n_pred

    cl_rows = jnp.asarray(cl_idx, jnp.int32)
    cls_terms = jnp.where(sums[cl_rows, 2] == 0, -sums[cl_rows, 1],
                          -(sums[cl_rows, 0] + sums[cl_rows, 1])
                          / jnp.maximum(sums[cl_rows, 2], 1.0))
    cls_loss = jnp.sum(cls_terms) / n_cls

    scalar_stats['ex_loss'] = ex_loss
    loss = loss + ex_loss
    scalar_stats['py_loss'] = py_loss
    loss = loss + py_loss
    if is_cls:
        scalar_stats['cls_loss'] = cls_loss
        loss = loss + cls_loss
    scalar_stats['loss'] = loss
    image_stats = {}
    return output, loss, scalar_stats, image_stats


# ----------------------------- main ------------------------------------------

if __name__ == "__main__":
    key = jax.random.PRNGKey(0)
    B, Cin, H, W = 2, 4, 16, 16
    num_cls = 4
    max_obj = 8
    n_iter = 3      # number of snake refinement iterations (len of py_pred list)
    n_poly = 4      # number of polygon instances
    n_pts = 16      # vertices per polygon

    keys = jax.random.split(key, 14)
    inp = jax.random.normal(keys[0], (B, Cin, H, W), jnp.float32)
    u = jax.random.uniform(keys[1], (B, num_cls, H, W), jnp.float32)
    ct_hm_gt = jnp.where(u > 0.97, 1.0, 0.8 * u)          # contains exact 1.0 peaks
    wh_gt = jax.random.uniform(keys[2], (B, max_obj, 2), jnp.float32) * 8.0
    ct_ind = jax.random.randint(keys[3], (B, max_obj), 0, H * W, jnp.int32)
    ct_01 = jax.random.bernoulli(keys[4], 0.75, (B, max_obj)).astype(jnp.float32)
    ex_pred = jax.random.normal(keys[5], (n_poly, 4, 2), jnp.float32)
    i_gt_4py = jax.random.normal(keys[6], (n_poly, 4, 2), jnp.float32)
    py_pred = jax.random.normal(keys[7], (n_iter, n_poly, n_pts, 2), jnp.float32) * 2.0
    py_gt = jax.random.normal(keys[8], (n_iter, n_poly, n_pts, 2), jnp.float32) * 2.0
    py_cls = jax.random.normal(keys[9], (n_iter, n_poly, n_pts, 1), jnp.float32)
    gt_cls = jax.random.bernoulli(keys[10], 0.4,
                                  (n_iter, n_poly, n_pts, 1)).astype(jnp.float32)
    iter_01 = jax.random.bernoulli(keys[11], 0.4,
                                   (n_iter - 1, n_poly, n_pts)).astype(jnp.float32)

    # deterministic stand-in net parameters (1x1 conv heads: ct_hm + wh)
    w_head = jax.random.normal(keys[12], (Cin, num_cls + 2), jnp.float32) * 0.1
    b_head = jnp.concatenate([jnp.full((num_cls,), -2.19, jnp.float32),
                              jnp.zeros((2,), jnp.float32)]).reshape(1, num_cls + 2)
    params = {'w_head': w_head, 'b_head': b_head}

    batch = {'inp': inp, 'ct_hm': ct_hm_gt, 'wh': wh_gt, 'ct_ind': ct_ind,
             'ct_01': ct_01, 'ex_pred': ex_pred, 'i_gt_4py': i_gt_4py,
             'py_pred': py_pred, 'py_gt': py_gt, 'py_cls': py_cls,
             'gt_cls': gt_cls, 'iter_01': iter_01}

    output, loss, scalar_stats, image_stats = network_wrapper_forward(
        params, batch, num_cls, is_cls=True)
    jax.block_until_ready(loss)
    print("KERNEL_OK")
</pallas_src>

<mosaic_0001>
module attributes {stable_mosaic.version = 11 : i64} {
  func.func @kernel(%arg0: i32, %arg1: memref<512x4xbf16, #tpu.memory_space<vmem>>, %arg2: memref<4x128xbf16, #tpu.memory_space<vmem>>, %arg3: memref<1x128xf32, #tpu.memory_space<vmem>>, %arg4: memref<512x4xf32, #tpu.memory_space<vmem>>, %arg5: memref<512x128xbf16, #tpu.memory_space<vmem>>, %arg6: memref<3xf32, #tpu.memory_space<smem>>) attributes {dimension_semantics = [#tpu.dimension_semantics<arbitrary>], iteration_bounds = array<i64: 1>, scalar_prefetch = 0 : i64, scratch_operands = 0 : i64, tpu.core_type = #tpu.core_type<tc>, window_params = [{transform_indices = @transform_0, window_bounds = array<i64: 512, 4>}, {pipeline_mode = #tpu.pipeline_mode<synchronous>, transform_indices = @transform_1, window_bounds = array<i64: 4, 128>}, {pipeline_mode = #tpu.pipeline_mode<synchronous>, transform_indices = @transform_2, window_bounds = array<i64: 1, 128>}, {transform_indices = @transform_3, window_bounds = array<i64: 512, 4>}, {transform_indices = @transform_4, window_bounds = array<i64: 512, 128>}, {transform_indices = @transform_5, window_bounds = array<i64: 3>}]} {
    %c0_i32 = arith.constant 0 : i32
    %0 = arith.cmpi eq, %arg0, %c0_i32 : i32
    %1 = arith.extui %0 : i1 to i32
    %c0_i32_0 = arith.constant 0 : i32
    %2 = arith.cmpi ne, %1, %c0_i32_0 : i32
    scf.if %2 {
      %cst_43 = arith.constant 0.000000e+00 : f32
      %c0_44 = arith.constant 0 : index
      %115 = memref.load %arg6[%c0_44] : memref<3xf32, #tpu.memory_space<smem>>
      memref.store %cst_43, %arg6[%c0_44] : memref<3xf32, #tpu.memory_space<smem>>
      %cst_45 = arith.constant 0.000000e+00 : f32
      %c1_46 = arith.constant 1 : index
      %116 = memref.load %arg6[%c1_46] : memref<3xf32, #tpu.memory_space<smem>>
      memref.store %cst_45, %arg6[%c1_46] : memref<3xf32, #tpu.memory_space<smem>>
      %cst_47 = arith.constant 0.000000e+00 : f32
      %c2_48 = arith.constant 2 : index
      %117 = memref.load %arg6[%c2_48] : memref<3xf32, #tpu.memory_space<smem>>
      memref.store %cst_47, %arg6[%c2_48] : memref<3xf32, #tpu.memory_space<smem>>
    } else {
    }
    %c0 = arith.constant 0 : index
    %c0_1 = arith.constant 0 : index
    %3 = vector.load %arg3[%c0, %c0_1] : memref<1x128xf32, #tpu.memory_space<vmem>>, vector<1x128xf32>
    %4 = vector.shape_cast %3 : vector<1x128xf32> to vector<1x128xf32>
    %5 = vector.broadcast %4 : vector<1x128xf32> to vector<512x128xf32>
    %c0_2 = arith.constant 0 : index
    %c0_3 = arith.constant 0 : index
    %6 = vector.load %arg1[%c0_2, %c0_3] : memref<512x4xbf16, #tpu.memory_space<vmem>>, vector<512x1xbf16>
    %7 = arith.extf %6 : vector<512x1xbf16> to vector<512x1xf32>
    %c0_4 = arith.constant 0 : index
    %c0_5 = arith.constant 0 : index
    %8 = vector.load %arg2[%c0_4, %c0_5] : memref<4x128xbf16, #tpu.memory_space<vmem>>, vector<1x128xbf16>
    %9 = arith.extf %8 : vector<1x128xbf16> to vector<1x128xf32>
    %10 = vector.broadcast %7 : vector<512x1xf32> to vector<512x128xf32>
    %11 = vector.broadcast %9 : vector<1x128xf32> to vector<512x128xf32>
    %12 = arith.mulf %10, %11 : vector<512x128xf32>
    %13 = arith.addf %5, %12 : vector<512x128xf32>
    %c0_6 = arith.constant 0 : index
    %c1 = arith.constant 1 : index
    %14 = vector.load %arg1[%c0_6, %c1] : memref<512x4xbf16, #tpu.memory_space<vmem>>, vector<512x1xbf16>
    %15 = arith.extf %14 : vector<512x1xbf16> to vector<512x1xf32>
    %c1_7 = arith.constant 1 : index
    %c0_8 = arith.constant 0 : index
    %16 = vector.load %arg2[%c1_7, %c0_8] : memref<4x128xbf16, #tpu.memory_space<vmem>>, vector<1x128xbf16>
    %17 = arith.extf %16 : vector<1x128xbf16> to vector<1x128xf32>
    %18 = vector.broadcast %15 : vector<512x1xf32> to vector<512x128xf32>
    %19 = vector.broadcast %17 : vector<1x128xf32> to vector<512x128xf32>
    %20 = arith.mulf %18, %19 : vector<512x128xf32>
    %21 = arith.addf %13, %20 : vector<512x128xf32>
    %c0_9 = arith.constant 0 : index
    %c2 = arith.constant 2 : index
    %22 = vector.load %arg1[%c0_9, %c2] : memref<512x4xbf16, #tpu.memory_space<vmem>>, vector<512x1xbf16>
    %23 = arith.extf %22 : vector<512x1xbf16> to vector<512x1xf32>
    %c2_10 = arith.constant 2 : index
    %c0_11 = arith.constant 0 : index
    %24 = vector.load %arg2[%c2_10, %c0_11] : memref<4x128xbf16, #tpu.memory_space<vmem>>, vector<1x128xbf16>
    %25 = arith.extf %24 : vector<1x128xbf16> to vector<1x128xf32>
    %26 = vector.broadcast %23 : vector<512x1xf32> to vector<512x128xf32>
    %27 = vector.broadcast %25 : vector<1x128xf32> to vector<512x128xf32>
    %28 = arith.mulf %26, %27 : vector<512x128xf32>
    %29 = arith.addf %21, %28 : vector<512x128xf32>
    %c0_12 = arith.constant 0 : index
    %c3 = arith.constant 3 : index
    %30 = vector.load %arg1[%c0_12, %c3] : memref<512x4xbf16, #tpu.memory_space<vmem>>, vector<512x1xbf16>
    %31 = arith.extf %30 : vector<512x1xbf16> to vector<512x1xf32>
    %c3_13 = arith.constant 3 : index
    %c0_14 = arith.constant 0 : index
    %32 = vector.load %arg2[%c3_13, %c0_14] : memref<4x128xbf16, #tpu.memory_space<vmem>>, vector<1x128xbf16>
    %33 = arith.extf %32 : vector<1x128xbf16> to vector<1x128xf32>
    %34 = vector.broadcast %31 : vector<512x1xf32> to vector<512x128xf32>
    %35 = vector.broadcast %33 : vector<1x128xf32> to vector<512x128xf32>
    %36 = arith.mulf %34, %35 : vector<512x128xf32>
    %37 = arith.addf %29, %36 : vector<512x128xf32>
    %38 = arith.truncf %37 : vector<512x128xf32> to vector<512x128xbf16>
    %c0_15 = arith.constant 0 : index
    %c0_16 = arith.constant 0 : index
    %39 = vector.load %arg5[%c0_15, %c0_16] : memref<512x128xbf16, #tpu.memory_space<vmem>>, vector<512x128xbf16>
    tpu.vector_store %arg5[%c0_15, %c0_16], %38 {strides = array<i32>} : memref<512x128xbf16, #tpu.memory_space<vmem>>, vector<512x128xbf16>,
    %40 = vector.extract_strided_slice %37 {offsets = [0, 0], sizes = [512, 4], strides = [1, 1]} : vector<512x128xf32> to vector<512x4xf32>
    %c0_17 = arith.constant 0 : index
    %c0_18 = arith.constant 0 : index
    %41 = vector.load %arg4[%c0_17, %c0_18] : memref<512x4xf32, #tpu.memory_space<vmem>>, vector<512x4xf32>
    %cst = arith.constant 0.000000e+00 : f32
    %42 = vector.broadcast %cst : f32 to vector<512x4xf32>
    %43 = arith.subf %42, %40 : vector<512x4xf32>
    %cst_19 = arith.constant 0.000000e+00 : f32
    %44 = vector.broadcast %cst_19 : f32 to vector<512x4xf32>
    %45 = arith.maximumf %43, %44 : vector<512x4xf32>
    %46 = math.absf %40 : vector<512x4xf32>
    %cst_20 = arith.constant 0.000000e+00 : f32
    %47 = vector.broadcast %cst_20 : f32 to vector<512x4xf32>
    %48 = arith.subf %47, %46 : vector<512x4xf32>
    %49 = math.exp %48 : vector<512x4xf32>
    %50 = math.log1p %49 : vector<512x4xf32>
    %51 = arith.addf %45, %50 : vector<512x4xf32>
    %cst_21 = arith.constant 0.000000e+00 : f32
    %52 = vector.broadcast %cst_21 : f32 to vector<512x4xf32>
    %53 = arith.subf %52, %51 : vector<512x4xf32>
    %cst_22 = arith.constant -9.21034049 : f32
    %cst_23 = arith.constant -1.000050e-04 : f32
    %54 = vector.broadcast %cst_22 : f32 to vector<512x4xf32>
    %55 = arith.maximumf %54, %53 : vector<512x4xf32>
    %56 = vector.broadcast %cst_23 : f32 to vector<512x4xf32>
    %57 = arith.minimumf %56, %55 : vector<512x4xf32>
    %cst_24 = arith.constant 0.000000e+00 : f32
    %58 = vector.broadcast %cst_24 : f32 to vector<512x4xf32>
    %59 = arith.subf %58, %40 : vector<512x4xf32>
    %60 = arith.subf %59, %51 : vector<512x4xf32>
    %cst_25 = arith.constant -9.21034049 : f32
    %cst_26 = arith.constant -1.000050e-04 : f32
    %61 = vector.broadcast %cst_25 : f32 to vector<512x4xf32>
    %62 = arith.maximumf %61, %60 : vector<512x4xf32>
    %63 = vector.broadcast %cst_26 : f32 to vector<512x4xf32>
    %64 = arith.minimumf %63, %62 : vector<512x4xf32>
    %cst_27 = arith.constant 0.000000e+00 : f32
    %65 = vector.broadcast %cst_27 : f32 to vector<512x4xf32>
    %66 = arith.subf %65, %51 : vector<512x4xf32>
    %67 = math.exp %66 : vector<512x4xf32>
    %cst_28 = arith.constant 9.99999974E-5 : f32
    %cst_29 = arith.constant 0.999899983 : f32
    %68 = vector.broadcast %cst_28 : f32 to vector<512x4xf32>
    %69 = arith.maximumf %68, %67 : vector<512x4xf32>
    %70 = vector.broadcast %cst_29 : f32 to vector<512x4xf32>
    %71 = arith.minimumf %70, %69 : vector<512x4xf32>
    %cst_30 = arith.constant 1.000000e+00 : f32
    %72 = vector.broadcast %cst_30 : f32 to vector<512x4xf32>
    %73 = arith.cmpf oeq, %41, %72 : vector<512x4xf32>
    %74 = arith.extui %73 : vector<512x4xi1> to vector<512x4xi32>
    %75 = arith.sitofp %74 : vector<512x4xi32> to vector<512x4xf32>
    %cst_31 = arith.constant 1.000000e+00 : f32
    %76 = vector.broadcast %cst_31 : f32 to vector<512x4xf32>
    %77 = arith.cmpf olt, %41, %76 : vector<512x4xf32>
    %78 = arith.extui %77 : vector<512x4xi1> to vector<512x4xi32>
    %79 = arith.sitofp %78 : vector<512x4xi32> to vector<512x4xf32>
    %cst_32 = arith.constant 1.000000e+00 : f32
    %80 = vector.broadcast %cst_32 : f32 to vector<512x4xf32>
    %81 = arith.subf %80, %41 : vector<512x4xf32>
    %82 = arith.mulf %81, %81 : vector<512x4xf32>
    %83 = arith.mulf %82, %81 : vector<512x4xf32>
    %84 = arith.mulf %83, %81 : vector<512x4xf32>
    %cst_33 = arith.constant 1.000000e+00 : f32
    %85 = vector.broadcast %cst_33 : f32 to vector<512x4xf32>
    %86 = arith.subf %85, %71 : vector<512x4xf32>
    %87 = arith.mulf %86, %86 : vector<512x4xf32>
    %88 = arith.mulf %57, %87 : vector<512x4xf32>
    %89 = arith.mulf %88, %75 : vector<512x4xf32>
    %90 = arith.mulf %71, %71 : vector<512x4xf32>
    %91 = arith.mulf %64, %90 : vector<512x4xf32>
    %92 = arith.mulf %91, %84 : vector<512x4xf32>
    %93 = arith.mulf %92, %79 : vector<512x4xf32>
    %c0_34 = arith.constant 0 : index
    %94 = memref.load %arg6[%c0_34] : memref<3xf32, #tpu.memory_space<smem>>
    %95 = vector.shape_cast %89 : vector<512x4xf32> to vector<1x512x4xf32>
    %cst_35 = arith.constant dense<0.000000e+00> : vector<1xf32>
    %96 = vector.multi_reduction <add>, %95, %cst_35 [1, 2] : vector<1x512x4xf32> to vector<1xf32>
    %97 = vector.shape_cast %96 : vector<1xf32> to vector<1x1x1xf32>
    %98 = vector.extract %97[0, 0, 0] : f32 from vector<1x1x1xf32>
    %99 = arith.addf %94, %98 : f32
    %c0_36 = arith.constant 0 : index
    %100 = memref.load %arg6[%c0_36] : memref<3xf32, #tpu.memory_space<smem>>
    memref.store %99, %arg6[%c0_36] : memref<3xf32, #tpu.memory_space<smem>>
    %c2_37 = arith.constant 2 : index
    %101 = memref.load %arg6[%c2_37] : memref<3xf32, #tpu.memory_space<smem>>
    %102 = vector.shape_cast %75 : vector<512x4xf32> to vector<1x512x4xf32>
    %cst_38 = arith.constant dense<0.000000e+00> : vector<1xf32>
    %103 = vector.multi_reduction <add>, %102, %cst_38 [1, 2] : vector<1x512x4xf32> to vector<1xf32>
    %104 = vector.shape_cast %103 : vector<1xf32> to vector<1x1x1xf32>
    %105 = vector.extract %104[0, 0, 0] : f32 from vector<1x1x1xf32>
    %106 = arith.addf %101, %105 : f32
    %c2_39 = arith.constant 2 : index
    %107 = memref.load %arg6[%c2_39] : memref<3xf32, #tpu.memory_space<smem>>
    memref.store %106, %arg6[%c2_39] : memref<3xf32, #tpu.memory_space<smem>>
    %c1_40 = arith.constant 1 : index
    %108 = memref.load %arg6[%c1_40] : memref<3xf32, #tpu.memory_space<smem>>
    %109 = vector.shape_cast %93 : vector<512x4xf32> to vector<1x512x4xf32>
    %cst_41 = arith.constant dense<0.000000e+00> : vector<1xf32>
    %110 = vector.multi_reduction <add>, %109, %cst_41 [1, 2] : vector<1x512x4xf32> to vector<1xf32>
    %111 = vector.shape_cast %110 : vector<1xf32> to vector<1x1x1xf32>
    %112 = vector.extract %111[0, 0, 0] : f32 from vector<1x1x1xf32>
    %113 = arith.addf %108, %112 : f32
    %c1_42 = arith.constant 1 : index
    %114 = memref.load %arg6[%c1_42] : memref<3xf32, #tpu.memory_space<smem>>
    memref.store %113, %arg6[%c1_42] : memref<3xf32, #tpu.memory_space<smem>>
    return
  }
  func.func @transform_0(%arg0: i32) -> (i32, i32) {
    %c0_i32 = arith.constant 0 : i32
    %c0_i32_0 = arith.constant 0 : i32
    return %arg0, %c0_i32 : i32, i32
  }
  func.func @transform_1(%arg0: i32) -> (i32, i32) {
    %c0_i32 = arith.constant 0 : i32
    %c0_i32_0 = arith.constant 0 : i32
    %c0_i32_1 = arith.constant 0 : i32
    return %c0_i32, %c0_i32_0 : i32, i32
  }
  func.func @transform_2(%arg0: i32) -> (i32, i32) {
    %c0_i32 = arith.constant 0 : i32
    %c0_i32_0 = arith.constant 0 : i32
    %c0_i32_1 = arith.constant 0 : i32
    return %c0_i32, %c0_i32_0 : i32, i32
  }
  func.func @transform_3(%arg0: i32) -> (i32, i32) {
    %c0_i32 = arith.constant 0 : i32
    %c0_i32_0 = arith.constant 0 : i32
    return %arg0, %c0_i32 : i32, i32
  }
  func.func @transform_4(%arg0: i32) -> (i32, i32) {
    %c0_i32 = arith.constant 0 : i32
    %c0_i32_0 = arith.constant 0 : i32
    return %arg0, %c0_i32 : i32, i32
  }
  func.func @transform_5(%arg0: i32) -> i32 {
    %c0_i32 = arith.constant 0 : i32
    %c0_i32_0 = arith.constant 0 : i32
    return %c0_i32 : i32
  }
}

</mosaic_0001>

<bundles_post_ra>
// kernel: tpu_custom_call.1
= control target key start
LH: loop header
LB: loop body
LE: loop exit
PB: predicated region body
PF: predicated region fallthrough
CT: control target
= control target key end

     0   :  { %11 = vsyncpa [#allocation3], 0  ;;  %v6807_v3 = vmov 0   ;;  %s11863_s0 = inlined_call_operand.vmem [shape: bf16[512,4], index: 0, kind: input, shape index: {}]   ;;  %s11864_s1 = inlined_call_operand.vmem [shape: bf16[4,128], index: 1, kind: input, shape index: {}]   ;;  %s11865_s2 = inlined_call_operand.vmem [shape: f32[1,128], index: 2, kind: input, shape index: {}]   ;;  %s11866_s3 = inlined_call_operand.vmem [shape: f32[512,4], index: 3, kind: input, shape index: {}]   ;;  %s11867_s4 = inlined_call_operand.hbm [shape: bf16[512,128], index: 4, kind: output, shape index: {0}]   ;;  %s11868_s5 = inlined_call_operand.hbm [shape: f32[3], index: 5, kind: output, shape index: {1}]  }
   0x1   :  { %v5654_v0 = vld [vmem:[%s11863_s0 + $0x20] sm:$0xff]   ;;  %v5652_v1 = vld [vmem:[%s11863_s0 + $0x10] sm:$0xff]   ;;  %5751 = vset.pattern.permute.xlu2 %v6807_v3  ;;  %5740 = vset.pattern.permute.xlu1 %v6807_v3  ;;  %v5655_v10 = vld [vmem:[%s11863_s0 + $0x28] sm:$0xff]  }
   0x2   :  { %v5364_v2 = vld [vmem:[%s11863_s0] sm:$0xff]   ;;  %v5381_v4 = vunpack.c.l.bf16 %v5654_v0  ;;  %v5382_v5 = vunpack.c.h.bf16 %v5654_v0  ;;  %v5373_v6 = vunpack.c.l.bf16 %v5652_v1  ;;  %v5374_v7 = vunpack.c.h.bf16 %v5652_v1  ;;  %5729 = vset.pattern.permute.xlu0 %v6807_v3  ;;  %v5653_v11 = vld [vmem:[%s11863_s0 + $0x18] sm:$0xff]   ;;  %v5651_v14 = vld [vmem:[%s11863_s0 + $0x8] sm:$0xff]  }
   0x3   :  { %v5365_v8 = vunpack.c.l.bf16 %v5364_v2  ;;  %v5366_v9 = vunpack.c.h.bf16 %v5364_v2  ;;  %v5385_v16 = vunpack.c.l.bf16 %v5655_v10  ;;  %v5386_v17 = vunpack.c.h.bf16 %v5655_v10 }
   0x4   :  { %v6861_v12 = vpack.i.bf16 %v5382_v5, %v5381_v4  ;;  %v6863_v13 = vpack.i.bf16 %v5374_v7, %v5373_v6  ;;  %v5377_v18 = vunpack.c.l.bf16 %v5653_v11  ;;  %v5378_v19 = vunpack.c.h.bf16 %v5653_v11 }
   0x5   :  { %v6868_v15 = vpack.i.bf16 %v5366_v9, %v5365_v8 }
   0x6   :  { %11983 = vst [vmem:[#allocation8_spill] sm:$0xff] %v6861_v12  ;;  %5753 = vperm.xlu2 %5751, %v6861_v12   ;;  %5742 = vperm.xlu1 %5740, %v6863_v13  }
   0x7   :  { %11984 = vst [vmem:[#allocation9_spill] sm:$0xff] %v6863_v13 }
   0x8   :  { %11985 = vst [vmem:[#allocation10_spill] sm:$0xff] %v6868_v15 }
   0x9   :  { %12 = vsyncpa [#allocation4], 0  ;;  %5731 = vperm.xlu0 %5729, %v6868_v15   ;;  %v5369_v20 = vunpack.c.l.bf16 %v5651_v14  ;;  %v5370_v21 = vunpack.c.h.bf16 %v5651_v14  ;;  %v6873_v22 = vpack.i.bf16 %v5386_v17, %v5385_v16  ;;  %v6875_v23 = vpack.i.bf16 %v5378_v19, %v5377_v18  ;;  %v5658_v25 = vld [vmem:[%s11863_s0 + $0x40] sm:$0xff]   ;;  %v5657_v26 = vld [vmem:[%s11863_s0 + $0x38] sm:$0xff]   ;;  %s5206_s29 = sshll.u32 %s11867_s4, 4  ;;  %s6812_s30 = smov [#allocation2]   ;;  %s5207_s29 = int_to_ptr.hbm [resolvable:$true] %s5206_s29 }
   0xa   :  { %v5656_v27 = vld [vmem:[%s11863_s0 + $0x30] sm:$0xff]   ;;  %v5397_v28 = vunpack.c.l.bf16 %v5658_v25  ;;  %v5398_v29 = vunpack.c.h.bf16 %v5658_v25  ;;  %v5393_v30 = vunpack.c.l.bf16 %v5657_v26  ;;  %v5394_v31 = vunpack.c.h.bf16 %v5657_v26  ;;  %v5661_v37 = vld [vmem:[%s11863_s0 + $0x58] sm:$0xff]   ;;  %v5659_v39 = vld [vmem:[%s11863_s0 + $0x48] sm:$0xff]   ;;  %s5204_s6 = sshll.u32 %s6812_s30, 4  ;;  %s6814_s7 = smov 4   ;;  %s5205_s6 = int_to_ptr.vmem [resolvable:$true] %s5204_s6 }
   0xb   :  { %11986 = vst [vmem:[#allocation11_spill] sm:$0xff] %v6873_v22  ;;  %v6877_v24 = vpack.i.bf16 %v5370_v21, %v5369_v20  ;;  %v5389_v32 = vunpack.c.l.bf16 %v5656_v27  ;;  %v5390_v33 = vunpack.c.h.bf16 %v5656_v27  ;;  %v5660_v38 = vld [vmem:[%s11863_s0 + $0x50] sm:$0xff]   ;;  %v5409_v40 = vunpack.c.l.bf16 %v5661_v37  ;;  %v5663_v50 = vld [vmem:[%s11863_s0 + $0x68] sm:$0xff]   ;;  %v5662_v51 = vld [vmem:[%s11863_s0 + $0x60] sm:$0xff]   ;;  %s5218_s10 = sshll.u32 %s11868_s5, 4  ;;  %s6815_s12 = smov [#allocation5]   ;;  %s5219_s10 = int_to_ptr.hbm [resolvable:$true] %s5218_s10 }
   0xc   :  { %11987 = vst [vmem:[#allocation12_spill] sm:$0xff] %v6875_v23  ;;  %v6891_v34 = vpack.i.bf16 %v5398_v29, %v5397_v28  ;;  %v6893_v35 = vpack.i.bf16 %v5394_v31, %v5393_v30  ;;  %v5410_v41 = vunpack.c.h.bf16 %v5661_v37  ;;  %v5405_v42 = vunpack.c.l.bf16 %v5660_v38  ;;  %v5664_v49 = vld [vmem:[%s11863_s0 + $0x70] sm:$0xff]   ;;  %v5667_v61 = vld [vmem:[%s11863_s0 + $0x88] sm:$0xff]   ;;  %v5666_v62 = vld [vmem:[%s11863_s0 + $0x80] sm:$0xff]  }
   0xd   :  { %11988 = vst [vmem:[#allocation13_spill] sm:$0xff] %v6877_v24  ;;  %v6895_v36 = vpack.i.bf16 %v5390_v33, %v5389_v32  ;;  %v5406_v43 = vunpack.c.h.bf16 %v5660_v38  ;;  %v5401_v44 = vunpack.c.l.bf16 %v5659_v39  ;;  %v5402_v45 = vunpack.c.h.bf16 %v5659_v39  ;;  %v5665_v63 = vld [vmem:[%s11863_s0 + $0x78] sm:$0xff]   ;;  %v5670_v9 = vld [vmem:[%s11863_s0 + $0xa0] sm:$0xff]   ;;  %v5668_v11 = vld [vmem:[%s11863_s0 + $0x90] sm:$0xff]  }
   0xe   :  { %5758 = vperm.xlu2 %5751, %v6873_v22   ;;  %5747 = vperm.xlu1 %5740, %v6875_v23   ;;  %11989 = vst [vmem:[#allocation14_spill] sm:$0xff] %v6891_v34  ;;  %v6909_v46 = vpack.i.bf16 %v5410_v41, %v5409_v40  ;;  %v5421_v52 = vunpack.c.l.bf16 %v5664_v49  ;;  %v5422_v53 = vunpack.c.h.bf16 %v5664_v49  ;;  %v5417_v54 = vunpack.c.l.bf16 %v5663_v50  ;;  %v5669_v10 = vld [vmem:[%s11863_s0 + $0x98] sm:$0xff]   ;;  %v5672_v28 = vld [vmem:[%s11863_s0 + $0xb0] sm:$0xff]   ;;  %v5671_v29 = vld [vmem:[%s11863_s0 + $0xa8] sm:$0xff]  }
   0xf   :  { %11990 = vst [vmem:[#allocation15_spill] sm:$0xff] %v6893_v35  ;;  %v6911_v47 = vpack.i.bf16 %v5406_v43, %v5405_v42  ;;  %v6913_v48 = vpack.i.bf16 %v5402_v45, %v5401_v44  ;;  %v5418_v55 = vunpack.c.h.bf16 %v5663_v50  ;;  %v5413_v56 = vunpack.c.l.bf16 %v5662_v51  ;;  %v5673_v27 = vld [vmem:[%s11863_s0 + $0xb8] sm:$0xff]   ;;  %v5676_v42 = vld [vmem:[%s11863_s0 + $0xd0] sm:$0xff]   ;;  %v5675_v43 = vld [vmem:[%s11863_s0 + $0xc8] sm:$0xff]  }
  0x10   :  { %11991 = vst [vmem:[#allocation16_spill] sm:$0xff] %v6895_v36  ;;  %v5414_v57 = vunpack.c.h.bf16 %v5662_v51  ;;  %v6927_v58 = vpack.i.bf16 %v5422_v53, %v5421_v52  ;;  %v5433_v0 = vunpack.c.l.bf16 %v5667_v61  ;;  %v5434_v1 = vunpack.c.h.bf16 %v5667_v61  ;;  %v5674_v44 = vld [vmem:[%s11863_s0 + $0xc0] sm:$0xff]  }
  0x11   :  { %5736 = vperm.xlu0 %5729, %v6877_v24   ;;  %11992 = vst [vmem:[#allocation17_spill] sm:$0xff] %v6909_v46  ;;  %v6929_v59 = vpack.i.bf16 %v5418_v55, %v5417_v54  ;;  %v5429_v2 = vunpack.c.l.bf16 %v5666_v62  ;;  %v5430_v3 = vunpack.c.h.bf16 %v5666_v62  ;;  %v5425_v4 = vunpack.c.l.bf16 %v5665_v63  ;;  %v5678_v61 = vld [vmem:[%s11863_s0 + $0xe0] sm:$0xff]   ;;  %v5677_v62 = vld [vmem:[%s11863_s0 + $0xd8] sm:$0xff]  }
  0x12   :  { %11993 = vst [vmem:[#allocation18_spill] sm:$0xff] %v6911_v47  ;;  %v6931_v60 = vpack.i.bf16 %v5414_v57, %v5413_v56  ;;  %v5426_v5 = vunpack.c.h.bf16 %v5665_v63  ;;  %v6945_v6 = vpack.i.bf16 %v5434_v1, %v5433_v0  ;;  %v5445_v14 = vunpack.c.l.bf16 %v5670_v9  ;;  %v5679_v57 = vld [vmem:[%s11863_s0 + $0xe8] sm:$0xff]  }
  0x13   :  { %11994 = vst [vmem:[#allocation19_spill] sm:$0xff] %v6913_v48  ;;  %v6947_v7 = vpack.i.bf16 %v5430_v3, %v5429_v2  ;;  %v5446_v16 = vunpack.c.h.bf16 %v5670_v9  ;;  %v5441_v17 = vunpack.c.l.bf16 %v5669_v10  ;;  %v5442_v18 = vunpack.c.h.bf16 %v5669_v10 }
  0x14   :  { %11995 = vst [vmem:[#allocation20_spill] sm:$0xff] %v6927_v58  ;;  %v6949_v8 = vpack.i.bf16 %v5426_v5, %v5425_v4  ;;  %v5437_v19 = vunpack.c.l.bf16 %v5668_v11  ;;  %v5438_v20 = vunpack.c.h.bf16 %v5668_v11  ;;  %v5457_v30 = vunpack.c.l.bf16 %v5673_v27  ;;  %v5681_v11 = vld [vmem:[%s11863_s0 + $0xf8] sm:$0xff]  }
  0x15   :  { %11996 = vst [vmem:[#allocation21_spill] sm:$0xff] %v6929_v59  ;;  %v6963_v21 = vpack.i.bf16 %v5446_v16, %v5445_v14  ;;  %v6965_v25 = vpack.i.bf16 %v5442_v18, %v5441_v17  ;;  %v5458_v31 = vunpack.c.h.bf16 %v5673_v27  ;;  %v5453_v32 = vunpack.c.l.bf16 %v5672_v28  ;;  %v5680_v14 = vld [vmem:[%s11863_s0 + $0xf0] sm:$0xff]   ;;  %s6813_s0 = smov 64  }
  0x16   :  { %5773 = vperm.xlu2 %5751, %v6891_v34   ;;  %5768 = vperm.xlu1 %5740, %v6893_v35   ;;  %11997 = vst [vmem:[#allocation22_spill] sm:$0xff] %v6931_v60  ;;  %v6967_v26 = vpack.i.bf16 %v5438_v20, %v5437_v19  ;;  %v5454_v33 = vunpack.c.h.bf16 %v5672_v28  ;;  %v5449_v37 = vunpack.c.l.bf16 %v5671_v29  ;;  %v5450_v38 = vunpack.c.h.bf16 %v5671_v29 }
  0x17   :  { %11998 = vst [vmem:[#allocation23_spill] sm:$0xff] %v6945_v6  ;;  %v6981_v39 = vpack.i.bf16 %v5458_v31, %v5457_v30  ;;  %v5469_v45 = vunpack.c.l.bf16 %v5676_v42  ;;  %v5470_v49 = vunpack.c.h.bf16 %v5676_v42  ;;  %v5465_v50 = vunpack.c.l.bf16 %v5675_v43 }
  0x18   :  { %11999 = vst [vmem:[#allocation24_spill] sm:$0xff] %v6949_v8  ;;  %v6983_v40 = vpack.i.bf16 %v5454_v33, %v5453_v32  ;;  %v6985_v41 = vpack.i.bf16 %v5450_v38, %v5449_v37  ;;  %v5466_v51 = vunpack.c.h.bf16 %v5675_v43  ;;  %v5461_v52 = vunpack.c.l.bf16 %v5674_v44 }
  0x19   :  { %5763 = vperm.xlu0 %5729, %v6895_v36   ;;  %12000 = vst [vmem:[#allocation25_spill] sm:$0xff] %v6963_v21  ;;  %v5462_v53 = vunpack.c.h.bf16 %v5674_v44  ;;  %v6999_v54 = vpack.i.bf16 %v5470_v49, %v5469_v45  ;;  %v5481_v63 = vunpack.c.l.bf16 %v5679_v57  ;;  %v5482_v0 = vunpack.c.h.bf16 %v5679_v57 }
  0x1a   :  { %12001 = vst [vmem:[#allocation26_spill] sm:$0xff] %v6965_v25  ;;  %v7001_v55 = vpack.i.bf16 %v5466_v51, %v5465_v50  ;;  %v5477_v1 = vunpack.c.l.bf16 %v5678_v61  ;;  %v5478_v2 = vunpack.c.h.bf16 %v5678_v61  ;;  %v5473_v3 = vunpack.c.l.bf16 %v5677_v62 }
  0x1b   :  { %12002 = vst [vmem:[#allocation27_spill] sm:$0xff] %v6981_v39  ;;  %v7003_v56 = vpack.i.bf16 %v5462_v53, %v5461_v52  ;;  %v5474_v4 = vunpack.c.h.bf16 %v5677_v62  ;;  %v7017_v5 = vpack.i.bf16 %v5482_v0, %v5481_v63  ;;  %v5489_v16 = vunpack.c.l.bf16 %v5681_v11 }
  0x1c   :  { %12003 = vst [vmem:[#allocation28_spill] sm:$0xff] %v6983_v40  ;;  %v7019_v9 = vpack.i.bf16 %v5478_v2, %v5477_v1  ;;  %v5490_v17 = vunpack.c.h.bf16 %v5681_v11  ;;  %v5485_v18 = vunpack.c.l.bf16 %v5680_v14  ;;  %v5486_v19 = vunpack.c.h.bf16 %v5680_v14  ;;  %v163_v1 = vld [vmem:[%s11864_s1] sm:$0x1] }
  0x1d   :  { %12004 = vst [vmem:[#allocation29_spill] sm:$0xff] %v6999_v54  ;;  %v7021_v10 = vpack.i.bf16 %v5474_v4, %v5473_v3  ;;  %v6808_v28 = vmov 1   ;;  %v164_v2 = vunpack.c.l.bf16 %v163_v1  ;;  %vm4780_vm6 = vcmask 31744  }
  0x1e   :  { %5788 = vperm.xlu2 %5751, %v6909_v46   ;;  %5783 = vperm.xlu1 %5740, %v6911_v47   ;;  %12005 = vst [vmem:[#allocation30_spill] sm:$0xff] %v7001_v55  ;;  %v7032_v20 = vpack.i.bf16 %v5490_v17, %v5489_v16  ;;  %v7034_v27 = vpack.i.bf16 %v5486_v19, %v5485_v18 }
  0x1f   :  { %12006 = vst [vmem:[#allocation31_spill] sm:$0xff] %v7003_v56  ;;  %v7118_v17 = vperm.slane %v164_v2, 0 }
  0x20   :  { %12007 = vst [vmem:[#allocation32_spill] sm:$0xff] %v7017_v5 }
  0x21   :  { %5778 = vperm.xlu0 %5729, %v6913_v48   ;;  %12008 = vst [vmem:[#allocation33_spill] sm:$0xff] %v7019_v9 }
  0x22   :  { %12009 = vst [vmem:[#allocation34_spill] sm:$0xff] %v7021_v10 }
  0x23   :  { %12010 = vst [vmem:[#allocation35_spill] sm:$0xff] %v7032_v20 }
  0x24   :  { %12011 = vst [vmem:[#allocation36_spill] sm:$0xff] %v7034_v27 }
  0x26   :  { %5803 = vperm.xlu2 %5751, %v6927_v58   ;;  %5798 = vperm.xlu1 %5740, %v6929_v59  }
  0x29   :  { %5793 = vperm.xlu0 %5729, %v6931_v60  }
  0x2e   :  { %5818 = vperm.xlu2 %5751, %v6945_v6   ;;  %5813 = vperm.xlu1 %5740, %v6947_v7  }
  0x31   :  { %5808 = vperm.xlu0 %5729, %v6949_v8  }
  0x36   :  { %5833 = vperm.xlu2 %5751, %v6963_v21   ;;  %5828 = vperm.xlu1 %5740, %v6965_v25  }
  0x39   :  { %5823 = vperm.xlu0 %5729, %v6967_v26  }
  0x3e   :  { %5848 = vperm.xlu2 %5751, %v6981_v39   ;;  %5843 = vperm.xlu1 %5740, %v6983_v40  }
  0x41   :  { %5838 = vperm.xlu0 %5729, %v6985_v41  }
  0x46   :  { %5863 = vperm.xlu2 %5751, %v6999_v54   ;;  %5858 = vperm.xlu1 %5740, %v7001_v55  }
  0x49   :  { %5853 = vperm.xlu0 %5729, %v7003_v56  }
  0x4e   :  { %5878 = vperm.xlu2 %5751, %v7017_v5   ;;  %5873 = vperm.xlu1 %5740, %v7019_v9  }
  0x51   :  { %5868 = vperm.xlu0 %5729, %v7021_v10  }
  0x56   :  { %5892 = vset.pattern.permute.xlu2 %v6808_v28  ;;  %5888 = vperm.xlu1 %5740, %v7032_v20  }
  0x57   :  { %5894 = vperm.xlu2 %5892, %v6868_v15  }
  0x59   :  { %5883 = vperm.xlu0 %5729, %v7034_v27  }
  0x5e   :  { %5904 = vset.pattern.permute.xlu1 %v6808_v28 }
  0x5f   :  { %5906 = vperm.xlu1 %5904, %v6863_v13   ;;  %5911 = vperm.xlu2 %5892, %v6875_v23  }
  0x60   :  { %v7042_v29 = vpop.permute.xlu2 %5753 }
  0x61   :  { %5898 = vset.pattern.permute.xlu0 %v6808_v28  ;;  %v5756_v18 = vunpack.i.h.bf16 %v7042_v29  ;;  %v5755_v19 = vunpack.i.l.bf16 %v7042_v29  ;;  %v7134_v29 = vld [vmem:[%s11865_s2] ss:$0 sm:$0xff] }
  0x62   :  { %5900 = vperm.xlu0 %5898, %v6877_v24  }
  0x67   :  { %5916 = vperm.xlu1 %5904, %v6861_v12   ;;  %5921 = vperm.xlu2 %5892, %v6873_v22  }
  0x68   :  { %v7047_v30 = vpop.permute.xlu2 %5758 }
  0x69   :  { %v5760_v28 = vunpack.i.l.bf16 %v7047_v30 }
  0x6a   :  { %5926 = vperm.xlu0 %5898, %v6895_v36  }
  0x6f   :  { %5931 = vperm.xlu1 %5904, %v6893_v35   ;;  %5936 = vperm.xlu2 %5892, %v6891_v34  }
  0x70   :  { %v7052_v31 = vpop.permute.xlu2 %5773 }
  0x72   :  { %5941 = vperm.xlu0 %5898, %v6913_v48  }
  0x77   :  { %5946 = vperm.xlu1 %5904, %v6911_v47   ;;  %5951 = vperm.xlu2 %5892, %v6909_v46  }
  0x78   :  { %v7057_v32 = vpop.permute.xlu2 %5788  ;;  %v7059_v33 = vpop.permute.xlu1 %5742 }
  0x7a   :  { %5956 = vperm.xlu0 %5898, %v6931_v60  }
  0x7b   :  { %v5732_v37 = vpop.permute.xlu0 %5731 }
  0x7c   :  { %v5734_v14 = vunpack.i.h.bf16 %v5732_v37  ;;  %v5733_v16 = vunpack.i.l.bf16 %v5732_v37  ;;  %v7128_v37 = vperm.slane %v164_v2, 1  ;;  %v496_v2 = vmul.f32 %v5760_v28, %v7118_v17 }
  0x7d   :  { %v5791_v28 = vunpack.i.h.bf16 %v7057_v32 }
  0x7e   :  { %v487_v1 = vmul.f32 %v5734_v14, %v7118_v17  ;;  %v494_v14 = vmul.f32 %v5755_v19, %v7118_v17 }
  0x7f   :  { %5961 = vperm.xlu1 %5904, %v6929_v59   ;;  %5966 = vperm.xlu2 %5892, %v6927_v58  }
  0x80   :  { %v7064_v38 = vpop.permute.xlu2 %5803  ;;  %v7066_v42 = vpop.permute.xlu1 %5747 }
  0x81   :  { %v5750_v19 = vunpack.i.h.bf16 %v7066_v42 }
  0x82   :  { %5971 = vperm.xlu0 %5898, %v6949_v8  }
  0x83   :  { %v7068_v43 = vpop.permute.xlu0 %5736 }
  0x87   :  { %5976 = vperm.xlu1 %5904, %v6947_v7   ;;  %5981 = vperm.xlu2 %5892, %v6945_v6  }
  0x88   :  { %v7073_v44 = vpop.permute.xlu2 %5818  ;;  %v7075_v45 = vpop.permute.xlu1 %5768 }
  0x8a   :  { %5986 = vperm.xlu0 %5898, %v6967_v26  }
  0x8b   :  { %v7077_v49 = vpop.permute.xlu0 %5763 }
  0x8f   :  { %5991 = vperm.xlu1 %5904, %v6965_v25   ;;  %5996 = vperm.xlu2 %5892, %v6963_v21  }
  0x90   :  { %v7082_v50 = vpop.permute.xlu2 %5833  ;;  %v7084_v51 = vpop.permute.xlu1 %5783 }
  0x92   :  { %6001 = vperm.xlu0 %5898, %v6985_v41  }
  0x93   :  { %v7086_v52 = vpop.permute.xlu0 %5778 }
  0x97   :  { %6006 = vperm.xlu1 %5904, %v6983_v40   ;;  %6011 = vperm.xlu2 %5892, %v6981_v39   ;;  %v551_v40 = vadd.f32 %v7134_v29, %v487_v1  ;;  %v5744_v1 = vunpack.i.l.bf16 %v7059_v33 }
  0x98   :  { %v7091_v53 = vpop.permute.xlu2 %5848  ;;  %v7093_v57 = vpop.permute.xlu1 %5798 }
  0x9a   :  { %6016 = vperm.xlu0 %5898, %v7003_v56   ;;  %v5745_v56 = vunpack.i.h.bf16 %v7059_v33 }
  0x9b   :  { %v7095_v61 = vpop.permute.xlu0 %5793 }
  0x9f   :  { %6021 = vperm.xlu1 %5904, %v7001_v55   ;;  %6026 = vperm.xlu2 %5892, %v6999_v54   ;;  %v495_v54 = vmul.f32 %v5756_v18, %v7118_v17 }
  0xa0   :  { %v7100_v62 = vpop.permute.xlu2 %5863  ;;  %v7102_v63 = vpop.permute.xlu1 %5813 }
  0xa2   :  { %6031 = vperm.xlu0 %5898, %v7021_v10   ;;  %v5776_v10 = vunpack.i.h.bf16 %v7052_v31 }
  0xa3   :  { %v7104_v0 = vpop.permute.xlu0 %5808 }
  0xa7   :  { %6036 = vperm.xlu1 %5904, %v7019_v9   ;;  %6041 = vperm.xlu2 %5892, %v7017_v5   ;;  %v486_v5 = vmul.f32 %v5733_v16, %v7118_v17  ;;  %v6809_v9 = vmov 2  }
  0xa8   :  { %v7112_v3 = vpop.permute.xlu2 %5878  ;;  %v7114_v4 = vpop.permute.xlu1 %5828 }
  0xa9   :  { %v550_v39 = vadd.f32 %v7134_v29, %v486_v5 }
  0xaa   :  { %6046 = vperm.xlu0 %5898, %v7034_v27  }
  0xab   :  { %v7116_v11 = vpop.permute.xlu0 %5823 }
  0xaf   :  { %6051 = vperm.xlu1 %5904, %v7032_v20   ;;  %6055 = vset.pattern.permute.xlu2 %v6809_v9 }
  0xb0   :  { %v7126_v27 = vpop.permute.xlu1 %5843  ;;  %6057 = vperm.xlu2 %6055, %v6868_v15   ;;  %v5749_v15 = vunpack.i.l.bf16 %v7066_v42  ;;  %v7160_v42 = vadd.f32 %v7134_v29, %v494_v14  ;;  %v491_v14 = vmul.f32 %v5745_v56, %v7118_v17 }
  0xb1   :  { %12012 = vst [vmem:[#allocation37_spill] sm:$0xff] %v7126_v27  ;;  %v5895_v20 = vpop.permute.xlu2 %5894  ;;  %v5761_v27 = vunpack.i.h.bf16 %v7047_v30  ;;  %v5775_v30 = vunpack.i.l.bf16 %v7052_v31  ;;  %v493_v31 = vmul.f32 %v5750_v19, %v7118_v17 }
  0xb2   :  { %6061 = vset.pattern.permute.xlu0 %v6809_v9  ;;  %v5897_v55 = vunpack.i.h.bf16 %v5895_v20  ;;  %v5896_v18 = vunpack.i.l.bf16 %v5895_v20  ;;  %v5790_v20 = vunpack.i.l.bf16 %v7057_v32 }
  0xb3   :  { %6063 = vperm.xlu0 %6061, %v6877_v24   ;;  %v7139_v16 = vpop.permute.xlu0 %5838 }
  0xb4   :  { %12013 = vst [vmem:[#allocation38_spill] sm:$0xff] %v7139_v16  ;;  %v872_v24 = vmul.f32 %v5897_v55, %v7128_v37  ;;  %v871_v16 = vmul.f32 %v5896_v18, %v7128_v37  ;;  %v7163_v55 = vadd.f32 %v7134_v29, %v495_v54  ;;  %v492_v18 = vmul.f32 %v5749_v15, %v7118_v17 }
  0xb5   :  { %v509_v15 = vmul.f32 %v5791_v28, %v7118_v17  ;;  %v508_v33 = vmul.f32 %v5790_v20, %v7118_v17 }
  0xb6   :  { %v7154_v21 = vadd.f32 %v871_v16, %v550_v39  ;;  %v7156_v5 = vadd.f32 %v872_v24, %v551_v40  ;;  %v497_v24 = vmul.f32 %v5761_v27, %v7118_v17  ;;  %v560_v39 = vadd.f32 %v7134_v29, %v496_v2 }
  0xb7   :  { %6067 = vset.pattern.permute.xlu1 %v6809_v9  ;;  %v503_v40 = vmul.f32 %v5776_v10, %v7118_v17  ;;  %v502_v9 = vmul.f32 %v5775_v30, %v7118_v17  ;;  %v490_v27 = vmul.f32 %v5744_v1, %v7118_v17  ;;  %v5805_v2 = vunpack.i.l.bf16 %v7064_v38 }
  0xb8   :  { %12014 = vst [vmem:[#allocation39_spill] sm:$0xff] %v7154_v21  ;;  %6069 = vperm.xlu1 %6067, %v6863_v13   ;;  %v7168_v32 = vpop.permute.xlu1 %5858  ;;  %6074 = vperm.xlu2 %6055, %v6875_v23   ;;  %v5806_v23 = vunpack.i.h.bf16 %v7064_v38  ;;  %v556_v13 = vadd.f32 %v7134_v29, %v492_v18  ;;  %v561_v20 = vadd.f32 %v7134_v29, %v497_v24  ;;  %v5739_v1 = vunpack.i.h.bf16 %v7068_v43 }
  0xb9   :  { %12015 = vst [vmem:[#allocation40_spill] sm:$0xff] %v7156_v5  ;;  %v5912_v16 = vpop.permute.xlu2 %5911  ;;  %v557_v5 = vadd.f32 %v7134_v29, %v493_v31  ;;  %v7190_v56 = vadd.f32 %v7134_v29, %v502_v9  ;;  %v5738_v21 = vunpack.i.l.bf16 %v7068_v43  ;;  %v514_v38 = vmul.f32 %v5805_v2, %v7118_v17 }
  0xba   :  { %v5914_v10 = vunpack.i.h.bf16 %v5912_v16  ;;  %v5913_v19 = vunpack.i.l.bf16 %v5912_v16  ;;  %v7195_v16 = vadd.f32 %v7134_v29, %v503_v40  ;;  %v7206_v24 = vadd.f32 %v7134_v29, %v509_v15 }
  0xbb   :  { %6089 = vperm.xlu0 %6061, %v6895_v36   ;;  %v7175_v54 = vpop.permute.xlu0 %5853  ;;  %v5821_v9 = vunpack.i.h.bf16 %v7073_v44  ;;  %v7214_v40 = vadd.f32 %v7134_v29, %v490_v27  ;;  %v5771_v2 = vunpack.i.h.bf16 %v7075_v45  ;;  %v5770_v27 = vunpack.i.l.bf16 %v7075_v45 }
  0xbc   :  { %v878_v30 = vmul.f32 %v5914_v10, %v7128_v37  ;;  %v877_v28 = vmul.f32 %v5913_v19, %v7128_v37  ;;  %v7203_v10 = vadd.f32 %v7134_v29, %v508_v33  ;;  %v5820_v19 = vunpack.i.l.bf16 %v7073_v44 }
  0xbd   :  { %v489_v44 = vmul.f32 %v5739_v1, %v7118_v17  ;;  %v488_v33 = vmul.f32 %v5738_v21, %v7118_v17  ;;  %v5765_v1 = vunpack.i.l.bf16 %v7077_v49 }
  0xbe   :  { %v7198_v18 = vadd.f32 %v877_v28, %v556_v13  ;;  %v7200_v31 = vadd.f32 %v878_v30, %v557_v5  ;;  %v7217_v13 = vadd.f32 %v7134_v29, %v491_v14  ;;  %v515_v5 = vmul.f32 %v5806_v23, %v7118_v17 }
  0xbf   :  { %v7229_v14 = vadd.f32 %v7134_v29, %v514_v38  ;;  %v5766_v23 = vunpack.i.h.bf16 %v7077_v49  ;;  %v7241_v38 = vadd.f32 %v7134_v29, %v488_v33  ;;  %v5786_v33 = vunpack.i.h.bf16 %v7084_v51 }
  0xc0   :  { %12016 = vst [vmem:[#allocation41_spill] sm:$0xff] %v7198_v18  ;;  %6079 = vperm.xlu1 %6067, %v6861_v12   ;;  %v7211_v43 = vpop.permute.xlu1 %5873  ;;  %6084 = vperm.xlu2 %6055, %v6873_v22   ;;  %v521_v12 = vmul.f32 %v5821_v9, %v7118_v17  ;;  %v7238_v45 = vadd.f32 %v7134_v29, %v515_v5  ;;  %v5836_v9 = vunpack.i.h.bf16 %v7082_v50 }
  0xc1   :  { %12017 = vst [vmem:[#allocation42_spill] sm:$0xff] %v7200_v31  ;;  %v5922_v30 = vpop.permute.xlu2 %5921  ;;  %v520_v31 = vmul.f32 %v5820_v19, %v7118_v17  ;;  %v5835_v19 = vunpack.i.l.bf16 %v7082_v50  ;;  %v499_v5 = vmul.f32 %v5766_v23, %v7118_v17 }
  0xc2   :  { %v5924_v28 = vunpack.i.h.bf16 %v5922_v30  ;;  %v5923_v22 = vunpack.i.l.bf16 %v5922_v30  ;;  %v500_v30 = vmul.f32 %v5770_v27, %v7118_v17  ;;  %v7264_v50 = vadd.f32 %v7134_v29, %v521_v12 }
  0xc3   :  { %6104 = vperm.xlu0 %6061, %v6913_v48   ;;  %v7222_v15 = vpop.permute.xlu0 %5868  ;;  %v501_v48 = vmul.f32 %v5771_v2, %v7118_v17  ;;  %v7261_v27 = vadd.f32 %v7134_v29, %v520_v31  ;;  %v5781_v31 = vunpack.i.h.bf16 %v7086_v52  ;;  %v527_v23 = vmul.f32 %v5836_v9, %v7118_v17 }
  0xc4   :  { %v882_v21 = vmul.f32 %v5924_v28, %v7128_v37  ;;  %v881_v18 = vmul.f32 %v5923_v22, %v7128_v37  ;;  %v7252_v22 = vadd.f32 %v7134_v29, %v489_v44  ;;  %v5785_v28 = vunpack.i.l.bf16 %v7084_v51 }
  0xc5   :  { %v7272_v51 = vadd.f32 %v7134_v29, %v500_v30  ;;  %v5780_v44 = vunpack.i.l.bf16 %v7086_v52  ;;  %v5851_v30 = vunpack.i.h.bf16 %v7091_v53  ;;  %v7290_v52 = vadd.f32 %v7134_v29, %v499_v5 }
  0xc6   :  { %v7247_v36 = vadd.f32 %v881_v18, %v560_v39  ;;  %v7249_v49 = vadd.f32 %v882_v21, %v561_v20  ;;  %v498_v39 = vmul.f32 %v5765_v1, %v7118_v17  ;;  %v7275_v18 = vadd.f32 %v7134_v29, %v501_v48 }
  0xc7   :  { %v526_v1 = vmul.f32 %v5835_v19, %v7118_v17  ;;  %v505_v9 = vmul.f32 %v5781_v31, %v7118_v17  ;;  %v5850_v19 = vunpack.i.l.bf16 %v7091_v53  ;;  %v5801_v53 = vunpack.i.h.bf16 %v7093_v57 }
  0xc8   :  { %12018 = vst [vmem:[#allocation43_spill] sm:$0xff] %v7247_v36  ;;  %6094 = vperm.xlu1 %6067, %v6893_v35   ;;  %v7258_v2 = vpop.permute.xlu1 %5888  ;;  %6099 = vperm.xlu2 %6055, %v6891_v34   ;;  %v507_v35 = vmul.f32 %v5786_v33, %v7118_v17 }
  0xc9   :  { %12019 = vst [vmem:[#allocation44_spill] sm:$0xff] %v7249_v49  ;;  %v5937_v12 = vpop.permute.xlu2 %5936  ;;  %v506_v49 = vmul.f32 %v5785_v28, %v7118_v17  ;;  %v7295_v33 = vadd.f32 %v7134_v29, %v526_v1  ;;  %v504_v28 = vmul.f32 %v5780_v44, %v7118_v17  ;;  %v533_v44 = vmul.f32 %v5851_v30, %v7118_v17 }
  0xca   :  { %12020 = vst [vmem:[#allocation45_spill] sm:$0xff] %v7258_v2  ;;  %v5939_v21 = vunpack.i.h.bf16 %v5937_v12  ;;  %v5938_v34 = vunpack.i.l.bf16 %v5937_v12  ;;  %v7311_v31 = vadd.f32 %v7134_v29, %v507_v35  ;;  %v532_v35 = vmul.f32 %v5850_v19, %v7118_v17 }
  0xcb   :  { %6119 = vperm.xlu0 %6061, %v6931_v60   ;;  %v7269_v20 = vpop.permute.xlu0 %5883  ;;  %v7287_v60 = vadd.f32 %v7134_v29, %v498_v39  ;;  %v7305_v39 = vadd.f32 %v7134_v29, %v527_v23  ;;  %v7308_v5 = vadd.f32 %v7134_v29, %v506_v49 }
  0xcc   :  { %12021 = vst [vmem:[#allocation46_spill] sm:$0xff] %v7269_v20  ;;  %v888_v48 = vmul.f32 %v5939_v21, %v7128_v37  ;;  %v887_v36 = vmul.f32 %v5938_v34, %v7128_v37  ;;  %v7332_v20 = vadd.f32 %v7134_v29, %v505_v9  ;;  %v513_v9 = vmul.f32 %v5801_v53, %v7118_v17 }
  0xce   :  { %v7299_v12 = vadd.f32 %v887_v36, %v7190_v56  ;;  %v7302_v34 = vadd.f32 %v888_v48, %v7195_v16  ;;  %v5800_v36 = vunpack.i.l.bf16 %v7093_v57  ;;  %v5796_v56 = vunpack.i.h.bf16 %v7095_v61 }
  0xcf   :  { %v5795_v16 = vunpack.i.l.bf16 %v7095_v61 }
  0xd0   :  { %12022 = vst [vmem:[#allocation47_spill] sm:$0xff] %v7299_v12  ;;  %6109 = vperm.xlu1 %6067, %v6911_v47   ;;  %6114 = vperm.xlu2 %6055, %v6909_v46  }
  0xd1   :  { %12023 = vst [vmem:[#allocation48_spill] sm:$0xff] %v7302_v34  ;;  %v5907_v49 = vpop.permute.xlu1 %5906  ;;  %v5952_v21 = vpop.permute.xlu2 %5951 }
  0xd2   :  { %v5909_v23 = vunpack.i.h.bf16 %v5907_v49  ;;  %v5908_v1 = vunpack.i.l.bf16 %v5907_v49  ;;  %v5954_v47 = vunpack.i.h.bf16 %v5952_v21  ;;  %v5953_v34 = vunpack.i.l.bf16 %v5952_v21 }
  0xd3   :  { %6134 = vperm.xlu0 %6061, %v6949_v8   ;;  %v7329_v49 = vadd.f32 %v7134_v29, %v504_v28 }
  0xd4   :  { %v5901_v48 = vpop.permute.xlu0 %5900  ;;  %v876_v57 = vmul.f32 %v5909_v23, %v7128_v37  ;;  %v875_v2 = vmul.f32 %v5908_v1, %v7128_v37  ;;  %v894_v61 = vmul.f32 %v5954_v47, %v7128_v37  ;;  %v893_v46 = vmul.f32 %v5953_v34, %v7128_v37 }
  0xd5   :  { %v5903_v30 = vunpack.i.h.bf16 %v5901_v48  ;;  %v5902_v12 = vunpack.i.l.bf16 %v5901_v48 }
  0xd6   :  { %v7335_v21 = vadd.f32 %v875_v2, %v7214_v40  ;;  %v7338_v23 = vadd.f32 %v876_v57, %v7217_v13  ;;  %v7341_v47 = vadd.f32 %v893_v46, %v7203_v10  ;;  %v7344_v34 = vadd.f32 %v894_v61, %v7206_v24 }
  0xd7   :  { %v874_v8 = vmul.f32 %v5903_v30, %v7128_v37  ;;  %v873_v19 = vmul.f32 %v5902_v12, %v7128_v37  ;;  %v512_v40 = vmul.f32 %v5800_v36, %v7118_v17  ;;  %v511_v2 = vmul.f32 %v5796_v56, %v7118_v17 }
  0xd8   :  { %v510_v13 = vmul.f32 %v5795_v16, %v7118_v17  ;;  %6124 = vperm.xlu1 %6067, %v6929_v59   ;;  %v7358_v46 = vadd.f32 %v7134_v29, %v532_v35  ;;  %v7361_v10 = vadd.f32 %v7134_v29, %v533_v44  ;;  %v5866_v24 = vunpack.i.h.bf16 %v7100_v62  ;;  %6129 = vperm.xlu2 %6055, %v6927_v58  }
  0xd9   :  { %v7347_v12 = vadd.f32 %v873_v19, %v7241_v38  ;;  %v7350_v28 = vadd.f32 %v874_v8, %v7252_v22  ;;  %v5865_v8 = vunpack.i.l.bf16 %v7100_v62  ;;  %v5917_v38 = vpop.permute.xlu1 %5916  ;;  %v5816_v22 = vunpack.i.h.bf16 %v7102_v63  ;;  %v5967_v56 = vpop.permute.xlu2 %5966 }
  0xda   :  { %v5919_v53 = vunpack.i.h.bf16 %v5917_v38  ;;  %v5918_v36 = vunpack.i.l.bf16 %v5917_v38  ;;  %v5969_v35 = vunpack.i.h.bf16 %v5967_v56  ;;  %v5968_v1 = vunpack.i.l.bf16 %v5967_v56 }
  0xdb   :  { %6149 = vperm.xlu0 %6061, %v6967_v26   ;;  %v7375_v38 = vadd.f32 %v7134_v29, %v512_v40  ;;  %v5815_v59 = vunpack.i.l.bf16 %v7102_v63  ;;  %v7397_v63 = vadd.f32 %v7134_v29, %v513_v9 }
  0xdc   :  { %v5927_v16 = vpop.permute.xlu0 %5926  ;;  %v880_v30 = vmul.f32 %v5919_v53, %v7128_v37  ;;  %v879_v57 = vmul.f32 %v5918_v36, %v7128_v37  ;;  %v900_v62 = vmul.f32 %v5969_v35, %v7128_v37  ;;  %v899_v61 = vmul.f32 %v5968_v1, %v7128_v37 }
  0xdd   :  { %v5929_v48 = vunpack.i.h.bf16 %v5927_v16  ;;  %v5928_v44 = vunpack.i.l.bf16 %v5927_v16 }
  0xde   :  { %v7379_v56 = vadd.f32 %v879_v57, %v7160_v42  ;;  %v7382_v53 = vadd.f32 %v880_v30, %v7163_v55  ;;  %v7385_v36 = vadd.f32 %v899_v61, %v7229_v14  ;;  %v7388_v16 = vadd.f32 %v900_v62, %v7238_v45 }
  0xdf   :  { %v884_v19 = vmul.f32 %v5929_v48, %v7128_v37  ;;  %v883_v58 = vmul.f32 %v5928_v44, %v7128_v37  ;;  %v7400_v42 = vadd.f32 %v7134_v29, %v510_v13  ;;  %v7403_v55 = vadd.f32 %v7134_v29, %v511_v2 }
  0xe0   :  { %v5811_v14 = vunpack.i.h.bf16 %v7104_v0  ;;  %6139 = vperm.xlu1 %6067, %v6947_v7   ;;  %v539_v45 = vmul.f32 %v5866_v24, %v7118_v17  ;;  %6144 = vperm.xlu2 %6055, %v6945_v6   ;;  %v518_v2 = vmul.f32 %v5815_v59, %v7118_v17 }
  0xe1   :  { %v7391_v35 = vadd.f32 %v883_v58, %v7287_v60  ;;  %v7394_v40 = vadd.f32 %v884_v19, %v7290_v52  ;;  %v538_v58 = vmul.f32 %v5865_v8, %v7118_v17  ;;  %v519_v60 = vmul.f32 %v5816_v22, %v7118_v17  ;;  %v5932_v9 = vpop.permute.xlu1 %5931  ;;  %v5982_v48 = vpop.permute.xlu2 %5981 }
  0xe2   :  { %v5810_v52 = vunpack.i.l.bf16 %v7104_v0  ;;  %v5934_v13 = vunpack.i.h.bf16 %v5932_v9  ;;  %v5933_v1 = vunpack.i.l.bf16 %v5932_v9  ;;  %v5984_v30 = vunpack.i.h.bf16 %v5982_v48 }
  0xe3   :  { %6164 = vperm.xlu0 %6061, %v6985_v41   ;;  %v5983_v57 = vunpack.i.l.bf16 %v5982_v48  ;;  %v517_v9 = vmul.f32 %v5811_v14, %v7118_v17  ;;  %v7441_v14 = vadd.f32 %v7134_v29, %v538_v58  ;;  %v12027_v58 = vld [vmem:[#allocation25_spill] sm:$0xff] }
  0xe4   :  { %v5942_v44 = vpop.permute.xlu0 %5941  ;;  %v886_v8 = vmul.f32 %v5934_v13, %v7128_v37  ;;  %v885_v22 = vmul.f32 %v5933_v1, %v7128_v37  ;;  %v906_v0 = vmul.f32 %v5984_v30, %v7128_v37  ;;  %v516_v6 = vmul.f32 %v5810_v52, %v7118_v17 }
  0xe5   :  { %v5944_v24 = vunpack.i.h.bf16 %v5942_v44  ;;  %v5943_v62 = vunpack.i.l.bf16 %v5942_v44  ;;  %v905_v61 = vmul.f32 %v5983_v57, %v7128_v37  ;;  %v5826_v52 = vunpack.i.h.bf16 %v7116_v11 }
  0xe6   :  { %v7423_v48 = vadd.f32 %v885_v22, %v7272_v51  ;;  %v7426_v44 = vadd.f32 %v886_v8, %v7275_v18  ;;  %v7432_v1 = vadd.f32 %v906_v0, %v7264_v50  ;;  %v7444_v51 = vadd.f32 %v7134_v29, %v539_v45 }
  0xe7   :  { %v890_v19 = vmul.f32 %v5944_v24, %v7128_v37  ;;  %v889_v59 = vmul.f32 %v5943_v62, %v7128_v37  ;;  %v7429_v13 = vadd.f32 %v905_v61, %v7261_v27  ;;  %v7447_v18 = vadd.f32 %v7134_v29, %v518_v2  ;;  %v12028_v24 = vld [vmem:[#allocation31_spill] sm:$0xff] }
  0xe8   :  { %12024 = vst [vmem:[#allocation49_spill] sm:$0xff] %v7426_v44  ;;  %v5881_v27 = vunpack.i.h.bf16 %v7112_v3  ;;  %6154 = vperm.xlu1 %6067, %v6965_v25   ;;  %v5880_v50 = vunpack.i.l.bf16 %v7112_v3  ;;  %6159 = vperm.xlu2 %6055, %v12027_v58   ;;  %v5825_v2 = vunpack.i.l.bf16 %v7116_v11  ;;  %v580_v44 = vadd.f32 %v7134_v29, %v516_v6 }
  0xe9   :  { %12025 = vst [vmem:[#allocation50_spill] sm:$0xff] %v7429_v13  ;;  %v7435_v30 = vadd.f32 %v889_v59, %v7329_v49  ;;  %v7438_v57 = vadd.f32 %v890_v19, %v7332_v20  ;;  %v5831_v49 = vunpack.i.h.bf16 %v7114_v4  ;;  %v5830_v20 = vunpack.i.l.bf16 %v7114_v4  ;;  %v5947_v45 = vpop.permute.xlu1 %5946  ;;  %v5997_v22 = vpop.permute.xlu2 %5996 }
  0xea   :  { %12026 = vst [vmem:[#allocation51_spill] sm:$0xff] %v7432_v1  ;;  %v5949_v62 = vunpack.i.h.bf16 %v5947_v45  ;;  %v5948_v8 = vunpack.i.l.bf16 %v5947_v45  ;;  %v5999_v61 = vunpack.i.h.bf16 %v5997_v22  ;;  %v5998_v19 = vunpack.i.l.bf16 %v5997_v22 }
  0xeb   :  { %6179 = vperm.xlu0 %6061, %v12028_v24   ;;  %v7465_v45 = vadd.f32 %v7134_v29, %v519_v60  ;;  %v581_v6 = vadd.f32 %v7134_v29, %v517_v9 }
  0xec   :  { %v5957_v0 = vpop.permute.xlu0 %5956  ;;  %v892_v25 = vmul.f32 %v5949_v62, %v7128_v37  ;;  %v891_v4 = vmul.f32 %v5948_v8, %v7128_v37  ;;  %v912_v1 = vmul.f32 %v5999_v61, %v7128_v37  ;;  %v911_v58 = vmul.f32 %v5998_v19, %v7128_v37 }
  0xed   :  { %v5959_v3 = vunpack.i.h.bf16 %v5957_v0  ;;  %v5958_v59 = vunpack.i.l.bf16 %v5957_v0  ;;  %v544_v19 = vmul.f32 %v5880_v50, %v7118_v17 }
  0xee   :  { %v7469_v22 = vadd.f32 %v891_v4, %v7308_v5  ;;  %v7472_v62 = vadd.f32 %v892_v25, %v7311_v31  ;;  %v7475_v8 = vadd.f32 %v911_v58, %v7295_v33  ;;  %v7478_v0 = vadd.f32 %v912_v1, %v7305_v39  ;;  %v12032_v31 = vld [vmem:[#allocation28_spill] sm:$0xff]  ;;  %v12033_v1 = vld [vmem:[#allocation38_spill] sm:$0xff] }
  0xef   :  { %v896_v13 = vmul.f32 %v5959_v3, %v7128_v37  ;;  %v895_v11 = vmul.f32 %v5958_v59, %v7128_v37  ;;  %v545_v5 = vmul.f32 %v5881_v27, %v7118_v17  ;;  %v525_v25 = vmul.f32 %v5831_v49, %v7118_v17 }
  0xf0   :  { %12029 = vst [vmem:[#allocation31_spill] sm:$0xff] %v7472_v62  ;;  %6169 = vperm.xlu1 %6067, %v12032_v31   ;;  %v524_v33 = vmul.f32 %v5830_v20, %v7118_v17  ;;  %v523_v39 = vmul.f32 %v5826_v52, %v7118_v17  ;;  %v5841_v58 = vunpack.i.h.bf16 %v12033_v1  ;;  %v5840_v27 = vunpack.i.l.bf16 %v12033_v1 }
  0xf1   :  { %12030 = vst [vmem:[#allocation52_spill] sm:$0xff] %v7475_v8  ;;  %v7481_v61 = vadd.f32 %v895_v11, %v7400_v42  ;;  %v7484_v60 = vadd.f32 %v896_v13, %v7403_v55  ;;  %v522_v42 = vmul.f32 %v5825_v2, %v7118_v17  ;;  %v12034_v55 = vld [vmem:[#allocation27_spill] sm:$0xff]  ;;  %v12035_v13 = vld [vmem:[#allocation34_spill] sm:$0xff]  ;;  %v5962_v9 = vpop.permute.xlu1 %5961  ;;  %v6012_v49 = vpop.permute.xlu2 %6011  ;;  %v7508_v62 = vadd.f32 %v7134_v29, %v545_v5 }
  0xf2   :  { %12031 = vst [vmem:[#allocation53_spill] sm:$0xff] %v7478_v0  ;;  %6174 = vperm.xlu2 %6055, %v12034_v55   ;;  %v5964_v50 = vunpack.i.h.bf16 %v5962_v9  ;;  %v5963_v3 = vunpack.i.l.bf16 %v5962_v9  ;;  %v6014_v4 = vunpack.i.h.bf16 %v6012_v49  ;;  %v6013_v11 = vunpack.i.l.bf16 %v6012_v49 }
  0xf3   :  { %6194 = vperm.xlu0 %6061, %v12035_v13   ;;  %v7505_v9 = vadd.f32 %v7134_v29, %v544_v19  ;;  %v7527_v19 = vadd.f32 %v7134_v29, %v524_v33  ;;  %v7530_v5 = vadd.f32 %v7134_v29, %v525_v25  ;;  %v5856_v33 = vunpack.i.h.bf16 %v7175_v54 }
  0xf4   :  { %v5972_v59 = vpop.permute.xlu0 %5971  ;;  %v898_v52 = vmul.f32 %v5964_v50, %v7128_v37  ;;  %v897_v2 = vmul.f32 %v5963_v3, %v7128_v37  ;;  %v918_v0 = vmul.f32 %v6014_v4, %v7128_v37  ;;  %v917_v55 = vmul.f32 %v6013_v11, %v7128_v37  ;;  %v12040_v11 = vld [vmem:[#allocation30_spill] sm:$0xff] }
  0xf5   :  { %v5974_v20 = vunpack.i.h.bf16 %v5972_v59  ;;  %v5973_v31 = vunpack.i.l.bf16 %v5972_v59 }
  0xf6   :  { %v7511_v49 = vadd.f32 %v897_v2, %v7375_v38  ;;  %v7514_v50 = vadd.f32 %v898_v52, %v7397_v63  ;;  %v7517_v3 = vadd.f32 %v917_v55, %v7358_v46  ;;  %v7520_v59 = vadd.f32 %v918_v0, %v7361_v10  ;;  %v12041_v46 = vld [vmem:[#allocation37_spill] sm:$0xff] }
  0xf7   :  { %v902_v8 = vmul.f32 %v5974_v20, %v7128_v37  ;;  %v901_v1 = vmul.f32 %v5973_v31, %v7128_v37  ;;  %v586_v38 = vadd.f32 %v7134_v29, %v522_v42  ;;  %v587_v63 = vadd.f32 %v7134_v29, %v523_v39  ;;  %v12042_v0 = vld [vmem:[#allocation29_spill] sm:$0xff] }
  0xf8   :  { %12036 = vst [vmem:[#allocation38_spill] sm:$0xff] %v7511_v49  ;;  %6184 = vperm.xlu1 %6067, %v12040_v11   ;;  %v5846_v55 = vunpack.i.h.bf16 %v12041_v46  ;;  %v5845_v10 = vunpack.i.l.bf16 %v12041_v46  ;;  %v5855_v42 = vunpack.i.l.bf16 %v7175_v54 }
  0xf9   :  { %12037 = vst [vmem:[#allocation34_spill] sm:$0xff] %v7514_v50  ;;  %v7522_v4 = vadd.f32 %v901_v1, %v580_v44  ;;  %v7524_v31 = vadd.f32 %v902_v8, %v581_v6  ;;  %v529_v44 = vmul.f32 %v5841_v58, %v7118_v17  ;;  %v528_v8 = vmul.f32 %v5840_v27, %v7118_v17  ;;  %v12043_v6 = vld [vmem:[#allocation36_spill] sm:$0xff]  ;;  %v5977_v25 = vpop.permute.xlu1 %5976  ;;  %v6027_v52 = vpop.permute.xlu2 %6026 }
  0xfa   :  { %12038 = vst [vmem:[#allocation54_spill] sm:$0xff] %v7517_v3  ;;  %6189 = vperm.xlu2 %6055, %v12042_v0   ;;  %v5979_v39 = vunpack.i.h.bf16 %v5977_v25  ;;  %v5978_v20 = vunpack.i.l.bf16 %v5977_v25  ;;  %v6029_v1 = vunpack.i.h.bf16 %v6027_v52  ;;  %v6028_v11 = vunpack.i.l.bf16 %v6027_v52 }
  0xfb   :  { %12039 = vst [vmem:[#allocation55_spill] sm:$0xff] %v7520_v59  ;;  %6209 = vperm.xlu0 %6061, %v12043_v6  }
  0xfc   :  { %v5987_v2 = vpop.permute.xlu0 %5986  ;;  %v904_v58 = vmul.f32 %v5979_v39, %v7128_v37  ;;  %v903_v27 = vmul.f32 %v5978_v20, %v7128_v37  ;;  %v924_v0 = vmul.f32 %v6029_v1, %v7128_v37  ;;  %v923_v3 = vmul.f32 %v6028_v11, %v7128_v37 }
  0xfd   :  { %v5989_v46 = vunpack.i.h.bf16 %v5987_v2  ;;  %v5988_v59 = vunpack.i.l.bf16 %v5987_v2  ;;  %v531_v11 = vmul.f32 %v5846_v55, %v7118_v17  ;;  %v593_v1 = vadd.f32 %v7134_v29, %v529_v44 }
  0xfe   :  { %v7550_v25 = vadd.f32 %v903_v27, %v7447_v18  ;;  %v7553_v49 = vadd.f32 %v904_v58, %v7465_v45  ;;  %v7556_v52 = vadd.f32 %v923_v3, %v7441_v14  ;;  %v7559_v39 = vadd.f32 %v924_v0, %v7444_v51  ;;  %v12046_v45 = vld [vmem:[#allocation33_spill] sm:$0xff] }
  0xff   :  { %v908_v50 = vmul.f32 %v5989_v46, %v7128_v37  ;;  %v907_v54 = vmul.f32 %v5988_v59, %v7128_v37  ;;  %v530_v59 = vmul.f32 %v5845_v10, %v7118_v17  ;;  %v592_v18 = vadd.f32 %v7134_v29, %v528_v8  ;;  %v12048_v58 = vld [vmem:[#allocation13_spill] sm:$0xff] }
 0x100   :  { %12044 = vst [vmem:[#allocation37_spill] sm:$0xff] %v7556_v52  ;;  %6199 = vperm.xlu1 %6067, %v12046_v45   ;;  %v5861_v14 = vunpack.i.h.bf16 %v7168_v32  ;;  %v5860_v3 = vunpack.i.l.bf16 %v7168_v32  ;;  %v535_v51 = vmul.f32 %v5856_v33, %v7118_v17  ;;  %v5871_v10 = vunpack.i.h.bf16 %v7222_v15 }
 0x101   :  { %12045 = vst [vmem:[#allocation36_spill] sm:$0xff] %v7559_v39  ;;  %v7561_v20 = vadd.f32 %v907_v54, %v586_v38  ;;  %v7563_v2 = vadd.f32 %v908_v50, %v587_v63  ;;  %v534_v38 = vmul.f32 %v5855_v42, %v7118_v17  ;;  %v12047_v50 = vld [vmem:[#allocation32_spill] sm:$0xff]  ;;  %v11913_v63 = vmov 3   ;;  %v5992_v55 = vpop.permute.xlu1 %5991  ;;  %v6042_v46 = vpop.permute.xlu2 %6041 }
 0x102   :  { %6204 = vperm.xlu2 %6055, %v12047_v50   ;;  %v5870_v44 = vunpack.i.l.bf16 %v7222_v15  ;;  %v5994_v8 = vunpack.i.h.bf16 %v5992_v55  ;;  %v5993_v0 = vunpack.i.l.bf16 %v5992_v55  ;;  %v6044_v27 = vunpack.i.h.bf16 %v6042_v46  ;;  %v7582_v50 = vld [vmem:[%s11864_s1] sm:$0x2] }
 0x103   :  { %6224 = vset.pattern.permute.xlu0 %v11913_v63  ;;  %v6043_v33 = vunpack.i.l.bf16 %v6042_v46  ;;  %12049 = vst [vmem:[#allocation13_spill] sm:$0xff] %v7582_v50  ;;  %v11916_v52 = vunpack.c.l.bf16 %v7582_v50 }
 0x104   :  { %6226 = vperm.xlu0 %6224, %v12048_v58   ;;  %v6002_v32 = vpop.permute.xlu0 %6001  ;;  %v910_v63 = vmul.f32 %v5994_v8, %v7128_v37  ;;  %v909_v45 = vmul.f32 %v5993_v0, %v7128_v37  ;;  %v930_v15 = vmul.f32 %v6044_v27, %v7128_v37 }
 0x105   :  { %v6004_v54 = vunpack.i.h.bf16 %v6002_v32  ;;  %v6003_v42 = vunpack.i.l.bf16 %v6002_v32  ;;  %v929_v55 = vmul.f32 %v6043_v33, %v7128_v37 }
 0x106   :  { %v7591_v46 = vadd.f32 %v909_v45, %v7527_v19  ;;  %v7594_v32 = vadd.f32 %v910_v63, %v7530_v5  ;;  %v7601_v0 = vadd.f32 %v930_v15, %v7508_v62  ;;  %v595_v19 = vadd.f32 %v7134_v29, %v531_v11  ;;  %v12055_v63 = vld [vmem:[#allocation35_spill] sm:$0xff] }
 0x107   :  { %v914_v58 = vmul.f32 %v6004_v54, %v7128_v37  ;;  %v913_v39 = vmul.f32 %v6003_v42, %v7128_v37  ;;  %v7598_v8 = vadd.f32 %v929_v55, %v7505_v9  ;;  %v594_v54 = vadd.f32 %v7134_v29, %v530_v59 }
 0x108   :  { %12050 = vst [vmem:[#allocation56_spill] sm:$0xff] %v7591_v46  ;;  %v537_v45 = vmul.f32 %v5861_v14, %v7118_v17  ;;  %v536_v5 = vmul.f32 %v5860_v3, %v7118_v17  ;;  %6214 = vperm.xlu1 %6067, %v12055_v63   ;;  %v598_v9 = vadd.f32 %v7134_v29, %v534_v38  ;;  %v5876_v62 = vunpack.i.h.bf16 %v7211_v43  ;;  %v12057_v14 = vld [vmem:[#allocation10_spill] sm:$0xff]  ;;  %v12058_v3 = vld [vmem:[#allocation16_spill] sm:$0xff] }
 0x109   :  { %12051 = vst [vmem:[#allocation57_spill] sm:$0xff] %v7594_v32  ;;  %v7603_v27 = vadd.f32 %v913_v39, %v592_v18  ;;  %v7605_v33 = vadd.f32 %v914_v58, %v593_v1  ;;  %v599_v42 = vadd.f32 %v7134_v29, %v535_v51  ;;  %v5875_v39 = vunpack.i.l.bf16 %v7211_v43  ;;  %v6007_v1 = vpop.permute.xlu1 %6006 }
 0x10a   :  { %12052 = vst [vmem:[#allocation58_spill] sm:$0xff] %v7598_v8  ;;  %v12056_v18 = vmov 3   ;;  %v541_v59 = vmul.f32 %v5871_v10, %v7118_v17  ;;  %v6009_v11 = vunpack.i.h.bf16 %v6007_v1  ;;  %v6008_v15 = vunpack.i.l.bf16 %v6007_v1  ;;  %v6058_v63 = vpop.permute.xlu2 %6057 }
 0x10b   :  { %12053 = vst [vmem:[#allocation59_spill] sm:$0xff] %v7601_v0  ;;  %6218 = vset.pattern.permute.xlu2 %v12056_v18  ;;  %v7622_v38 = vperm.slane %v11916_v52, 2  ;;  %v540_v51 = vmul.f32 %v5870_v44, %v7118_v17  ;;  %v6060_v8 = vunpack.i.h.bf16 %v6058_v63  ;;  %v6059_v1 = vunpack.i.l.bf16 %v6058_v63 }
 0x10c   :  { %12054 = vst [vmem:[#allocation60_spill] sm:$0xff] %v7605_v33  ;;  %6220 = vperm.xlu2 %6218, %v12057_v14   ;;  %6252 = vperm.xlu0 %6224, %v12058_v3   ;;  %v6017_v55 = vpop.permute.xlu0 %6016  ;;  %v916_v0 = vmul.f32 %v6009_v11, %v7128_v37  ;;  %v915_v10 = vmul.f32 %v6008_v15, %v7128_v37  ;;  %v12061_v15 = vld [vmem:[#allocation39_spill] sm:$0xff] }
 0x10d   :  { %v6019_v58 = vunpack.i.h.bf16 %v6017_v55  ;;  %v6018_v43 = vunpack.i.l.bf16 %v6017_v55  ;;  %v1259_v52 = vmul.f32 %v6060_v8, %v7622_v38  ;;  %v1258_v44 = vmul.f32 %v6059_v1, %v7622_v38  ;;  %v12060_v55 = vld [vmem:[#allocation46_spill] sm:$0xff] }
 0x10e   :  { %v7629_v32 = vadd.f32 %v915_v10, %v594_v54  ;;  %v7631_v50 = vadd.f32 %v916_v0, %v595_v19  ;;  %v5885_v46 = vunpack.i.l.bf16 %v12060_v55  ;;  %v600_v63 = vadd.f32 %v7134_v29, %v536_v5 }
 0x10f   :  { %v920_v14 = vmul.f32 %v6019_v58, %v7128_v37  ;;  %v919_v3 = vmul.f32 %v6018_v43, %v7128_v37  ;;  %v7642_v58 = vadd.f32 %v1258_v44, %v12061_v15  ;;  %v12063_v43 = vld [vmem:[#allocation40_spill] sm:$0xff]  ;;  %v601_v8 = vadd.f32 %v7134_v29, %v537_v45 }
 0x110   :  { %12059 = vst [vmem:[#allocation10_spill] sm:$0xff] %v7631_v50  ;;  %v7645_v54 = vadd.f32 %v1259_v52, %v12063_v43  ;;  %6230 = vset.pattern.permute.xlu1 %v12056_v18  ;;  %v543_v0 = vmul.f32 %v5876_v62, %v7118_v17  ;;  %v542_v19 = vmul.f32 %v5875_v39, %v7118_v17  ;;  %v5886_v1 = vunpack.i.h.bf16 %v12060_v55  ;;  %v12067_v18 = vld [vmem:[#allocation19_spill] sm:$0xff] }
 0x111   :  { %v7636_v33 = vadd.f32 %v919_v3, %v598_v9  ;;  %v7638_v11 = vadd.f32 %v920_v14, %v599_v42  ;;  %12062 = vst [vmem:[#allocation16_spill] sm:$0xff] %v7642_v58  ;;  %v604_v9 = vadd.f32 %v7134_v29, %v540_v51  ;;  %v12065_v42 = vld [vmem:[#allocation9_spill] sm:$0xff]  ;;  %v6022_v10 = vpop.permute.xlu1 %6021  ;;  %v605_v5 = vadd.f32 %v7134_v29, %v541_v59  ;;  %v12066_v3 = vld [vmem:[#allocation12_spill] sm:$0xff] }
 0x112   :  { %12064 = vst [vmem:[#allocation46_spill] sm:$0xff] %v7645_v54  ;;  %6232 = vperm.xlu1 %6230, %v12065_v42   ;;  %v6024_v14 = vunpack.i.h.bf16 %v6022_v10  ;;  %v6023_v52 = vunpack.i.l.bf16 %v6022_v10  ;;  %v546_v62 = vmul.f32 %v5885_v46, %v7118_v17  ;;  %v6075_v15 = vpop.permute.xlu2 %6074 }
 0x113   :  { %v6077_v42 = vunpack.i.h.bf16 %v6075_v15  ;;  %v6076_v59 = vunpack.i.l.bf16 %v6075_v15 }
 0x114   :  { %6237 = vperm.xlu2 %6218, %v12066_v3   ;;  %6267 = vperm.xlu0 %6224, %v12067_v18   ;;  %v6032_v45 = vpop.permute.xlu0 %6031  ;;  %v922_v51 = vmul.f32 %v6024_v14, %v7128_v37  ;;  %v921_v43 = vmul.f32 %v6023_v52, %v7128_v37  ;;  %v12068_v52 = vld [vmem:[#allocation41_spill] sm:$0xff] }
 0x115   :  { %v6034_v44 = vunpack.i.h.bf16 %v6032_v45  ;;  %v6033_v39 = vunpack.i.l.bf16 %v6032_v45  ;;  %v1265_v18 = vmul.f32 %v6077_v42, %v7622_v38  ;;  %v1264_v46 = vmul.f32 %v6076_v59, %v7622_v38 }
 0x116   :  { %v7662_v54 = vadd.f32 %v921_v43, %v600_v63  ;;  %v7664_v3 = vadd.f32 %v922_v51, %v601_v8  ;;  %v547_v45 = vmul.f32 %v5886_v1, %v7118_v17  ;;  %v606_v63 = vadd.f32 %v7134_v29, %v542_v19  ;;  %v12073_v43 = vld [vmem:[#allocation8_spill] sm:$0xff] }
 0x117   :  { %v926_v55 = vmul.f32 %v6034_v44, %v7128_v37  ;;  %v925_v10 = vmul.f32 %v6033_v39, %v7128_v37  ;;  %v7674_v15 = vadd.f32 %v1264_v46, %v12068_v52  ;;  %v12070_v44 = vld [vmem:[#allocation42_spill] sm:$0xff]  ;;  %v607_v8 = vadd.f32 %v7134_v29, %v543_v0  ;;  %v12072_v39 = vld [vmem:[#allocation45_spill] sm:$0xff] }
 0x118   :  { %v7677_v50 = vadd.f32 %v1265_v18, %v12070_v44  ;;  %v5891_v51 = vunpack.i.h.bf16 %v12072_v39  ;;  %v611_v19 = vadd.f32 %v7134_v29, %v547_v45 }
 0x119   :  { %v7669_v58 = vadd.f32 %v925_v10, %v604_v9  ;;  %v7671_v14 = vadd.f32 %v926_v55, %v605_v5  ;;  %12069 = vst [vmem:[#allocation39_spill] sm:$0xff] %v7674_v15  ;;  %v6037_v42 = vpop.permute.xlu1 %6036  ;;  %v5890_v9 = vunpack.i.l.bf16 %v12072_v39  ;;  %v610_v5 = vadd.f32 %v7134_v29, %v546_v62  ;;  %v12074_v55 = vld [vmem:[#allocation11_spill] sm:$0xff]  ;;  %v12075_v10 = vld [vmem:[#allocation22_spill] sm:$0xff] }
 0x11a   :  { %12071 = vst [vmem:[#allocation40_spill] sm:$0xff] %v7677_v50  ;;  %6242 = vperm.xlu1 %6230, %v12073_v43   ;;  %v6039_v1 = vunpack.i.h.bf16 %v6037_v42  ;;  %v6038_v59 = vunpack.i.l.bf16 %v6037_v42  ;;  %v6085_v52 = vpop.permute.xlu2 %6084  ;;  %v549_v45 = vmul.f32 %v5891_v51, %v7118_v17  ;;  %v12081_v51 = vld [vmem:[#allocation24_spill] sm:$0xff] }
 0x11b   :  { %v6087_v50 = vunpack.i.h.bf16 %v6085_v52  ;;  %v6086_v39 = vunpack.i.l.bf16 %v6085_v52  ;;  %v12076_v52 = vld [vmem:[#allocation43_spill] sm:$0xff] }
 0x11c   :  { %6247 = vperm.xlu2 %6218, %v12074_v55   ;;  %6282 = vperm.xlu0 %6224, %v12075_v10   ;;  %v6047_v18 = vpop.permute.xlu0 %6046  ;;  %v928_v44 = vmul.f32 %v6039_v1, %v7128_v37  ;;  %v927_v43 = vmul.f32 %v6038_v59, %v7128_v37  ;;  %v548_v1 = vmul.f32 %v5890_v9, %v7118_v17  ;;  %v6766_v17 = vld [vmem:[%s11865_s2] ss:$0 sm:$0xff] }
 0x11d   :  { %v6049_v46 = vunpack.i.h.bf16 %v6047_v18  ;;  %v6048_v0 = vunpack.i.l.bf16 %v6047_v18  ;;  %v1269_v10 = vmul.f32 %v6087_v50, %v7622_v38  ;;  %v1268_v29 = vmul.f32 %v6086_v39, %v7622_v38  ;;  %v12080_v39 = vld [vmem:[#allocation14_spill] sm:$0xff] }
 0x11e   :  { %v7692_v15 = vadd.f32 %v927_v43, %v606_v63  ;;  %v7694_v55 = vadd.f32 %v928_v44, %v607_v8  ;;  %v12079_v8 = vld [vmem:[#allocation15_spill] sm:$0xff]  ;;  %v612_v9 = vadd.f32 %v6766_v17, %v548_v1 }
 0x11f   :  { %v932_v62 = vmul.f32 %v6049_v46, %v7128_v37  ;;  %v931_v42 = vmul.f32 %v6048_v0, %v7128_v37  ;;  %v7705_v46 = vadd.f32 %v1268_v29, %v12076_v52  ;;  %v12077_v0 = vld [vmem:[#allocation44_spill] sm:$0xff] }
 0x120   :  { %v7708_v63 = vadd.f32 %v1269_v10, %v12077_v0 }
 0x121   :  { %v7700_v18 = vadd.f32 %v931_v42, %v610_v5  ;;  %v7702_v59 = vadd.f32 %v932_v62, %v611_v19  ;;  %v6052_v44 = vpop.permute.xlu1 %6051  ;;  %v613_v5 = vadd.f32 %v6766_v17, %v549_v45  ;;  %v12082_v17 = vld [vmem:[#allocation47_spill] sm:$0xff] }
 0x122   :  { %12078 = vst [vmem:[#allocation9_spill] sm:$0xff] %v7708_v63  ;;  %6257 = vperm.xlu1 %6230, %v12079_v8   ;;  %v6054_v50 = vunpack.i.h.bf16 %v6052_v44  ;;  %v6053_v43 = vunpack.i.l.bf16 %v6052_v44  ;;  %v6100_v19 = vpop.permute.xlu2 %6099 }
 0x123   :  { %v6102_v29 = vunpack.i.h.bf16 %v6100_v19  ;;  %v6101_v52 = vunpack.i.l.bf16 %v6100_v19 }
 0x124   :  { %6262 = vperm.xlu2 %6218, %v12080_v39   ;;  %6297 = vperm.xlu0 %6224, %v12081_v51   ;;  %v934_v42 = vmul.f32 %v6054_v50, %v7128_v37  ;;  %v933_v10 = vmul.f32 %v6053_v43, %v7128_v37  ;;  %v12083_v37 = vld [vmem:[#allocation48_spill] sm:$0xff] }
 0x125   :  { %v6064_v62 = vpop.permute.xlu0 %6063  ;;  %v1275_v51 = vmul.f32 %v6102_v29, %v7622_v38  ;;  %v1274_v63 = vmul.f32 %v6101_v52, %v7622_v38 }
 0x126   :  { %v6066_v0 = vunpack.i.h.bf16 %v6064_v62  ;;  %v6065_v8 = vunpack.i.l.bf16 %v6064_v62  ;;  %v7718_v44 = vadd.f32 %v933_v10, %v612_v9  ;;  %v7720_v39 = vadd.f32 %v934_v42, %v613_v5  ;;  %v12084_v5 = vld [vmem:[#allocation18_spill] sm:$0xff]  ;;  %v12085_v62 = vld [vmem:[#allocation17_spill] sm:$0xff] }
 0x127   :  { %v7727_v50 = vadd.f32 %v1274_v63, %v12082_v17  ;;  %v7730_v43 = vadd.f32 %v1275_v51, %v12083_v37 }
 0x128   :  { %v1261_v45 = vmul.f32 %v6066_v0, %v7622_v38  ;;  %v1260_v1 = vmul.f32 %v6065_v8, %v7622_v38 }
 0x12a   :  { %v7733_v19 = vadd.f32 %v1260_v1, %v7347_v12  ;;  %v7736_v9 = vadd.f32 %v1261_v45, %v7350_v28  ;;  %6272 = vperm.xlu1 %6230, %v12084_v5   ;;  %v6070_v42 = vpop.permute.xlu1 %6069  ;;  %v6115_v63 = vpop.permute.xlu2 %6114 }
 0x12b   :  { %v6072_v10 = vunpack.i.h.bf16 %v6070_v42  ;;  %v6071_v29 = vunpack.i.l.bf16 %v6070_v42  ;;  %v6117_v0 = vunpack.i.h.bf16 %v6115_v63  ;;  %v6116_v8 = vunpack.i.l.bf16 %v6115_v63 }
 0x12c   :  { %6277 = vperm.xlu2 %6218, %v12085_v62   ;;  %6312 = vperm.xlu0 %6224, %v6967_v26  }
 0x12d   :  { %v6090_v52 = vpop.permute.xlu0 %6089  ;;  %v1263_v12 = vmul.f32 %v6072_v10, %v7622_v38  ;;  %v1262_v28 = vmul.f32 %v6071_v29, %v7622_v38  ;;  %v1281_v45 = vmul.f32 %v6117_v0, %v7622_v38  ;;  %v1280_v1 = vmul.f32 %v6116_v8, %v7622_v38  ;;  %v12088_v0 = vld [vmem:[#allocation20_spill] sm:$0xff] }
 0x12e   :  { %v6092_v51 = vunpack.i.h.bf16 %v6090_v52  ;;  %v6091_v17 = vunpack.i.l.bf16 %v6090_v52  ;;  %v12087_v52 = vld [vmem:[#allocation21_spill] sm:$0xff] }
 0x12f   :  { %v7748_v5 = vadd.f32 %v1262_v28, %v7335_v21  ;;  %v7751_v62 = vadd.f32 %v1263_v12, %v7338_v23  ;;  %v7754_v42 = vadd.f32 %v1280_v1, %v7341_v47  ;;  %v7757_v10 = vadd.f32 %v1281_v45, %v7344_v34 }
 0x130   :  { %v1271_v37 = vmul.f32 %v6092_v51, %v7622_v38  ;;  %v1270_v26 = vmul.f32 %v6091_v17, %v7622_v38 }
 0x131   :  { %12086 = vst [vmem:[#allocation12_spill] sm:$0xff] %v7757_v10 }
 0x132   :  { %v7760_v29 = vadd.f32 %v1270_v26, %v7391_v35  ;;  %v7763_v63 = vadd.f32 %v1271_v37, %v7394_v40  ;;  %6287 = vperm.xlu1 %6230, %v12087_v52   ;;  %v6080_v21 = vpop.permute.xlu1 %6079  ;;  %v6130_v47 = vpop.permute.xlu2 %6129 }
 0x133   :  { %v6082_v23 = vunpack.i.h.bf16 %v6080_v21  ;;  %v6081_v8 = vunpack.i.l.bf16 %v6080_v21  ;;  %v6132_v17 = vunpack.i.h.bf16 %v6130_v47  ;;  %v6131_v34 = vunpack.i.l.bf16 %v6130_v47  ;;  %v12095_v47 = vld [vmem:[#allocation23_spill] sm:$0xff] }
 0x134   :  { %6292 = vperm.xlu2 %6218, %v12088_v0   ;;  %6327 = vperm.xlu0 %6224, %v6985_v41  }
 0x135   :  { %v6105_v51 = vpop.permute.xlu0 %6104  ;;  %v1267_v35 = vmul.f32 %v6082_v23, %v7622_v38  ;;  %v1266_v40 = vmul.f32 %v6081_v8, %v7622_v38  ;;  %v1287_v45 = vmul.f32 %v6132_v17, %v7622_v38  ;;  %v1286_v1 = vmul.f32 %v6131_v34, %v7622_v38 }
 0x136   :  { %v6107_v12 = vunpack.i.h.bf16 %v6105_v51  ;;  %v6106_v28 = vunpack.i.l.bf16 %v6105_v51 }
 0x137   :  { %v7775_v26 = vadd.f32 %v1266_v40, %v7379_v56  ;;  %v7778_v52 = vadd.f32 %v1267_v35, %v7382_v53  ;;  %v7781_v0 = vadd.f32 %v1286_v1, %v7385_v36  ;;  %v7784_v21 = vadd.f32 %v1287_v45, %v7388_v16  ;;  %v12097_v1 = vld [vmem:[#allocation49_spill] sm:$0xff] }
 0x138   :  { %v1277_v37 = vmul.f32 %v6107_v12, %v7622_v38  ;;  %v1276_v41 = vmul.f32 %v6106_v28, %v7622_v38 }
 0x139   :  { %12089 = vst [vmem:[#allocation19_spill] sm:$0xff] %v7775_v26 }
 0x13a   :  { %12090 = vst [vmem:[#allocation41_spill] sm:$0xff] %v7778_v52  ;;  %v7787_v23 = vadd.f32 %v1276_v41, %v7435_v30  ;;  %v7790_v8 = vadd.f32 %v1277_v37, %v7438_v57  ;;  %6302 = vperm.xlu1 %6230, %v6947_v7   ;;  %v6095_v56 = vpop.permute.xlu1 %6094  ;;  %v6145_v36 = vpop.permute.xlu2 %6144  ;;  %v12099_v41 = vld [vmem:[#allocation50_spill] sm:$0xff] }
 0x13b   :  { %12091 = vst [vmem:[#allocation42_spill] sm:$0xff] %v7781_v0  ;;  %v6097_v53 = vunpack.i.h.bf16 %v6095_v56  ;;  %v6096_v51 = vunpack.i.l.bf16 %v6095_v56  ;;  %v6147_v34 = vunpack.i.h.bf16 %v6145_v36  ;;  %v6146_v16 = vunpack.i.l.bf16 %v6145_v36  ;;  %v12101_v56 = vld [vmem:[#allocation51_spill] sm:$0xff] }
 0x13c   :  { %12092 = vst [vmem:[#allocation45_spill] sm:$0xff] %v7784_v21  ;;  %6307 = vperm.xlu2 %6218, %v12095_v47   ;;  %6342 = vperm.xlu0 %6224, %v12028_v24  }
 0x13d   :  { %12093 = vst [vmem:[#allocation8_spill] sm:$0xff] %v7787_v23  ;;  %v6120_v17 = vpop.permute.xlu0 %6119  ;;  %v1273_v30 = vmul.f32 %v6097_v53, %v7622_v38  ;;  %v1272_v57 = vmul.f32 %v6096_v51, %v7622_v38  ;;  %v1293_v35 = vmul.f32 %v6147_v34, %v7622_v38  ;;  %v1292_v7 = vmul.f32 %v6146_v16, %v7622_v38  ;;  %v12106_v34 = vld [vmem:[#allocation25_spill] sm:$0xff] }
 0x13e   :  { %12094 = vst [vmem:[#allocation11_spill] sm:$0xff] %v7790_v8  ;;  %v6122_v12 = vunpack.i.h.bf16 %v6120_v17  ;;  %v6121_v28 = vunpack.i.l.bf16 %v6120_v17  ;;  %v12105_v17 = vld [vmem:[#allocation26_spill] sm:$0xff] }
 0x13f   :  { %v7802_v45 = vadd.f32 %v1272_v57, %v7423_v48  ;;  %v7805_v37 = vadd.f32 %v1273_v30, %v12097_v1  ;;  %v7808_v47 = vadd.f32 %v1292_v7, %v12099_v41  ;;  %v7811_v53 = vadd.f32 %v1293_v35, %v12101_v56 }
 0x140   :  { %v1283_v40 = vmul.f32 %v6122_v12, %v7622_v38  ;;  %v1282_v24 = vmul.f32 %v6121_v28, %v7622_v38 }
 0x141   :  { %12096 = vst [vmem:[#allocation22_spill] sm:$0xff] %v7802_v45 }
 0x142   :  { %12098 = vst [vmem:[#allocation43_spill] sm:$0xff] %v7805_v37  ;;  %v7814_v51 = vadd.f32 %v1282_v24, %v7481_v61  ;;  %v7817_v36 = vadd.f32 %v1283_v40, %v7484_v60  ;;  %6317 = vperm.xlu1 %6230, %v12105_v17   ;;  %v6110_v48 = vpop.permute.xlu1 %6109  ;;  %v6160_v28 = vpop.permute.xlu2 %6159  ;;  %v12108_v17 = vld [vmem:[#allocation31_spill] sm:$0xff] }
 0x143   :  { %12100 = vst [vmem:[#allocation44_spill] sm:$0xff] %v7808_v47  ;;  %v6112_v16 = vunpack.i.h.bf16 %v6110_v48  ;;  %v6111_v12 = vunpack.i.l.bf16 %v6110_v48  ;;  %v6162_v57 = vunpack.i.h.bf16 %v6160_v28  ;;  %v6161_v35 = vunpack.i.l.bf16 %v6160_v28  ;;  %v12110_v48 = vld [vmem:[#allocation52_spill] sm:$0xff] }
 0x144   :  { %12102 = vst [vmem:[#allocation15_spill] sm:$0xff] %v7811_v53  ;;  %6322 = vperm.xlu2 %6218, %v12106_v34   ;;  %6357 = vperm.xlu0 %6224, %v12035_v13  }
 0x145   :  { %12103 = vst [vmem:[#allocation14_spill] sm:$0xff] %v7814_v51  ;;  %v6135_v30 = vpop.permute.xlu0 %6134  ;;  %v1279_v61 = vmul.f32 %v6112_v16, %v7622_v38  ;;  %v1278_v60 = vmul.f32 %v6111_v12, %v7622_v38  ;;  %v1299_v40 = vmul.f32 %v6162_v57, %v7622_v38  ;;  %v1298_v24 = vmul.f32 %v6161_v35, %v7622_v38  ;;  %v12112_v16 = vld [vmem:[#allocation53_spill] sm:$0xff]  ;;  %v12116_v35 = vld [vmem:[#allocation28_spill] sm:$0xff] }
 0x146   :  { %12104 = vst [vmem:[#allocation24_spill] sm:$0xff] %v7817_v36  ;;  %v6137_v7 = vunpack.i.h.bf16 %v6135_v30  ;;  %v6136_v1 = vunpack.i.l.bf16 %v6135_v30 }
 0x147   :  { %v7829_v56 = vadd.f32 %v1278_v60, %v7469_v22  ;;  %v7832_v34 = vadd.f32 %v1279_v61, %v12108_v17  ;;  %v7835_v28 = vadd.f32 %v1298_v24, %v12110_v48  ;;  %v7838_v30 = vadd.f32 %v1299_v40, %v12112_v16 }
 0x148   :  { %v1289_v41 = vmul.f32 %v6137_v7, %v7622_v38  ;;  %v1288_v13 = vmul.f32 %v6136_v1, %v7622_v38  ;;  %v12117_v7 = vld [vmem:[#allocation27_spill] sm:$0xff] }
 0x149   :  { %12107 = vst [vmem:[#allocation47_spill] sm:$0xff] %v7829_v56 }
 0x14a   :  { %12109 = vst [vmem:[#allocation48_spill] sm:$0xff] %v7832_v34  ;;  %v7841_v12 = vadd.f32 %v1288_v13, %v7522_v4  ;;  %v7844_v57 = vadd.f32 %v1289_v41, %v7524_v31  ;;  %6332 = vperm.xlu1 %6230, %v12116_v35   ;;  %v6125_v22 = vpop.permute.xlu1 %6124 }
 0x14b   :  { %12111 = vst [vmem:[#allocation18_spill] sm:$0xff] %v7835_v28  ;;  %v6127_v1 = vunpack.i.h.bf16 %v6125_v22  ;;  %v6126_v61 = vunpack.i.l.bf16 %v6125_v22 }
 0x14c   :  { %12113 = vst [vmem:[#allocation17_spill] sm:$0xff] %v7838_v30  ;;  %6337 = vperm.xlu2 %6218, %v12117_v7   ;;  %6372 = vperm.xlu0 %6224, %v12043_v6   ;;  %v6175_v60 = vpop.permute.xlu2 %6174  ;;  %v12118_v7 = vld [vmem:[#allocation38_spill] sm:$0xff] }
 0x14d   :  { %12114 = vst [vmem:[#allocation21_spill] sm:$0xff] %v7841_v12  ;;  %v6150_v24 = vpop.permute.xlu0 %6149  ;;  %v6177_v17 = vunpack.i.h.bf16 %v6175_v60  ;;  %v6176_v40 = vunpack.i.l.bf16 %v6175_v60  ;;  %v1285_v4 = vmul.f32 %v6127_v1, %v7622_v38  ;;  %v1284_v31 = vmul.f32 %v6126_v61, %v7622_v38  ;;  %v12120_v30 = vld [vmem:[#allocation34_spill] sm:$0xff]  ;;  %v12124_v1 = vld [vmem:[#allocation55_spill] sm:$0xff] }
 0x14e   :  { %12115 = vst [vmem:[#allocation20_spill] sm:$0xff] %v7844_v57  ;;  %v6152_v48 = vunpack.i.h.bf16 %v6150_v24  ;;  %v6151_v16 = vunpack.i.l.bf16 %v6150_v24  ;;  %v12122_v60 = vld [vmem:[#allocation54_spill] sm:$0xff] }
 0x14f   :  { %v1305_v41 = vmul.f32 %v6177_v17, %v7622_v38  ;;  %v1304_v13 = vmul.f32 %v6176_v40, %v7622_v38  ;;  %v7856_v22 = vadd.f32 %v1284_v31, %v12118_v7  ;;  %v7859_v28 = vadd.f32 %v1285_v4, %v12120_v30  ;;  %v12128_v40 = vld [vmem:[#allocation30_spill] sm:$0xff] }
 0x150   :  { %v1295_v35 = vmul.f32 %v6152_v48, %v7622_v38  ;;  %v1294_v6 = vmul.f32 %v6151_v16, %v7622_v38  ;;  %v12129_v48 = vld [vmem:[#allocation29_spill] sm:$0xff] }
 0x151   :  { %12119 = vst [vmem:[#allocation23_spill] sm:$0xff] %v7856_v22  ;;  %v7862_v24 = vadd.f32 %v1304_v13, %v12122_v60  ;;  %v7865_v34 = vadd.f32 %v1305_v41, %v12124_v1 }
 0x152   :  { %12121 = vst [vmem:[#allocation49_spill] sm:$0xff] %v7859_v28  ;;  %v7868_v61 = vadd.f32 %v1294_v6, %v7561_v20  ;;  %v7871_v17 = vadd.f32 %v1295_v35, %v7563_v2  ;;  %6347 = vperm.xlu1 %6230, %v12128_v40   ;;  %v6140_v16 = vpop.permute.xlu1 %6139 }
 0x153   :  { %12123 = vst [vmem:[#allocation50_spill] sm:$0xff] %v7862_v24  ;;  %v6142_v31 = vunpack.i.h.bf16 %v6140_v16  ;;  %v6141_v30 = vunpack.i.l.bf16 %v6140_v16 }
 0x154   :  { %12125 = vst [vmem:[#allocation51_spill] sm:$0xff] %v7865_v34  ;;  %6352 = vperm.xlu2 %6218, %v12129_v48   ;;  %v6190_v4 = vpop.permute.xlu2 %6189 }
 0x155   :  { %12126 = vst [vmem:[#allocation26_spill] sm:$0xff] %v7868_v61  ;;  %v6165_v7 = vpop.permute.xlu0 %6164  ;;  %v6192_v13 = vunpack.i.h.bf16 %v6190_v4  ;;  %v6191_v60 = vunpack.i.l.bf16 %v6190_v4  ;;  %v1291_v1 = vmul.f32 %v6142_v31, %v7622_v38  ;;  %v1290_v20 = vmul.f32 %v6141_v30, %v7622_v38  ;;  %v12132_v4 = vld [vmem:[#allocation37_spill] sm:$0xff]  ;;  %v12134_v31 = vld [vmem:[#allocation36_spill] sm:$0xff] }
 0x156   :  { %12127 = vst [vmem:[#allocation25_spill] sm:$0xff] %v7871_v17  ;;  %v6167_v24 = vunpack.i.h.bf16 %v6165_v7  ;;  %v6166_v41 = vunpack.i.l.bf16 %v6165_v7 }
 0x157   :  { %v1311_v2 = vmul.f32 %v6192_v13, %v7622_v38  ;;  %v1310_v35 = vmul.f32 %v6191_v60, %v7622_v38  ;;  %v7882_v48 = vadd.f32 %v1290_v20, %v7550_v25  ;;  %v7885_v16 = vadd.f32 %v1291_v1, %v7553_v49  ;;  %v12137_v13 = vld [vmem:[#allocation60_spill] sm:$0xff] }
 0x158   :  { %v1301_v6 = vmul.f32 %v6167_v24, %v7622_v38  ;;  %v1300_v40 = vmul.f32 %v6166_v41, %v7622_v38  ;;  %v12139_v24 = vld [vmem:[#allocation33_spill] sm:$0xff]  ;;  %v12140_v41 = vld [vmem:[#allocation32_spill] sm:$0xff] }
 0x159   :  { %12130 = vst [vmem:[#allocation31_spill] sm:$0xff] %v7882_v48  ;;  %v7888_v7 = vadd.f32 %v1310_v35, %v12132_v4  ;;  %v7891_v34 = vadd.f32 %v1311_v2, %v12134_v31 }
 0x15a   :  { %12131 = vst [vmem:[#allocation52_spill] sm:$0xff] %v7885_v16  ;;  %v7894_v30 = vadd.f32 %v1300_v40, %v7603_v27  ;;  %v7897_v60 = vadd.f32 %v1301_v6, %v12137_v13  ;;  %6362 = vperm.xlu1 %6230, %v12139_v24   ;;  %v6155_v25 = vpop.permute.xlu1 %6154 }
 0x15b   :  { %12133 = vst [vmem:[#allocation53_spill] sm:$0xff] %v7888_v7  ;;  %v6157_v20 = vunpack.i.h.bf16 %v6155_v25  ;;  %v6156_v49 = vunpack.i.l.bf16 %v6155_v25 }
 0x15c   :  { %12135 = vst [vmem:[#allocation28_spill] sm:$0xff] %v7891_v34  ;;  %6367 = vperm.xlu2 %6218, %v12140_v41   ;;  %v6205_v1 = vpop.permute.xlu2 %6204  ;;  %v12141_v41 = vld [vmem:[#allocation56_spill] sm:$0xff]  ;;  %v12143_v34 = vld [vmem:[#allocation57_spill] sm:$0xff] }
 0x15d   :  { %12136 = vst [vmem:[#allocation27_spill] sm:$0xff] %v7894_v30  ;;  %v6180_v16 = vpop.permute.xlu0 %6179  ;;  %v6207_v35 = vunpack.i.h.bf16 %v6205_v1  ;;  %v6206_v4 = vunpack.i.l.bf16 %v6205_v1  ;;  %v1297_v31 = vmul.f32 %v6157_v20, %v7622_v38  ;;  %v1296_v27 = vmul.f32 %v6156_v49, %v7622_v38  ;;  %v12145_v1 = vld [vmem:[#allocation58_spill] sm:$0xff]  ;;  %v12147_v20 = vld [vmem:[#allocation59_spill] sm:$0xff] }
 0x15e   :  { %12138 = vst [vmem:[#allocation38_spill] sm:$0xff] %v7897_v60  ;;  %v6182_v7 = vunpack.i.h.bf16 %v6180_v16  ;;  %v6181_v2 = vunpack.i.l.bf16 %v6180_v16 }
 0x15f   :  { %v1317_v6 = vmul.f32 %v6207_v35, %v7622_v38  ;;  %v1316_v40 = vmul.f32 %v6206_v4, %v7622_v38  ;;  %v7908_v25 = vadd.f32 %v1296_v27, %v12141_v41  ;;  %v7911_v48 = vadd.f32 %v1297_v31, %v12143_v34  ;;  %v12152_v34 = vld [vmem:[#allocation13_spill] sm:$0xff] }
 0x160   :  { %v1307_v13 = vmul.f32 %v6182_v7, %v7622_v38  ;;  %v1306_v24 = vmul.f32 %v6181_v2, %v7622_v38  ;;  %v12151_v7 = vld [vmem:[#allocation35_spill] sm:$0xff]  ;;  %v12153_v31 = vunpack.c.l.bf16 %v12152_v34 }
 0x161   :  { %12142 = vst [vmem:[#allocation34_spill] sm:$0xff] %v7908_v25  ;;  %v7914_v16 = vadd.f32 %v1316_v40, %v12145_v1  ;;  %v7917_v60 = vadd.f32 %v1317_v6, %v12147_v20 }
 0x162   :  { %12144 = vst [vmem:[#allocation54_spill] sm:$0xff] %v7911_v48  ;;  %v7920_v49 = vadd.f32 %v1306_v24, %v7636_v33  ;;  %v7923_v35 = vadd.f32 %v1307_v13, %v7638_v11  ;;  %6377 = vperm.xlu1 %6230, %v12151_v7   ;;  %v6170_v4 = vpop.permute.xlu1 %6169  ;;  %v7928_v48 = vperm.slane %v12153_v31, 3 }
 0x163   :  { %12146 = vst [vmem:[#allocation55_spill] sm:$0xff] %v7914_v16  ;;  %v6172_v2 = vunpack.i.h.bf16 %v6170_v4  ;;  %v6171_v27 = vunpack.i.l.bf16 %v6170_v4 }
 0x164   :  { %12148 = vst [vmem:[#allocation30_spill] sm:$0xff] %v7917_v60  ;;  %v12155_v60 = vld [vmem:[#allocation10_spill] sm:$0xff] }
 0x165   :  { %12149 = vst [vmem:[#allocation29_spill] sm:$0xff] %v7920_v49  ;;  %v6195_v41 = vpop.permute.xlu0 %6194  ;;  %v1303_v20 = vmul.f32 %v6172_v2, %v7622_v38  ;;  %v1302_v33 = vmul.f32 %v6171_v27, %v7622_v38 }
 0x166   :  { %12150 = vst [vmem:[#allocation37_spill] sm:$0xff] %v7923_v35  ;;  %v6197_v40 = vunpack.i.h.bf16 %v6195_v41  ;;  %v6196_v1 = vunpack.i.l.bf16 %v6195_v41  ;;  %v6221_v6 = vpop.permute.xlu2 %6220 }
 0x167   :  { %v6223_v24 = vunpack.i.h.bf16 %v6221_v6  ;;  %v6222_v11 = vunpack.i.l.bf16 %v6221_v6  ;;  %v7935_v4 = vadd.f32 %v1302_v33, %v7629_v32  ;;  %v7938_v34 = vadd.f32 %v1303_v20, %v12155_v60  ;;  %v12159_v6 = vld [vmem:[#allocation16_spill] sm:$0xff] }
 0x168   :  { %v1313_v13 = vmul.f32 %v6197_v40, %v7622_v38  ;;  %v1312_v7 = vmul.f32 %v6196_v1, %v7622_v38  ;;  %v12160_v1 = vld [vmem:[#allocation46_spill] sm:$0xff] }
 0x169   :  { %12154 = vst [vmem:[#allocation36_spill] sm:$0xff] %v7935_v4  ;;  %v1644_v31 = vmul.f32 %v6223_v24, %v7928_v48  ;;  %v1643_v41 = vmul.f32 %v6222_v11, %v7928_v48 }
 0x16a   :  { %12156 = vst [vmem:[#allocation60_spill] sm:$0xff] %v7938_v34  ;;  %v7943_v2 = vadd.f32 %v1312_v7, %v7669_v58  ;;  %v7946_v27 = vadd.f32 %v1313_v13, %v7671_v14  ;;  %v6185_v32 = vpop.permute.xlu1 %6184 }
 0x16b   :  { %v7949_v40 = vadd.f32 %v1643_v41, %v12159_v6  ;;  %v7952_v16 = vadd.f32 %v1644_v31, %v12160_v1  ;;  %v6187_v58 = vunpack.i.h.bf16 %v6185_v32  ;;  %v6186_v11 = vunpack.i.l.bf16 %v6185_v32 }
 0x16c   :  { %12157 = vst [vmem:[#allocation33_spill] sm:$0xff] %v7943_v2 }
 0x16d   :  { %12158 = vst [vmem:[#allocation32_spill] sm:$0xff] %v7946_v27  ;;  %v5494_v60 = vpack.c.bf16 %v7952_v16, %v7949_v40  ;;  %v2091_v20 = vand.u32 2147483647, %v7949_v40  ;;  %v6210_v33 = vpop.permute.xlu0 %6209  ;;  %v2092_v24 = vand.u32 2147483647, %v7952_v16  ;;  %v1309_v31 = vmul.f32 %v6187_v58, %v7622_v38 }
 0x16e   :  { %v6212_v7 = vunpack.i.h.bf16 %v6210_v33  ;;  %v6238_v14 = vpop.permute.xlu2 %6237  ;;  %v6211_v41 = vunpack.i.l.bf16 %v6210_v33  ;;  %v1308_v1 = vmul.f32 %v6186_v11, %v7622_v38 }
 0x16f   :  { %5495 = vst [vmem:[#allocation2] sm:$0xff] %v5494_v60   ;;  %v2155_v13 = vsub.f32 0.0, %v2091_v20  ;;  %v2156_v6 = vsub.f32 0.0, %v2092_v24  ;;  %v6240_v2 = vunpack.i.h.bf16 %v6238_v14  ;;  %v6239_v25 = vunpack.i.l.bf16 %v6238_v14 }
 0x170   :  { %v1319_v4 = vmul.f32 %v6212_v7, %v7622_v38  ;;  %v1318_v27 = vmul.f32 %v6211_v41, %v7622_v38  ;;  %v7963_v32 = vadd.f32 %v1308_v1, %v7662_v54  ;;  %v7966_v60 = vadd.f32 %v1309_v31, %v7664_v3  ;;  %v12165_v7 = vld [vmem:[#allocation39_spill] sm:$0xff]  ;;  %v12166_v54 = vld [vmem:[#allocation40_spill] sm:$0xff] }
 0x171   :  { %v2219_v34 = vmul.f32 1.442695, %v2155_v13  ;;  %v2221_v49 = vmul.f32 1.442695, %v2156_v6  ;;  %v1650_v24 = vmul.f32 %v6240_v2, %v7928_v48  ;;  %v1649_v58 = vmul.f32 %v6239_v25, %v7928_v48 }
 0x172   :  { %12161 = vst [vmem:[#allocation56_spill] sm:$0xff] %v7963_v32  ;;  %v7969_v20 = vadd.f32 %v1319_v4, %v7702_v59  ;;  %v7972_v33 = vadd.f32 %v1318_v27, %v7700_v18  ;;  %v6200_v11 = vpop.permute.xlu1 %6199 }
 0x173   :  { %12162 = vst [vmem:[#allocation57_spill] sm:$0xff] %v7966_v60  ;;  %6382 = vpow2.f32 %v2219_v34  ;;  %v7977_v14 = vadd.f32 %v1649_v58, %v12165_v7  ;;  %v7980_v13 = vadd.f32 %v1650_v24, %v12166_v54  ;;  %v6201_v3 = vunpack.i.l.bf16 %v6200_v11 }
 0x174   :  { %12163 = vst [vmem:[#allocation58_spill] sm:$0xff] %v7969_v20  ;;  %6384 = vpow2.f32 %v2221_v49  ;;  %v6202_v4 = vunpack.i.h.bf16 %v6200_v11 }
 0x175   :  { %12164 = vst [vmem:[#allocation59_spill] sm:$0xff] %v7972_v33  ;;  %v5509_v59 = vpack.c.bf16 %v7980_v13, %v7977_v14  ;;  %v1314_v18 = vmul.f32 %v6201_v3, %v7622_v38  ;;  %v2097_v49 = vand.u32 2147483647, %v7977_v14  ;;  %v2098_v7 = vand.u32 2147483647, %v7980_v13 }
 0x176   :  { %v6248_v2 = vpop.permute.xlu2 %6247  ;;  %v1315_v31 = vmul.f32 %v6202_v4, %v7622_v38  ;;  %v1963_v3 = vsub.f32 0.0, %v7949_v40  ;;  %v1899_v4 = vld [vmem:[%s11866_s3] sm:$0xff] }
 0x177   :  { %5684 = vst [vmem:[#allocation2 + $0x18] sm:$0xff] %v5509_v59   ;;  %v7988_v1 = vadd.f32 %v1314_v18, %v7692_v15  ;;  %v6249_v58 = vunpack.i.l.bf16 %v6248_v2  ;;  %v6250_v11 = vunpack.i.h.bf16 %v6248_v2  ;;  %v2161_v54 = vsub.f32 0.0, %v2097_v49 }
 0x178   :  { %v7993_v60 = vadd.f32 %v1315_v31, %v7694_v55  ;;  %v2162_v32 = vsub.f32 0.0, %v2098_v7  ;;  %v4011_v20 = vsub.f32 1.0, %v1899_v4  ;;  %v2027_v55 = vmax.f32 %v1963_v3, 0.0  ;;  %v12169_v7 = vld [vmem:[#allocation9_spill] sm:$0xff] }
 0x179   :  { %v6383_v34 = vpop.eup %6382  ;;  %12167 = vst [vmem:[#allocation35_spill] sm:$0xff] %v7988_v1  ;;  %v1654_v1 = vmul.f32 %v6250_v11, %v7928_v48  ;;  %v2231_v40 = vmul.f32 1.442695, %v2161_v54  ;;  %vm3627_vm2 = vcmp.eq.f32.partialorder %v1899_v4, 1.0  ;;  %vm3819_vm4 = vcmp.lt.f32.partialorder %v1899_v4, 1.0 }
 0x17a   :  { %v6385_v27 = vpop.eup %6384  ;;  %v2347_v25 = vadd.f32 1.0, %v6383_v34  ;;  %v2350_v41 = vmul.f32 -0.5, %v6383_v34  ;;  %12168 = vst [vmem:[#allocation13_spill] sm:$0xff] %v7993_v60  ;;  %v2353_v15 = vand.u32 2147483647, %v6383_v34 }
 0x17b   :  { %v2356_v6 = vadd.f32 1.0, %v6385_v27  ;;  %v2359_v24 = vmul.f32 -0.5, %v6385_v27  ;;  %v2362_v2 = vand.u32 2147483647, %v6385_v27  ;;  %v8008_v54 = vadd.f32 %v1654_v1, %v12169_v7 }
 0x17c   :  { %6386 = vlog2.f32 %v2347_v25  ;;  %v2351_v59 = vadd.f32 1.0, %v2350_v41  ;;  %v1653_v25 = vmul.f32 %v6249_v58, %v7928_v48  ;;  %vm2354_vm0 = vcmp.lt.f32.partialorder %v2353_v15, 0.0004427343 }
 0x17d   :  { %6388 = vlog2.f32 %v2356_v6  ;;  %v2360_v18 = vadd.f32 1.0, %v2359_v24  ;;  %v1964_v6 = vsub.f32 0.0, %v7952_v16  ;;  %v1900_v16 = vld [vmem:[%s11866_s3 + $0x8] sm:$0xff]  ;;  %vm2363_vm1 = vcmp.lt.f32.partialorder %v2362_v2, 0.0004427343 }
 0x17e   :  { %v2352_v60 = vmul.f32 %v6383_v34, %v2351_v59  ;;  %v8002_v24 = vadd.f32 %v1653_v25, %v7705_v46  ;;  %6390 = vpow2.f32 %v2231_v40  ;;  %v2233_v34 = vmul.f32 1.442695, %v2162_v32 }
 0x17f   :  { %v2361_v35 = vmul.f32 %v6385_v27, %v2360_v18  ;;  %v2028_v58 = vmax.f32 %v1964_v6, 0.0  ;;  %v4012_v15 = vsub.f32 1.0, %v1900_v16  ;;  %v4075_v25 = vmul.f32 %v4011_v20, %v4011_v20 }
 0x180   :  { %v5519_v46 = vpack.c.bf16 %v8008_v54, %v8002_v24  ;;  %6392 = vpow2.f32 %v2233_v34  ;;  %vm3628_vm3 = vcmp.eq.f32.partialorder %v1900_v16, 1.0  ;;  %vm3820_vm5 = vcmp.lt.f32.partialorder %v1900_v16, 1.0 }
 0x181   :  { %v4076_v2 = vmul.f32 %v4012_v15, %v4012_v15 }
 0x182   :  { %v6387_v49 = vpop.eup %6386  ;;  %5686 = vst [vmem:[#allocation2 + $0x28] sm:$0xff] %v5519_v46  }
 0x183   :  { %v6389_v41 = vpop.eup %6388  ;;  %v2349_v31 = vmul.f32 0.6931472, %v6387_v49  ;;  %v4140_v40 = vmul.f32 %v4076_v2, %v4012_v15 }
 0x184   :  { %v2358_v33 = vmul.f32 0.6931472, %v6389_v41 }
 0x185   :  { %v2355_v11 = vsel %vm2354_vm0, %v2352_v60, %v2349_v31  ;;  %v8012_v60 = vpop.eup %6390  ;;  %v11917_v31 = vmov 0.0  }
 0x186   :  { %v2364_v30 = vsel %vm2363_vm1, %v2361_v35, %v2358_v33  ;;  %v2923_v28 = vadd.f32 %v2355_v11, %v2027_v55  ;;  %v4139_v35 = vmul.f32 %v4075_v25, %v4011_v20  ;;  %v2401_v33 = vadd.f32 1.0, %v8012_v60  ;;  %v8015_v1 = vpop.eup %6392 }
 0x187   :  { %v2924_v59 = vadd.f32 %v2364_v30, %v2028_v58  ;;  %v6227_v30 = vpop.permute.xlu0 %6226  ;;  %v8018_v58 = vsel %vm3627_vm2, 1.0, %v11917_v31  ;;  %v8021_v34 = vsel %vm3628_vm3, 1.0, %v11917_v31  ;;  %v5297_v46 = vsel %vm3819_vm4, 1.0, %v11917_v31 }
 0x188   :  { %v2987_v27 = vsub.f32 0.0, %v2923_v28  ;;  %v3179_v32 = vsub.f32 %v1963_v3, %v2923_v28  ;;  %v6229_v11 = vunpack.i.h.bf16 %v6227_v30  ;;  %v5298_v4 = vsel %vm3820_vm5, 1.0, %v11917_v31 }
 0x189   :  { %v2988_v18 = vsub.f32 0.0, %v2924_v59  ;;  %v3180_v55 = vsub.f32 %v1964_v6, %v2924_v59  ;;  %v4203_v28 = vmul.f32 %v4139_v35, %v4011_v20  ;;  %v2410_v6 = vadd.f32 1.0, %v8015_v1 }
 0x18a   :  { %v3371_v49 = vmul.f32 1.442695, %v2987_v27  ;;  %v3243_v16 = vmax.f32 %v3179_v32, -9.2103405  ;;  %v4204_v59 = vmul.f32 %v4140_v40, %v4012_v15  ;;  %v2404_v2 = vmul.f32 -0.5, %v8012_v60 }
 0x18b   :  { %v3373_v41 = vmul.f32 1.442695, %v2988_v18  ;;  %v3051_v22 = vmax.f32 %v2987_v27, -9.2103405  ;;  %v1646_v56 = vmul.f32 %v6229_v11, %v7928_v48  ;;  %v3052_v31 = vmax.f32 %v2988_v18, -9.2103405 }
 0x18c   :  { %6394 = vpow2.f32 %v3371_v49  ;;  %v3244_v49 = vmax.f32 %v3180_v55, -9.2103405  ;;  %v2407_v35 = vand.u32 2147483647, %v8012_v60  ;;  %v6228_v32 = vunpack.i.l.bf16 %v6227_v30 }
 0x18d   :  { %6396 = vpow2.f32 %v3373_v41  ;;  %v3115_v27 = vmin.f32 %v3051_v22, -0.000100005  ;;  %v2413_v17 = vmul.f32 -0.5, %v8015_v1  ;;  %v3116_v11 = vmin.f32 %v3052_v31, -0.000100005 }
 0x18e   :  { %6398 = vlog2.f32 %v2401_v33  ;;  %v3307_v33 = vmin.f32 %v3243_v16, -0.000100005  ;;  %v3308_v15 = vmin.f32 %v3244_v49, -0.000100005  ;;  %v1645_v47 = vmul.f32 %v6228_v32, %v7928_v48 }
 0x18f   :  { %6400 = vlog2.f32 %v2410_v6  ;;  %v2101_v6 = vand.u32 2147483647, %v8002_v24  ;;  %vm8036_vm7 = vcmp.lt.f32.partialorder %v2407_v35, 0.0004427343  ;;  %v2414_v32 = vadd.f32 1.0, %v2413_v17 }
 0x191   :  { %v2165_v35 = vsub.f32 0.0, %v2101_v6 }
 0x192   :  { %v6395_v7 = vpop.eup %6394 }
 0x193   :  { %v6397_v3 = vpop.eup %6396  ;;  %v3499_v25 = vmax.f32 %v6395_v7, 0.0001 }
 0x194   :  { %v3500_v41 = vmax.f32 %v6397_v3, 0.0001  ;;  %v2405_v3 = vadd.f32 1.0, %v2404_v2  ;;  %v6399_v57 = vpop.eup %6398 }
 0x195   :  { %v3563_v61 = vmin.f32 %v3499_v25, 0.9999  ;;  %v2403_v2 = vmul.f32 0.6931472, %v6399_v57 }
 0x196   :  { %v3564_v20 = vmin.f32 %v3500_v41, 0.9999  ;;  %v2406_v22 = vmul.f32 %v8012_v60, %v2405_v3  ;;  %v12172_v3 = vsub.f32 0.0, %v7977_v14 }
 0x197   :  { %v4267_v7 = vsub.f32 1.0, %v3563_v61  ;;  %v4523_v12 = vmul.f32 %v3563_v61, %v3563_v61  ;;  %v11920_v61 = vsub.f32 0.0, %v7980_v13 }
 0x198   :  { %v4268_v40 = vsub.f32 1.0, %v3564_v20  ;;  %v4524_v55 = vmul.f32 %v3564_v20, %v3564_v20 }
 0x199   :  { %v4331_v25 = vmul.f32 %v4267_v7, %v4267_v7  ;;  %v4587_v53 = vmul.f32 %v4523_v12, %v3307_v33  ;;  %v6401_v7 = vpop.eup %6400 }
 0x19a   :  { %v4332_v18 = vmul.f32 %v4268_v40, %v4268_v40  ;;  %v4588_v41 = vmul.f32 %v4524_v55, %v3308_v15  ;;  %v8042_v15 = vadd.f32 %v1645_v47, %v7733_v19  ;;  %v2412_v55 = vmul.f32 0.6931472, %v6401_v7 }
 0x19b   :  { %v4395_v30 = vmul.f32 %v4331_v25, %v3115_v27  ;;  %v4651_v16 = vmul.f32 %v4587_v53, %v4203_v28  ;;  %v2033_v27 = vmax.f32 %v12172_v3, 0.0  ;;  %v2102_v25 = vand.u32 2147483647, %v8008_v54 }
 0x19c   :  { %v4396_v49 = vmul.f32 %v4332_v18, %v3116_v11  ;;  %v4652_v20 = vmul.f32 %v4588_v41, %v4204_v59  ;;  %v8045_v59 = vadd.f32 %v1646_v56, %v7736_v9  ;;  %v1905_v9 = vld [vmem:[%s11866_s3 + $0x30] sm:$0xff]  ;;  %v1906_v56 = vld [vmem:[%s11866_s3 + $0x38] sm:$0xff]  ;;  %v2415_v11 = vmul.f32 %v8015_v1, %v2414_v32 }
 0x19d   :  { %v4459_v12 = vmul.f32 %v8018_v58, %v4395_v30  ;;  %v4715_v33 = vmul.f32 %v5297_v46, %v4651_v16  ;;  %v2416_v46 = vand.u32 2147483647, %v8015_v1  ;;  %v2239_v30 = vmul.f32 1.442695, %v2165_v35 }
 0x19e   :  { %v4460_v53 = vmul.f32 %v8021_v34, %v4396_v49  ;;  %v4716_v28 = vmul.f32 %v5298_v4, %v4652_v20  ;;  %v2409_v4 = vsel %vm8036_vm7, %v2406_v22, %v2403_v2  ;;  %v5499_v18 = vpack.c.bf16 %v8045_v59, %v8042_v15 }
 0x19f   :  { %v4781_v57 = vsel %vm4780_vm6, %v4459_v12, 0.0  ;;  %v5061_v60 = vsel %vm4780_vm6, %v4715_v33, 0.0  ;;  %vm2417_vm8 = vcmp.lt.f32.partialorder %v2416_v46, 0.0004427343  ;;  %v8070_v41 = vadd.f32 %v2409_v4, %v2033_v27 }
 0x1a0   :  { %v4782_v40 = vsel %vm4780_vm6, %v4460_v53, 0.0  ;;  %v5062_v17 = vsel %vm4780_vm6, %v4716_v28, 0.0  ;;  %v4017_v16 = vsub.f32 1.0, %v1905_v9  ;;  %v4018_v6 = vsub.f32 1.0, %v1906_v56  ;;  %5682 = vst [vmem:[#allocation2 + $0x8] sm:$0xff] %v5499_v18  }
 0x1a1   :  { %v8054_v19 = vadd.f32 %v4782_v40, %v4781_v57  ;;  %v8056_v47 = vadd.f32 %v5062_v17, %v5061_v60  ;;  %v2418_v49 = vsel %vm2417_vm8, %v2415_v11, %v2412_v55  ;;  %v2034_v20 = vmax.f32 %v11920_v61, 0.0  ;;  %v6215_v57 = vpop.permute.xlu1 %6214  ;;  %v1909_v55 = vld [vmem:[%s11866_s3 + $0x50] sm:$0xff] }
 0x1a2   :  { %v2166_v2 = vsub.f32 0.0, %v2102_v25  ;;  %v4921_v22 = vsel %vm4780_vm6, %v8018_v58, 0.0  ;;  %v2993_v1 = vsub.f32 0.0, %v8070_v41  ;;  %6402 = vpow2.f32 %v2239_v30 }
 0x1a3   :  { %v8076_v7 = vadd.f32 %v2418_v49, %v2034_v20  ;;  %v4922_v12 = vsel %vm4780_vm6, %v8021_v34, 0.0  ;;  %vm3633_vm9 = vcmp.eq.f32.partialorder %v1905_v9, 1.0  ;;  %v4081_v33 = vmul.f32 %v4017_v16, %v4017_v16  ;;  %v1910_v20 = vld [vmem:[%s11866_s3 + $0x58] sm:$0xff] }
 0x1a4   :  { %v4082_v31 = vmul.f32 %v4018_v6, %v4018_v6  ;;  %vm3634_vm10 = vcmp.eq.f32.partialorder %v1906_v56, 1.0  ;;  %vm3825_vm11 = vcmp.lt.f32.partialorder %v1905_v9, 1.0  ;;  %v2241_v32 = vmul.f32 1.442695, %v2166_v2 }
 0x1a5   :  { %v2093_v53 = vand.u32 2147483647, %v8042_v15  ;;  %v2094_v28 = vand.u32 2147483647, %v8045_v59  ;;  %v8083_v58 = vadd.f32 %v4922_v12, %v4921_v22  ;;  %vm3826_vm12 = vcmp.lt.f32.partialorder %v1906_v56, 1.0 }
 0x1a6   :  { %v11919_v60 = vsub.f32 0.0, %v8076_v7  ;;  %v3383_v46 = vmul.f32 1.442695, %v2993_v1  ;;  %v12173_v35 = vmov 0.0   ;;  %v4145_v4 = vmul.f32 %v4081_v33, %v4017_v16 }
 0x1a7   :  { %v8087_v40 = vsel %vm3633_vm9, 1.0, %v12173_v35  ;;  %v8090_v34 = vsel %vm3634_vm10, 1.0, %v12173_v35  ;;  %v8093_v17 = vsel %vm3825_vm11, 1.0, %v12173_v35  ;;  %v4146_v56 = vmul.f32 %v4082_v31, %v4018_v6 }
 0x1a8   :  { %v8098_v9 = vpop.eup %6402  ;;  %6404 = vpow2.f32 %v2241_v32  ;;  %v2157_v3 = vsub.f32 0.0, %v2093_v53  ;;  %v6216_v27 = vunpack.i.l.bf16 %v6215_v57  ;;  %v8101_v25 = vsel %vm3826_vm12, 1.0, %v12173_v35 }
 0x1a9   :  { %v11921_v11 = vsub.f32 0.0, %v8002_v24  ;;  %v2158_v18 = vsub.f32 0.0, %v2094_v28  ;;  %v6217_v30 = vunpack.i.h.bf16 %v6215_v57  ;;  %6406 = vpow2.f32 %v3383_v46 }
 0x1aa   :  { %v3385_v49 = vmul.f32 1.442695, %v11919_v60  ;;  %v8109_v2 = vsub.f32 1.0, %v1909_v55  ;;  %v8112_v12 = vmul.f32 %v4145_v4, %v4017_v16  ;;  %v8116_v33 = vsel %vm4780_vm6, %v8087_v40, 0.0 }
 0x1ab   :  { %12174 = vst [vmem:[#allocation10_spill] sm:$0xff] %v8116_v33  ;;  %v8120_v31 = vsel %vm4780_vm6, %v8090_v34, 0.0  ;;  %v2437_v32 = vadd.f32 1.0, %v8098_v9  ;;  %v8123_v53 = vmul.f32 %v4146_v56, %v4018_v6  ;;  %v12176_v28 = vsub.f32 0.0, %v7977_v14  ;;  %v6263_v56 = vpop.permute.xlu2 %6262 }
 0x1ac   :  { %12175 = vst [vmem:[#allocation16_spill] sm:$0xff] %v8120_v31  ;;  %v2223_v46 = vmul.f32 1.442695, %v2157_v3  ;;  %v1320_v16 = vmul.f32 %v6216_v27, %v7622_v38  ;;  %v8129_v4 = vsub.f32 1.0, %v1910_v20  ;;  %v8133_v60 = vmax.f32 %v11921_v11, 0.0 }
 0x1ad   :  { %v3185_v57 = vsub.f32 %v12176_v28, %v8070_v41  ;;  %v2225_v61 = vmul.f32 1.442695, %v2158_v18  ;;  %v1321_v22 = vmul.f32 %v6217_v30, %v7622_v38  ;;  %6408 = vpow2.f32 %v3385_v49 }
 0x1ae   :  { %v8136_v45 = vpop.eup %6404  ;;  %vm3637_vm13 = vcmp.eq.f32.partialorder %v1909_v55, 1.0  ;;  %v4085_v14 = vmul.f32 %v8109_v2, %v8109_v2  ;;  %v12177_v41 = vsub.f32 0.0, %v8008_v54  ;;  %vm3638_vm14 = vcmp.eq.f32.partialorder %v1910_v20, 1.0 }
 0x1af   :  { %vm3829_vm15 = vcmp.lt.f32.partialorder %v1909_v55, 1.0  ;;  %vm3830_vm0 = vcmp.lt.f32.partialorder %v1910_v20, 1.0  ;;  %6410 = vlog2.f32 %v2437_v32  ;;  %v6407_v3 = vpop.eup %6406  ;;  %v8144_v27 = vmax.f32 %v2993_v1, -9.2103405 }
 0x1b0   :  { %v8142_v6 = vmax.f32 %v12177_v41, 0.0  ;;  %v3249_v38 = vmax.f32 %v3185_v57, -9.2103405  ;;  %6412 = vpow2.f32 %v2223_v46  ;;  %v8147_v18 = vadd.f32 %v1320_v16, %v7718_v44  ;;  %v6253_v41 = vpop.permute.xlu0 %6252 }
 0x1b1   :  { %v2446_v30 = vadd.f32 1.0, %v8136_v45  ;;  %6414 = vpow2.f32 %v2225_v61  ;;  %v8151_v49 = vadd.f32 %v1321_v22, %v7720_v39  ;;  %v6265_v28 = vunpack.i.h.bf16 %v6263_v56 }
 0x1b2   :  { %12178 = vst [vmem:[#allocation46_spill] sm:$0xff] %v8147_v18  ;;  %v8155_v11 = vsel %vm3637_vm13, 1.0, %v12173_v35  ;;  %v8158_v1 = vsel %vm3638_vm14, 1.0, %v12173_v35  ;;  %v4086_v32 = vmul.f32 %v8129_v4, %v8129_v4  ;;  %v6264_v44 = vunpack.i.l.bf16 %v6263_v56 }
 0x1b3   :  { %12179 = vst [vmem:[#allocation39_spill] sm:$0xff] %v8151_v49  ;;  %v12180_v57 = vsub.f32 0.0, %v7980_v13  ;;  %v3505_v39 = vmax.f32 %v6407_v3, 0.0001  ;;  %v2440_v22 = vmul.f32 -0.5, %v8098_v9  ;;  %v1660_v46 = vmul.f32 %v6265_v28, %v7928_v48  ;;  %v6409_v16 = vpop.eup %6408 }
 0x1b4   :  { %v8171_v18 = vsel %vm3829_vm15, 1.0, %v12173_v35  ;;  %v8175_v49 = vsel %vm3830_vm0, 1.0, %v12173_v35  ;;  %v1659_v56 = vmul.f32 %v6264_v44, %v7928_v48  ;;  %v6255_v37 = vunpack.i.h.bf16 %v6253_v41 }
 0x1b5   :  { %v8165_v61 = vsub.f32 %v12180_v57, %v8076_v7  ;;  %v6411_v13 = vpop.eup %6410  ;;  %v3313_v3 = vmin.f32 %v3249_v38, -0.000100005  ;;  %6416 = vlog2.f32 %v2446_v30  ;;  %v6254_v31 = vunpack.i.l.bf16 %v6253_v41 }
 0x1b6   :  { %v6413_v36 = vpop.eup %6412  ;;  %v12181_v28 = vsub.f32 0.0, %v8076_v7  ;;  %v8184_v55 = vmul.f32 %v4085_v14, %v8109_v2  ;;  %v8187_v20 = vadd.f32 %v1659_v56, %v7727_v50  ;;  %v8190_v44 = vadd.f32 %v1660_v46, %v7730_v43 }
 0x1b7   :  { %v6415_v21 = vpop.eup %6414  ;;  %v3569_v38 = vmin.f32 %v3505_v39, 0.9999  ;;  %v2441_v30 = vadd.f32 1.0, %v2440_v22  ;;  %v2443_v7 = vand.u32 2147483647, %v8098_v9  ;;  %v2365_v0 = vadd.f32 1.0, %v6413_v36 }
 0x1b8   :  { %v8181_v51 = vmax.f32 %v12181_v28, -9.2103405  ;;  %v2449_v28 = vmul.f32 -0.5, %v8136_v45  ;;  %v1656_v14 = vmul.f32 %v6255_v37, %v7928_v48  ;;  %v2439_v33 = vmul.f32 0.6931472, %v6411_v13 }
 0x1b9   :  { %v2368_v50 = vmul.f32 -0.5, %v6413_v36  ;;  %v5534_v43 = vpack.c.bf16 %v8190_v44, %v8187_v20  ;;  %v1655_v46 = vmul.f32 %v6254_v31, %v7928_v48  ;;  %v3506_v56 = vmax.f32 %v6409_v16, 0.0001 }
 0x1ba   :  { %6418 = vlog2.f32 %v2365_v0  ;;  %v2374_v22 = vadd.f32 1.0, %v6415_v21  ;;  %v4273_v41 = vsub.f32 1.0, %v3569_v38  ;;  %v4529_v52 = vmul.f32 %v3569_v38, %v3569_v38 }
 0x1bb   :  { %v6417_v57 = vpop.eup %6416  ;;  %v2442_v26 = vmul.f32 %v8098_v9, %v2441_v30  ;;  %v2377_v23 = vmul.f32 -0.5, %v6415_v21  ;;  %5689 = vst [vmem:[#allocation2 + $0x40] sm:$0xff] %v5534_v43   ;;  %vm8202_vm1 = vcmp.lt.f32.partialorder %v2443_v7, 0.0004427343  ;;  %v2450_v13 = vadd.f32 1.0, %v2449_v28 }
 0x1bc   :  { %6420 = vlog2.f32 %v2374_v22  ;;  %v8207_v31 = vadd.f32 %v1656_v14, %v7763_v63  ;;  %v2452_v16 = vand.u32 2147483647, %v8136_v45  ;;  %v2369_v39 = vadd.f32 1.0, %v2368_v50  ;;  %v8219_v63 = vld [vmem:[%s11866_s3 + $0x10] sm:$0xff] }
 0x1bd   :  { %v2445_v0 = vsel %vm8202_vm1, %v2442_v26, %v2439_v33  ;;  %v8213_v38 = vadd.f32 %v1655_v46, %v7760_v29  ;;  %v3570_v9 = vmin.f32 %v3506_v56, 0.9999  ;;  %v4150_v30 = vmul.f32 %v4086_v32, %v8129_v4 }
 0x1be   :  { %v2448_v7 = vmul.f32 0.6931472, %v6417_v57  ;;  %v2371_v43 = vand.u32 2147483647, %v6413_v36  ;;  %v4337_v8 = vmul.f32 %v4273_v41, %v4273_v41  ;;  %v12184_v28 = vsub.f32 0.0, %v8042_v15 }
 0x1bf   :  { %v12185_v33 = vsub.f32 0.0, %v8045_v59  ;;  %v2378_v50 = vadd.f32 1.0, %v2377_v23  ;;  %v2451_v46 = vmul.f32 %v8136_v45, %v2450_v13  ;;  %v8227_v32 = vadd.f32 %v2445_v0, %v8133_v60 }
 0x1c0   :  { %v2029_v26 = vmax.f32 %v12184_v28, 0.0  ;;  %v6419_v29 = vpop.eup %6418  ;;  %v2380_v57 = vand.u32 2147483647, %v6415_v21  ;;  %v5524_v41 = vpack.c.bf16 %v8207_v31, %v8213_v38  ;;  %v4593_v56 = vmul.f32 %v4529_v52, %v3313_v3 }
 0x1c1   :  { %v2030_v14 = vmax.f32 %v12185_v33, 0.0  ;;  %vm8231_vm2 = vcmp.lt.f32.partialorder %v2452_v16, 0.0004427343  ;;  %v2367_v37 = vmul.f32 0.6931472, %v6419_v29  ;;  %v2370_v28 = vmul.f32 %v6413_v36, %v2369_v39  ;;  %v8246_v36 = vld [vmem:[%s11866_s3 + $0x18] sm:$0xff] }
 0x1c2   :  { %v6421_v10 = vpop.eup %6420  ;;  %v4274_v33 = vsub.f32 1.0, %v3570_v9  ;;  %v2454_v23 = vsel %vm8231_vm2, %v2451_v46, %v2448_v7  ;;  %v8238_v45 = vsub.f32 1.0, %v8219_v63  ;;  %vm2372_vm3 = vcmp.lt.f32.partialorder %v2371_v43, 0.0004427343  ;;  %5687 = vst [vmem:[#allocation2 + $0x30] sm:$0xff] %v5524_v41  }
 0x1c3   :  { %v12188_v60 = vmin.f32 %v8144_v27, -0.000100005  ;;  %v2373_v52 = vsel %vm2372_vm3, %v2370_v28, %v2367_v37  ;;  %v2376_v3 = vmul.f32 0.6931472, %v6421_v10  ;;  %v2379_v0 = vmul.f32 %v6415_v21, %v2378_v50 }
 0x1c4   :  { %v2997_v16 = vsub.f32 0.0, %v8227_v32  ;;  %vm2381_vm4 = vcmp.lt.f32.partialorder %v2380_v57, 0.0004427343  ;;  %v8248_v39 = vadd.f32 %v2373_v52, %v2029_v26  ;;  %v2107_v7 = vand.u32 2147483647, %v8187_v20 }
 0x1c5   :  { %v4401_v13 = vmul.f32 %v4337_v8, %v12188_v60  ;;  %v4530_v43 = vmul.f32 %v3570_v9, %v3570_v9  ;;  %v4657_v29 = vmul.f32 %v4593_v56, %v8112_v12  ;;  %v2934_v8 = vadd.f32 %v2454_v23, %v8142_v6 }
 0x1c6   :  { %v2382_v27 = vsel %vm2381_vm4, %v2379_v0, %v2376_v3  ;;  %v3122_v10 = vmin.f32 %v8181_v51, -0.000100005  ;;  %v4338_v21 = vmul.f32 %v4274_v33, %v4274_v33  ;;  %v8256_v50 = vmul.f32 %v8184_v55, %v8109_v2 }
 0x1c7   :  { %v8258_v46 = vadd.f32 %v2382_v27, %v2030_v14  ;;  %v12189_v26 = vmax.f32 %v8165_v61, -9.2103405  ;;  %v4465_v41 = vmul.f32 %v8087_v40, %v4401_v13  ;;  %v8264_v9 = vsub.f32 1.0, %v8246_v36 }
 0x1c8   :  { %v4077_v12 = vmul.f32 %v8238_v45, %v8238_v45  ;;  %v3391_v6 = vmul.f32 1.442695, %v2997_v16  ;;  %v2989_v51 = vsub.f32 0.0, %v8248_v39  ;;  %v2108_v56 = vand.u32 2147483647, %v8190_v44 }
 0x1c9   :  { %v3314_v57 = vmin.f32 %v12189_v26, -0.000100005  ;;  %v2171_v2 = vsub.f32 0.0, %v2107_v7  ;;  %v4721_v14 = vmul.f32 %v8093_v17, %v4657_v29  ;;  %v2998_v22 = vsub.f32 0.0, %v2934_v8 }
 0x1ca   :  { %v2990_v61 = vsub.f32 0.0, %v8258_v46  ;;  %v4402_v37 = vmul.f32 %v4338_v21, %v3122_v10  ;;  %v8273_v40 = vmul.f32 %v4150_v30, %v8129_v4  ;;  %v8277_v28 = vsel %vm4780_vm6, %v8155_v11, 0.0 }
 0x1cb   :  { %v4594_v55 = vmul.f32 %v4530_v43, %v3314_v57  ;;  %12190 = vst [vmem:[#allocation40_spill] sm:$0xff] %v8277_v28  ;;  %v8281_v33 = vsel %vm4780_vm6, %v8158_v1, 0.0  ;;  %v8284_v23 = vsel %vm4780_vm6, %v4465_v41, 0.0  ;;  %v12192_v17 = vsub.f32 0.0, %v8002_v24 }
 0x1cc   :  { %12191 = vst [vmem:[#allocation9_spill] sm:$0xff] %v8281_v33  ;;  %v4078_v13 = vmul.f32 %v8264_v9, %v8264_v9  ;;  %v4141_v4 = vmul.f32 %v4077_v12, %v8238_v45  ;;  %6422 = vpow2.f32 %v3391_v6  ;;  %v3375_v30 = vmul.f32 1.442695, %v2989_v51 }
 0x1cd   :  { %v3189_v60 = vsub.f32 %v12192_v17, %v8227_v32  ;;  %v2172_v52 = vsub.f32 0.0, %v2108_v56  ;;  %v2251_v3 = vmul.f32 1.442695, %v2171_v2  ;;  %v4658_v0 = vmul.f32 %v4594_v55, %v8123_v53 }
 0x1ce   :  { %v8296_v7 = vsel %vm4780_vm6, %v4721_v14, 0.0  ;;  %v3393_v43 = vmul.f32 1.442695, %v2998_v22  ;;  %v3377_v24 = vmul.f32 1.442695, %v2990_v61  ;;  %v4466_v32 = vmul.f32 %v8090_v34, %v4402_v37 }
 0x1cf   :  { %vm3629_vm5 = vcmp.eq.f32.partialorder %v8219_v63, 1.0  ;;  %vm3630_vm7 = vcmp.eq.f32.partialorder %v8246_v36, 1.0  ;;  %6424 = vpow2.f32 %v3375_v30  ;;  %v12193_v29 = vsub.f32 0.0, %v8008_v54 }
 0x1d0   :  { %vm3821_vm8 = vcmp.lt.f32.partialorder %v8219_v63, 1.0  ;;  %vm3822_vm9 = vcmp.lt.f32.partialorder %v8246_v36, 1.0  ;;  %6426 = vpow2.f32 %v3377_v24  ;;  %v8307_v53 = vmax.f32 %v2997_v16, -9.2103405 }
 0x1d1   :  { %v3190_v27 = vsub.f32 %v12193_v29, %v2934_v8  ;;  %v3253_v10 = vmax.f32 %v3189_v60, -9.2103405  ;;  %6428 = vpow2.f32 %v2251_v3  ;;  %v2253_v21 = vmul.f32 1.442695, %v2172_v52 }
 0x1d2   :  { %6430 = vpow2.f32 %v3393_v43  ;;  %v5235_v34 = vsel %vm3629_vm5, 1.0, %v12173_v35  ;;  %v8311_v26 = vsel %vm3630_vm7, 1.0, %v12173_v35  ;;  %v12194_v54 = vsub.f32 0.0, %v8042_v15  ;;  %v6423_v57 = vpop.eup %6422 }
 0x1d3   :  { %v8316_v63 = vmax.f32 %v2998_v22, -9.2103405  ;;  %v5299_v41 = vsel %vm3821_vm8, 1.0, %v12173_v35  ;;  %v12195_v16 = vsub.f32 0.0, %v8045_v59  ;;  %6432 = vpow2.f32 %v2253_v21 }
 0x1d4   :  { %v3181_v8 = vsub.f32 %v12194_v54, %v8248_v39  ;;  %v8323_v6 = vsel %vm4780_vm6, %v4466_v32, 0.0  ;;  %v3254_v56 = vmax.f32 %v3190_v27, -9.2103405  ;;  %v5300_v2 = vsel %vm3822_vm9, 1.0, %v12173_v35 }
 0x1d5   :  { %v3182_v12 = vsub.f32 %v12195_v16, %v8258_v46  ;;  %12196 = vst [vmem:[#allocation61_spill] sm:$0xff] %v8323_v6  ;;  %v4142_v15 = vmul.f32 %v4078_v13, %v8264_v9  ;;  %v6425_v55 = vpop.eup %6424  ;;  %v8330_v22 = vmin.f32 %v3253_v10, -0.000100005  ;;  %v4924_v37 = vsel %vm4780_vm6, %v5235_v34, 0.0  ;;  %v6268_v6 = vpop.permute.xlu0 %6267 }
 0x1d6   :  { %v8335_v59 = vsel %vm4780_vm6, %v8311_v26, 0.0  ;;  %v6427_v17 = vpop.eup %6426  ;;  %v8338_v60 = vmul.f32 %v8101_v25, %v4658_v0  ;;  %v3509_v30 = vmax.f32 %v6423_v57, 0.0001  ;;  %v3245_v36 = vmax.f32 %v3181_v8, -9.2103405 }
 0x1d7   :  { %v3501_v52 = vmax.f32 %v6425_v55, 0.0001  ;;  %v8340_v3 = vpop.eup %6428  ;;  %v4205_v43 = vmul.f32 %v4141_v4, %v8238_v45  ;;  %v3246_v24 = vmax.f32 %v3182_v12, -9.2103405  ;;  %v3502_v32 = vmax.f32 %v6427_v17, 0.0001  ;;  %v6233_v55 = vpop.permute.xlu1 %6232 }
 0x1d8   :  { %v6431_v29 = vpop.eup %6430  ;;  %v8344_v27 = vmin.f32 %v3254_v56, -0.000100005  ;;  %v4206_v10 = vmul.f32 %v4142_v15, %v8264_v9  ;;  %v3053_v25 = vmax.f32 %v2989_v51, -9.2103405  ;;  %v8352_v54 = vadd.f32 %v4924_v37, %v8083_v58 }
 0x1d9   :  { %v3565_v0 = vmin.f32 %v3501_v52, 0.9999  ;;  %v8349_v21 = vpop.eup %6432  ;;  %v3054_v8 = vmax.f32 %v2990_v61, -9.2103405  ;;  %v3566_v45 = vmin.f32 %v3502_v32, 0.9999  ;;  %v6234_v33 = vunpack.i.l.bf16 %v6233_v55 }
 0x1da   :  { %v2491_v4 = vadd.f32 1.0, %v8340_v3  ;;  %v3573_v57 = vmin.f32 %v3509_v30, 0.9999  ;;  %v3309_v16 = vmin.f32 %v3245_v36, -0.000100005  ;;  %v2500_v58 = vadd.f32 1.0, %v8349_v21 }
 0x1db   :  { %v4269_v12 = vsub.f32 1.0, %v3565_v0  ;;  %v4525_v56 = vmul.f32 %v3565_v0, %v3565_v0  ;;  %v3510_v9 = vmax.f32 %v6431_v29, 0.0001  ;;  %v3310_v15 = vmin.f32 %v3246_v24, -0.000100005 }
 0x1dc   :  { %v4270_v39 = vsub.f32 1.0, %v3566_v45  ;;  %v4526_v51 = vmul.f32 %v3566_v45, %v3566_v45  ;;  %v3117_v17 = vmin.f32 %v3053_v25, -0.000100005  ;;  %v3118_v37 = vmin.f32 %v3054_v8, -0.000100005 }
 0x1dd   :  { %v4333_v52 = vmul.f32 %v4269_v12, %v4269_v12  ;;  %v4589_v13 = vmul.f32 %v4525_v56, %v3309_v16  ;;  %6434 = vlog2.f32 %v2491_v4  ;;  %v2103_v30 = vand.u32 2147483647, %v8213_v38 }
 0x1de   :  { %v4334_v46 = vmul.f32 %v4270_v39, %v4270_v39  ;;  %v4590_v61 = vmul.f32 %v4526_v51, %v3310_v15  ;;  %v6235_v36 = vunpack.i.h.bf16 %v6233_v55  ;;  %v3574_v0 = vmin.f32 %v3510_v9, 0.9999 }
 0x1df   :  { %v4397_v32 = vmul.f32 %v4333_v52, %v3117_v17  ;;  %v4653_v14 = vmul.f32 %v4589_v13, %v4205_v43  ;;  %v2494_v25 = vmul.f32 -0.5, %v8340_v3  ;;  %6436 = vlog2.f32 %v2500_v58 }
 0x1e0   :  { %v4398_v29 = vmul.f32 %v4334_v46, %v3118_v37  ;;  %v4654_v24 = vmul.f32 %v4590_v61, %v4206_v10  ;;  %v4277_v16 = vsub.f32 1.0, %v3573_v57  ;;  %v4533_v12 = vmul.f32 %v3573_v57, %v3573_v57 }
 0x1e1   :  { %v4461_v45 = vmul.f32 %v5235_v34, %v4397_v32  ;;  %v4717_v28 = vmul.f32 %v5299_v41, %v4653_v14  ;;  %v2167_v43 = vsub.f32 0.0, %v2103_v30  ;;  %v1648_v9 = vmul.f32 %v6235_v36, %v7928_v48  ;;  %v8369_v41 = vld [vmem:[%s11866_s3 + $0x80] sm:$0xff] }
 0x1e2   :  { %v4462_v8 = vmul.f32 %v8311_v26, %v4398_v29  ;;  %v4718_v56 = vmul.f32 %v5300_v2, %v4654_v24  ;;  %v2503_v26 = vmul.f32 -0.5, %v8349_v21  ;;  %v1647_v2 = vmul.f32 %v6234_v33, %v7928_v48 }
 0x1e3   :  { %v4784_v4 = vsel %vm4780_vm6, %v4461_v45, 0.0  ;;  %v5064_v13 = vsel %vm4780_vm6, %v4717_v28, 0.0  ;;  %v6435_v15 = vpop.eup %6434  ;;  %v4278_v14 = vsub.f32 1.0, %v3574_v0  ;;  %v4534_v39 = vmul.f32 %v3574_v0, %v3574_v0 }
 0x1e4   :  { %v4785_v10 = vadd.f32 %v4784_v4, %v8054_v19  ;;  %v5065_v34 = vadd.f32 %v5064_v13, %v8056_v47  ;;  %v4786_v28 = vsel %vm4780_vm6, %v4462_v8, 0.0  ;;  %v5066_v57 = vsel %vm4780_vm6, %v4718_v56, 0.0  ;;  %v8378_v19 = vld [vmem:[%s11866_s3 + $0x88] sm:$0xff] }
 0x1e5   :  { %v2495_v47 = vadd.f32 1.0, %v2494_v25  ;;  %v2497_v17 = vand.u32 2147483647, %v8340_v3  ;;  %v6437_v52 = vpop.eup %6436  ;;  %v8386_v33 = vsub.f32 1.0, %v8369_v41  ;;  %v1979_v58 = vsub.f32 0.0, %v8187_v20 }
 0x1e6   :  { %v8380_v51 = vadd.f32 %v4786_v28, %v4785_v10  ;;  %v8382_v55 = vadd.f32 %v5066_v57, %v5065_v34  ;;  %v2493_v37 = vmul.f32 0.6931472, %v6435_v15  ;;  %v2243_v46 = vmul.f32 1.442695, %v2167_v43 }
 0x1e7   :  { %v8390_v61 = vsub.f32 1.0, %v8378_v19  ;;  %v2504_v32 = vadd.f32 1.0, %v2503_v26  ;;  %v8393_v30 = vadd.f32 %v1647_v2, %v7748_v5  ;;  %v8396_v36 = vadd.f32 %v1648_v9, %v7751_v62 }
 0x1e8   :  { %v4341_v0 = vmul.f32 %v4277_v16, %v4277_v16  ;;  %v4597_v29 = vmul.f32 %v4533_v12, %v8330_v22  ;;  %v2496_v24 = vmul.f32 %v8340_v3, %v2495_v47  ;;  %v2506_v45 = vand.u32 2147483647, %v8349_v21 }
 0x1e9   :  { %v4342_v25 = vmul.f32 %v4278_v14, %v4278_v14  ;;  %v4598_v8 = vmul.f32 %v4534_v39, %v8344_v27  ;;  %vm8402_vm10 = vcmp.lt.f32.partialorder %v2497_v17, 0.0004427343  ;;  %v2502_v4 = vmul.f32 0.6931472, %v6437_v52 }
 0x1ea   :  { %v1980_v5 = vsub.f32 0.0, %v8190_v44  ;;  %v2499_v62 = vsel %vm8402_vm10, %v2496_v24, %v2493_v37  ;;  %v2104_v16 = vand.u32 2147483647, %v8207_v31  ;;  %6438 = vpow2.f32 %v2243_v46 }
 0x1eb   :  { %v4091_v22 = vmul.f32 %v8386_v33, %v8386_v33  ;;  %v2043_v3 = vmax.f32 %v1979_v58, 0.0  ;;  %v2505_v27 = vmul.f32 %v8349_v21, %v2504_v32  ;;  %v5504_v12 = vpack.c.bf16 %v8396_v36, %v8393_v30 }
 0x1ec   :  { %v12199_v13 = vmin.f32 %v8307_v53, -0.000100005  ;;  %v4661_v9 = vmul.f32 %v4597_v29, %v8256_v50  ;;  %v4092_v15 = vmul.f32 %v8390_v61, %v8390_v61  ;;  %vm8422_vm11 = vcmp.lt.f32.partialorder %v2506_v45, 0.0004427343 }
 0x1ed   :  { %v12202_v34 = vmin.f32 %v8316_v63, -0.000100005  ;;  %v4662_v21 = vmul.f32 %v4598_v8, %v8273_v40  ;;  %v2508_v2 = vsel %vm8422_vm11, %v2505_v27, %v2502_v4  ;;  %v8431_v14 = vadd.f32 %v2499_v62, %v2043_v3  ;;  %5683 = vst [vmem:[#allocation2 + $0x10] sm:$0xff] %v5504_v12  }
 0x1ee   :  { %v4405_v43 = vmul.f32 %v4341_v0, %v12199_v13  ;;  %v8435_v50 = vsel %vm4780_vm6, %v8338_v60, 0.0  ;;  %v2044_v53 = vmax.f32 %v1980_v5, 0.0  ;;  %v2168_v28 = vsub.f32 0.0, %v2104_v16 }
 0x1ef   :  { %v4406_v26 = vmul.f32 %v4342_v25, %v12202_v34  ;;  %12203 = vst [vmem:[#allocation62_spill] sm:$0xff] %v8435_v50  ;;  %v2095_v57 = vand.u32 2147483647, %v8393_v30  ;;  %v8442_v63 = vadd.f32 %v8335_v59, %v8352_v54  ;;  %vm3643_vm12 = vcmp.eq.f32.partialorder %v8369_v41, 1.0  ;;  %v1911_v59 = vld [vmem:[%s11866_s3 + $0x60] sm:$0xff] }
 0x1f0   :  { %v4155_v40 = vmul.f32 %v4091_v22, %v8386_v33  ;;  %v11923_v47 = vsub.f32 0.0, %v8213_v38  ;;  %v8447_v39 = vpop.eup %6438  ;;  %v4469_v60 = vmul.f32 %v8155_v11, %v4405_v43  ;;  %v4725_v17 = vmul.f32 %v8171_v18, %v4661_v9  ;;  %v1912_v11 = vld [vmem:[%s11866_s3 + $0x68] sm:$0xff] }
 0x1f1   :  { %vm3644_vm13 = vcmp.eq.f32.partialorder %v8378_v19, 1.0  ;;  %v8452_v52 = vadd.f32 %v2508_v2, %v2044_v53  ;;  %v4470_v54 = vmul.f32 %v8158_v1, %v4406_v26  ;;  %v4726_v37 = vmul.f32 %v8175_v49, %v4662_v21 }
 0x1f2   :  { %v4156_v46 = vmul.f32 %v4092_v15, %v8390_v61  ;;  %v3003_v32 = vsub.f32 0.0, %v8431_v14  ;;  %v8465_v18 = vsel %vm3643_vm12, 1.0, %v12173_v35  ;;  %vm3835_vm14 = vcmp.lt.f32.partialorder %v8369_v41, 1.0 }
 0x1f3   :  { %v2245_v0 = vmul.f32 1.442695, %v2168_v28  ;;  %v2159_v29 = vsub.f32 0.0, %v2095_v57  ;;  %v8469_v24 = vsel %vm3644_vm13, 1.0, %v12173_v35  ;;  %vm3836_vm15 = vcmp.lt.f32.partialorder %v8378_v19, 1.0 }
 0x1f4   :  { %v4023_v49 = vsub.f32 1.0, %v1911_v59  ;;  %v2455_v1 = vadd.f32 1.0, %v8447_v39  ;;  %v8474_v45 = vsel %vm4780_vm6, %v4469_v60, 0.0  ;;  %v8477_v25 = vsel %vm4780_vm6, %v4725_v17, 0.0 }
 0x1f5   :  { %12204 = vst [vmem:[#allocation63_spill] sm:$0xff] %v8474_v45  ;;  %v3004_v8 = vsub.f32 0.0, %v8452_v52  ;;  %v4024_v56 = vsub.f32 1.0, %v1912_v11  ;;  %v8481_v41 = vsel %vm4780_vm6, %v4470_v54, 0.0  ;;  %v8484_v4 = vsel %vm4780_vm6, %v4726_v37, 0.0 }
 0x1f6   :  { %12205 = vst [vmem:[#allocation64_spill] sm:$0xff] %v8477_v25  ;;  %v8487_v19 = vsel %vm3835_vm14, 1.0, %v12173_v35  ;;  %v3403_v62 = vmul.f32 1.442695, %v3003_v32  ;;  %v8490_v16 = vsel %vm3836_vm15, 1.0, %v12173_v35  ;;  %v8493_v22 = vmul.f32 %v4155_v40, %v8386_v33 }
 0x1f7   :  { %12206 = vst [vmem:[#allocation65_spill] sm:$0xff] %v8481_v41  ;;  %6440 = vpow2.f32 %v2245_v0  ;;  %v2227_v3 = vmul.f32 1.442695, %v2159_v29  ;;  %v8496_v27 = vmul.f32 %v4156_v46, %v8390_v61  ;;  %v4087_v12 = vmul.f32 %v4023_v49, %v4023_v49 }
 0x1f8   :  { %12207 = vst [vmem:[#allocation66_spill] sm:$0xff] %v8484_v4  ;;  %v11922_v13 = vsub.f32 0.0, %v8207_v31  ;;  %6442 = vlog2.f32 %v2455_v1  ;;  %v8501_v43 = vsel %vm4780_vm6, %v8465_v18, 0.0  ;;  %v8505_v9 = vsel %vm4780_vm6, %v8469_v24, 0.0 }
 0x1f9   :  { %12208 = vst [vmem:[#allocation67_spill] sm:$0xff] %v8501_v43  ;;  %v3405_v15 = vmul.f32 1.442695, %v3004_v8  ;;  %v4088_v33 = vmul.f32 %v4024_v56, %v4024_v56  ;;  %6444 = vpow2.f32 %v3403_v62  ;;  %vm3639_vm0 = vcmp.eq.f32.partialorder %v1911_v59, 1.0 }
 0x1fa   :  { %12209 = vst [vmem:[#allocation68_spill] sm:$0xff] %v8505_v9  ;;  %vm3640_vm1 = vcmp.eq.f32.partialorder %v1912_v11, 1.0  ;;  %vm3831_vm2 = vcmp.lt.f32.partialorder %v1911_v59, 1.0  ;;  %v3195_v61 = vsub.f32 %v1979_v58, %v8431_v14  ;;  %vm3832_vm3 = vcmp.lt.f32.partialorder %v1912_v11, 1.0  ;;  %v6278_v59 = vpop.permute.xlu2 %6277 }
 0x1fb   :  { %v2458_v10 = vmul.f32 -0.5, %v8447_v39  ;;  %6446 = vpow2.f32 %v2227_v3  ;;  %v4151_v34 = vmul.f32 %v4087_v12, %v4023_v49  ;;  %v2039_v26 = vmax.f32 %v11923_v47, 0.0 }
 0x1fc   :  { %v8515_v21 = vmax.f32 %v11922_v13, 0.0  ;;  %v2096_v2 = vand.u32 2147483647, %v8396_v36  ;;  %6448 = vpow2.f32 %v3405_v15  ;;  %v8519_v28 = vsel %vm3639_vm0, 1.0, %v12173_v35 }
 0x1fd   :  { %v6441_v53 = vpop.eup %6440  ;;  %v8522_v20 = vsel %vm3640_vm1, 1.0, %v12173_v35  ;;  %v8525_v58 = vsel %vm3831_vm2, 1.0, %v12173_v35  ;;  %v8527_v57 = vmax.f32 %v3003_v32, -9.2103405  ;;  %v3196_v40 = vsub.f32 %v1980_v5, %v8452_v52 }
 0x1fe   :  { %12210 = vst [vmem:[#allocation69_spill] sm:$0xff] %v8522_v20  ;;  %v6443_v14 = vpop.eup %6442  ;;  %v8533_v60 = vsel %vm3832_vm3, 1.0, %v12173_v35  ;;  %v4152_v17 = vmul.f32 %v4088_v33, %v4024_v56  ;;  %v3259_v54 = vmax.f32 %v3195_v61, -9.2103405  ;;  %v8537_v37 = vsel %vm4780_vm6, %v8519_v28, 0.0 }
 0x1ff   :  { %12211 = vst [vmem:[#allocation70_spill] sm:$0xff] %v8533_v60  ;;  %v2459_v46 = vadd.f32 1.0, %v2458_v10  ;;  %v2461_v11 = vand.u32 2147483647, %v8447_v39  ;;  %v6445_v0 = vpop.eup %6444  ;;  %v8540_v32 = vmax.f32 %v3004_v8, -9.2103405  ;;  %v8542_v29 = vmul.f32 %v4151_v34, %v4023_v49 }
 0x200   :  { %12212 = vst [vmem:[#allocation71_spill] sm:$0xff] %v8537_v37  ;;  %v8546_v44 = vsel %vm4780_vm6, %v8522_v20, 0.0  ;;  %v2160_v5 = vsub.f32 0.0, %v2096_v2  ;;  %v2457_v1 = vmul.f32 0.6931472, %v6443_v14  ;;  %v2464_v62 = vadd.f32 1.0, %v6441_v53 }
 0x201   :  { %12213 = vst [vmem:[#allocation72_spill] sm:$0xff] %v8546_v44  ;;  %v8548_v52 = vpop.eup %6446  ;;  %v6280_v3 = vunpack.i.h.bf16 %v6278_v59  ;;  %v6279_v12 = vunpack.i.l.bf16 %v6278_v59  ;;  %v3260_v33 = vmax.f32 %v3196_v40, -9.2103405  ;;  %v8551_v61 = vmul.f32 %v4152_v17, %v4024_v56  ;;  %v8568_v17 = vld [vmem:[%s11866_s3 + $0x20] sm:$0xff] }
 0x202   :  { %v2467_v8 = vmul.f32 -0.5, %v6441_v53  ;;  %v6449_v10 = vpop.eup %6448  ;;  %v8553_v49 = vmin.f32 %v3259_v54, -0.000100005  ;;  %v3515_v34 = vmax.f32 %v6445_v0, 0.0001  ;;  %v2460_v13 = vmul.f32 %v8447_v39, %v2459_v46 }
 0x203   :  { %12214 = vst [vmem:[#allocation73_spill] sm:$0xff] %v8551_v61  ;;  %vm8556_vm4 = vcmp.lt.f32.partialorder %v2461_v11, 0.0004427343  ;;  %v11924_v14 = vsub.f32 0.0, %v8393_v30  ;;  %v11925_v59 = vsub.f32 0.0, %v8396_v36  ;;  %v2383_v40 = vadd.f32 1.0, %v8548_v52 }
 0x204   :  { %v2229_v47 = vmul.f32 1.442695, %v2160_v5  ;;  %v2463_v56 = vsel %vm8556_vm4, %v2460_v13, %v2457_v1  ;;  %6450 = vlog2.f32 %v2464_v62  ;;  %v1666_v39 = vmul.f32 %v6280_v3, %v7928_v48  ;;  %v8575_v5 = vld [vmem:[%s11866_s3 + $0x28] sm:$0xff] }
 0x205   :  { %v1665_v54 = vmul.f32 %v6279_v12, %v7928_v48  ;;  %v3516_v46 = vmax.f32 %v6449_v10, 0.0001  ;;  %v2468_v11 = vadd.f32 1.0, %v2467_v8  ;;  %v2470_v0 = vand.u32 2147483647, %v6441_v53 }
 0x206   :  { %6452 = vpow2.f32 %v2229_v47  ;;  %v3579_v1 = vmin.f32 %v3515_v34, 0.9999  ;;  %v2386_v62 = vmul.f32 -0.5, %v8548_v52  ;;  %v3324_v2 = vmin.f32 %v3260_v33, -0.000100005  ;;  %v12217_v34 = vld [vmem:[#allocation12_spill] sm:$0xff] }
 0x207   :  { %6454 = vlog2.f32 %v2383_v40  ;;  %v2935_v15 = vadd.f32 %v2463_v56, %v2039_v26  ;;  %v8580_v3 = vsub.f32 1.0, %v8568_v17  ;;  %v2031_v12 = vmax.f32 %v11924_v14, 0.0 }
 0x208   :  { %v8585_v8 = vsub.f32 1.0, %v8575_v5  ;;  %v8589_v47 = vmax.f32 %v11925_v59, 0.0  ;;  %v8592_v10 = vadd.f32 %v1665_v54, %v7754_v42  ;;  %v8595_v40 = vadd.f32 %v1666_v39, %v12217_v34 }
 0x209   :  { %v3580_v26 = vmin.f32 %v3516_v46, 0.9999  ;;  %v2469_v33 = vmul.f32 %v6441_v53, %v2468_v11  ;;  %vm8597_vm5 = vcmp.lt.f32.partialorder %v2470_v0, 0.0004427343  ;;  %vm3631_vm7 = vcmp.eq.f32.partialorder %v8568_v17, 1.0 }
 0x20a   :  { %v6451_v14 = vpop.eup %6450  ;;  %v4283_v13 = vsub.f32 1.0, %v3579_v1  ;;  %vm3632_vm8 = vcmp.eq.f32.partialorder %v8575_v5, 1.0  ;;  %v2387_v59 = vadd.f32 1.0, %v2386_v62  ;;  %v5549_v42 = vpack.c.bf16 %v8595_v40, %v8592_v10 }
 0x20b   :  { %v2999_v9 = vsub.f32 0.0, %v2935_v15  ;;  %v12220_v39 = vsub.f32 0.0, %v8213_v38  ;;  %v4079_v53 = vmul.f32 %v8580_v3, %v8580_v3  ;;  %v2389_v11 = vand.u32 2147483647, %v8548_v52 }
 0x20c   :  { %v6453_v54 = vpop.eup %6452  ;;  %v4539_v34 = vmul.f32 %v3579_v1, %v3579_v1  ;;  %v8611_v43 = vsel %vm3631_vm7, 1.0, %v12173_v35  ;;  %v8615_v62 = vmul.f32 %v8585_v8, %v8585_v8  ;;  %5692 = vst [vmem:[#allocation2 + $0x58] sm:$0xff] %v5549_v42   ;;  %v4284_v37 = vsub.f32 1.0, %v3580_v26 }
 0x20d   :  { %v3191_v46 = vsub.f32 %v12220_v39, %v2935_v15  ;;  %v6455_v0 = vpop.eup %6454  ;;  %v2392_v44 = vadd.f32 1.0, %v6453_v54  ;;  %v2466_v4 = vmul.f32 0.6931472, %v6451_v14  ;;  %v8620_v38 = vsel %vm3632_vm8, 1.0, %v12173_v35 }
 0x20e   :  { %v2395_v15 = vmul.f32 -0.5, %v6453_v54  ;;  %v4347_v39 = vmul.f32 %v4283_v13, %v4283_v13  ;;  %v2385_v41 = vmul.f32 0.6931472, %v6455_v0  ;;  %v2388_v1 = vmul.f32 %v8548_v52, %v2387_v59 }
 0x20f   :  { %6456 = vlog2.f32 %v2392_v44  ;;  %v4540_v25 = vmul.f32 %v3580_v26, %v3580_v26  ;;  %v8623_v45 = vmax.f32 %v2999_v9, -9.2103405  ;;  %v3255_v50 = vmax.f32 %v3191_v46, -9.2103405 }
 0x210   :  { %vm2390_vm9 = vcmp.lt.f32.partialorder %v2389_v11, 0.0004427343  ;;  %v4603_v42 = vmul.f32 %v4539_v34, %v8553_v49  ;;  %v3395_v14 = vmul.f32 1.442695, %v2999_v9  ;;  %vm3823_vm10 = vcmp.lt.f32.partialorder %v8568_v17, 1.0 }
 0x211   :  { %v2391_v60 = vsel %vm2390_vm9, %v2388_v1, %v2385_v41  ;;  %v4348_v20 = vmul.f32 %v4284_v37, %v4284_v37  ;;  %v2472_v13 = vsel %vm8597_vm5, %v2469_v33, %v2466_v4  ;;  %v2396_v0 = vadd.f32 1.0, %v2395_v15 }
 0x212   :  { %v8629_v61 = vadd.f32 %v2391_v60, %v2031_v12  ;;  %v12221_v44 = vmin.f32 %v8527_v57, -0.000100005  ;;  %v8634_v59 = vmul.f32 %v4079_v53, %v8580_v3  ;;  %v2398_v26 = vand.u32 2147483647, %v6453_v54 }
 0x213   :  { %v6270_v46 = vunpack.i.h.bf16 %v6268_v6  ;;  %v4604_v49 = vmul.f32 %v4540_v25, %v3324_v2  ;;  %v3127_v9 = vmin.f32 %v8623_v45, -0.000100005  ;;  %v8637_v11 = vmin.f32 %v3255_v50, -0.000100005 }
 0x214   :  { %v4411_v52 = vmul.f32 %v4347_v39, %v12221_v44  ;;  %v2991_v41 = vsub.f32 0.0, %v8629_v61  ;;  %v4667_v4 = vmul.f32 %v4603_v42, %v8493_v22  ;;  %v2936_v60 = vadd.f32 %v2472_v13, %v8515_v21  ;;  %v6243_v21 = vpop.permute.xlu1 %6242 }
 0x215   :  { %v6457_v37 = vpop.eup %6456  ;;  %6458 = vpow2.f32 %v3395_v14  ;;  %vm3824_vm11 = vcmp.lt.f32.partialorder %v8575_v5, 1.0  ;;  %v12222_v57 = vmin.f32 %v8540_v32, -0.000100005  ;;  %v8648_v25 = vsel %vm3823_vm10, 1.0, %v12173_v35 }
 0x216   :  { %v2394_v50 = vmul.f32 0.6931472, %v6457_v37  ;;  %v2397_v2 = vmul.f32 %v6453_v54, %v2396_v0  ;;  %v4475_v33 = vmul.f32 %v8465_v18, %v4411_v52  ;;  %vm2399_vm12 = vcmp.lt.f32.partialorder %v2398_v26, 0.0004427343  ;;  %v12223_v0 = vld [vmem:[#allocation11_spill] sm:$0xff] }
 0x217   :  { %v4412_v12 = vmul.f32 %v4348_v20, %v12222_v57  ;;  %v3379_v56 = vmul.f32 1.442695, %v2991_v41  ;;  %v1662_v22 = vmul.f32 %v6270_v46, %v7928_v48  ;;  %v4668_v53 = vmul.f32 %v4604_v49, %v8496_v27  ;;  %v12226_v57 = vld [vmem:[#allocation8_spill] sm:$0xff] }
 0x218   :  { %v2400_v34 = vsel %vm2399_vm12, %v2397_v2, %v2394_v50  ;;  %v2113_v32 = vand.u32 2147483647, %v8592_v10  ;;  %v2114_v20 = vand.u32 2147483647, %v8595_v40  ;;  %v4731_v17 = vmul.f32 %v8487_v19, %v4667_v4 }
 0x219   :  { %v8657_v15 = vadd.f32 %v2400_v34, %v8589_v47  ;;  %6460 = vpow2.f32 %v3379_v56  ;;  %v6269_v54 = vunpack.i.l.bf16 %v6268_v6  ;;  %v3000_v18 = vsub.f32 0.0, %v2936_v60 }
 0x21a   :  { %v2177_v39 = vsub.f32 0.0, %v2113_v32  ;;  %v2178_v1 = vsub.f32 0.0, %v2114_v20  ;;  %v6245_v42 = vunpack.i.h.bf16 %v6243_v21  ;;  %v8662_v44 = vadd.f32 %v1662_v22, %v12223_v0 }
 0x21b   :  { %v6459_v14 = vpop.eup %6458  ;;  %v2992_v13 = vsub.f32 0.0, %v8657_v15  ;;  %v1661_v27 = vmul.f32 %v6269_v54, %v7928_v48  ;;  %v6244_v52 = vunpack.i.l.bf16 %v6243_v21  ;;  %v12224_v19 = vsub.f32 0.0, %v8207_v31 }
 0x21c   :  { %v12225_v6 = vsub.f32 0.0, %v8393_v30  ;;  %v2263_v46 = vmul.f32 1.442695, %v2177_v39  ;;  %v2265_v49 = vmul.f32 1.442695, %v2178_v1  ;;  %v8674_v37 = vsel %vm3824_vm11, 1.0, %v12173_v35 }
 0x21d   :  { %v8666_v26 = vsub.f32 %v12224_v19, %v2936_v60  ;;  %v3381_v4 = vmul.f32 1.442695, %v2992_v13  ;;  %v8677_v50 = vadd.f32 %v1661_v27, %v12226_v57  ;;  %v1652_v2 = vmul.f32 %v6245_v42, %v7928_v48 }
 0x21e   :  { %v3183_v47 = vsub.f32 %v12225_v6, %v8629_v61  ;;  %v3397_v31 = vmul.f32 1.442695, %v3000_v18  ;;  %v4144_v60 = vmul.f32 %v8615_v62, %v8585_v8  ;;  %6462 = vpow2.f32 %v2263_v46 }
 0x21f   :  { %v1651_v30 = vmul.f32 %v6244_v52, %v7928_v48  ;;  %v6461_v61 = vpop.eup %6460  ;;  %v8684_v56 = vmul.f32 %v8469_v24, %v4412_v12  ;;  %v8687_v5 = vmul.f32 %v8490_v16, %v4668_v53  ;;  %6464 = vpow2.f32 %v3381_v4  ;;  %v12229_v24 = vld [vmem:[#allocation19_spill] sm:$0xff]  ;;  %v12230_v16 = vld [vmem:[#allocation41_spill] sm:$0xff] }
 0x220   :  { %v5539_v22 = vpack.c.bf16 %v8662_v44, %v8677_v50  ;;  %v8692_v21 = vsel %vm4780_vm6, %v4475_v33, 0.0  ;;  %v3247_v34 = vmax.f32 %v3183_v47, -9.2103405  ;;  %v3503_v32 = vmax.f32 %v6461_v61, 0.0001 }
 0x221   :  { %12227 = vst [vmem:[#allocation12_spill] sm:$0xff] %v8692_v21  ;;  %6466 = vpow2.f32 %v2265_v49  ;;  %v3511_v62 = vmax.f32 %v6459_v14, 0.0001  ;;  %v12228_v20 = vsub.f32 0.0, %v8396_v36  ;;  %v8698_v12 = vadd.f32 %v1651_v30, %v12229_v24 }
 0x222   :  { %5690 = vst [vmem:[#allocation2 + $0x48] sm:$0xff] %v5539_v22   ;;  %v8701_v53 = vadd.f32 %v1652_v2, %v12230_v16  ;;  %v8704_v39 = vsel %vm4780_vm6, %v4731_v17, 0.0  ;;  %6468 = vpow2.f32 %v3397_v31  ;;  %v3055_v33 = vmax.f32 %v2991_v41, -9.2103405 }
 0x223   :  { %v3184_v54 = vsub.f32 %v12228_v20, %v8657_v15  ;;  %12231 = vst [vmem:[#allocation11_spill] sm:$0xff] %v8704_v39  ;;  %v3567_v1 = vmin.f32 %v3503_v32, 0.9999  ;;  %v8706_v42 = vmax.f32 %v3000_v18, -9.2103405  ;;  %v4207_v36 = vmul.f32 %v8634_v59, %v8580_v3  ;;  %v8721_v3 = vld [vmem:[%s11866_s3 + $0xb0] sm:$0xff] }
 0x224   :  { %v3256_v14 = vmax.f32 %v8666_v26, -9.2103405  ;;  %v5514_v15 = vpack.c.bf16 %v8701_v53, %v8698_v12  ;;  %v8713_v27 = vpop.eup %6462  ;;  %v4928_v0 = vsel %vm4780_vm6, %v8611_v43, 0.0  ;;  %v3311_v17 = vmin.f32 %v3247_v34, -0.000100005 }
 0x225   :  { %v4271_v52 = vsub.f32 1.0, %v3567_v1  ;;  %v4527_v19 = vmul.f32 %v3567_v1, %v3567_v1  ;;  %v6465_v41 = vpop.eup %6464  ;;  %v3575_v6 = vmin.f32 %v3511_v62, 0.9999  ;;  %v4208_v18 = vmul.f32 %v4144_v60, %v8585_v8  ;;  %v8740_v1 = vld [vmem:[%s11866_s3 + $0xb8] sm:$0xff] }
 0x226   :  { %v3248_v47 = vmax.f32 %v3184_v54, -9.2103405  ;;  %v2545_v59 = vadd.f32 1.0, %v8713_v27  ;;  %v3119_v49 = vmin.f32 %v3055_v33, -0.000100005  ;;  %5685 = vst [vmem:[#allocation2 + $0x20] sm:$0xff] %v5514_v15   ;;  %v4929_v15 = vadd.f32 %v4928_v0, %v8442_v63 }
 0x227   :  { %v8724_v46 = vpop.eup %6466  ;;  %v3504_v4 = vmax.f32 %v6465_v41, 0.0001  ;;  %v4335_v57 = vmul.f32 %v4271_v52, %v4271_v52  ;;  %v4591_v2 = vmul.f32 %v4527_v19, %v3311_v17  ;;  %v8728_v31 = vsel %vm4780_vm6, %v8620_v38, 0.0 }
 0x228   :  { %v3056_v8 = vmax.f32 %v2992_v13, -9.2103405  ;;  %6470 = vlog2.f32 %v2545_v59  ;;  %v2554_v60 = vadd.f32 1.0, %v8724_v46  ;;  %v6469_v30 = vpop.eup %6468  ;;  %v8732_v32 = vsub.f32 1.0, %v8721_v3 }
 0x229   :  { %v3568_v61 = vmin.f32 %v3504_v4, 0.9999  ;;  %v4399_v22 = vmul.f32 %v4335_v57, %v3119_v49  ;;  %v4655_v34 = vmul.f32 %v4591_v2, %v4207_v36  ;;  %v4279_v62 = vsub.f32 1.0, %v3575_v6 }
 0x22a   :  { %v3312_v20 = vmin.f32 %v3248_v47, -0.000100005  ;;  %v2548_v54 = vmul.f32 -0.5, %v8713_v27  ;;  %6472 = vlog2.f32 %v2554_v60  ;;  %v3512_v36 = vmax.f32 %v6469_v30, 0.0001 }
 0x22b   :  { %v4272_v24 = vsub.f32 1.0, %v3568_v61  ;;  %v4463_v16 = vmul.f32 %v8611_v43, %v4399_v22  ;;  %v4528_v33 = vmul.f32 %v3568_v61, %v3568_v61  ;;  %v4719_v13 = vmul.f32 %v8648_v25, %v4655_v34 }
 0x22c   :  { %v3120_v17 = vmin.f32 %v3056_v8, -0.000100005  ;;  %v2109_v52 = vand.u32 2147483647, %v8677_v50  ;;  %v2557_v4 = vmul.f32 -0.5, %v8724_v46  ;;  %v8751_v0 = vsub.f32 1.0, %v8740_v1 }
 0x22d   :  { %v4336_v19 = vmul.f32 %v4272_v24, %v4272_v24  ;;  %v4592_v41 = vmul.f32 %v4528_v33, %v3312_v20  ;;  %v4788_v47 = vsel %vm4780_vm6, %v4463_v16, 0.0  ;;  %v5068_v43 = vsel %vm4780_vm6, %v4719_v13, 0.0 }
 0x22e   :  { %v6471_v59 = vpop.eup %6470  ;;  %v4789_v25 = vadd.f32 %v4788_v47, %v8380_v51  ;;  %v5069_v49 = vadd.f32 %v5068_v43, %v8382_v55  ;;  %v2110_v57 = vand.u32 2147483647, %v8662_v44  ;;  %v2549_v8 = vadd.f32 1.0, %v2548_v54 }
 0x22f   :  { %v4400_v2 = vmul.f32 %v4336_v19, %v3120_v17  ;;  %v4656_v63 = vmul.f32 %v4592_v41, %v4208_v18  ;;  %v4343_v30 = vmul.f32 %v4279_v62, %v4279_v62  ;;  %v4535_v61 = vmul.f32 %v3575_v6, %v3575_v6 }
 0x230   :  { %v6473_v60 = vpop.eup %6472  ;;  %v4097_v22 = vmul.f32 %v8732_v32, %v8732_v32  ;;  %v2551_v51 = vand.u32 2147483647, %v8713_v27  ;;  %v2547_v20 = vmul.f32 0.6931472, %v6471_v59  ;;  %v2173_v24 = vsub.f32 0.0, %v2109_v52  ;;  %v6293_v59 = vpop.permute.xlu2 %6292 }
 0x231   :  { %v4464_v55 = vmul.f32 %v8620_v38, %v4400_v2  ;;  %v4720_v34 = vmul.f32 %v8674_v37, %v4656_v63  ;;  %v3576_v16 = vmin.f32 %v3512_v36, 0.9999  ;;  %v1985_v18 = vsub.f32 0.0, %v8592_v10 }
 0x232   :  { %v2558_v33 = vadd.f32 1.0, %v2557_v4  ;;  %v2174_v13 = vsub.f32 0.0, %v2110_v57  ;;  %v2550_v62 = vmul.f32 %v8713_v27, %v2549_v8  ;;  %v2560_v17 = vand.u32 2147483647, %v8724_v46 }
 0x233   :  { %v4790_v54 = vsel %vm4780_vm6, %v4464_v55, 0.0  ;;  %v5070_v6 = vsel %vm4780_vm6, %v4720_v34, 0.0  ;;  %vm8763_vm13 = vcmp.lt.f32.partialorder %v2551_v51, 0.0004427343  ;;  %v2556_v37 = vmul.f32 0.6931472, %v6473_v60 }
 0x234   :  { %v4791_v19 = vadd.f32 %v4790_v54, %v4789_v25  ;;  %v5071_v41 = vadd.f32 %v5070_v6, %v5069_v49  ;;  %v4599_v36 = vmul.f32 %v4535_v61, %v8637_v11  ;;  %v1986_v52 = vsub.f32 0.0, %v8595_v40  ;;  %v12237_v6 = vld [vmem:[#allocation42_spill] sm:$0xff]  ;;  %v8949_v40 = vld [vmem:[%s11866_s3 + $0x48] sm:$0xff] }
 0x235   :  { %v2553_v47 = vsel %vm8763_vm13, %v2550_v62, %v2547_v20  ;;  %v2255_v43 = vmul.f32 1.442695, %v2173_v24  ;;  %v2049_v49 = vmax.f32 %v1985_v18, 0.0  ;;  %v2559_v4 = vmul.f32 %v8724_v46, %v2558_v33 }
 0x236   :  { %v8772_v27 = vadd.f32 %v8284_v23, %v4791_v19  ;;  %v8775_v25 = vadd.f32 %v8296_v7, %v5071_v41  ;;  %v4280_v57 = vsub.f32 1.0, %v3576_v16  ;;  %v4536_v11 = vmul.f32 %v3576_v16, %v3576_v16 }
 0x237   :  { %v4098_v2 = vmul.f32 %v8751_v0, %v8751_v0  ;;  %vm2561_vm14 = vcmp.lt.f32.partialorder %v2560_v17, 0.0004427343  ;;  %v8782_v8 = vadd.f32 %v2553_v47, %v2049_v49  ;;  %v2257_v60 = vmul.f32 1.442695, %v2174_v13  ;;  %v12238_v17 = vld [vmem:[#allocation45_spill] sm:$0xff] }
 0x238   :  { %v2562_v63 = vsel %vm2561_vm14, %v2559_v4, %v2556_v37  ;;  %v6295_v23 = vunpack.i.h.bf16 %v6293_v59  ;;  %v4407_v7 = vmul.f32 %v4343_v30, %v3127_v9  ;;  %v4663_v61 = vmul.f32 %v4599_v36, %v8542_v29  ;;  %v1918_v36 = vld [vmem:[%s11866_s3 + $0x98] sm:$0xff] }
 0x239   :  { %v2050_v51 = vmax.f32 %v1986_v52, 0.0  ;;  %6474 = vpow2.f32 %v2255_v43  ;;  %v8791_v46 = vsel %vm4780_vm6, %v8684_v56, 0.0  ;;  %v3128_v55 = vmin.f32 %v8706_v42, -0.000100005 }
 0x23a   :  { %12234 = vst [vmem:[#allocation8_spill] sm:$0xff] %v8791_v46  ;;  %v3320_v34 = vmin.f32 %v3256_v14, -0.000100005  ;;  %v4931_v20 = vadd.f32 %v8728_v31, %v4929_v15  ;;  %v4344_v24 = vmul.f32 %v4280_v57, %v4280_v57  ;;  %v1672_v29 = vmul.f32 %v6295_v23, %v7928_v48  ;;  %v8808_v14 = vld [vmem:[%s11866_s3 + $0x90] sm:$0xff] }
 0x23b   :  { %v8797_v45 = vadd.f32 %v2562_v63, %v2050_v51  ;;  %v6294_v9 = vunpack.i.l.bf16 %v6293_v59  ;;  %v4161_v16 = vmul.f32 %v4097_v22, %v8732_v32  ;;  %v3009_v33 = vsub.f32 0.0, %v8782_v8  ;;  %v12236_v22 = vld [vmem:[#allocation10_spill] sm:$0xff] }
 0x23c   :  { %v4600_v30 = vmul.f32 %v4536_v11, %v3320_v34  ;;  %6476 = vpow2.f32 %v2257_v60  ;;  %v4471_v56 = vmul.f32 %v8519_v28, %v4407_v7  ;;  %v4727_v42 = vmul.f32 %v8525_v58, %v4663_v61  ;;  %v12243_v23 = vld [vmem:[#allocation70_spill] sm:$0xff] }
 0x23d   :  { %v4162_v26 = vmul.f32 %v4098_v2, %v8751_v0  ;;  %v1671_v31 = vmul.f32 %v6294_v9, %v7928_v48  ;;  %v8813_v15 = vsel %vm4780_vm6, %v8687_v5, 0.0  ;;  %v8816_v13 = vadd.f32 %v12236_v22, %v4931_v20  ;;  %v12239_v5 = vld [vmem:[#allocation73_spill] sm:$0xff] }
 0x23e   :  { %12235 = vst [vmem:[#allocation19_spill] sm:$0xff] %v8813_v15  ;;  %vm3649_vm15 = vcmp.eq.f32.partialorder %v8721_v3, 1.0  ;;  %vm3650_vm0 = vcmp.eq.f32.partialorder %v8740_v1, 1.0  ;;  %v4408_v58 = vmul.f32 %v4344_v24, %v3128_v55  ;;  %v11929_v54 = vsub.f32 0.0, %v8797_v45  ;;  %v12242_v2 = vld [vmem:[#allocation69_spill] sm:$0xff] }
 0x23f   :  { %v8820_v28 = vpop.eup %6474  ;;  %v8824_v62 = vadd.f32 %v1671_v31, %v12237_v6  ;;  %v8827_v19 = vadd.f32 %v1672_v29, %v12238_v17  ;;  %v4664_v41 = vmul.f32 %v4600_v30, %v12239_v5  ;;  %v8831_v38 = vmul.f32 %v4161_v16, %v8732_v32 }
 0x240   :  { %v3415_v37 = vmul.f32 1.442695, %v3009_v33  ;;  %v4029_v47 = vsub.f32 1.0, %v8808_v14  ;;  %v8840_v43 = vsel %vm4780_vm6, %v4471_v56, 0.0  ;;  %v8843_v59 = vsel %vm4780_vm6, %v4727_v42, 0.0 }
 0x241   :  { %12240 = vst [vmem:[#allocation41_spill] sm:$0xff] %v8840_v43  ;;  %vm3841_vm1 = vcmp.lt.f32.partialorder %v8721_v3, 1.0  ;;  %v8847_v32 = vmul.f32 %v4162_v26, %v8751_v0  ;;  %v8854_v4 = vsel %vm3649_vm15, 1.0, %v12173_v35  ;;  %v8859_v57 = vsel %vm3650_vm0, 1.0, %v12173_v35 }
 0x242   :  { %12241 = vst [vmem:[#allocation10_spill] sm:$0xff] %v8843_v59  ;;  %v8849_v49 = vpop.eup %6476  ;;  %vm3842_vm2 = vcmp.lt.f32.partialorder %v8740_v1, 1.0  ;;  %v2509_v11 = vadd.f32 1.0, %v8820_v28  ;;  %v4472_v63 = vmul.f32 %v12242_v2, %v4408_v58  ;;  %v3417_v0 = vmul.f32 1.442695, %v11929_v54 }
 0x243   :  { %v4030_v60 = vsub.f32 1.0, %v1918_v36  ;;  %v5564_v3 = vpack.c.bf16 %v8827_v19, %v8824_v62  ;;  %v4728_v7 = vmul.f32 %v12243_v23, %v4664_v41  ;;  %v8870_v61 = vsel %vm3841_vm1, 1.0, %v12173_v35 }
 0x244   :  { %6478 = vpow2.f32 %v3415_v37  ;;  %v4093_v51 = vmul.f32 %v4029_v47, %v4029_v47  ;;  %v8873_v1 = vsel %vm3842_vm2, 1.0, %v12173_v35  ;;  %v8877_v55 = vsel %vm4780_vm6, %v8854_v4, 0.0 }
 0x245   :  { %12244 = vst [vmem:[#allocation42_spill] sm:$0xff] %v8877_v55  ;;  %v11927_v34 = vsub.f32 0.0, %v8662_v44  ;;  %v2518_v20 = vadd.f32 1.0, %v8849_v49  ;;  %v8883_v24 = vsel %vm4780_vm6, %v8859_v57, 0.0  ;;  %v11928_v29 = vsub.f32 0.0, %v8677_v50 }
 0x246   :  { %5695 = vst [vmem:[#allocation2 + $0x70] sm:$0xff] %v5564_v3   ;;  %6480 = vlog2.f32 %v2509_v11  ;;  %v2099_v9 = vand.u32 2147483647, %v8698_v12  ;;  %v8888_v30 = vsel %vm4780_vm6, %v4472_v63, 0.0  ;;  %v4094_v16 = vmul.f32 %v4030_v60, %v4030_v60 }
 0x247   :  { %12245 = vst [vmem:[#allocation45_spill] sm:$0xff] %v8883_v24  ;;  %6482 = vpow2.f32 %v3417_v0  ;;  %v2100_v56 = vand.u32 2147483647, %v8701_v53  ;;  %v8892_v42 = vsel %vm4780_vm6, %v4728_v7, 0.0  ;;  %vm3645_vm3 = vcmp.eq.f32.partialorder %v8808_v14, 1.0 }
 0x248   :  { %12246 = vst [vmem:[#allocation73_spill] sm:$0xff] %v8888_v30  ;;  %vm3646_vm4 = vcmp.eq.f32.partialorder %v1918_v36, 1.0  ;;  %v4157_v26 = vmul.f32 %v4093_v51, %v4029_v47  ;;  %vm3837_vm5 = vcmp.lt.f32.partialorder %v8808_v14, 1.0  ;;  %v8898_v31 = vmax.f32 %v11927_v34, 0.0 }
 0x249   :  { %12247 = vst [vmem:[#allocation69_spill] sm:$0xff] %v8892_v42  ;;  %v2512_v22 = vmul.f32 -0.5, %v8820_v28  ;;  %6484 = vlog2.f32 %v2518_v20  ;;  %vm3838_vm7 = vcmp.lt.f32.partialorder %v1918_v36, 1.0  ;;  %v2045_v6 = vmax.f32 %v11928_v29, 0.0 }
 0x24a   :  { %v6479_v58 = vpop.eup %6478  ;;  %v2163_v5 = vsub.f32 0.0, %v2099_v9  ;;  %v8905_v41 = vsel %vm3645_vm3, 1.0, %v12173_v35  ;;  %v8908_v14 = vsel %vm3646_vm4, 1.0, %v12173_v35  ;;  %v4158_v37 = vmul.f32 %v4094_v16, %v4030_v60 }
 0x24b   :  { %v2164_v11 = vsub.f32 0.0, %v2100_v56  ;;  %v3201_v63 = vsub.f32 %v1985_v18, %v8782_v8  ;;  %v8914_v36 = vsel %vm3837_vm5, 1.0, %v12173_v35  ;;  %v8916_v0 = vmul.f32 %v4157_v26, %v4029_v47  ;;  %v8942_v47 = vld [vmem:[%s11866_s3 + $0x40] sm:$0xff] }
 0x24c   :  { %v6481_v2 = vpop.eup %6480  ;;  %v2521_v3 = vmul.f32 -0.5, %v8849_v49  ;;  %v3521_v7 = vmax.f32 %v6479_v58, 0.0001  ;;  %v8920_v51 = vsel %vm3838_vm7, 1.0, %v12173_v35  ;;  %v8924_v20 = vsel %vm4780_vm6, %v8905_v41, 0.0 }
 0x24d   :  { %v6483_v23 = vpop.eup %6482  ;;  %12248 = vst [vmem:[#allocation70_spill] sm:$0xff] %v8920_v51  ;;  %v2513_v9 = vadd.f32 1.0, %v2512_v22  ;;  %v8928_v10 = vsel %vm4780_vm6, %v8908_v14, 0.0  ;;  %v2515_v18 = vand.u32 2147483647, %v8820_v28  ;;  %v3202_v58 = vsub.f32 %v1986_v52, %v8797_v45 }
 0x24e   :  { %12249 = vst [vmem:[#allocation74_spill] sm:$0xff] %v8924_v20  ;;  %v2235_v16 = vmul.f32 1.442695, %v2163_v5  ;;  %v3073_v26 = vmax.f32 %v3009_v33, -9.2103405  ;;  %v8937_v17 = vmul.f32 %v4158_v37, %v4030_v60  ;;  %v2522_v24 = vadd.f32 1.0, %v2521_v3 }
 0x24f   :  { %12250 = vst [vmem:[#allocation75_spill] sm:$0xff] %v8928_v10  ;;  %v6485_v56 = vpop.eup %6484  ;;  %v2511_v34 = vmul.f32 0.6931472, %v6481_v2  ;;  %v2237_v29 = vmul.f32 1.442695, %v2164_v11  ;;  %v2514_v8 = vmul.f32 %v8820_v28, %v2513_v9  ;;  %v12251_v52 = vsub.f32 0.0, %v8698_v12 }
 0x250   :  { %v3265_v22 = vmax.f32 %v3201_v63, -9.2103405  ;;  %v3522_v54 = vmax.f32 %v6483_v23, 0.0001  ;;  %v3585_v5 = vmin.f32 %v3521_v7, 0.9999  ;;  %6486 = vpow2.f32 %v2235_v16 }
 0x251   :  { %v2524_v33 = vand.u32 2147483647, %v8849_v49  ;;  %v8953_v60 = vmax.f32 %v12251_v52, 0.0  ;;  %v12252_v37 = vsub.f32 0.0, %v8797_v45  ;;  %vm8957_vm8 = vcmp.lt.f32.partialorder %v2515_v18, 0.0004427343 }
 0x252   :  { %v2520_v63 = vmul.f32 0.6931472, %v6485_v56  ;;  %v3266_v28 = vmax.f32 %v3202_v58, -9.2103405  ;;  %v2517_v3 = vsel %vm8957_vm8, %v2514_v8, %v2511_v34  ;;  %v8964_v23 = vsub.f32 1.0, %v8942_v47 }
 0x253   :  { %v3074_v11 = vmax.f32 %v12252_v37, -9.2103405  ;;  %6488 = vpow2.f32 %v2237_v29  ;;  %v3137_v7 = vmin.f32 %v3073_v26, -0.000100005  ;;  %v3586_v9 = vmin.f32 %v3522_v54, 0.9999 }
 0x254   :  { %v2523_v52 = vmul.f32 %v8849_v49, %v2522_v24  ;;  %v8968_v45 = vsub.f32 1.0, %v8949_v40  ;;  %v3329_v18 = vmin.f32 %v3265_v22, -0.000100005  ;;  %v4289_v37 = vsub.f32 1.0, %v3585_v5 }
 0x255   :  { %v4545_v55 = vmul.f32 %v3585_v5, %v3585_v5  ;;  %vm8970_vm9 = vcmp.lt.f32.partialorder %v2524_v33, 0.0004427343  ;;  %v3138_v56 = vmin.f32 %v3074_v11, -0.000100005  ;;  %v8976_v58 = vadd.f32 %v2517_v3, %v2045_v6 }
 0x256   :  { %v2526_v34 = vsel %vm8970_vm9, %v2523_v52, %v2520_v63  ;;  %v12257_v54 = vsub.f32 0.0, %v8701_v53  ;;  %v3330_v49 = vmin.f32 %v3266_v28, -0.000100005  ;;  %vm3635_vm10 = vcmp.eq.f32.partialorder %v8942_v47, 1.0  ;;  %v6487_v22 = vpop.eup %6486 }
 0x257   :  { %v8985_v24 = vmul.f32 %v8964_v23, %v8964_v23  ;;  %v4290_v5 = vsub.f32 1.0, %v3586_v9  ;;  %v4546_v8 = vmul.f32 %v3586_v9, %v3586_v9  ;;  %vm3636_vm11 = vcmp.eq.f32.partialorder %v8949_v40, 1.0 }
 0x258   :  { %v8980_v29 = vmax.f32 %v12257_v54, 0.0  ;;  %v8991_v6 = vmul.f32 %v8968_v45, %v8968_v45  ;;  %v4353_v11 = vmul.f32 %v4289_v37, %v4289_v37  ;;  %v4609_v2 = vmul.f32 %v4545_v55, %v3329_v18  ;;  %v6283_v37 = vpop.permute.xlu0 %6282 }
 0x259   :  { %v6489_v33 = vpop.eup %6488  ;;  %v8994_v63 = vadd.f32 %v2526_v34, %v8898_v31  ;;  %v2419_v28 = vadd.f32 1.0, %v6487_v22  ;;  %v3005_v3 = vsub.f32 0.0, %v8976_v58  ;;  %v8998_v52 = vsel %vm3635_vm10, 1.0, %v12173_v35 }
 0x25a   :  { %v2422_v16 = vmul.f32 -0.5, %v6487_v22  ;;  %v2428_v9 = vadd.f32 1.0, %v6489_v33  ;;  %v9001_v54 = vsel %vm3636_vm11, 1.0, %v12173_v35  ;;  %v2431_v26 = vmul.f32 -0.5, %v6489_v33 }
 0x25b   :  { %6490 = vlog2.f32 %v2419_v28  ;;  %v2119_v10 = vand.u32 2147483647, %v8824_v62  ;;  %v4354_v55 = vmul.f32 %v4290_v5, %v4290_v5  ;;  %vm3827_vm12 = vcmp.lt.f32.partialorder %v8942_v47, 1.0  ;;  %v12258_v28 = vld [vmem:[#allocation61_spill] sm:$0xff] }
 0x25c   :  { %6492 = vlog2.f32 %v2428_v9  ;;  %v2120_v31 = vand.u32 2147483647, %v8827_v19  ;;  %v4417_v18 = vmul.f32 %v4353_v11, %v3137_v7  ;;  %v4610_v34 = vmul.f32 %v4546_v8, %v3330_v49  ;;  %v12259_v7 = vld [vmem:[#allocation62_spill] sm:$0xff] }
 0x25d   :  { %v4673_v20 = vmul.f32 %v4609_v2, %v8831_v38  ;;  %v3006_v15 = vsub.f32 0.0, %v8994_v63  ;;  %v3407_v46 = vmul.f32 1.442695, %v3005_v3  ;;  %v2423_v39 = vadd.f32 1.0, %v2422_v16 }
 0x25e   :  { %v9010_v21 = vadd.f32 %v12258_v28, %v8772_v27  ;;  %v6284_v42 = vunpack.i.l.bf16 %v6283_v37  ;;  %vm3828_vm13 = vcmp.lt.f32.partialorder %v8949_v40, 1.0  ;;  %v2425_v5 = vand.u32 2147483647, %v6487_v22 }
 0x25f   :  { %v2432_v59 = vadd.f32 1.0, %v2431_v26  ;;  %v2183_v9 = vsub.f32 0.0, %v2119_v10  ;;  %v4418_v30 = vmul.f32 %v4354_v55, %v3138_v56  ;;  %v2434_v43 = vand.u32 2147483647, %v6489_v33 }
 0x260   :  { %v9015_v49 = vadd.f32 %v12259_v7, %v8775_v25  ;;  %v2184_v38 = vsub.f32 0.0, %v2120_v31  ;;  %v4674_v11 = vmul.f32 %v4610_v34, %v8847_v32  ;;  %v3409_v2 = vmul.f32 1.442695, %v3006_v15 }
 0x261   :  { %v6491_v8 = vpop.eup %6490  ;;  %v9021_v27 = vsel %vm3827_vm12, 1.0, %v12173_v35  ;;  %v6285_v16 = vunpack.i.h.bf16 %v6283_v37  ;;  %6494 = vpow2.f32 %v3407_v46  ;;  %v2424_v56 = vmul.f32 %v6487_v22, %v2423_v39 }
 0x262   :  { %v6493_v28 = vpop.eup %6492  ;;  %v2421_v10 = vmul.f32 0.6931472, %v6491_v8  ;;  %v1667_v26 = vmul.f32 %v6284_v42, %v7928_v48  ;;  %vm2426_vm14 = vcmp.lt.f32.partialorder %v2425_v5, 0.0004427343  ;;  %v2433_v55 = vmul.f32 %v6489_v33, %v2432_v59 }
 0x263   :  { %v2430_v25 = vmul.f32 0.6931472, %v6493_v28  ;;  %v2275_v31 = vmul.f32 1.442695, %v2183_v9  ;;  %v4481_v7 = vmul.f32 %v8854_v4, %v4417_v18  ;;  %vm2435_vm15 = vcmp.lt.f32.partialorder %v2434_v43, 0.0004427343 }
 0x264   :  { %v2427_v32 = vsel %vm2426_vm14, %v2424_v56, %v2421_v10  ;;  %v2277_v34 = vmul.f32 1.442695, %v2184_v38  ;;  %v12260_v47 = vsub.f32 0.0, %v8677_v50  ;;  %v1668_v39 = vmul.f32 %v6285_v16, %v7928_v48 }
 0x265   :  { %v2436_v37 = vsel %vm2435_vm15, %v2433_v55, %v2430_v25  ;;  %v2931_v46 = vadd.f32 %v2427_v32, %v8953_v60  ;;  %v4737_v42 = vmul.f32 %v8870_v61, %v4673_v20  ;;  %v12261_v59 = vsub.f32 0.0, %v8662_v44 }
 0x266   :  { %v3197_v51 = vsub.f32 %v12260_v47, %v8976_v58  ;;  %6496 = vpow2.f32 %v3409_v2  ;;  %v9035_v4 = vadd.f32 %v2436_v37, %v8980_v29  ;;  %v9038_v43 = vmul.f32 %v8859_v57, %v4418_v30  ;;  %v12262_v58 = vld [vmem:[#allocation14_spill] sm:$0xff]  ;;  %v12263_v57 = vld [vmem:[#allocation24_spill] sm:$0xff]  ;;  %v6258_v2 = vpop.permute.xlu1 %6257 }
 0x267   :  { %v3198_v22 = vsub.f32 %v12261_v59, %v8994_v63  ;;  %v2995_v50 = vsub.f32 0.0, %v2931_v46  ;;  %6498 = vpow2.f32 %v2275_v31  ;;  %v9041_v33 = vadd.f32 %v1667_v26, %v12262_v58  ;;  %v6495_v60 = vpop.eup %6494 }
 0x268   :  { %v9044_v18 = vmul.f32 %v8873_v1, %v4674_v11  ;;  %v9046_v61 = vmax.f32 %v3005_v3, -9.2103405  ;;  %v2996_v44 = vsub.f32 0.0, %v9035_v4  ;;  %6500 = vpow2.f32 %v2277_v34  ;;  %v12264_v1 = vld [vmem:[#allocation16_spill] sm:$0xff] }
 0x269   :  { %v9049_v20 = vmax.f32 %v3006_v15, -9.2103405  ;;  %v3261_v29 = vmax.f32 %v3197_v51, -9.2103405  ;;  %v3387_v63 = vmul.f32 1.442695, %v2995_v50  ;;  %v9052_v30 = vadd.f32 %v1668_v39, %v12263_v57 }
 0x26a   :  { %v3262_v5 = vmax.f32 %v3198_v22, -9.2103405  ;;  %v9057_v9 = vsel %vm3828_vm13, 1.0, %v12173_v35  ;;  %v4935_v3 = vadd.f32 %v12264_v1, %v8816_v13  ;;  %v3389_v38 = vmul.f32 1.442695, %v2996_v44 }
 0x26b   :  { %v9062_v8 = vsel %vm4780_vm6, %v4481_v7, 0.0  ;;  %v4936_v15 = vsel %vm4780_vm6, %v8998_v52, 0.0  ;;  %6502 = vpow2.f32 %v3387_v63  ;;  %v5554_v51 = vpack.c.bf16 %v9052_v30, %v9041_v33 }
 0x26c   :  { %12265 = vst [vmem:[#allocation61_spill] sm:$0xff] %v9062_v8  ;;  %v6497_v11 = vpop.eup %6496  ;;  %v3517_v40 = vmax.f32 %v6495_v60, 0.0001  ;;  %v4147_v16 = vmul.f32 %v8985_v24, %v8964_v23  ;;  %6504 = vpow2.f32 %v3389_v38  ;;  %v9074_v28 = vsel %vm4780_vm6, %v4737_v42, 0.0 }
 0x26d   :  { %v9071_v13 = vpop.eup %6498  ;;  %12266 = vst [vmem:[#allocation62_spill] sm:$0xff] %v9074_v28  ;;  %v9077_v56 = vmin.f32 %v3261_v29, -0.000100005  ;;  %v4148_v26 = vmul.f32 %v8991_v6, %v8968_v45  ;;  %v9083_v55 = vmin.f32 %v3262_v5, -0.000100005  ;;  %v4937_v31 = vadd.f32 %v4936_v15, %v4935_v3 }
 0x26e   :  { %5693 = vst [vmem:[#allocation2 + $0x60] sm:$0xff] %v5554_v51   ;;  %v9081_v25 = vpop.eup %6500  ;;  %v12267_v24 = vsub.f32 0.0, %v8698_v12  ;;  %v2599_v32 = vadd.f32 1.0, %v9071_v13  ;;  %v4938_v34 = vsel %vm4780_vm6, %v9001_v54, 0.0  ;;  %v12268_v47 = vsub.f32 0.0, %v8701_v53  ;;  %v9101_v12 = vld [vmem:[%s11866_s3 + $0xe0] sm:$0xff] }
 0x26f   :  { %v11930_v6 = vsub.f32 0.0, %v8824_v62  ;;  %v2608_v39 = vadd.f32 1.0, %v9081_v25  ;;  %v3518_v42 = vmax.f32 %v6497_v11, 0.0001  ;;  %v9095_v59 = vmin.f32 %v3517_v40, 0.9999 }
 0x270   :  { %v3187_v7 = vsub.f32 %v12267_v24, %v2931_v46  ;;  %v3188_v37 = vsub.f32 %v12268_v47, %v9035_v4  ;;  %v4211_v22 = vmul.f32 %v4147_v16, %v8964_v23  ;;  %6506 = vlog2.f32 %v2599_v32 }
 0x271   :  { %v6503_v46 = vpop.eup %6502  ;;  %v4212_v58 = vmul.f32 %v4148_v26, %v8968_v45  ;;  %v3059_v53 = vmax.f32 %v2995_v50, -9.2103405  ;;  %v12269_v4 = vsub.f32 0.0, %v8827_v19  ;;  %6508 = vlog2.f32 %v2608_v39 }
 0x272   :  { %v6505_v29 = vpop.eup %6504  ;;  %v9108_v63 = vadd.f32 %v4938_v34, %v4937_v31  ;;  %v3251_v57 = vmax.f32 %v3187_v7, -9.2103405  ;;  %v3507_v23 = vmax.f32 %v6503_v46, 0.0001  ;;  %v2602_v5 = vmul.f32 -0.5, %v9071_v13 }
 0x273   :  { %v9106_v60 = vmax.f32 %v12269_v4, 0.0  ;;  %v3252_v1 = vmax.f32 %v3188_v37, -9.2103405  ;;  %v3508_v3 = vmax.f32 %v6505_v29, 0.0001  ;;  %v9112_v38 = vsub.f32 1.0, %v9101_v12 }
 0x274   :  { %v2055_v45 = vmax.f32 %v11930_v6, 0.0  ;;  %v3582_v50 = vmin.f32 %v3518_v42, 0.9999  ;;  %v4285_v15 = vsub.f32 1.0, %v9095_v59  ;;  %v3571_v51 = vmin.f32 %v3507_v23, 0.9999 }
 0x275   :  { %v2611_v11 = vmul.f32 -0.5, %v9081_v25  ;;  %v4541_v40 = vmul.f32 %v9095_v59, %v9095_v59  ;;  %v3060_v16 = vmax.f32 %v2996_v44, -9.2103405  ;;  %v3123_v26 = vmin.f32 %v3059_v53, -0.000100005 }
 0x276   :  { %v3572_v31 = vmin.f32 %v3508_v3, 0.9999  ;;  %v6507_v24 = vpop.eup %6506  ;;  %v3315_v7 = vmin.f32 %v3251_v57, -0.000100005  ;;  %v4275_v32 = vsub.f32 1.0, %v3571_v51  ;;  %v4531_v34 = vmul.f32 %v3571_v51, %v3571_v51 }
 0x277   :  { %v2603_v47 = vadd.f32 1.0, %v2602_v5  ;;  %v6509_v37 = vpop.eup %6508  ;;  %v3316_v39 = vmin.f32 %v3252_v1, -0.000100005  ;;  %v2605_v4 = vand.u32 2147483647, %v9071_v13  ;;  %v2612_v10 = vadd.f32 1.0, %v2611_v11 }
 0x278   :  { %v4276_v46 = vsub.f32 1.0, %v3572_v31  ;;  %v4532_v42 = vmul.f32 %v3572_v31, %v3572_v31  ;;  %v4339_v29 = vmul.f32 %v4275_v32, %v4275_v32  ;;  %v4595_v23 = vmul.f32 %v4531_v34, %v3315_v7  ;;  %v12278_v31 = vld [vmem:[#allocation66_spill] sm:$0xff] }
 0x279   :  { %v2601_v6 = vmul.f32 0.6931472, %v6507_v24  ;;  %v3124_v59 = vmin.f32 %v3060_v16, -0.000100005  ;;  %v2614_v3 = vand.u32 2147483647, %v9081_v25  ;;  %v2604_v5 = vmul.f32 %v9071_v13, %v2603_v47 }
 0x27a   :  { %v4340_v44 = vmul.f32 %v4276_v46, %v4276_v46  ;;  %v4596_v53 = vmul.f32 %v4532_v42, %v3316_v39  ;;  %v4403_v57 = vmul.f32 %v4339_v29, %v3123_v26  ;;  %v4659_v28 = vmul.f32 %v4595_v23, %v4211_v22  ;;  %v9154_v42 = vld [vmem:[%s11866_s3 + $0xe8] sm:$0xff]  ;;  %v12274_v23 = vld [vmem:[#allocation63_spill] sm:$0xff] }
 0x27b   :  { %v2610_v51 = vmul.f32 0.6931472, %v6509_v37  ;;  %vm9123_vm0 = vcmp.lt.f32.partialorder %v2605_v4, 0.0004427343  ;;  %v6260_v7 = vunpack.i.h.bf16 %v6258_v2  ;;  %v2613_v26 = vmul.f32 %v9081_v25, %v2612_v10 }
 0x27c   :  { %v4404_v1 = vmul.f32 %v4340_v44, %v3124_v59  ;;  %v4660_v8 = vmul.f32 %v4596_v53, %v4212_v58  ;;  %v4467_v11 = vmul.f32 %v8998_v52, %v4403_v57  ;;  %v4723_v16 = vmul.f32 %v9021_v27, %v4659_v28  ;;  %v12275_v44 = vld [vmem:[#allocation64_spill] sm:$0xff] }
 0x27d   :  { %v2607_v24 = vsel %vm9123_vm0, %v2604_v5, %v2601_v6  ;;  %vm9134_vm1 = vcmp.lt.f32.partialorder %v2614_v3, 0.0004427343  ;;  %v2115_v32 = vand.u32 2147483647, %v9041_v33  ;;  %v4286_v34 = vsub.f32 1.0, %v3582_v50 }
 0x27e   :  { %v4468_v22 = vmul.f32 %v9001_v54, %v4404_v1  ;;  %v4724_v13 = vmul.f32 %v9057_v9, %v4660_v8  ;;  %v4796_v52 = vsel %vm4780_vm6, %v4467_v11, 0.0  ;;  %v5076_v27 = vsel %vm4780_vm6, %v4723_v16, 0.0 }
 0x27f   :  { %v2616_v28 = vsel %vm9134_vm1, %v2613_v26, %v2610_v51  ;;  %v4797_v10 = vadd.f32 %v4796_v52, %v9010_v21  ;;  %v5077_v54 = vadd.f32 %v5076_v27, %v9015_v49  ;;  %v9145_v25 = vadd.f32 %v2607_v24, %v2055_v45 }
 0x280   :  { %v2116_v9 = vand.u32 2147483647, %v9052_v30  ;;  %v4542_v8 = vmul.f32 %v3582_v50, %v3582_v50  ;;  %v4798_v6 = vsel %vm4780_vm6, %v4468_v22, 0.0  ;;  %v5078_v47 = vsel %vm4780_vm6, %v4724_v13, 0.0  ;;  %v12280_v13 = vld [vmem:[#allocation22_spill] sm:$0xff] }
 0x281   :  { %v1658_v37 = vmul.f32 %v6260_v7, %v7928_v48  ;;  %v4799_v39 = vadd.f32 %v4798_v6, %v4797_v10  ;;  %v5079_v46 = vadd.f32 %v5078_v47, %v5077_v54  ;;  %v9157_v21 = vadd.f32 %v2616_v28, %v9106_v60  ;;  %v9168_v60 = vld [vmem:[%s11866_s3 + $0xc0] sm:$0xff] }
 0x282   :  { %v2179_v49 = vsub.f32 0.0, %v2115_v32  ;;  %v4349_v45 = vmul.f32 %v4285_v15, %v4285_v15  ;;  %v4350_v4 = vmul.f32 %v4286_v34, %v4286_v34  ;;  %v4605_v50 = vmul.f32 %v4541_v40, %v9077_v56  ;;  %v12276_v56 = vld [vmem:[#allocation43_spill] sm:$0xff]  ;;  %v12277_v40 = vld [vmem:[#allocation65_spill] sm:$0xff] }
 0x283   :  { %v6259_v29 = vunpack.i.l.bf16 %v6258_v2  ;;  %v4801_v59 = vadd.f32 %v12274_v23, %v4799_v39  ;;  %v5081_v53 = vadd.f32 %v12275_v44, %v5079_v46  ;;  %v3015_v3 = vsub.f32 0.0, %v9145_v25  ;;  %v12285_v46 = vld [vmem:[#allocation70_spill] sm:$0xff] }
 0x284   :  { %v2180_v57 = vsub.f32 0.0, %v2116_v9  ;;  %v4606_v5 = vmul.f32 %v4542_v8, %v9083_v55  ;;  %v4040_v51 = vsub.f32 1.0, %v9154_v42  ;;  %v9172_v2 = vadd.f32 %v1658_v37, %v12276_v56 }
 0x285   :  { %v1657_v15 = vmul.f32 %v6259_v29, %v7928_v48  ;;  %v9175_v1 = vadd.f32 %v12277_v40, %v4801_v59  ;;  %v9178_v7 = vadd.f32 %v12278_v31, %v5081_v53  ;;  %v3016_v55 = vsub.f32 0.0, %v9157_v21 }
 0x286   :  { %v2267_v11 = vmul.f32 1.442695, %v2179_v49  ;;  %v12279_v16 = vmin.f32 %v9046_v61, -0.000100005  ;;  %v4669_v26 = vmul.f32 %v4605_v50, %v8916_v0  ;;  %v2269_v22 = vmul.f32 1.442695, %v2180_v57 }
 0x287   :  { %v9185_v58 = vadd.f32 %v1657_v15, %v12280_v13  ;;  %v9189_v32 = vsel %vm4780_vm6, %v9038_v43, 0.0  ;;  %v12282_v34 = vmin.f32 %v9049_v20, -0.000100005  ;;  %v3427_v27 = vmul.f32 1.442695, %v3015_v3  ;;  %v12283_v0 = vld [vmem:[#allocation40_spill] sm:$0xff] }
 0x288   :  { %v4413_v24 = vmul.f32 %v4349_v45, %v12279_v16  ;;  %12281 = vst [vmem:[#allocation14_spill] sm:$0xff] %v9189_v32  ;;  %v4035_v28 = vsub.f32 1.0, %v9168_v60  ;;  %v4670_v61 = vmul.f32 %v4606_v5, %v8937_v17  ;;  %v4941_v10 = vadd.f32 %v12283_v0, %v9108_v63  ;;  %v9204_v43 = vld [vmem:[%s11866_s3 + $0xc8] sm:$0xff] }
 0x289   :  { %v4414_v52 = vmul.f32 %v4350_v4, %v12282_v34  ;;  %v4103_v54 = vmul.f32 %v9112_v38, %v9112_v38  ;;  %v5529_v20 = vpack.c.bf16 %v9172_v2, %v9185_v58  ;;  %vm3655_vm2 = vcmp.eq.f32.partialorder %v9101_v12, 1.0  ;;  %v12286_v45 = vld [vmem:[#allocation9_spill] sm:$0xff] }
 0x28a   :  { %v4104_v9 = vmul.f32 %v4040_v51, %v4040_v51  ;;  %v3429_v17 = vmul.f32 1.442695, %v3016_v55  ;;  %6510 = vpow2.f32 %v2267_v11  ;;  %v4477_v63 = vmul.f32 %v8905_v41, %v4413_v24 }
 0x28b   :  { %v4733_v8 = vmul.f32 %v8914_v36, %v4669_v26  ;;  %vm3656_vm3 = vcmp.eq.f32.partialorder %v9154_v42, 1.0  ;;  %6512 = vpow2.f32 %v2269_v22  ;;  %5688 = vst [vmem:[#allocation2 + $0x38] sm:$0xff] %v5529_v20   ;;  %v4478_v6 = vmul.f32 %v8908_v14, %v4414_v52 }
 0x28c   :  { %6514 = vpow2.f32 %v3427_v27  ;;  %v4036_v47 = vsub.f32 1.0, %v9204_v43  ;;  %v4099_v37 = vmul.f32 %v4035_v28, %v4035_v28  ;;  %v9218_v39 = vsel %vm4780_vm6, %v9044_v18, 0.0 }
 0x28d   :  { %12284 = vst [vmem:[#allocation24_spill] sm:$0xff] %v9218_v39  ;;  %v4734_v49 = vmul.f32 %v12285_v46, %v4670_v61  ;;  %v9222_v41 = vadd.f32 %v12286_v45, %v4941_v10  ;;  %v2105_v36 = vand.u32 2147483647, %v9185_v58  ;;  %v9228_v4 = vsel %vm3655_vm2, 1.0, %v12173_v35  ;;  %v6308_v10 = vpop.permute.xlu2 %6307 }
 0x28e   :  { %v9231_v14 = vsel %vm3656_vm3, 1.0, %v12173_v35  ;;  %vm3847_vm4 = vcmp.lt.f32.partialorder %v9101_v12, 1.0  ;;  %6516 = vpow2.f32 %v3429_v17  ;;  %v9235_v18 = vsel %vm4780_vm6, %v4477_v63, 0.0 }
 0x28f   :  { %vm3848_vm5 = vcmp.lt.f32.partialorder %v9154_v42, 1.0  ;;  %v4167_v50 = vmul.f32 %v4103_v54, %v9112_v38  ;;  %v4168_v29 = vmul.f32 %v4104_v9, %v4040_v51  ;;  %v9242_v59 = vsel %vm4780_vm6, %v4478_v6, 0.0 }
 0x290   :  { %v9239_v23 = vpop.eup %6510  ;;  %v9245_v44 = vsel %vm4780_vm6, %v4733_v8, 0.0  ;;  %v4100_v53 = vmul.f32 %v4036_v47, %v4036_v47  ;;  %v4163_v57 = vmul.f32 %v4099_v37, %v4035_v28  ;;  %v9250_v5 = vsel %vm4780_vm6, %v4734_v49, 0.0 }
 0x291   :  { %v9247_v12 = vpop.eup %6512  ;;  %12287 = vst [vmem:[#allocation16_spill] sm:$0xff] %v9250_v5  ;;  %v9253_v42 = vsel %vm3847_vm4, 1.0, %v12173_v35  ;;  %v2106_v15 = vand.u32 2147483647, %v9172_v2  ;;  %v2169_v56 = vsub.f32 0.0, %v2105_v36  ;;  %v9257_v31 = vsel %vm3848_vm5, 1.0, %v12173_v35 }
 0x292   :  { %v6515_v40 = vpop.eup %6514  ;;  %v9261_v11 = vsel %vm4780_vm6, %v9228_v4, 0.0  ;;  %v9265_v16 = vsel %vm4780_vm6, %v9231_v14, 0.0  ;;  %v11932_v24 = vsub.f32 0.0, %v9041_v33  ;;  %v9269_v26 = vmul.f32 %v4167_v50, %v9112_v38 }
 0x293   :  { %12288 = vst [vmem:[#allocation63_spill] sm:$0xff] %v9261_v11  ;;  %v9271_v22 = vmul.f32 %v4168_v29, %v4040_v51  ;;  %v11931_v13 = vsub.f32 0.0, %v9052_v30  ;;  %v2563_v34 = vadd.f32 1.0, %v9239_v23  ;;  %vm3651_vm7 = vcmp.eq.f32.partialorder %v9168_v60, 1.0 }
 0x294   :  { %12289 = vst [vmem:[#allocation64_spill] sm:$0xff] %v9265_v16  ;;  %v6517_v52 = vpop.eup %6516  ;;  %v4164_v27 = vmul.f32 %v4100_v53, %v4036_v47  ;;  %v9276_v61 = vmul.f32 %v4163_v57, %v4035_v28  ;;  %v2572_v0 = vadd.f32 1.0, %v9247_v12  ;;  %v3527_v54 = vmax.f32 %v6515_v40, 0.0001 }
 0x295   :  { %vm3652_vm8 = vcmp.eq.f32.partialorder %v9204_v43, 1.0  ;;  %v2170_v38 = vsub.f32 0.0, %v2106_v15  ;;  %v2247_v20 = vmul.f32 1.442695, %v2169_v56  ;;  %v12290_v51 = vsub.f32 0.0, %v8824_v62 }
 0x296   :  { %vm3843_vm9 = vcmp.lt.f32.partialorder %v9168_v60, 1.0  ;;  %vm3844_vm10 = vcmp.lt.f32.partialorder %v9204_v43, 1.0  ;;  %v9287_v28 = vmax.f32 %v11932_v24, 0.0  ;;  %v3528_v17 = vmax.f32 %v6517_v52, 0.0001 }
 0x297   :  { %v3207_v9 = vsub.f32 %v12290_v51, %v9145_v25  ;;  %6518 = vlog2.f32 %v2563_v34  ;;  %v6310_v63 = vunpack.i.h.bf16 %v6308_v10  ;;  %v6309_v8 = vunpack.i.l.bf16 %v6308_v10 }
 0x298   :  { %v12291_v6 = vsub.f32 0.0, %v8827_v19  ;;  %v9295_v62 = vsel %vm3651_vm7, 1.0, %v12173_v35  ;;  %v9298_v46 = vsel %vm3652_vm8, 1.0, %v12173_v35  ;;  %6520 = vlog2.f32 %v2572_v0 }
 0x299   :  { %v3591_v49 = vmin.f32 %v3527_v54, 0.9999  ;;  %v9301_v45 = vsel %vm3843_vm9, 1.0, %v12173_v35  ;;  %6522 = vpow2.f32 %v2247_v20  ;;  %v2249_v36 = vmul.f32 1.442695, %v2170_v38 }
 0x29a   :  { %v3208_v37 = vsub.f32 %v12291_v6, %v9157_v21  ;;  %v3079_v50 = vmax.f32 %v3015_v3, -9.2103405  ;;  %v3271_v19 = vmax.f32 %v3207_v9, -9.2103405  ;;  %v9308_v60 = vsel %vm3844_vm10, 1.0, %v12173_v35  ;;  %v12295_v21 = vld [vmem:[#allocation15_spill] sm:$0xff] }
 0x29b   :  { %v9310_v29 = vmul.f32 %v4164_v27, %v4036_v47  ;;  %v3592_v53 = vmin.f32 %v3528_v17, 0.9999  ;;  %v2566_v57 = vmul.f32 -0.5, %v9239_v23  ;;  %v1678_v15 = vmul.f32 %v6310_v63, %v7928_v48  ;;  %v12294_v63 = vld [vmem:[#allocation44_spill] sm:$0xff] }
 0x29c   :  { %v1677_v56 = vmul.f32 %v6309_v8, %v7928_v48  ;;  %v3272_v40 = vmax.f32 %v3208_v37, -9.2103405  ;;  %v9317_v25 = vsel %vm4780_vm6, %v9295_v62, 0.0  ;;  %v2052_v3 = vmax.f32 %v11931_v13, 0.0 }
 0x29d   :  { %12292 = vst [vmem:[#allocation43_spill] sm:$0xff] %v9317_v25  ;;  %v2575_v43 = vmul.f32 -0.5, %v9247_v12  ;;  %v6519_v34 = vpop.eup %6518  ;;  %v3080_v47 = vmax.f32 %v3016_v55, -9.2103405  ;;  %v4295_v52 = vsub.f32 1.0, %v3591_v49  ;;  %v9326_v27 = vsel %vm4780_vm6, %v9298_v46, 0.0 }
 0x29e   :  { %12293 = vst [vmem:[#allocation65_spill] sm:$0xff] %v9326_v27  ;;  %6524 = vpow2.f32 %v2249_v36  ;;  %v6521_v0 = vpop.eup %6520  ;;  %v3143_v10 = vmin.f32 %v3079_v50, -0.000100005  ;;  %v3335_v54 = vmin.f32 %v3271_v19, -0.000100005  ;;  %v4551_v38 = vmul.f32 %v3591_v49, %v3591_v49 }
 0x29f   :  { %v2569_v20 = vand.u32 2147483647, %v9239_v23  ;;  %v6523_v51 = vpop.eup %6522  ;;  %v4296_v9 = vsub.f32 1.0, %v3592_v53  ;;  %v2567_v17 = vadd.f32 1.0, %v2566_v57  ;;  %v9330_v8 = vadd.f32 %v1677_v56, %v12294_v63 }
 0x2a0   :  { %v9333_v55 = vadd.f32 %v1678_v15, %v12295_v21  ;;  %v3336_v6 = vmin.f32 %v3272_v40, -0.000100005  ;;  %v4552_v37 = vmul.f32 %v3592_v53, %v3592_v53  ;;  %v2576_v13 = vadd.f32 1.0, %v2575_v43 }
 0x2a1   :  { %v4359_v24 = vmul.f32 %v4295_v52, %v4295_v52  ;;  %v2565_v50 = vmul.f32 0.6931472, %v6519_v34  ;;  %v2578_v49 = vand.u32 2147483647, %v9247_v12  ;;  %v1977_v19 = vsub.f32 0.0, %v9185_v58 }
 0x2a2   :  { %v4615_v16 = vmul.f32 %v4551_v38, %v3335_v54  ;;  %vm9338_vm11 = vcmp.lt.f32.partialorder %v2569_v20, 0.0004427343  ;;  %v2574_v56 = vmul.f32 0.6931472, %v6521_v0  ;;  %v2473_v63 = vadd.f32 1.0, %v6523_v51 }
 0x2a3   :  { %v4360_v21 = vmul.f32 %v4296_v9, %v4296_v9  ;;  %v2568_v53 = vmul.f32 %v9239_v23, %v2567_v17  ;;  %v2476_v40 = vmul.f32 -0.5, %v6523_v51  ;;  %v5579_v43 = vpack.c.bf16 %v9333_v55, %v9330_v8 }
 0x2a4   :  { %v6525_v15 = vpop.eup %6524  ;;  %v4616_v34 = vmul.f32 %v4552_v37, %v3336_v6  ;;  %v2577_v52 = vmul.f32 %v9247_v12, %v2576_v13  ;;  %6526 = vlog2.f32 %v2473_v63  ;;  %v3144_v54 = vmin.f32 %v3080_v47, -0.000100005  ;;  %v1913_v12 = vld [vmem:[%s11866_s3 + $0x70] sm:$0xff] }
 0x2a5   :  { %v2482_v36 = vadd.f32 1.0, %v6525_v15  ;;  %v2571_v38 = vsel %vm9338_vm11, %v2568_v53, %v2565_v50  ;;  %vm9348_vm12 = vcmp.lt.f32.partialorder %v2578_v49, 0.0004427343  ;;  %v2485_v20 = vmul.f32 -0.5, %v6525_v15  ;;  %5698 = vst [vmem:[#allocation2 + $0x88] sm:$0xff] %v5579_v43  }
 0x2a6   :  { %v4423_v23 = vmul.f32 %v4359_v24, %v3143_v10  ;;  %v4679_v9 = vmul.f32 %v4615_v16, %v9269_v26  ;;  %v2580_v17 = vsel %vm9348_vm12, %v2577_v52, %v2574_v56  ;;  %v2041_v13 = vmax.f32 %v1977_v19, 0.0  ;;  %v1914_v10 = vld [vmem:[%s11866_s3 + $0x78] sm:$0xff]  ;;  %v12301_v56 = vld [vmem:[#allocation41_spill] sm:$0xff] }
 0x2a7   :  { %6528 = vlog2.f32 %v2482_v36  ;;  %v12300_v47 = vsub.f32 0.0, %v9172_v2  ;;  %v2477_v37 = vadd.f32 1.0, %v2476_v40  ;;  %v4424_v24 = vmul.f32 %v4360_v21, %v3144_v54  ;;  %v12302_v54 = vld [vmem:[#allocation73_spill] sm:$0xff] }
 0x2a8   :  { %v4680_v16 = vmul.f32 %v4616_v34, %v9271_v22  ;;  %v2947_v26 = vadd.f32 %v2571_v38, %v9287_v28  ;;  %v2479_v36 = vand.u32 2147483647, %v6523_v51  ;;  %v2948_v49 = vadd.f32 %v2580_v17, %v2052_v3 }
 0x2a9   :  { %v2042_v6 = vmax.f32 %v12300_v47, 0.0  ;;  %vm3641_vm13 = vcmp.eq.f32.partialorder %v1913_v12, 1.0  ;;  %v2486_v57 = vadd.f32 1.0, %v2485_v20  ;;  %v4805_v63 = vadd.f32 %v12301_v56, %v9175_v1  ;;  %v12303_v1 = vld [vmem:[#allocation10_spill] sm:$0xff]  ;;  %v12304_v56 = vld [vmem:[#allocation69_spill] sm:$0xff] }
 0x2aa   :  { %v6527_v53 = vpop.eup %6526  ;;  %v9371_v40 = vmul.f32 %v9228_v4, %v4423_v23  ;;  %v9374_v21 = vmul.f32 %v9253_v42, %v4679_v9  ;;  %v4025_v22 = vsub.f32 1.0, %v1913_v12  ;;  %v2488_v28 = vand.u32 2147483647, %v6525_v15 }
 0x2ab   :  { %v4026_v43 = vsub.f32 1.0, %v1914_v10  ;;  %v2475_v34 = vmul.f32 0.6931472, %v6527_v53  ;;  %v2478_v52 = vmul.f32 %v6523_v51, %v2477_v37  ;;  %v9377_v38 = vadd.f32 %v12302_v54, %v4805_v63 }
 0x2ac   :  { %v3011_v0 = vsub.f32 0.0, %v2947_v26  ;;  %vm3642_vm14 = vcmp.eq.f32.partialorder %v1914_v10, 1.0  ;;  %vm2480_vm15 = vcmp.lt.f32.partialorder %v2479_v36, 0.0004427343  ;;  %v5085_v20 = vadd.f32 %v12303_v1, %v9178_v7 }
 0x2ad   :  { %v6529_v3 = vpop.eup %6528  ;;  %v3012_v4 = vsub.f32 0.0, %v2948_v49  ;;  %v2481_v23 = vsel %vm2480_vm15, %v2478_v52, %v2475_v34  ;;  %v2487_v42 = vmul.f32 %v6525_v15, %v2486_v57  ;;  %v4089_v9 = vmul.f32 %v4025_v22, %v4025_v22  ;;  %v12307_v57 = vld [vmem:[#allocation71_spill] sm:$0xff] }
 0x2ae   :  { %v2484_v17 = vmul.f32 0.6931472, %v6529_v3  ;;  %vm2489_vm0 = vcmp.lt.f32.partialorder %v2488_v28, 0.0004427343  ;;  %v9381_v47 = vadd.f32 %v2481_v23, %v2041_v13  ;;  %v9384_v51 = vadd.f32 %v12304_v56, %v5085_v20  ;;  %v6298_v20 = vpop.permute.xlu0 %6297  ;;  %v6273_v56 = vpop.permute.xlu1 %6272 }
 0x2af   :  { %v12305_v37 = vsub.f32 0.0, %v9041_v33  ;;  %v12306_v53 = vsub.f32 0.0, %v9052_v30  ;;  %v4090_v54 = vmul.f32 %v4026_v43, %v4026_v43  ;;  %v3419_v7 = vmul.f32 1.442695, %v3011_v0 }
 0x2b0   :  { %v2490_v50 = vsel %vm2489_vm0, %v2487_v42, %v2484_v17  ;;  %v9392_v34 = vsel %vm3641_vm13, 1.0, %v12173_v35  ;;  %vm3833_vm1 = vcmp.lt.f32.partialorder %v1913_v12, 1.0  ;;  %v3421_v13 = vmul.f32 1.442695, %v3012_v4 }
 0x2b1   :  { %v3203_v63 = vsub.f32 %v12305_v37, %v2947_v26  ;;  %v3204_v36 = vsub.f32 %v12306_v53, %v2948_v49  ;;  %v9394_v15 = vadd.f32 %v2490_v50, %v2042_v6  ;;  %vm3834_vm2 = vcmp.lt.f32.partialorder %v1914_v10, 1.0 }
 0x2b2   :  { %v4945_v28 = vadd.f32 %v12307_v57, %v9222_v41  ;;  %v11933_v33 = vsub.f32 0.0, %v9381_v47  ;;  %v9400_v30 = vmul.f32 %v9231_v14, %v4424_v24  ;;  %v9403_v26 = vmul.f32 %v9257_v31, %v4680_v16  ;;  %v12308_v24 = vld [vmem:[#allocation72_spill] sm:$0xff] }
 0x2b3   :  { %v4153_v49 = vmul.f32 %v4089_v9, %v4025_v22  ;;  %v3002_v52 = vsub.f32 0.0, %v9394_v15  ;;  %v3267_v3 = vmax.f32 %v3203_v63, -9.2103405  ;;  %v3268_v12 = vmax.f32 %v3204_v36, -9.2103405 }
 0x2b4   :  { %v9408_v6 = vsel %vm3642_vm14, 1.0, %v12173_v35  ;;  %v4154_v50 = vmul.f32 %v4090_v54, %v4026_v43  ;;  %6530 = vpow2.f32 %v3419_v7  ;;  %v9411_v41 = vsel %vm3833_vm1, 1.0, %v12173_v35 }
 0x2b5   :  { %v9414_v14 = vsel %vm3834_vm2, 1.0, %v12173_v35  ;;  %v4948_v31 = vsel %vm4780_vm6, %v9392_v34, 0.0  ;;  %6532 = vpow2.f32 %v3421_v13  ;;  %v4947_v16 = vadd.f32 %v12308_v24, %v4945_v28 }
 0x2b6   :  { %v4950_v1 = vsel %vm4780_vm6, %v9408_v6, 0.0  ;;  %v3399_v10 = vmul.f32 1.442695, %v11933_v33  ;;  %v9423_v23 = vmax.f32 %v3011_v0, -9.2103405  ;;  %v9427_v42 = vmul.f32 %v4153_v49, %v4025_v22 }
 0x2b7   :  { %v9425_v17 = vmax.f32 %v3012_v4, -9.2103405  ;;  %v3401_v9 = vmul.f32 1.442695, %v3002_v52  ;;  %v9429_v37 = vmin.f32 %v3267_v3, -0.000100005  ;;  %v9433_v53 = vmul.f32 %v4154_v50, %v4026_v43 }
 0x2b8   :  { %v9431_v63 = vmin.f32 %v3268_v12, -0.000100005  ;;  %6534 = vpow2.f32 %v3399_v10  ;;  %v2125_v36 = vand.u32 2147483647, %v9330_v8  ;;  %v2126_v54 = vand.u32 2147483647, %v9333_v55 }
 0x2b9   :  { %6536 = vpow2.f32 %v3401_v9  ;;  %v6300_v0 = vunpack.i.h.bf16 %v6298_v20  ;;  %v4949_v7 = vadd.f32 %v4948_v31, %v4947_v16  ;;  %v6299_v4 = vunpack.i.l.bf16 %v6298_v20 }
 0x2ba   :  { %v6275_v13 = vunpack.i.h.bf16 %v6273_v56  ;;  %v6274_v22 = vunpack.i.l.bf16 %v6273_v56  ;;  %v6531_v57 = vpop.eup %6530  ;;  %v3193_v28 = vsub.f32 %v1977_v19, %v9381_v47  ;;  %v2189_v49 = vsub.f32 0.0, %v2125_v36  ;;  %v12310_v19 = vld [vmem:[#allocation20_spill] sm:$0xff] }
 0x2bb   :  { %v2190_v3 = vsub.f32 0.0, %v2126_v54  ;;  %v1674_v43 = vmul.f32 %v6300_v0, %v7928_v48  ;;  %v6533_v12 = vpop.eup %6532  ;;  %v12309_v50 = vsub.f32 0.0, %v9172_v2  ;;  %v1673_v10 = vmul.f32 %v6299_v4, %v7928_v48  ;;  %v12311_v0 = vld [vmem:[#allocation21_spill] sm:$0xff]  ;;  %v12312_v2 = vld [vmem:[#allocation47_spill] sm:$0xff]  ;;  %v12313_v4 = vld [vmem:[#allocation48_spill] sm:$0xff] }
 0x2bc   :  { %v1664_v31 = vmul.f32 %v6275_v13, %v7928_v48  ;;  %v1663_v16 = vmul.f32 %v6274_v22, %v7928_v48  ;;  %v2287_v9 = vmul.f32 1.442695, %v2189_v49  ;;  %v3523_v54 = vmax.f32 %v6531_v57, 0.0001 }
 0x2bd   :  { %v3194_v24 = vsub.f32 %v12309_v50, %v9394_v15  ;;  %v2289_v58 = vmul.f32 1.442695, %v2190_v3  ;;  %v9449_v56 = vadd.f32 %v1674_v43, %v12310_v19  ;;  %v9452_v33 = vadd.f32 %v1673_v10, %v12311_v0 }
 0x2be   :  { %v6535_v36 = vpop.eup %6534  ;;  %v9455_v15 = vadd.f32 %v1663_v16, %v12312_v2  ;;  %v9458_v50 = vadd.f32 %v1664_v31, %v12313_v4  ;;  %v3524_v22 = vmax.f32 %v6533_v12, 0.0001  ;;  %v3257_v11 = vmax.f32 %v3193_v28, -9.2103405 }
 0x2bf   :  { %v6537_v13 = vpop.eup %6536  ;;  %v3513_v20 = vmax.f32 %v6535_v36, 0.0001  ;;  %6538 = vpow2.f32 %v2287_v9  ;;  %v3258_v49 = vmax.f32 %v3194_v24, -9.2103405  ;;  %v5569_v57 = vpack.c.bf16 %v9449_v56, %v9452_v33 }
 0x2c0   :  { %v3514_v3 = vmax.f32 %v6537_v13, 0.0001  ;;  %6540 = vpow2.f32 %v2289_v58  ;;  %v9462_v43 = vadd.f32 %v4950_v1, %v4949_v7  ;;  %v12314_v10 = vsub.f32 0.0, %v9381_v47 }
 0x2c1   :  { %v3066_v19 = vmax.f32 %v3002_v52, -9.2103405  ;;  %v3577_v0 = vmin.f32 %v3513_v20, 0.9999  ;;  %v12315_v2 = vsub.f32 0.0, %v9330_v8  ;;  %5696 = vst [vmem:[#allocation2 + $0x78] sm:$0xff] %v5569_v57   ;;  %v5544_v24 = vpack.c.bf16 %v9458_v50, %v9455_v15 }
 0x2c2   :  { %v3065_v16 = vmax.f32 %v12314_v10, -9.2103405  ;;  %v3578_v31 = vmin.f32 %v3514_v3, 0.9999  ;;  %v2122_v28 = vand.u32 2147483647, %v9449_v56 }
 0x2c3   :  { %v9468_v12 = vmax.f32 %v12315_v2, 0.0  ;;  %v9473_v9 = vmin.f32 %v3523_v54, 0.9999  ;;  %v3321_v1 = vmin.f32 %v3257_v11, -0.000100005  ;;  %v4281_v7 = vsub.f32 1.0, %v3577_v0 }
 0x2c4   :  { %v4537_v58 = vmul.f32 %v3577_v0, %v3577_v0  ;;  %v9475_v47 = vmin.f32 %v3524_v22, 0.9999  ;;  %v3322_v52 = vmin.f32 %v3258_v49, -0.000100005  ;;  %v4282_v20 = vsub.f32 1.0, %v3578_v31  ;;  %5691 = vst [vmem:[#allocation2 + $0x50] sm:$0xff] %v5544_v24  }
 0x2c5   :  { %v4538_v36 = vmul.f32 %v3578_v31, %v3578_v31  ;;  %v6539_v4 = vpop.eup %6538  ;;  %v3129_v13 = vmin.f32 %v3065_v16, -0.000100005  ;;  %v3130_v3 = vmin.f32 %v3066_v19, -0.000100005  ;;  %v4345_v57 = vmul.f32 %v4281_v7, %v4281_v7 }
 0x2c6   :  { %v4601_v10 = vmul.f32 %v4537_v58, %v3321_v1  ;;  %v6541_v2 = vpop.eup %6540  ;;  %v4346_v27 = vmul.f32 %v4282_v20, %v4282_v20  ;;  %v2653_v39 = vadd.f32 1.0, %v6539_v4  ;;  %v2186_v54 = vsub.f32 0.0, %v2122_v28 }
 0x2c7   :  { %v4602_v25 = vmul.f32 %v4538_v36, %v3322_v52  ;;  %v4409_v32 = vmul.f32 %v4345_v57, %v3129_v13  ;;  %v2656_v0 = vmul.f32 -0.5, %v6539_v4  ;;  %v2662_v22 = vadd.f32 1.0, %v6541_v2 }
 0x2c8   :  { %v4665_v11 = vmul.f32 %v4601_v10, %v9427_v42  ;;  %v4291_v49 = vsub.f32 1.0, %v9473_v9  ;;  %v4410_v5 = vmul.f32 %v4346_v27, %v3130_v3  ;;  %6542 = vlog2.f32 %v2653_v39 }
 0x2c9   :  { %v4666_v31 = vmul.f32 %v4602_v25, %v9433_v53  ;;  %v4473_v16 = vmul.f32 %v9392_v34, %v4409_v32  ;;  %6544 = vlog2.f32 %v2662_v22  ;;  %v2121_v24 = vand.u32 2147483647, %v9452_v33 }
 0x2ca   :  { %v4729_v19 = vmul.f32 %v9411_v41, %v4665_v11  ;;  %v4474_v28 = vmul.f32 %v9408_v6, %v4410_v5  ;;  %v2665_v42 = vmul.f32 -0.5, %v6541_v2  ;;  %v2281_v7 = vmul.f32 1.442695, %v2186_v54 }
 0x2cb   :  { %v4730_v1 = vmul.f32 %v9414_v14, %v4666_v31  ;;  %v4808_v58 = vsel %vm4780_vm6, %v4473_v16, 0.0  ;;  %v2657_v52 = vadd.f32 1.0, %v2656_v0  ;;  %v2659_v25 = vand.u32 2147483647, %v6539_v4  ;;  %v12319_v0 = vld [vmem:[#allocation11_spill] sm:$0xff]  ;;  %v1933_v31 = vld [vmem:[%s11866_s3 + $0x110] sm:$0xff] }
 0x2cc   :  { %v5088_v27 = vsel %vm4780_vm6, %v4729_v19, 0.0  ;;  %v4292_v39 = vsub.f32 1.0, %v9475_v47  ;;  %v4547_v32 = vmul.f32 %v9473_v9, %v9473_v9  ;;  %v4809_v34 = vadd.f32 %v4808_v58, %v9377_v38  ;;  %v12330_v38 = vld [vmem:[#allocation68_spill] sm:$0xff] }
 0x2cd   :  { %v5089_v41 = vadd.f32 %v5088_v27, %v9384_v51  ;;  %v4810_v5 = vsel %vm4780_vm6, %v4474_v28, 0.0  ;;  %v5090_v6 = vsel %vm4780_vm6, %v4730_v1, 0.0  ;;  %v2666_v14 = vadd.f32 1.0, %v2665_v42  ;;  %v12318_v51 = vld [vmem:[#allocation12_spill] sm:$0xff]  ;;  %v1930_v28 = vld [vmem:[%s11866_s3 + $0xf8] sm:$0xff] }
 0x2ce   :  { %v2668_v53 = vand.u32 2147483647, %v6541_v2  ;;  %v6543_v20 = vpop.eup %6542  ;;  %v4548_v36 = vmul.f32 %v9475_v47, %v9475_v47  ;;  %v4811_v13 = vadd.f32 %v4810_v5, %v4809_v34  ;;  %v2185_v57 = vsub.f32 0.0, %v2121_v24  ;;  %v12322_v1 = vld [vmem:[#allocation8_spill] sm:$0xff] }
 0x2cf   :  { %v5091_v3 = vadd.f32 %v5090_v6, %v5089_v41  ;;  %v6545_v10 = vpop.eup %6544  ;;  %v2655_v54 = vmul.f32 0.6931472, %v6543_v20  ;;  %v2658_v9 = vmul.f32 %v6539_v4, %v2657_v52  ;;  %vm9496_vm3 = vcmp.lt.f32.partialorder %v2659_v25, 0.0004427343 }
 0x2d0   :  { %6546 = vpow2.f32 %v2281_v7  ;;  %v4813_v11 = vadd.f32 %v12318_v51, %v4811_v13  ;;  %v2664_v47 = vmul.f32 0.6931472, %v6545_v10  ;;  %v2667_v16 = vmul.f32 %v6541_v2, %v2666_v14  ;;  %v12323_v7 = vld [vmem:[#allocation19_spill] sm:$0xff] }
 0x2d1   :  { %v5093_v22 = vadd.f32 %v12319_v0, %v5091_v3  ;;  %v4355_v19 = vmul.f32 %v4291_v49, %v4291_v49  ;;  %v4611_v24 = vmul.f32 %v4547_v32, %v9429_v37  ;;  %v2661_v4 = vsel %vm9496_vm3, %v2658_v9, %v2655_v54  ;;  %v1934_v2 = vld [vmem:[%s11866_s3 + $0x118] sm:$0xff] }
 0x2d2   :  { %vm9508_vm4 = vcmp.lt.f32.partialorder %v2668_v53, 0.0004427343  ;;  %v9513_v42 = vadd.f32 %v12322_v1, %v4813_v11  ;;  %v2279_v49 = vmul.f32 1.442695, %v2185_v57  ;;  %v3139_v27 = vmin.f32 %v9423_v23, -0.000100005 }
 0x2d3   :  { %v9516_v58 = vadd.f32 %v12323_v7, %v5093_v22  ;;  %v2670_v37 = vsel %vm9508_vm4, %v2667_v16, %v2664_v47  ;;  %v4356_v52 = vmul.f32 %v4292_v39, %v4292_v39  ;;  %v4045_v25 = vsub.f32 1.0, %v1933_v31  ;;  %v12328_v3 = vld [vmem:[#allocation67_spill] sm:$0xff] }
 0x2d4   :  { %v12324_v32 = vsub.f32 0.0, %v9333_v55  ;;  %v9528_v41 = vsel %vm4780_vm6, %v9371_v40, 0.0  ;;  %v9532_v5 = vsel %vm4780_vm6, %v9374_v21, 0.0  ;;  %v4612_v6 = vmul.f32 %v4548_v36, %v9431_v63 }
 0x2d5   :  { %12325 = vst [vmem:[#allocation66_spill] sm:$0xff] %v9528_v41  ;;  %v9536_v14 = vadd.f32 %v2661_v4, %v9468_v12  ;;  %v3140_v23 = vmin.f32 %v9425_v17, -0.000100005  ;;  %v4419_v39 = vmul.f32 %v4355_v19, %v3139_v27  ;;  %v4046_v20 = vsub.f32 1.0, %v1934_v2 }
 0x2d6   :  { %v2062_v34 = vmax.f32 %v12324_v32, 0.0  ;;  %12326 = vst [vmem:[#allocation22_spill] sm:$0xff] %v9532_v5  ;;  %v9538_v53 = vpop.eup %6546  ;;  %v9545_v40 = vsel %vm4780_vm6, %v9400_v30, 0.0  ;;  %v4675_v21 = vmul.f32 %v4611_v24, %v9276_v61  ;;  %v4953_v63 = vadd.f32 %v12328_v3, %v9462_v43 }
 0x2d7   :  { %12327 = vst [vmem:[#allocation40_spill] sm:$0xff] %v9545_v40  ;;  %6548 = vpow2.f32 %v2279_v49  ;;  %v4420_v12 = vmul.f32 %v4356_v52, %v3140_v23  ;;  %vm3661_vm5 = vcmp.eq.f32.partialorder %v1933_v31, 1.0  ;;  %vm3662_vm7 = vcmp.eq.f32.partialorder %v1934_v2, 1.0 }
 0x2d8   :  { %v9541_v13 = vadd.f32 %v2670_v37, %v2062_v34  ;;  %v4109_v36 = vmul.f32 %v4045_v25, %v4045_v25  ;;  %v4676_v17 = vmul.f32 %v4612_v6, %v9310_v29  ;;  %vm3853_vm8 = vcmp.lt.f32.partialorder %v1933_v31, 1.0 }
 0x2d9   :  { %v3021_v57 = vsub.f32 0.0, %v9536_v14  ;;  %v2626_v10 = vadd.f32 1.0, %v9538_v53  ;;  %v9555_v30 = vsel %vm4780_vm6, %v9403_v26, 0.0  ;;  %v4483_v61 = vmul.f32 %v9295_v62, %v4419_v39  ;;  %v1929_v62 = vld [vmem:[%s11866_s3 + $0xf0] sm:$0xff] }
 0x2da   :  { %12329 = vst [vmem:[#allocation70_spill] sm:$0xff] %v9555_v30  ;;  %v4110_v54 = vmul.f32 %v4046_v20, %v4046_v20  ;;  %v3022_v43 = vsub.f32 0.0, %v9541_v13  ;;  %v4739_v9 = vmul.f32 %v9301_v45, %v4675_v21  ;;  %v9561_v51 = vadd.f32 %v12330_v38, %v4953_v63 }
 0x2db   :  { %v9564_v29 = vsel %vm3661_vm5, 1.0, %v12173_v35  ;;  %vm3854_vm9 = vcmp.lt.f32.partialorder %v1934_v2, 1.0  ;;  %v4484_v11 = vmul.f32 %v9298_v46, %v4420_v12  ;;  %v9568_v0 = vsel %vm3662_vm7, 1.0, %v12173_v35 }
 0x2dc   :  { %v9571_v26 = vsel %vm3853_vm8, 1.0, %v12173_v35  ;;  %v2111_v45 = vand.u32 2147483647, %v9455_v15  ;;  %v4740_v31 = vmul.f32 %v9308_v60, %v4676_v17  ;;  %v4173_v47 = vmul.f32 %v4109_v36, %v4045_v25 }
 0x2dd   :  { %v9577_v22 = vpop.eup %6548  ;;  %v3439_v46 = vmul.f32 1.442695, %v3021_v57  ;;  %6550 = vlog2.f32 %v2626_v10  ;;  %v9583_v16 = vsel %vm4780_vm6, %v4483_v61, 0.0  ;;  %v9586_v19 = vsel %vm3854_vm9, 1.0, %v12173_v35 }
 0x2de   :  { %12331 = vst [vmem:[#allocation9_spill] sm:$0xff] %v9583_v16  ;;  %v4174_v24 = vmul.f32 %v4110_v54, %v4046_v20  ;;  %v3441_v4 = vmul.f32 1.442695, %v3022_v43  ;;  %v9594_v60 = vsel %vm4780_vm6, %v4739_v9, 0.0  ;;  %v4041_v1 = vsub.f32 1.0, %v1929_v62 }
 0x2df   :  { %12332 = vst [vmem:[#allocation44_spill] sm:$0xff] %v9594_v60  ;;  %v11934_v7 = vsub.f32 0.0, %v9452_v33  ;;  %v11935_v2 = vsub.f32 0.0, %v9449_v56  ;;  %v9599_v37 = vsel %vm4780_vm6, %v4484_v11, 0.0  ;;  %v2617_v49 = vadd.f32 1.0, %v9577_v22 }
 0x2e0   :  { %12333 = vst [vmem:[#allocation15_spill] sm:$0xff] %v9599_v37  ;;  %v2629_v27 = vmul.f32 -0.5, %v9538_v53  ;;  %v2175_v52 = vsub.f32 0.0, %v2111_v45  ;;  %v9604_v32 = vsel %vm4780_vm6, %v4740_v31, 0.0  ;;  %v9606_v34 = vmul.f32 %v4173_v47, %v4045_v25 }
 0x2e1   :  { %12334 = vst [vmem:[#allocation41_spill] sm:$0xff] %v9604_v32  ;;  %6552 = vpow2.f32 %v3439_v46  ;;  %v4042_v6 = vsub.f32 1.0, %v1930_v28  ;;  %v9608_v23 = vmul.f32 %v4174_v24, %v4046_v20  ;;  %v9612_v39 = vsel %vm4780_vm6, %v9564_v29, 0.0 }
 0x2e2   :  { %12335 = vst [vmem:[#allocation73_spill] sm:$0xff] %v9612_v39  ;;  %v9616_v21 = vsel %vm4780_vm6, %v9568_v0, 0.0  ;;  %6554 = vpow2.f32 %v3441_v4  ;;  %vm3657_vm10 = vcmp.eq.f32.partialorder %v1929_v62, 1.0  ;;  %v4105_v63 = vmul.f32 %v4041_v1, %v4041_v1 }
 0x2e3   :  { %12336 = vst [vmem:[#allocation10_spill] sm:$0xff] %v9616_v21  ;;  %v6551_v3 = vpop.eup %6550  ;;  %v9620_v25 = vmax.f32 %v11934_v7, 0.0  ;;  %v2058_v20 = vmax.f32 %v11935_v2, 0.0  ;;  %vm3658_vm11 = vcmp.eq.f32.partialorder %v1930_v28, 1.0  ;;  %6556 = vlog2.f32 %v2617_v49 }
 0x2e4   :  { %v2630_v12 = vadd.f32 1.0, %v2629_v27  ;;  %v2259_v36 = vmul.f32 1.442695, %v2175_v52  ;;  %vm3849_vm12 = vcmp.lt.f32.partialorder %v1929_v62, 1.0  ;;  %v4106_v17 = vmul.f32 %v4042_v6, %v4042_v6 }
 0x2e5   :  { %v2632_v10 = vand.u32 2147483647, %v9538_v53  ;;  %v11936_v61 = vsub.f32 0.0, %v9455_v15  ;;  %v12337_v54 = vsub.f32 0.0, %v9330_v8  ;;  %v9630_v38 = vsel %vm3657_vm10, 1.0, %v12173_v35 }
 0x2e6   :  { %vm3850_vm13 = vcmp.lt.f32.partialorder %v1930_v28, 1.0  ;;  %v2628_v11 = vmul.f32 0.6931472, %v6551_v3  ;;  %v12338_v31 = vsub.f32 0.0, %v9333_v55  ;;  %v9636_v62 = vsel %vm3658_vm11, 1.0, %v12173_v35  ;;  %v9682_v3 = vld [vmem:[%s11866_s3 + $0xa8] sm:$0xff] }
 0x2e7   :  { %v3213_v9 = vsub.f32 %v12337_v54, %v9536_v14  ;;  %v6553_v45 = vpop.eup %6552  ;;  %v4169_v46 = vmul.f32 %v4105_v63, %v4041_v1  ;;  %v2620_v24 = vmul.f32 -0.5, %v9577_v22  ;;  %v9640_v8 = vsel %vm3849_vm12, 1.0, %v12173_v35 }
 0x2e8   :  { %v3214_v47 = vsub.f32 %v12338_v31, %v9541_v13  ;;  %v6555_v4 = vpop.eup %6554  ;;  %v2631_v49 = vmul.f32 %v9538_v53, %v2630_v12  ;;  %v2112_v28 = vand.u32 2147483647, %v9458_v50  ;;  %6558 = vpow2.f32 %v2259_v36 }
 0x2e9   :  { %v9646_v27 = vmax.f32 %v3021_v57, -9.2103405  ;;  %v9649_v55 = vsel %vm3850_vm13, 1.0, %v12173_v35  ;;  %v4170_v52 = vmul.f32 %v4106_v17, %v4042_v6  ;;  %vm9651_vm14 = vcmp.lt.f32.partialorder %v2632_v10, 0.0004427343  ;;  %v6557_v63 = vpop.eup %6556  ;;  %v9666_v17 = vld [vmem:[%s11866_s3 + $0xa0] sm:$0xff]  ;;  %v6323_v10 = vpop.permute.xlu2 %6322 }
 0x2ea   :  { %v9657_v54 = vmax.f32 %v3022_v43, -9.2103405  ;;  %v3277_v53 = vmax.f32 %v3213_v9, -9.2103405  ;;  %v3533_v12 = vmax.f32 %v6553_v45, 0.0001  ;;  %v2634_v14 = vsel %vm9651_vm14, %v2631_v49, %v2628_v11 }
 0x2eb   :  { %v3278_v57 = vmax.f32 %v3214_v47, -9.2103405  ;;  %v3534_v36 = vmax.f32 %v6555_v4, 0.0001  ;;  %v9661_v31 = vmul.f32 %v4169_v46, %v4041_v1  ;;  %v2621_v7 = vadd.f32 1.0, %v2620_v24 }
 0x2ec   :  { %v9670_v13 = vsel %vm4780_vm6, %v9630_v38, 0.0  ;;  %v2623_v43 = vand.u32 2147483647, %v9577_v22  ;;  %v2176_v11 = vsub.f32 0.0, %v2112_v28  ;;  %v3149_v45 = vmin.f32 %v9646_v27, -0.000100005 }
 0x2ed   :  { %12341 = vst [vmem:[#allocation69_spill] sm:$0xff] %v9670_v13  ;;  %v9675_v1 = vmul.f32 %v4170_v52, %v4042_v6  ;;  %v2619_v47 = vmul.f32 0.6931472, %v6557_v63  ;;  %v2954_v46 = vadd.f32 %v2634_v14, %v2058_v20  ;;  %v3341_v4 = vmin.f32 %v3277_v53, -0.000100005 }
 0x2ee   :  { %v9677_v24 = vpop.eup %6558  ;;  %v3597_v49 = vmin.f32 %v3533_v12, 0.9999  ;;  %v9685_v2 = vsub.f32 1.0, %v9666_v17  ;;  %v6325_v9 = vunpack.i.h.bf16 %v6323_v10  ;;  %v3150_v28 = vmin.f32 %v9657_v54, -0.000100005 }
 0x2ef   :  { %v3342_v27 = vmin.f32 %v3278_v57, -0.000100005  ;;  %v3598_v6 = vmin.f32 %v3534_v36, 0.9999  ;;  %v2622_v52 = vmul.f32 %v9577_v22, %v2621_v7  ;;  %vm9689_vm15 = vcmp.lt.f32.partialorder %v2623_v43, 0.0004427343 }
 0x2f0   :  { %v2047_v63 = vmax.f32 %v11936_v61, 0.0  ;;  %v12344_v53 = vsub.f32 0.0, %v9458_v50  ;;  %v2261_v14 = vmul.f32 1.442695, %v2176_v11  ;;  %v3018_v54 = vsub.f32 0.0, %v2954_v46 }
 0x2f1   :  { %v2625_v21 = vsel %vm9689_vm15, %v2622_v52, %v2619_v47  ;;  %v9702_v57 = vsub.f32 1.0, %v9682_v3  ;;  %v2527_v22 = vadd.f32 1.0, %v9677_v24  ;;  %v4301_v7 = vsub.f32 1.0, %v3597_v49 }
 0x2f2   :  { %v9697_v12 = vmax.f32 %v12344_v53, 0.0  ;;  %v4557_v36 = vmul.f32 %v3597_v49, %v3597_v49  ;;  %v4095_v43 = vmul.f32 %v9685_v2, %v9685_v2  ;;  %6560 = vpow2.f32 %v2261_v14 }
 0x2f3   :  { %v4302_v61 = vsub.f32 1.0, %v3598_v6  ;;  %vm3647_vm0 = vcmp.eq.f32.partialorder %v9666_v17, 1.0  ;;  %6562 = vlog2.f32 %v2527_v22  ;;  %v2530_v11 = vmul.f32 -0.5, %v9677_v24 }
 0x2f4   :  { %v4558_v20 = vmul.f32 %v3598_v6, %v3598_v6  ;;  %v2953_v47 = vadd.f32 %v2625_v21, %v9620_v25  ;;  %vm3648_vm1 = vcmp.eq.f32.partialorder %v9682_v3, 1.0  ;;  %v1684_v52 = vmul.f32 %v6325_v9, %v7928_v48 }
 0x2f5   :  { %v12345_v53 = vsub.f32 0.0, %v9449_v56  ;;  %v3433_v39 = vmul.f32 1.442695, %v3018_v54  ;;  %v9716_v14 = vmul.f32 %v9702_v57, %v9702_v57  ;;  %v6324_v13 = vunpack.i.l.bf16 %v6323_v10 }
 0x2f6   :  { %v4365_v30 = vmul.f32 %v4301_v7, %v4301_v7  ;;  %v4621_v22 = vmul.f32 %v4557_v36, %v3341_v4  ;;  %v9718_v40 = vmax.f32 %v3018_v54, -9.2103405  ;;  %v9721_v6 = vsel %vm3647_vm0, 1.0, %v12173_v35 }
 0x2f7   :  { %v3210_v49 = vsub.f32 %v12345_v53, %v2954_v46  ;;  %v4366_v21 = vmul.f32 %v4302_v61, %v4302_v61  ;;  %v9724_v25 = vsel %vm3648_vm1, 1.0, %v12173_v35  ;;  %vm3839_vm2 = vcmp.lt.f32.partialorder %v9666_v17, 1.0 }
 0x2f8   :  { %v2531_v56 = vadd.f32 1.0, %v2530_v11  ;;  %v6561_v9 = vpop.eup %6560  ;;  %v4622_v46 = vmul.f32 %v4558_v20, %v3342_v27  ;;  %v3017_v53 = vsub.f32 0.0, %v2953_v47  ;;  %vm3840_vm3 = vcmp.lt.f32.partialorder %v9682_v3, 1.0 }
 0x2f9   :  { %v2533_v10 = vand.u32 2147483647, %v9677_v24  ;;  %v6563_v4 = vpop.eup %6562  ;;  %v3274_v54 = vmax.f32 %v3210_v49, -9.2103405  ;;  %6564 = vpow2.f32 %v3433_v39  ;;  %v2536_v7 = vadd.f32 1.0, %v6561_v9 }
 0x2fa   :  { %v1683_v36 = vmul.f32 %v6324_v13, %v7928_v48  ;;  %v4429_v61 = vmul.f32 %v4365_v30, %v3149_v45  ;;  %v4685_v5 = vmul.f32 %v4621_v22, %v9606_v34  ;;  %v2539_v32 = vmul.f32 -0.5, %v6561_v9  ;;  %v12347_v34 = vld [vmem:[#allocation18_spill] sm:$0xff]  ;;  %v12348_v45 = vld [vmem:[#allocation17_spill] sm:$0xff] }
 0x2fb   :  { %v4430_v11 = vmul.f32 %v4366_v21, %v3150_v28  ;;  %v2529_v60 = vmul.f32 0.6931472, %v6563_v4  ;;  %v2532_v27 = vmul.f32 %v9677_v24, %v2531_v56  ;;  %6566 = vlog2.f32 %v2536_v7  ;;  %v12350_v7 = vld [vmem:[#allocation75_spill] sm:$0xff] }
 0x2fc   :  { %v4686_v20 = vmul.f32 %v4622_v46, %v9608_v23  ;;  %v12346_v37 = vsub.f32 0.0, %v9452_v33  ;;  %v3431_v39 = vmul.f32 1.442695, %v3017_v53  ;;  %vm2534_vm4 = vcmp.lt.f32.partialorder %v2533_v10, 0.0004427343 }
 0x2fd   :  { %v2535_v16 = vsel %vm2534_vm4, %v2532_v27, %v2529_v60  ;;  %v4817_v30 = vadd.f32 %v9235_v18, %v9513_v42  ;;  %v9739_v13 = vadd.f32 %v1683_v36, %v12347_v34  ;;  %v9742_v28 = vadd.f32 %v1684_v52, %v12348_v45 }
 0x2fe   :  { %v3209_v49 = vsub.f32 %v12346_v37, %v2953_v47  ;;  %v9745_v24 = vmul.f32 %v9564_v29, %v4429_v61  ;;  %v9747_v22 = vmin.f32 %v3274_v54, -0.000100005  ;;  %v2540_v23 = vadd.f32 1.0, %v2539_v32  ;;  %v6313_v54 = vpop.permute.xlu0 %6312  ;;  %v12351_v61 = vld [vmem:[#allocation16_spill] sm:$0xff] }
 0x2ff   :  { %v9749_v33 = vadd.f32 %v2535_v16, %v2047_v63  ;;  %v6565_v37 = vpop.eup %6564  ;;  %v9752_v60 = vmul.f32 %v9568_v0, %v4430_v11  ;;  %v9755_v18 = vmul.f32 %v9571_v26, %v4685_v5  ;;  %v2542_v42 = vand.u32 2147483647, %v6561_v9  ;;  %v12349_v5 = vld [vmem:[#allocation74_spill] sm:$0xff] }
 0x300   :  { %v9758_v47 = vadd.f32 %v9242_v59, %v4817_v30  ;;  %v3273_v52 = vmax.f32 %v3209_v49, -9.2103405  ;;  %6568 = vpow2.f32 %v3431_v39  ;;  %v4159_v29 = vmul.f32 %v4095_v43, %v9685_v2 }
 0x301   :  { %v3007_v21 = vsub.f32 0.0, %v9749_v33  ;;  %v6567_v32 = vpop.eup %6566  ;;  %v9763_v16 = vmul.f32 %v9586_v19, %v4686_v20  ;;  %v9768_v0 = vsel %vm3839_vm2, 1.0, %v12173_v35  ;;  %v4957_v26 = vadd.f32 %v12349_v5, %v9561_v51 }
 0x302   :  { %v5594_v59 = vpack.c.bf16 %v9742_v28, %v9739_v13  ;;  %v9774_v63 = vmax.f32 %v3017_v53, -9.2103405  ;;  %v3530_v43 = vmax.f32 %v6565_v37, 0.0001  ;;  %v2538_v56 = vmul.f32 0.6931472, %v6567_v32 }
 0x303   :  { %v2541_v46 = vmul.f32 %v6561_v9, %v2540_v23  ;;  %v9779_v19 = vsel %vm3840_vm3, 1.0, %v12173_v35  ;;  %vm2543_vm5 = vcmp.lt.f32.partialorder %v2542_v42, 0.0004427343  ;;  %v3411_v17 = vmul.f32 1.442695, %v3007_v21  ;;  %v9815_v37 = vld [vmem:[%s11866_s3 + $0x148] sm:$0xff] }
 0x304   :  { %v5097_v10 = vadd.f32 %v9245_v44, %v9516_v58  ;;  %5701 = vst [vmem:[#allocation2 + $0xa0] sm:$0xff] %v5594_v59   ;;  %v9783_v51 = vmin.f32 %v3273_v52, -0.000100005  ;;  %v4160_v53 = vmul.f32 %v9716_v14, %v9702_v57  ;;  %v9788_v4 = vmul.f32 %v4159_v29, %v9685_v2 }
 0x305   :  { %v2544_v9 = vsel %vm2543_vm5, %v2541_v46, %v2538_v56  ;;  %v4959_v3 = vadd.f32 %v12350_v7, %v4957_v26  ;;  %6570 = vpow2.f32 %v3411_v17  ;;  %v4960_v58 = vsel %vm4780_vm6, %v9721_v6, 0.0  ;;  %v12353_v17 = vld [vmem:[#allocation25_spill] sm:$0xff]  ;;  %v12354_v7 = vld [vmem:[#allocation26_spill] sm:$0xff] }
 0x306   :  { %v2944_v36 = vadd.f32 %v2544_v9, %v9697_v12  ;;  %v9793_v11 = vadd.f32 %v12351_v61, %v5097_v10  ;;  %v6569_v44 = vpop.eup %6568  ;;  %v4962_v14 = vsel %vm4780_vm6, %v9724_v25, 0.0  ;;  %v2131_v2 = vand.u32 2147483647, %v9739_v13  ;;  %v9804_v12 = vld [vmem:[%s11866_s3 + $0x140] sm:$0xff] }
 0x307   :  { %v2132_v27 = vand.u32 2147483647, %v9742_v28  ;;  %v3594_v20 = vmin.f32 %v3530_v43, 0.9999  ;;  %v6315_v39 = vunpack.i.h.bf16 %v6313_v54  ;;  %v6314_v30 = vunpack.i.l.bf16 %v6313_v54 }
 0x308   :  { %v3008_v49 = vsub.f32 0.0, %v2944_v36  ;;  %v9807_v34 = vmul.f32 %v4160_v53, %v9702_v57  ;;  %v12352_v45 = vsub.f32 0.0, %v9455_v15  ;;  %v2195_v42 = vsub.f32 0.0, %v2131_v2  ;;  %v6288_v53 = vpop.permute.xlu1 %6287 }
 0x309   :  { %v2196_v52 = vsub.f32 0.0, %v2132_v27  ;;  %v3529_v29 = vmax.f32 %v6569_v44, 0.0001  ;;  %v4961_v32 = vadd.f32 %v4960_v58, %v4959_v3  ;;  %v1680_v26 = vmul.f32 %v6315_v39, %v7928_v48 }
 0x30a   :  { %v3199_v23 = vsub.f32 %v12352_v45, %v9749_v33  ;;  %v3413_v5 = vmul.f32 1.442695, %v3008_v49  ;;  %v9819_v59 = vsub.f32 1.0, %v9804_v12  ;;  %v2299_v57 = vmul.f32 1.442695, %v2195_v42 }
 0x30b   :  { %v2301_v43 = vmul.f32 1.442695, %v2196_v52  ;;  %v1679_v15 = vmul.f32 %v6314_v30, %v7928_v48  ;;  %v6571_v33 = vpop.eup %6570  ;;  %v4298_v56 = vsub.f32 1.0, %v3594_v20  ;;  %v9823_v46 = vsub.f32 1.0, %v9815_v37 }
 0x30c   :  { %6572 = vpow2.f32 %v3413_v5  ;;  %v9826_v10 = vadd.f32 %v1680_v26, %v12353_v17  ;;  %v3263_v9 = vmax.f32 %v3199_v23, -9.2103405  ;;  %v3519_v54 = vmax.f32 %v6571_v33, 0.0001 }
 0x30d   :  { %6574 = vpow2.f32 %v2299_v57  ;;  %v9829_v3 = vadd.f32 %v1679_v15, %v12354_v7  ;;  %v9831_v61 = vmin.f32 %v3529_v29, 0.9999  ;;  %v3071_v44 = vmax.f32 %v3007_v21, -9.2103405 }
 0x30e   :  { %v12355_v58 = vsub.f32 0.0, %v9458_v50  ;;  %6576 = vpow2.f32 %v2301_v43  ;;  %v9835_v27 = vmul.f32 %v3594_v20, %v3594_v20  ;;  %v3583_v39 = vmin.f32 %v3519_v54, 0.9999 }
 0x30f   :  { %v5584_v30 = vpack.c.bf16 %v9826_v10, %v9829_v3  ;;  %v6290_v45 = vunpack.i.h.bf16 %v6288_v53  ;;  %v9839_v23 = vmul.f32 %v4298_v56, %v4298_v56  ;;  %v9841_v42 = vadd.f32 %v4962_v14, %v4961_v32 }
 0x310   :  { %v3200_v2 = vsub.f32 %v12355_v58, %v2944_v36  ;;  %v3072_v52 = vmax.f32 %v3008_v49, -9.2103405  ;;  %v9845_v29 = vmul.f32 %v9819_v59, %v9819_v59  ;;  %v3327_v21 = vmin.f32 %v3263_v9, -0.000100005 }
 0x311   :  { %v4287_v50 = vsub.f32 1.0, %v3583_v39  ;;  %v4543_v36 = vmul.f32 %v3583_v39, %v3583_v39  ;;  %v2004_v20 = vsub.f32 0.0, %v9742_v28  ;;  %5699 = vst [vmem:[#allocation2 + $0x90] sm:$0xff] %v5584_v30   ;;  %v3135_v57 = vmin.f32 %v3071_v44, -0.000100005 }
 0x312   :  { %v6573_v5 = vpop.eup %6572  ;;  %v3264_v43 = vmax.f32 %v3200_v2, -9.2103405  ;;  %v1670_v56 = vmul.f32 %v6290_v45, %v7928_v48  ;;  %v3136_v9 = vmin.f32 %v3072_v52, -0.000100005  ;;  %v6289_v58 = vunpack.i.l.bf16 %v6288_v53 }
 0x313   :  { %v6575_v14 = vpop.eup %6574  ;;  %v3520_v32 = vmax.f32 %v6573_v5, 0.0001  ;;  %v4351_v49 = vmul.f32 %v4287_v50, %v4287_v50  ;;  %v4607_v33 = vmul.f32 %v4543_v36, %v3327_v21  ;;  %v2128_v15 = vand.u32 2147483647, %v9826_v10 }
 0x314   :  { %v6577_v17 = vpop.eup %6576  ;;  %v2707_v54 = vadd.f32 1.0, %v6575_v14  ;;  %v2710_v7 = vmul.f32 -0.5, %v6575_v14  ;;  %v3328_v44 = vmin.f32 %v3264_v43, -0.000100005  ;;  %v2127_v53 = vand.u32 2147483647, %v9829_v3 }
 0x315   :  { %v3584_v39 = vmin.f32 %v3520_v32, 0.9999  ;;  %v4415_v30 = vmul.f32 %v4351_v49, %v3135_v57  ;;  %v4671_v41 = vmul.f32 %v4607_v33, %v9788_v4  ;;  %v2716_v26 = vadd.f32 1.0, %v6577_v17 }
 0x316   :  { %6578 = vlog2.f32 %v2707_v54  ;;  %v2719_v2 = vmul.f32 -0.5, %v6577_v17  ;;  %v2711_v52 = vadd.f32 1.0, %v2710_v7  ;;  %v1669_v36 = vmul.f32 %v6289_v58, %v7928_v48 }
 0x317   :  { %v4288_v5 = vsub.f32 1.0, %v3584_v39  ;;  %v4479_v21 = vmul.f32 %v9721_v6, %v4415_v30  ;;  %v4544_v50 = vmul.f32 %v3584_v39, %v3584_v39  ;;  %v4735_v45 = vmul.f32 %v9768_v0, %v4671_v41 }
 0x318   :  { %6580 = vlog2.f32 %v2716_v26  ;;  %v2713_v6 = vand.u32 2147483647, %v6575_v14  ;;  %v2720_v54 = vadd.f32 1.0, %v2719_v2  ;;  %v4553_v41 = vmul.f32 %v9831_v61, %v9831_v61 }
 0x319   :  { %v4352_v57 = vmul.f32 %v4288_v5, %v4288_v5  ;;  %v4608_v4 = vmul.f32 %v4544_v50, %v3328_v44  ;;  %v4820_v43 = vsel %vm4780_vm6, %v4479_v21, 0.0  ;;  %v5100_v32 = vsel %vm4780_vm6, %v4735_v45, 0.0 }
 0x31a   :  { %v4821_v49 = vadd.f32 %v4820_v43, %v9758_v47  ;;  %v5101_v33 = vadd.f32 %v5100_v32, %v9793_v11  ;;  %v2068_v7 = vmax.f32 %v2004_v20, 0.0  ;;  %v12356_v39 = vsub.f32 0.0, %v9739_v13 }
 0x31b   :  { %v4416_v0 = vmul.f32 %v4352_v57, %v3136_v9  ;;  %v4672_v26 = vmul.f32 %v4608_v4, %v9807_v34  ;;  %v2722_v44 = vand.u32 2147483647, %v6577_v17  ;;  %v2191_v5 = vsub.f32 0.0, %v2127_v53  ;;  %v12357_v34 = vld [vmem:[#allocation23_spill] sm:$0xff]  ;;  %v12358_v4 = vld [vmem:[#allocation49_spill] sm:$0xff] }
 0x31c   :  { %v6579_v58 = vpop.eup %6578  ;;  %v2067_v30 = vmax.f32 %v12356_v39, 0.0  ;;  %v2192_v47 = vsub.f32 0.0, %v2128_v15  ;;  %v2712_v50 = vmul.f32 %v6575_v14, %v2711_v52  ;;  %vm2714_vm7 = vcmp.lt.f32.partialorder %v2713_v6, 0.0004427343  ;;  %v12359_v6 = vld [vmem:[#allocation61_spill] sm:$0xff] }
 0x31d   :  { %v4480_v11 = vmul.f32 %v9724_v25, %v4416_v0  ;;  %v4736_v2 = vmul.f32 %v9779_v19, %v4672_v26  ;;  %v2709_v21 = vmul.f32 0.6931472, %v6579_v58  ;;  %v2721_v9 = vmul.f32 %v6577_v17, %v2720_v54  ;;  %v12360_v54 = vld [vmem:[#allocation62_spill] sm:$0xff] }
 0x31e   :  { %v6581_v45 = vpop.eup %6580  ;;  %v9871_v57 = vadd.f32 %v1669_v36, %v12357_v34  ;;  %v9874_v43 = vadd.f32 %v1670_v56, %v12358_v4  ;;  %vm2723_vm8 = vcmp.lt.f32.partialorder %v2722_v44, 0.0004427343  ;;  %v4618_v14 = vmul.f32 %v9835_v27, %v9747_v22  ;;  %v6338_v27 = vpop.permute.xlu2 %6337 }
 0x31f   :  { %v4822_v32 = vsel %vm4780_vm6, %v4480_v11, 0.0  ;;  %v5102_v53 = vsel %vm4780_vm6, %v4736_v2, 0.0  ;;  %v2715_v15 = vsel %vm2714_vm7, %v2712_v50, %v2709_v21  ;;  %v2718_v39 = vmul.f32 0.6931472, %v6581_v45  ;;  %v12365_v50 = vld [vmem:[#allocation42_spill] sm:$0xff] }
 0x320   :  { %v4823_v25 = vadd.f32 %v4822_v32, %v4821_v49  ;;  %v5103_v0 = vadd.f32 %v5102_v53, %v5101_v33  ;;  %v9878_v19 = vadd.f32 %v2715_v15, %v2067_v30  ;;  %v2291_v52 = vmul.f32 1.442695, %v2191_v5  ;;  %v12362_v5 = vld [vmem:[#allocation14_spill] sm:$0xff] }
 0x321   :  { %v2724_v17 = vsel %vm2723_vm8, %v2721_v9, %v2718_v39  ;;  %v2293_v36 = vmul.f32 1.442695, %v2192_v47  ;;  %v3145_v49 = vmin.f32 %v9774_v63, -0.000100005  ;;  %v12361_v33 = vsub.f32 1.0, %v9831_v61 }
 0x322   :  { %v4825_v56 = vadd.f32 %v12359_v6, %v4823_v25  ;;  %v5105_v26 = vadd.f32 %v12360_v54, %v5103_v0  ;;  %v9884_v58 = vadd.f32 %v2724_v17, %v2068_v7  ;;  %v11940_v11 = vsub.f32 0.0, %v9878_v19  ;;  %v12363_v7 = vld [vmem:[#allocation24_spill] sm:$0xff]  ;;  %v12373_v6 = vld [vmem:[#allocation50_spill] sm:$0xff]  ;;  %v12374_v54 = vld [vmem:[#allocation51_spill] sm:$0xff] }
 0x323   :  { %v4361_v30 = vmul.f32 %v12361_v33, %v12361_v33  ;;  %6582 = vpow2.f32 %v2291_v52  ;;  %v5559_v22 = vpack.c.bf16 %v9874_v43, %v9871_v57  ;;  %v4617_v44 = vmul.f32 %v4553_v41, %v9783_v51 }
 0x324   :  { %v9895_v47 = vadd.f32 %v12362_v5, %v4825_v56  ;;  %v9898_v2 = vadd.f32 %v12363_v7, %v5105_v26  ;;  %v11939_v21 = vsub.f32 0.0, %v9884_v58  ;;  %v12364_v63 = vmin.f32 %v9718_v40, -0.000100005  ;;  %v1936_v5 = vld [vmem:[%s11866_s3 + $0x128] sm:$0xff] }
 0x325   :  { %v4965_v45 = vadd.f32 %v12365_v50, %v9841_v42  ;;  %v4116_v9 = vmul.f32 %v9823_v46, %v9823_v46  ;;  %6584 = vpow2.f32 %v2293_v36  ;;  %5694 = vst [vmem:[#allocation2 + $0x68] sm:$0xff] %v5559_v22   ;;  %v4682_v51 = vmul.f32 %v4618_v14, %v9675_v1  ;;  %v12371_v14 = vld [vmem:[#allocation45_spill] sm:$0xff] }
 0x326   :  { %v4426_v61 = vmul.f32 %v9839_v23, %v12364_v63  ;;  %v4179_v41 = vmul.f32 %v9845_v29, %v9819_v59  ;;  %v3451_v34 = vmul.f32 1.442695, %v11940_v11  ;;  %v6340_v4 = vunpack.i.h.bf16 %v6338_v27 }
 0x327   :  { %v9915_v40 = vsel %vm4780_vm6, %v9745_v24, 0.0  ;;  %v9919_v23 = vsel %vm4780_vm6, %v9755_v18, 0.0  ;;  %v9923_v42 = vsel %vm4780_vm6, %v9636_v62, 0.0  ;;  %v4425_v1 = vmul.f32 %v4361_v30, %v3145_v49 }
 0x328   :  { %12366 = vst [vmem:[#allocation71_spill] sm:$0xff] %v9915_v40  ;;  %v9927_v29 = vsel %vm4780_vm6, %v9752_v60, 0.0  ;;  %v9931_v32 = vsel %vm4780_vm6, %v9763_v16, 0.0  ;;  %v4681_v24 = vmul.f32 %v4617_v44, %v9661_v31  ;;  %v3453_v53 = vmul.f32 1.442695, %v11939_v21 }
 0x329   :  { %12367 = vst [vmem:[#allocation72_spill] sm:$0xff] %v9919_v23  ;;  %v9936_v18 = vpop.eup %6582  ;;  %v4490_v15 = vmul.f32 %v9636_v62, %v4426_v61  ;;  %v4180_v39 = vmul.f32 %v4116_v9, %v9823_v46  ;;  %v1690_v25 = vmul.f32 %v6340_v4, %v7928_v48  ;;  %v6339_v0 = vunpack.i.l.bf16 %v6338_v27 }
 0x32a   :  { %12368 = vst [vmem:[#allocation20_spill] sm:$0xff] %v9923_v42  ;;  %v4746_v60 = vmul.f32 %v9649_v55, %v4682_v51  ;;  %v9943_v17 = vadd.f32 %v12371_v14, %v4965_v45  ;;  %v9946_v16 = vmul.f32 %v4179_v41, %v9819_v59  ;;  %6586 = vpow2.f32 %v3451_v34 }
 0x32b   :  { %12369 = vst [vmem:[#allocation21_spill] sm:$0xff] %v9927_v29  ;;  %v9948_v31 = vpop.eup %6584  ;;  %v4489_v52 = vmul.f32 %v9630_v38, %v4425_v1  ;;  %vm3667_vm9 = vcmp.eq.f32.partialorder %v9804_v12, 1.0  ;;  %vm3668_vm10 = vcmp.eq.f32.partialorder %v9815_v37, 1.0  ;;  %v1689_v62 = vmul.f32 %v6339_v0, %v7928_v48  ;;  %v1935_v38 = vld [vmem:[%s11866_s3 + $0x120] sm:$0xff] }
 0x32c   :  { %12370 = vst [vmem:[#allocation47_spill] sm:$0xff] %v9931_v32  ;;  %v4745_v36 = vmul.f32 %v9640_v8, %v4681_v24  ;;  %vm3859_vm11 = vcmp.lt.f32.partialorder %v9804_v12, 1.0  ;;  %6588 = vpow2.f32 %v3453_v53  ;;  %v2671_v55 = vadd.f32 1.0, %v9936_v18 }
 0x32d   :  { %v9958_v59 = vsel %vm4780_vm6, %v4490_v15, 0.0  ;;  %vm3860_vm12 = vcmp.lt.f32.partialorder %v9815_v37, 1.0  ;;  %v9965_v56 = vadd.f32 %v1689_v62, %v12373_v6  ;;  %v9968_v26 = vadd.f32 %v1690_v25, %v12374_v54 }
 0x32e   :  { %12372 = vst [vmem:[#allocation48_spill] sm:$0xff] %v9958_v59  ;;  %v9971_v8 = vsel %vm4780_vm6, %v4746_v60, 0.0  ;;  %v9974_v12 = vsel %vm3667_vm9, 1.0, %v12173_v35  ;;  %v11937_v49 = vsub.f32 0.0, %v9826_v10  ;;  %v2680_v33 = vadd.f32 1.0, %v9948_v31 }
 0x32f   :  { %12375 = vst [vmem:[#allocation12_spill] sm:$0xff] %v9968_v26  ;;  %v9979_v30 = vsel %vm4780_vm6, %v4489_v52, 0.0  ;;  %v9984_v22 = vsel %vm3668_vm10, 1.0, %v12173_v35  ;;  %v9987_v27 = vsel %vm3859_vm11, 1.0, %v12173_v35  ;;  %v9990_v44 = vmul.f32 %v4180_v39, %v9823_v46 }
 0x330   :  { %12376 = vst [vmem:[#allocation11_spill] sm:$0xff] %v9971_v8  ;;  %v6587_v7 = vpop.eup %6586  ;;  %v9996_v63 = vsel %vm4780_vm6, %v4745_v36, 0.0  ;;  %v9999_v61 = vsel %vm3860_vm12, 1.0, %v12173_v35  ;;  %v10001_v37 = vsub.f32 1.0, %v1935_v38  ;;  %6590 = vlog2.f32 %v2671_v55 }
 0x331   :  { %12377 = vst [vmem:[#allocation8_spill] sm:$0xff] %v9979_v30  ;;  %v10005_v50 = vsel %vm4780_vm6, %v9974_v12, 0.0  ;;  %v10009_v46 = vsel %vm4780_vm6, %v9984_v22, 0.0  ;;  %v11938_v45 = vsub.f32 0.0, %v9829_v3  ;;  %v5609_v9 = vpack.c.bf16 %v9968_v26, %v9965_v56 }
 0x332   :  { %12378 = vst [vmem:[#allocation19_spill] sm:$0xff] %v9996_v63  ;;  %v6589_v51 = vpop.eup %6588  ;;  %v10014_v41 = vsub.f32 1.0, %v1936_v5  ;;  %v10018_v34 = vmax.f32 %v11937_v49, 0.0  ;;  %6592 = vlog2.f32 %v2680_v33  ;;  %v3539_v1 = vmax.f32 %v6587_v7, 0.0001  ;;  %v10231_v63 = vpop.permute.xlu1 %6302 }
 0x333   :  { %12379 = vst [vmem:[#allocation67_spill] sm:$0xff] %v10005_v50  ;;  %vm3663_vm13 = vcmp.eq.f32.partialorder %v1935_v38, 1.0  ;;  %vm3664_vm14 = vcmp.eq.f32.partialorder %v1936_v5, 1.0  ;;  %v2674_v24 = vmul.f32 -0.5, %v9936_v18  ;;  %vm3855_vm15 = vcmp.lt.f32.partialorder %v1935_v38, 1.0 }
 0x334   :  { %12380 = vst [vmem:[#allocation68_spill] sm:$0xff] %v10009_v46  ;;  %vm3856_vm0 = vcmp.lt.f32.partialorder %v1936_v5, 1.0  ;;  %v4111_v53 = vmul.f32 %v10001_v37, %v10001_v37  ;;  %v2117_v15 = vand.u32 2147483647, %v9871_v57  ;;  %v3540_v39 = vmax.f32 %v6589_v51, 0.0001 }
 0x335   :  { %5704 = vst [vmem:[#allocation2 + $0xb8] sm:$0xff] %v5609_v9   ;;  %v2063_v25 = vmax.f32 %v11938_v45, 0.0  ;;  %v2683_v0 = vmul.f32 -0.5, %v9948_v31  ;;  %v2118_v60 = vand.u32 2147483647, %v9874_v43  ;;  %v12381_v52 = vsub.f32 0.0, %v9739_v13 }
 0x336   :  { %v6591_v14 = vpop.eup %6590  ;;  %v10033_v36 = vsel %vm3663_vm13, 1.0, %v12173_v35  ;;  %v10036_v55 = vsel %vm3664_vm14, 1.0, %v12173_v35  ;;  %v4112_v38 = vmul.f32 %v10014_v41, %v10014_v41  ;;  %v3603_v6 = vmin.f32 %v3539_v1, 0.9999 }
 0x337   :  { %v3219_v62 = vsub.f32 %v12381_v52, %v9878_v19  ;;  %v10041_v54 = vsel %vm3855_vm15, 1.0, %v12173_v35  ;;  %v10044_v33 = vsel %vm3856_vm0, 1.0, %v12173_v35  ;;  %v2675_v5 = vadd.f32 1.0, %v2674_v24 }
 0x338   :  { %v6593_v7 = vpop.eup %6592  ;;  %v3220_v13 = vsub.f32 %v2004_v20, %v9884_v58  ;;  %v4175_v9 = vmul.f32 %v4111_v53, %v10001_v37  ;;  %v2677_v51 = vand.u32 2147483647, %v9936_v18  ;;  %v2181_v52 = vsub.f32 0.0, %v2117_v15 }
 0x339   :  { %v3604_v49 = vmin.f32 %v3540_v39, 0.9999  ;;  %v2673_v45 = vmul.f32 0.6931472, %v6591_v14  ;;  %v2684_v1 = vadd.f32 1.0, %v2683_v0  ;;  %v2182_v4 = vsub.f32 0.0, %v2118_v60 }
 0x33a   :  { %v3283_v21 = vmax.f32 %v3219_v62, -9.2103405  ;;  %v10053_v11 = vsel %vm4780_vm6, %v10033_v36, 0.0  ;;  %v2686_v24 = vand.u32 2147483647, %v9948_v31  ;;  %v12383_v28 = vsub.f32 0.0, %v9878_v19 }
 0x33b   :  { %12382 = vst [vmem:[#allocation18_spill] sm:$0xff] %v10053_v11  ;;  %v4307_v53 = vsub.f32 1.0, %v3603_v6  ;;  %v2676_v50 = vmul.f32 %v9936_v18, %v2675_v5  ;;  %v2682_v15 = vmul.f32 0.6931472, %v6593_v7  ;;  %v3284_v39 = vmax.f32 %v3220_v13, -9.2103405 }
 0x33c   :  { %v3091_v20 = vmax.f32 %v12383_v28, -9.2103405  ;;  %v4563_v14 = vmul.f32 %v3603_v6, %v3603_v6  ;;  %vm10060_vm1 = vcmp.lt.f32.partialorder %v2677_v51, 0.0004427343  ;;  %v2271_v60 = vmul.f32 1.442695, %v2181_v52 }
 0x33d   :  { %v4308_v62 = vsub.f32 1.0, %v3604_v49  ;;  %v2679_v11 = vsel %vm10060_vm1, %v2676_v50, %v2673_v45  ;;  %v2685_v46 = vmul.f32 %v9948_v31, %v2684_v1  ;;  %v2273_v32 = vmul.f32 1.442695, %v2182_v4  ;;  %v1925_v6 = vld [vmem:[%s11866_s3 + $0xd0] sm:$0xff]  ;;  %v1926_v5 = vld [vmem:[%s11866_s3 + $0xd8] sm:$0xff] }
 0x33e   :  { %v3347_v19 = vmin.f32 %v3283_v21, -0.000100005  ;;  %v4564_v28 = vmul.f32 %v3604_v49, %v3604_v49  ;;  %v4176_v29 = vmul.f32 %v4112_v38, %v10014_v41  ;;  %vm10068_vm2 = vcmp.lt.f32.partialorder %v2686_v24, 0.0004427343 }
 0x33f   :  { %v12388_v50 = vsub.f32 0.0, %v9884_v58  ;;  %v3155_v45 = vmin.f32 %v3091_v20, -0.000100005  ;;  %v4371_v21 = vmul.f32 %v4307_v53, %v4307_v53  ;;  %v2688_v49 = vsel %vm10068_vm2, %v2685_v46, %v2682_v15 }
 0x340   :  { %v3348_v4 = vmin.f32 %v3284_v39, -0.000100005  ;;  %v4627_v38 = vmul.f32 %v4563_v14, %v3347_v19  ;;  %v2959_v7 = vadd.f32 %v2679_v11, %v2063_v25  ;;  %6594 = vpow2.f32 %v2271_v60 }
 0x341   :  { %v3092_v31 = vmax.f32 %v12388_v50, -9.2103405  ;;  %v4372_v13 = vmul.f32 %v4308_v62, %v4308_v62  ;;  %v10082_v51 = vsub.f32 1.0, %v1925_v6  ;;  %v10084_v52 = vsub.f32 1.0, %v1926_v5 }
 0x342   :  { %6596 = vpow2.f32 %v2273_v32  ;;  %v4628_v1 = vmul.f32 %v4564_v28, %v3348_v4  ;;  %v10087_v24 = vmul.f32 %v4175_v9, %v10001_v37  ;;  %v10090_v58 = vmul.f32 %v4176_v29, %v10014_v41 }
 0x343   :  { %v2960_v20 = vadd.f32 %v2688_v49, %v10018_v34  ;;  %v3156_v46 = vmin.f32 %v3092_v31, -0.000100005  ;;  %v4435_v53 = vmul.f32 %v4371_v21, %v3155_v45  ;;  %v10095_v11 = vsel %vm4780_vm6, %v10036_v55, 0.0 }
 0x344   :  { %12389 = vst [vmem:[#allocation17_spill] sm:$0xff] %v10095_v11  ;;  %vm3653_vm3 = vcmp.eq.f32.partialorder %v1925_v6, 1.0  ;;  %v4691_v25 = vmul.f32 %v4627_v38, %v9946_v16  ;;  %v3023_v15 = vsub.f32 0.0, %v2959_v7  ;;  %v12390_v32 = vsub.f32 0.0, %v9871_v57 }
 0x345   :  { %v12391_v37 = vsub.f32 0.0, %v9874_v43  ;;  %v4436_v41 = vmul.f32 %v4372_v13, %v3156_v46  ;;  %v10108_v34 = vmul.f32 %v10082_v51, %v10082_v51  ;;  %v10112_v9 = vmul.f32 %v10084_v52, %v10084_v52 }
 0x346   :  { %v10100_v39 = vmax.f32 %v12390_v32, 0.0  ;;  %v6595_v14 = vpop.eup %6594  ;;  %v4692_v0 = vmul.f32 %v4628_v1, %v9990_v44  ;;  %v3024_v60 = vsub.f32 0.0, %v2960_v20  ;;  %vm3654_vm4 = vcmp.eq.f32.partialorder %v1926_v5, 1.0 }
 0x347   :  { %v10104_v29 = vmax.f32 %v12391_v37, 0.0  ;;  %v10117_v62 = vsel %vm3653_vm3, 1.0, %v12173_v35  ;;  %v4499_v28 = vmul.f32 %v9974_v12, %v4435_v53  ;;  %vm3845_vm5 = vcmp.lt.f32.partialorder %v1925_v6, 1.0 }
 0x348   :  { %v6597_v19 = vpop.eup %6596  ;;  %vm3846_vm7 = vcmp.lt.f32.partialorder %v1926_v5, 1.0  ;;  %v2581_v18 = vadd.f32 1.0, %v6595_v14  ;;  %v4755_v50 = vmul.f32 %v9987_v27, %v4691_v25  ;;  %v3443_v31 = vmul.f32 1.442695, %v3023_v15  ;;  %v12395_v25 = vld [vmem:[#allocation9_spill] sm:$0xff] }
 0x349   :  { %v2584_v45 = vmul.f32 -0.5, %v6595_v14  ;;  %v2590_v21 = vadd.f32 1.0, %v6597_v19  ;;  %v4500_v49 = vmul.f32 %v9984_v22, %v4436_v41  ;;  %v10123_v44 = vsel %vm3654_vm4, 1.0, %v12173_v35 }
 0x34a   :  { %6598 = vlog2.f32 %v2581_v18  ;;  %v2593_v4 = vmul.f32 -0.5, %v6597_v19  ;;  %v4756_v38 = vmul.f32 %v9999_v61, %v4692_v0  ;;  %v3445_v13 = vmul.f32 1.442695, %v3024_v60  ;;  %v12397_v0 = vld [vmem:[#allocation15_spill] sm:$0xff] }
 0x34b   :  { %v10127_v12 = vsel %vm3845_vm5, 1.0, %v12173_v35  ;;  %6600 = vlog2.f32 %v2590_v21  ;;  %v10130_v6 = vsel %vm4780_vm6, %v4499_v28, 0.0  ;;  %v12393_v27 = vsub.f32 0.0, %v9829_v3 }
 0x34c   :  { %12392 = vst [vmem:[#allocation74_spill] sm:$0xff] %v10130_v6  ;;  %v10136_v22 = vsel %vm3846_vm7, 1.0, %v12173_v35  ;;  %v2137_v46 = vand.u32 2147483647, %v9965_v56  ;;  %v10140_v53 = vsel %vm4780_vm6, %v4755_v50, 0.0  ;;  %6602 = vpow2.f32 %v3443_v31  ;;  %v6328_v50 = vpop.permute.xlu0 %6327 }
 0x34d   :  { %v3215_v1 = vsub.f32 %v12393_v27, %v2959_v7  ;;  %12394 = vst [vmem:[#allocation75_spill] sm:$0xff] %v10140_v53  ;;  %v2585_v61 = vadd.f32 1.0, %v2584_v45  ;;  %v4829_v32 = vadd.f32 %v12395_v25, %v9895_v47  ;;  %v10145_v37 = vsel %vm4780_vm6, %v4500_v49, 0.0 }
 0x34e   :  { %12396 = vst [vmem:[#allocation16_spill] sm:$0xff] %v10145_v37  ;;  %v10147_v41 = vmax.f32 %v3023_v15, -9.2103405  ;;  %v2587_v3 = vand.u32 2147483647, %v6595_v14  ;;  %v2594_v7 = vadd.f32 1.0, %v2593_v4  ;;  %6604 = vpow2.f32 %v3445_v13 }
 0x34f   :  { %v2596_v5 = vand.u32 2147483647, %v6597_v19  ;;  %v10150_v28 = vadd.f32 %v12397_v0, %v4829_v32  ;;  %v2138_v18 = vand.u32 2147483647, %v9968_v26  ;;  %v10154_v45 = vsel %vm4780_vm6, %v4756_v38, 0.0  ;;  %v12400_v4 = vld [vmem:[#allocation43_spill] sm:$0xff] }
 0x350   :  { %v6599_v31 = vpop.eup %6598  ;;  %12398 = vst [vmem:[#allocation25_spill] sm:$0xff] %v10154_v45  ;;  %v12399_v47 = vsub.f32 0.0, %v9826_v10  ;;  %v3279_v49 = vmax.f32 %v3215_v1, -9.2103405  ;;  %v2201_v15 = vsub.f32 0.0, %v2137_v46  ;;  %v4969_v13 = vadd.f32 %v12400_v4, %v9943_v17 }
 0x351   :  { %v6601_v27 = vpop.eup %6600  ;;  %v10158_v25 = vmax.f32 %v3024_v60, -9.2103405  ;;  %v2583_v32 = vmul.f32 0.6931472, %v6599_v31  ;;  %v2586_v0 = vmul.f32 %v6595_v14, %v2585_v61  ;;  %vm2588_vm8 = vcmp.lt.f32.partialorder %v2587_v3, 0.0004427343 }
 0x352   :  { %v3216_v21 = vsub.f32 %v12399_v47, %v2960_v20  ;;  %v2592_v16 = vmul.f32 0.6931472, %v6601_v27  ;;  %v2595_v37 = vmul.f32 %v6597_v19, %v2594_v7  ;;  %v6329_v53 = vunpack.i.l.bf16 %v6328_v50  ;;  %v6603_v6 = vpop.eup %6602  ;;  %v12401_v60 = vld [vmem:[#allocation44_spill] sm:$0xff] }
 0x353   :  { %v2589_v38 = vsel %vm2588_vm8, %v2586_v0, %v2583_v32  ;;  %vm2597_vm9 = vcmp.lt.f32.partialorder %v2596_v5, 0.0004427343  ;;  %v2202_v45 = vsub.f32 0.0, %v2138_v18  ;;  %v6330_v10 = vunpack.i.h.bf16 %v6328_v50  ;;  %v12402_v5 = vld [vmem:[#allocation41_spill] sm:$0xff]  ;;  %v12404_v32 = vld [vmem:[#allocation27_spill] sm:$0xff] }
 0x354   :  { %v2598_v20 = vsel %vm2597_vm9, %v2595_v37, %v2592_v16  ;;  %v2949_v1 = vadd.f32 %v2589_v38, %v10100_v39  ;;  %v5109_v46 = vadd.f32 %v12401_v60, %v9898_v2  ;;  %v2311_v47 = vmul.f32 1.442695, %v2201_v15  ;;  %v6605_v11 = vpop.eup %6604  ;;  %v12403_v16 = vld [vmem:[#allocation65_spill] sm:$0xff] }
 0x355   :  { %v3280_v14 = vmax.f32 %v3216_v21, -9.2103405  ;;  %v4165_v19 = vmul.f32 %v10108_v34, %v10082_v51  ;;  %v2950_v61 = vadd.f32 %v2598_v20, %v10104_v29  ;;  %v3535_v3 = vmax.f32 %v6603_v6, 0.0001  ;;  %v12406_v20 = vld [vmem:[#allocation38_spill] sm:$0xff] }
 0x356   :  { %v3013_v7 = vsub.f32 0.0, %v2949_v1  ;;  %v10170_v18 = vadd.f32 %v12402_v5, %v5109_v46  ;;  %v1685_v39 = vmul.f32 %v6329_v53, %v7928_v48  ;;  %v4971_v37 = vadd.f32 %v12403_v16, %v4969_v13 }
 0x357   :  { %v4972_v2 = vsel %vm4780_vm6, %v10117_v62, 0.0  ;;  %v3014_v50 = vsub.f32 0.0, %v2950_v61  ;;  %v1686_v31 = vmul.f32 %v6330_v10, %v7928_v48  ;;  %v3536_v21 = vmax.f32 %v6605_v11, 0.0001 }
 0x358   :  { %v3423_v15 = vmul.f32 1.442695, %v3013_v7  ;;  %6606 = vpow2.f32 %v2311_v47  ;;  %v2313_v34 = vmul.f32 1.442695, %v2202_v45  ;;  %v3343_v29 = vmin.f32 %v3279_v49, -0.000100005 }
 0x359   :  { %v4166_v6 = vmul.f32 %v10112_v9, %v10084_v52  ;;  %v3425_v27 = vmul.f32 1.442695, %v3014_v50  ;;  %v11941_v4 = vsub.f32 0.0, %v9965_v56  ;;  %v3599_v13 = vmin.f32 %v3535_v3, 0.9999 }
 0x35a   :  { %6608 = vpow2.f32 %v3423_v15  ;;  %v10182_v0 = vadd.f32 %v1685_v39, %v12404_v32  ;;  %v10185_v38 = vmul.f32 %v4165_v19, %v10082_v51  ;;  %v4973_v11 = vadd.f32 %v4972_v2, %v4971_v37  ;;  %v10200_v51 = vld [vmem:[%s11866_s3 + $0x170] sm:$0xff] }
 0x35b   :  { %v12405_v45 = vsub.f32 0.0, %v9871_v57  ;;  %6610 = vpow2.f32 %v3425_v27  ;;  %v3600_v10 = vmin.f32 %v3536_v21, 0.9999  ;;  %v4974_v9 = vsel %vm4780_vm6, %v10123_v44, 0.0  ;;  %v10205_v57 = vld [vmem:[%s11866_s3 + $0x178] sm:$0xff] }
 0x35c   :  { %6612 = vpow2.f32 %v2313_v34  ;;  %v10192_v60 = vadd.f32 %v1686_v31, %v12406_v20  ;;  %v10194_v46 = vmin.f32 %v3280_v14, -0.000100005  ;;  %v4230_v47 = vmul.f32 %v4166_v6, %v10084_v52 }
 0x35d   :  { %v3205_v49 = vsub.f32 %v12405_v45, %v2949_v1  ;;  %v10209_v1 = vmax.f32 %v11941_v4, 0.0  ;;  %v12407_v19 = vsub.f32 0.0, %v9968_v26  ;;  %v4303_v52 = vsub.f32 1.0, %v3599_v13 }
 0x35e   :  { %v6607_v3 = vpop.eup %6606  ;;  %v3077_v5 = vmax.f32 %v3013_v7, -9.2103405  ;;  %v12408_v39 = vsub.f32 0.0, %v9874_v43  ;;  %v5599_v37 = vpack.c.bf16 %v10192_v60, %v10182_v0  ;;  %v4559_v2 = vmul.f32 %v3599_v13, %v3599_v13 }
 0x35f   :  { %v10213_v14 = vmax.f32 %v12407_v19, 0.0  ;;  %v10219_v31 = vadd.f32 %v4974_v9, %v4973_v11  ;;  %v3269_v21 = vmax.f32 %v3205_v49, -9.2103405  ;;  %v2761_v15 = vadd.f32 1.0, %v6607_v3 }
 0x360   :  { %v3206_v16 = vsub.f32 %v12408_v39, %v2950_v61  ;;  %v6609_v34 = vpop.eup %6608  ;;  %v4304_v6 = vsub.f32 1.0, %v3600_v10  ;;  %v10222_v27 = vsub.f32 1.0, %v10200_v51  ;;  %v10225_v32 = vsub.f32 1.0, %v10205_v57  ;;  %5702 = vst [vmem:[#allocation2 + $0xa8] sm:$0xff] %v5599_v37  }
 0x361   :  { %v2764_v7 = vmul.f32 -0.5, %v6607_v3  ;;  %v6611_v43 = vpop.eup %6610  ;;  %v10227_v61 = vmul.f32 %v3600_v10, %v3600_v10  ;;  %v3078_v45 = vmax.f32 %v3014_v50, -9.2103405  ;;  %v3525_v20 = vmax.f32 %v6609_v34, 0.0001 }
 0x362   :  { %6614 = vlog2.f32 %v2761_v15  ;;  %v6613_v13 = vpop.eup %6612  ;;  %v10229_v11 = vmul.f32 %v4303_v52, %v4303_v52  ;;  %v3141_v49 = vmin.f32 %v3077_v5, -0.000100005  ;;  %v3270_v9 = vmax.f32 %v3206_v16, -9.2103405 }
 0x363   :  { %v3526_v19 = vmax.f32 %v6611_v43, 0.0001  ;;  %v4623_v39 = vmul.f32 %v4559_v2, %v3343_v29  ;;  %v3333_v4 = vmin.f32 %v3269_v21, -0.000100005  ;;  %v3589_v53 = vmin.f32 %v3525_v20, 0.9999 }
 0x364   :  { %v2770_v17 = vadd.f32 1.0, %v6613_v13  ;;  %v4368_v23 = vmul.f32 %v4304_v6, %v4304_v6  ;;  %v2765_v8 = vadd.f32 1.0, %v2764_v7  ;;  %v2767_v37 = vand.u32 2147483647, %v6607_v3 }
 0x365   :  { %v3590_v40 = vmin.f32 %v3526_v19, 0.9999  ;;  %v4293_v10 = vsub.f32 1.0, %v3589_v53  ;;  %v4549_v50 = vmul.f32 %v3589_v53, %v3589_v53  ;;  %v2773_v15 = vmul.f32 -0.5, %v6613_v13 }
 0x366   :  { %6616 = vlog2.f32 %v2770_v17  ;;  %v3142_v34 = vmin.f32 %v3078_v45, -0.000100005  ;;  %v3334_v52 = vmin.f32 %v3270_v9, -0.000100005  ;;  %v2133_v2 = vand.u32 2147483647, %v10182_v0 }
 0x367   :  { %v4294_v59 = vsub.f32 1.0, %v3590_v40  ;;  %v4550_v5 = vmul.f32 %v3590_v40, %v3590_v40  ;;  %v4357_v43 = vmul.f32 %v4293_v10, %v4293_v10  ;;  %v4613_v29 = vmul.f32 %v4549_v50, %v3333_v4 }
 0x368   :  { %v6615_v16 = vpop.eup %6614  ;;  %v6305_v21 = vunpack.i.h.bf16 %v10231_v63  ;;  %v2766_v19 = vmul.f32 %v6607_v3, %v2765_v8  ;;  %vm2768_vm10 = vcmp.lt.f32.partialorder %v2767_v37, 0.0004427343  ;;  %v2774_v17 = vadd.f32 1.0, %v2773_v15 }
 0x369   :  { %v4358_v6 = vmul.f32 %v4294_v59, %v4294_v59  ;;  %v4614_v7 = vmul.f32 %v4550_v5, %v3334_v52  ;;  %v2763_v20 = vmul.f32 0.6931472, %v6615_v16  ;;  %v4421_v42 = vmul.f32 %v4357_v43, %v3141_v49  ;;  %v12410_v16 = vld [vmem:[#allocation63_spill] sm:$0xff] }
 0x36a   :  { %v4677_v53 = vmul.f32 %v4613_v29, %v10185_v38  ;;  %v2776_v40 = vand.u32 2147483647, %v6613_v13  ;;  %v6304_v59 = vunpack.i.l.bf16 %v10231_v63  ;;  %v2134_v49 = vand.u32 2147483647, %v10192_v60 }
 0x36b   :  { %v4422_v45 = vmul.f32 %v4358_v6, %v3142_v34  ;;  %v4678_v9 = vmul.f32 %v4614_v7, %v4230_v47  ;;  %v2769_v30 = vsel %vm2768_vm10, %v2766_v19, %v2763_v20  ;;  %v4485_v4 = vmul.f32 %v10117_v62, %v4421_v42  ;;  %v12413_v6 = vld [vmem:[#allocation22_spill] sm:$0xff] }
 0x36c   :  { %v6617_v26 = vpop.eup %6616  ;;  %v4741_v10 = vmul.f32 %v10127_v12, %v4677_v53  ;;  %v10239_v50 = vadd.f32 %v2769_v30, %v10209_v1  ;;  %v2775_v15 = vmul.f32 %v6613_v13, %v2774_v17  ;;  %vm2777_vm11 = vcmp.lt.f32.partialorder %v2776_v40, 0.0004427343  ;;  %v12415_v53 = vld [vmem:[#allocation70_spill] sm:$0xff] }
 0x36d   :  { %v4486_v8 = vmul.f32 %v10123_v44, %v4422_v45  ;;  %v4742_v38 = vmul.f32 %v10136_v22, %v4678_v9  ;;  %v2772_v3 = vmul.f32 0.6931472, %v6617_v26  ;;  %v4832_v47 = vsel %vm4780_vm6, %v4485_v4, 0.0  ;;  %v12416_v9 = vld [vmem:[#allocation31_spill] sm:$0xff] }
 0x36e   :  { %v5112_v37 = vsel %vm4780_vm6, %v4741_v10, 0.0  ;;  %v3033_v42 = vsub.f32 0.0, %v10239_v50  ;;  %v4833_v62 = vadd.f32 %v4832_v47, %v10150_v28  ;;  %v2197_v63 = vsub.f32 0.0, %v2133_v2 }
 0x36f   :  { %v5113_v30 = vadd.f32 %v5112_v37, %v10170_v18  ;;  %v4834_v44 = vsel %vm4780_vm6, %v4486_v8, 0.0  ;;  %v5114_v12 = vsel %vm4780_vm6, %v4742_v38, 0.0  ;;  %v2778_v26 = vsel %vm2777_vm11, %v2775_v15, %v2772_v3  ;;  %v12418_v8 = vld [vmem:[#allocation64_spill] sm:$0xff] }
 0x370   :  { %v3463_v22 = vmul.f32 1.442695, %v3033_v42  ;;  %v4624_v1 = vmul.f32 %v10227_v61, %v10194_v46  ;;  %v4835_v13 = vadd.f32 %v4834_v44, %v4833_v62  ;;  %v10257_v52 = vadd.f32 %v2778_v26, %v10213_v14  ;;  %v12412_v46 = vld [vmem:[#allocation66_spill] sm:$0xff] }
 0x371   :  { %v5115_v34 = vadd.f32 %v5114_v12, %v5113_v30  ;;  %v12409_v28 = vmin.f32 %v10147_v41, -0.000100005  ;;  %v4687_v5 = vmul.f32 %v4623_v39, %v10087_v24  ;;  %v4977_v43 = vadd.f32 %v12410_v16, %v10219_v31  ;;  %v6353_v24 = vpop.permute.xlu2 %6352  ;;  %v12414_v31 = vld [vmem:[#allocation40_spill] sm:$0xff]  ;;  %v10318_v30 = vld [vmem:[%s11866_s3 + $0x158] sm:$0xff] }
 0x372   :  { %vm3673_vm12 = vcmp.eq.f32.partialorder %v10200_v51, 1.0  ;;  %v12411_v29 = vmin.f32 %v10158_v25, -0.000100005  ;;  %v4837_v61 = vadd.f32 %v12412_v46, %v4835_v13  ;;  %6618 = vpow2.f32 %v3463_v22  ;;  %v12422_v46 = vld [vmem:[#allocation28_spill] sm:$0xff] }
 0x373   :  { %v4431_v18 = vmul.f32 %v10229_v11, %v12409_v28  ;;  %v5117_v7 = vadd.f32 %v12413_v6, %v5115_v34  ;;  %v2198_v14 = vsub.f32 0.0, %v2134_v49  ;;  %v2303_v20 = vmul.f32 1.442695, %v2197_v63 }
 0x374   :  { %v4432_v2 = vmul.f32 %v4368_v23, %v12411_v29  ;;  %v1676_v41 = vmul.f32 %v6305_v21, %v7928_v48  ;;  %v1675_v11 = vmul.f32 %v6304_v59, %v7928_v48  ;;  %v4688_v39 = vmul.f32 %v4624_v1, %v10090_v58  ;;  %v12417_v58 = vld [vmem:[#allocation52_spill] sm:$0xff]  ;;  %v12421_v29 = vld [vmem:[#allocation53_spill] sm:$0xff] }
 0x375   :  { %v10274_v19 = vadd.f32 %v12414_v31, %v4837_v61  ;;  %v10277_v25 = vadd.f32 %v12415_v53, %v5117_v7  ;;  %v3034_v23 = vsub.f32 0.0, %v10257_v52  ;;  %v4495_v17 = vmul.f32 %v10033_v36, %v4431_v18 }
 0x376   :  { %6620 = vpow2.f32 %v2303_v20  ;;  %v2305_v45 = vmul.f32 1.442695, %v2198_v14  ;;  %v10282_v40 = vadd.f32 %v1675_v11, %v12416_v9  ;;  %v4751_v21 = vmul.f32 %v10041_v54, %v4687_v5 }
 0x377   :  { %vm3674_vm13 = vcmp.eq.f32.partialorder %v10205_v57, 1.0  ;;  %v10287_v4 = vadd.f32 %v1676_v41, %v12417_v58  ;;  %v6355_v10 = vunpack.i.h.bf16 %v6353_v24  ;;  %v4496_v59 = vmul.f32 %v10036_v55, %v4432_v2 }
 0x378   :  { %v10291_v38 = vadd.f32 %v12418_v8, %v4977_v43  ;;  %v10296_v36 = vsel %vm3673_vm12, 1.0, %v12173_v35  ;;  %v6354_v3 = vunpack.i.l.bf16 %v6353_v24  ;;  %v6619_v49 = vpop.eup %6618  ;;  %v4752_v54 = vmul.f32 %v10044_v33, %v4688_v39  ;;  %v10313_v33 = vld [vmem:[%s11866_s3 + $0x150] sm:$0xff] }
 0x379   :  { %v3465_v47 = vmul.f32 1.442695, %v3034_v23  ;;  %6622 = vpow2.f32 %v2305_v45  ;;  %v5574_v37 = vpack.c.bf16 %v10287_v4, %v10282_v40  ;;  %v10304_v55 = vsel %vm3674_vm13, 1.0, %v12173_v35 }
 0x37a   :  { %v4121_v15 = vmul.f32 %v10222_v27, %v10222_v27  ;;  %v4122_v62 = vmul.f32 %v10225_v32, %v10225_v32  ;;  %v1696_v63 = vmul.f32 %v6355_v10, %v7928_v48  ;;  %v10322_v44 = vsel %vm4780_vm6, %v4495_v17, 0.0 }
 0x37b   :  { %v10325_v12 = vsel %vm4780_vm6, %v4751_v21, 0.0  ;;  %vm3865_vm14 = vcmp.lt.f32.partialorder %v10200_v51, 1.0  ;;  %5697 = vst [vmem:[#allocation2 + $0x80] sm:$0xff] %v5574_v37   ;;  %v1695_v26 = vmul.f32 %v6354_v3, %v7928_v48  ;;  %v10332_v1 = vsel %vm4780_vm6, %v4496_v59, 0.0 }
 0x37c   :  { %12419 = vst [vmem:[#allocation26_spill] sm:$0xff] %v10325_v12  ;;  %v10329_v22 = vpop.eup %6620  ;;  %vm3866_vm15 = vcmp.lt.f32.partialorder %v10205_v57, 1.0  ;;  %v3545_v13 = vmax.f32 %v6619_v49, 0.0001  ;;  %v2123_v34 = vand.u32 2147483647, %v10282_v40  ;;  %6624 = vpow2.f32 %v3465_v47 }
 0x37d   :  { %12420 = vst [vmem:[#allocation23_spill] sm:$0xff] %v10332_v1  ;;  %v4053_v28 = vsub.f32 1.0, %v10313_v33  ;;  %v4054_v18 = vsub.f32 1.0, %v10318_v30  ;;  %v2725_v5 = vadd.f32 1.0, %v10329_v22  ;;  %v4185_v16 = vmul.f32 %v4121_v15, %v10222_v27 }
 0x37e   :  { %v4186_v43 = vmul.f32 %v4122_v62, %v10225_v32  ;;  %v10342_v2 = vadd.f32 %v1695_v26, %v12421_v29  ;;  %v10345_v61 = vadd.f32 %v1696_v63, %v12422_v46  ;;  %v10350_v7 = vsel %vm4780_vm6, %v4752_v54, 0.0 }
 0x37f   :  { %v10347_v6 = vpop.eup %6622  ;;  %12423 = vst [vmem:[#allocation49_spill] sm:$0xff] %v10350_v7  ;;  %v10355_v14 = vsel %vm3865_vm14, 1.0, %v12173_v35  ;;  %v12424_v20 = vsub.f32 0.0, %v9965_v56  ;;  %v2005_v11 = vsub.f32 0.0, %v10182_v0  ;;  %v10364_v24 = vsel %vm3866_vm15, 1.0, %v12173_v35  ;;  %v6318_v7 = vpop.permute.xlu1 %6317 }
 0x380   :  { %v3609_v39 = vmin.f32 %v3545_v13, 0.9999  ;;  %v2006_v31 = vsub.f32 0.0, %v10192_v60  ;;  %v2187_v53 = vsub.f32 0.0, %v2123_v34  ;;  %v10369_v51 = vsel %vm4780_vm6, %v10296_v36, 0.0  ;;  %v12427_v13 = vld [vmem:[#allocation12_spill] sm:$0xff] }
 0x381   :  { %v3225_v41 = vsub.f32 %v12424_v20, %v10239_v50  ;;  %12425 = vst [vmem:[#allocation61_spill] sm:$0xff] %v10369_v51  ;;  %v4117_v17 = vmul.f32 %v4053_v28, %v4053_v28  ;;  %v4118_v45 = vmul.f32 %v4054_v18, %v4054_v18  ;;  %6626 = vlog2.f32 %v2725_v5 }
 0x382   :  { %v4249_v56 = vmul.f32 %v4185_v16, %v10222_v27  ;;  %v10373_v9 = vmul.f32 %v4186_v43, %v10225_v32  ;;  %v2734_v57 = vadd.f32 1.0, %v10347_v6  ;;  %v5624_v21 = vpack.c.bf16 %v10345_v61, %v10342_v2  ;;  %v6625_v58 = vpop.eup %6624 }
 0x383   :  { %v10380_v10 = vsel %vm4780_vm6, %v10304_v55, 0.0  ;;  %v3289_v59 = vmax.f32 %v3225_v41, -9.2103405  ;;  %v2069_v8 = vmax.f32 %v2005_v11, 0.0  ;;  %v2124_v3 = vand.u32 2147483647, %v10287_v4 }
 0x384   :  { %12426 = vst [vmem:[#allocation62_spill] sm:$0xff] %v10380_v10  ;;  %v4313_v27 = vsub.f32 1.0, %v3609_v39  ;;  %v10387_v32 = vmax.f32 %v2006_v31, 0.0  ;;  %v2728_v49 = vmul.f32 -0.5, %v10329_v22  ;;  %v2283_v54 = vmul.f32 1.442695, %v2187_v53 }
 0x385   :  { %5707 = vst [vmem:[#allocation2 + $0xd0] sm:$0xff] %v5624_v21   ;;  %v4569_v47 = vmul.f32 %v3609_v39, %v3609_v39  ;;  %vm3669_vm0 = vcmp.eq.f32.partialorder %v10313_v33, 1.0  ;;  %v4181_v37 = vmul.f32 %v4117_v17, %v4053_v28  ;;  %v4182_v15 = vmul.f32 %v4118_v45, %v4054_v18 }
 0x386   :  { %v3097_v62 = vmax.f32 %v3033_v42, -9.2103405  ;;  %v3546_v63 = vmax.f32 %v6625_v58, 0.0001  ;;  %vm3670_vm1 = vcmp.eq.f32.partialorder %v10318_v30, 1.0  ;;  %6628 = vlog2.f32 %v2734_v57 }
 0x387   :  { %v6627_v26 = vpop.eup %6626  ;;  %v12428_v34 = vsub.f32 0.0, %v12427_v13  ;;  %v3353_v16 = vmin.f32 %v3289_v59, -0.000100005  ;;  %vm3861_vm2 = vcmp.lt.f32.partialorder %v10313_v33, 1.0  ;;  %vm3862_vm3 = vcmp.lt.f32.partialorder %v10318_v30, 1.0 }
 0x388   :  { %v4377_v43 = vmul.f32 %v4313_v27, %v4313_v27  ;;  %v2729_v29 = vadd.f32 1.0, %v2728_v49  ;;  %v2188_v46 = vsub.f32 0.0, %v2124_v3  ;;  %6630 = vpow2.f32 %v2283_v54 }
 0x389   :  { %v3226_v5 = vsub.f32 %v12428_v34, %v10257_v52  ;;  %v4633_v50 = vmul.f32 %v4569_v47, %v3353_v16  ;;  %v10399_v42 = vmul.f32 %v4181_v37, %v4053_v28  ;;  %v2731_v20 = vand.u32 2147483647, %v10329_v22 }
 0x38a   :  { %v2737_v41 = vmul.f32 -0.5, %v10347_v6  ;;  %v3161_v39 = vmin.f32 %v3097_v62, -0.000100005  ;;  %v3610_v53 = vmin.f32 %v3546_v63, 0.9999  ;;  %v10403_v17 = vmul.f32 %v4182_v15, %v4054_v18 }
 0x38b   :  { %v2727_v45 = vmul.f32 0.6931472, %v6627_v26  ;;  %v10408_v57 = vsel %vm3669_vm0, 1.0, %v12173_v35  ;;  %v10413_v21 = vsel %vm3670_vm1, 1.0, %v12173_v35  ;;  %v10418_v28 = vsel %vm3861_vm2, 1.0, %v12173_v35 }
 0x38c   :  { %v10423_v18 = vsel %vm3862_vm3, 1.0, %v12173_v35  ;;  %v6629_v58 = vpop.eup %6628  ;;  %v3290_v59 = vmax.f32 %v3226_v5, -9.2103405  ;;  %v4441_v3 = vmul.f32 %v4377_v43, %v3161_v39  ;;  %v2730_v27 = vmul.f32 %v10329_v22, %v2729_v29  ;;  %v1931_v5 = vld [vmem:[%s11866_s3 + $0x100] sm:$0xff] }
 0x38d   :  { %v2285_v49 = vmul.f32 1.442695, %v2188_v46  ;;  %v3098_v54 = vmax.f32 %v3034_v23, -9.2103405  ;;  %v4697_v47 = vmul.f32 %v4633_v50, %v4249_v56  ;;  %vm10428_vm4 = vcmp.lt.f32.partialorder %v2731_v20, 0.0004427343 }
 0x38e   :  { %v2738_v33 = vadd.f32 1.0, %v2737_v41  ;;  %v10432_v15 = vpop.eup %6630  ;;  %v4314_v30 = vsub.f32 1.0, %v3610_v53  ;;  %v4570_v62 = vmul.f32 %v3610_v53, %v3610_v53  ;;  %v2733_v63 = vsel %vm10428_vm4, %v2730_v27, %v2727_v45  ;;  %v1932_v50 = vld [vmem:[%s11866_s3 + $0x108] sm:$0xff] }
 0x38f   :  { %v2740_v26 = vand.u32 2147483647, %v10347_v6  ;;  %v10439_v22 = vsel %vm4780_vm6, %v10408_v57, 0.0  ;;  %v10443_v52 = vsel %vm4780_vm6, %v10413_v21, 0.0  ;;  %v2736_v23 = vmul.f32 0.6931472, %v6629_v58 }
 0x390   :  { %12431 = vst [vmem:[#allocation14_spill] sm:$0xff] %v10439_v22  ;;  %v11944_v56 = vsub.f32 0.0, %v10282_v40  ;;  %v3354_v13 = vmin.f32 %v3290_v59, -0.000100005  ;;  %v4505_v34 = vmul.f32 %v10296_v36, %v4441_v3  ;;  %v11943_v16 = vsub.f32 0.0, %v10287_v4 }
 0x391   :  { %12432 = vst [vmem:[#allocation24_spill] sm:$0xff] %v10443_v52  ;;  %6632 = vpow2.f32 %v2285_v49  ;;  %v4761_v43 = vmul.f32 %v10355_v14, %v4697_v47  ;;  %v2739_v29 = vmul.f32 %v10347_v6, %v2738_v33  ;;  %v2965_v46 = vadd.f32 %v2733_v63, %v2069_v8 }
 0x392   :  { %v2635_v20 = vadd.f32 1.0, %v10432_v15  ;;  %v3162_v41 = vmin.f32 %v3098_v54, -0.000100005  ;;  %v4378_v36 = vmul.f32 %v4314_v30, %v4314_v30  ;;  %v4634_v39 = vmul.f32 %v4570_v62, %v3354_v13  ;;  %v12437_v13 = vld [vmem:[#allocation69_spill] sm:$0xff] }
 0x393   :  { %vm10457_vm5 = vcmp.lt.f32.partialorder %v2740_v26, 0.0004427343  ;;  %v4043_v14 = vsub.f32 1.0, %v1931_v5  ;;  %v2059_v6 = vmax.f32 %v11944_v56, 0.0  ;;  %v2638_v8 = vmul.f32 -0.5, %v10432_v15 }
 0x394   :  { %v2742_v45 = vsel %vm10457_vm5, %v2739_v29, %v2736_v23  ;;  %vm3659_vm7 = vcmp.eq.f32.partialorder %v1931_v5, 1.0  ;;  %v4044_v58 = vsub.f32 1.0, %v1932_v50  ;;  %v10468_v59 = vmax.f32 %v11943_v16, 0.0 }
 0x395   :  { %6634 = vlog2.f32 %v2635_v20  ;;  %v10471_v3 = vsel %vm4780_vm6, %v4505_v34, 0.0  ;;  %v10474_v27 = vsel %vm4780_vm6, %v4761_v43, 0.0  ;;  %v3029_v49 = vsub.f32 0.0, %v2965_v46 }
 0x396   :  { %12435 = vst [vmem:[#allocation42_spill] sm:$0xff] %v10471_v3  ;;  %vm3660_vm8 = vcmp.eq.f32.partialorder %v1932_v50, 1.0  ;;  %v4442_v47 = vmul.f32 %v4378_v36, %v3162_v41  ;;  %v4698_v37 = vmul.f32 %v4634_v39, %v10373_v9  ;;  %v2966_v33 = vadd.f32 %v2742_v45, %v10387_v32 }
 0x397   :  { %12436 = vst [vmem:[#allocation45_spill] sm:$0xff] %v10474_v27  ;;  %v6633_v54 = vpop.eup %6632  ;;  %vm3851_vm9 = vcmp.lt.f32.partialorder %v1931_v5, 1.0  ;;  %v10479_v30 = vsel %vm3659_vm7, 1.0, %v12173_v35  ;;  %v4107_v62 = vmul.f32 %v4043_v14, %v4043_v14  ;;  %v2639_v63 = vadd.f32 1.0, %v2638_v8 }
 0x398   :  { %v2644_v26 = vadd.f32 1.0, %v6633_v54  ;;  %v10482_v23 = vsel %vm3660_vm8, 1.0, %v12173_v35  ;;  %vm3852_vm10 = vcmp.lt.f32.partialorder %v1932_v50, 1.0  ;;  %v4981_v34 = vadd.f32 %v12437_v13, %v10291_v38  ;;  %v12438_v38 = vld [vmem:[#allocation8_spill] sm:$0xff] }
 0x399   :  { %v2641_v43 = vand.u32 2147483647, %v10432_v15  ;;  %v3455_v29 = vmul.f32 1.442695, %v3029_v49  ;;  %v10488_v9 = vsel %vm3851_vm9, 1.0, %v12173_v35  ;;  %v2647_v32 = vmul.f32 -0.5, %v6633_v54 }
 0x39a   :  { %6636 = vlog2.f32 %v2644_v26  ;;  %v4506_v20 = vmul.f32 %v10304_v55, %v4442_v47  ;;  %v4762_v41 = vmul.f32 %v10364_v24, %v4698_v37  ;;  %v3030_v36 = vsub.f32 0.0, %v2966_v33  ;;  %v12439_v26 = vld [vmem:[#allocation20_spill] sm:$0xff] }
 0x39b   :  { %v6635_v5 = vpop.eup %6634  ;;  %v4108_v39 = vmul.f32 %v4044_v58, %v4044_v58  ;;  %v4171_v53 = vmul.f32 %v4107_v62, %v4043_v14  ;;  %v2640_v8 = vmul.f32 %v10432_v15, %v2639_v63  ;;  %v4841_v13 = vadd.f32 %v12438_v38, %v10274_v19  ;;  %v12440_v37 = vld [vmem:[#allocation48_spill] sm:$0xff] }
 0x39c   :  { %v2637_v45 = vmul.f32 0.6931472, %v6635_v5  ;;  %v10497_v16 = vsel %vm3852_vm10, 1.0, %v12173_v35  ;;  %v4983_v56 = vadd.f32 %v12439_v26, %v4981_v34  ;;  %v4984_v55 = vsel %vm4780_vm6, %v10479_v30, 0.0 }
 0x39d   :  { %vm2642_vm11 = vcmp.lt.f32.partialorder %v2641_v43, 0.0004427343  ;;  %6638 = vpow2.f32 %v3455_v29  ;;  %v2648_v47 = vadd.f32 1.0, %v2647_v32  ;;  %v10503_v62 = vadd.f32 %v12440_v37, %v4841_v13 }
 0x39e   :  { %v2643_v24 = vsel %vm2642_vm11, %v2640_v8, %v2637_v45  ;;  %v3221_v15 = vsub.f32 %v2005_v11, %v2965_v46  ;;  %v3457_v19 = vmul.f32 1.442695, %v3030_v36  ;;  %v4172_v63 = vmul.f32 %v4108_v39, %v4044_v58  ;;  %v6343_v46 = vpop.permute.xlu0 %6342 }
 0x39f   :  { %v2650_v50 = vand.u32 2147483647, %v6633_v54  ;;  %v10508_v38 = vsel %vm4780_vm6, %v4506_v20, 0.0  ;;  %v10511_v34 = vsel %vm4780_vm6, %v4762_v41, 0.0  ;;  %v10513_v43 = vmul.f32 %v4171_v53, %v4043_v14 }
 0x3a0   :  { %v6637_v5 = vpop.eup %6636  ;;  %12441 = vst [vmem:[#allocation50_spill] sm:$0xff] %v10508_v38  ;;  %v2955_v29 = vadd.f32 %v2643_v24, %v2059_v6  ;;  %v10515_v32 = vmax.f32 %v3029_v49, -9.2103405  ;;  %v3222_v45 = vsub.f32 %v2006_v31, %v2966_v33  ;;  %v4985_v0 = vadd.f32 %v4984_v55, %v4983_v56 }
 0x3a1   :  { %12442 = vst [vmem:[#allocation51_spill] sm:$0xff] %v10511_v34  ;;  %v4986_v11 = vsel %vm4780_vm6, %v10482_v23, 0.0  ;;  %v2646_v39 = vmul.f32 0.6931472, %v6637_v5  ;;  %v2649_v8 = vmul.f32 %v6633_v54, %v2648_v47  ;;  %v2143_v13 = vand.u32 2147483647, %v10342_v2 }
 0x3a2   :  { %v3019_v20 = vsub.f32 0.0, %v2955_v29  ;;  %v3285_v41 = vmax.f32 %v3221_v15, -9.2103405  ;;  %6640 = vpow2.f32 %v3457_v19  ;;  %v10522_v14 = vmul.f32 %v4172_v63, %v4044_v58  ;;  %v12443_v54 = vld [vmem:[#allocation19_spill] sm:$0xff]  ;;  %v10534_v58 = vld [vmem:[%s11866_s3 + $0x1a0] sm:$0xff] }
 0x3a3   :  { %vm2651_vm12 = vcmp.lt.f32.partialorder %v2650_v50, 0.0004427343  ;;  %v6639_v6 = vpop.eup %6638  ;;  %v2144_v60 = vand.u32 2147483647, %v10345_v61  ;;  %v6345_v31 = vunpack.i.h.bf16 %v6343_v46  ;;  %v4987_v33 = vadd.f32 %v4986_v11, %v4985_v0 }
 0x3a4   :  { %v2652_v49 = vsel %vm2651_vm12, %v2649_v8, %v2646_v39  ;;  %v3435_v53 = vmul.f32 1.442695, %v3019_v20  ;;  %v5121_v55 = vadd.f32 %v12443_v54, %v10277_v25  ;;  %v10529_v24 = vmax.f32 %v3030_v36, -9.2103405  ;;  %v10543_v25 = vld [vmem:[%s11866_s3 + $0x1a8] sm:$0xff]  ;;  %v12445_v36 = vld [vmem:[#allocation11_spill] sm:$0xff] }
 0x3a5   :  { %v2956_v26 = vadd.f32 %v2652_v49, %v10468_v59  ;;  %v3286_v47 = vmax.f32 %v3222_v45, -9.2103405  ;;  %v2207_v37 = vsub.f32 0.0, %v2143_v13  ;;  %v10536_v15 = vmin.f32 %v3285_v41, -0.000100005  ;;  %v12446_v8 = vld [vmem:[#allocation73_spill] sm:$0xff] }
 0x3a6   :  { %6642 = vpow2.f32 %v3435_v53  ;;  %v3541_v19 = vmax.f32 %v6639_v6, 0.0001  ;;  %v12444_v50 = vsub.f32 0.0, %v10282_v40  ;;  %v10546_v5 = vadd.f32 %v12445_v36, %v5121_v55  ;;  %v12447_v54 = vld [vmem:[#allocation37_spill] sm:$0xff] }
 0x3a7   :  { %v3020_v63 = vsub.f32 0.0, %v2956_v26  ;;  %v2208_v45 = vsub.f32 0.0, %v2144_v60  ;;  %v2323_v0 = vmul.f32 1.442695, %v2207_v37  ;;  %v1692_v11 = vmul.f32 %v6345_v31, %v7928_v48 }
 0x3a8   :  { %v3211_v59 = vsub.f32 %v12444_v50, %v2955_v29  ;;  %v6641_v39 = vpop.eup %6640  ;;  %v4989_v13 = vadd.f32 %v12446_v8, %v4987_v33  ;;  %v10551_v6 = vsub.f32 1.0, %v10534_v58  ;;  %v6344_v40 = vunpack.i.l.bf16 %v6343_v46 }
 0x3a9   :  { %v3437_v41 = vmul.f32 1.442695, %v3020_v63  ;;  %v10554_v29 = vsub.f32 1.0, %v10543_v25  ;;  %v11945_v49 = vsub.f32 0.0, %v10342_v2  ;;  %6644 = vpow2.f32 %v2323_v0  ;;  %v12448_v0 = vld [vmem:[#allocation29_spill] sm:$0xff] }
 0x3aa   :  { %v2325_v53 = vmul.f32 1.442695, %v2208_v45  ;;  %v1691_v31 = vmul.f32 %v6344_v40, %v7928_v48  ;;  %v10560_v55 = vadd.f32 %v1692_v11, %v12447_v54  ;;  %v3542_v37 = vmax.f32 %v6641_v39, 0.0001 }
 0x3ab   :  { %6646 = vpow2.f32 %v3437_v41  ;;  %v3605_v50 = vmin.f32 %v3541_v19, 0.9999  ;;  %v3275_v36 = vmax.f32 %v3211_v59, -9.2103405  ;;  %v10563_v8 = vmin.f32 %v3286_v47, -0.000100005 }
 0x3ac   :  { %v6643_v33 = vpop.eup %6642  ;;  %6648 = vpow2.f32 %v2325_v53  ;;  %v10566_v45 = vadd.f32 %v1691_v31, %v12448_v0  ;;  %v12449_v41 = vld [vmem:[#allocation10_spill] sm:$0xff]  ;;  %v3083_v40 = vmax.f32 %v3019_v20, -9.2103405  ;;  %v12451_v11 = vsub.f32 0.0, %v10287_v4 }
 0x3ad   :  { %v3531_v56 = vmax.f32 %v6643_v33, 0.0001  ;;  %v10569_v60 = vadd.f32 %v12449_v41, %v4989_v13  ;;  %v10575_v19 = vmul.f32 %v10551_v6, %v10551_v6  ;;  %v10579_v47 = vmul.f32 %v10554_v29, %v10554_v29 }
 0x3ae   :  { %v3212_v54 = vsub.f32 %v12451_v11, %v2956_v26  ;;  %v10583_v39 = vmax.f32 %v11945_v49, 0.0  ;;  %v5614_v13 = vpack.c.bf16 %v10560_v55, %v10566_v45  ;;  %v10587_v53 = vmin.f32 %v3542_v37, 0.9999 }
 0x3af   :  { %12450 = vst [vmem:[#allocation9_spill] sm:$0xff] %v10569_v60  ;;  %v3595_v59 = vmin.f32 %v3531_v56, 0.9999  ;;  %v6645_v20 = vpop.eup %6644  ;;  %v4309_v4 = vsub.f32 1.0, %v3605_v50  ;;  %v3339_v26 = vmin.f32 %v3275_v36, -0.000100005  ;;  %v4565_v34 = vmul.f32 %v3605_v50, %v3605_v50 }
 0x3b0   :  { %v12452_v31 = vsub.f32 0.0, %v10345_v61  ;;  %v3084_v0 = vmax.f32 %v3020_v63, -9.2103405  ;;  %v2815_v46 = vadd.f32 1.0, %v6645_v20  ;;  %5705 = vst [vmem:[#allocation2 + $0xc0] sm:$0xff] %v5614_v13   ;;  %v2818_v51 = vmul.f32 -0.5, %v6645_v20 }
 0x3b1   :  { %v6647_v56 = vpop.eup %6646  ;;  %v4299_v41 = vsub.f32 1.0, %v3595_v59  ;;  %v4555_v11 = vmul.f32 %v3595_v59, %v3595_v59  ;;  %v3147_v38 = vmin.f32 %v3083_v40, -0.000100005  ;;  %v3276_v27 = vmax.f32 %v3212_v54, -9.2103405 }
 0x3b2   :  { %v10591_v33 = vmax.f32 %v12452_v31, 0.0  ;;  %v6649_v49 = vpop.eup %6648  ;;  %v3532_v3 = vmax.f32 %v6647_v56, 0.0001  ;;  %6650 = vlog2.f32 %v2815_v46  ;;  %v4373_v36 = vmul.f32 %v4309_v4, %v4309_v4 }
 0x3b3   :  { %v4363_v10 = vmul.f32 %v4299_v41, %v4299_v41  ;;  %v4619_v37 = vmul.f32 %v4555_v11, %v3339_v26  ;;  %v2824_v22 = vadd.f32 1.0, %v6649_v49  ;;  %v2140_v31 = vand.u32 2147483647, %v10560_v55 }
 0x3b4   :  { %v3596_v52 = vmin.f32 %v3532_v3, 0.9999  ;;  %v3148_v63 = vmin.f32 %v3084_v0, -0.000100005  ;;  %v2827_v13 = vmul.f32 -0.5, %v6649_v49  ;;  %v2819_v26 = vadd.f32 1.0, %v2818_v51 }
 0x3b5   :  { %v4427_v60 = vmul.f32 %v4363_v10, %v3147_v38  ;;  %v4683_v59 = vmul.f32 %v4619_v37, %v10513_v43  ;;  %v3340_v12 = vmin.f32 %v3276_v27, -0.000100005  ;;  %6652 = vlog2.f32 %v2824_v22 }
 0x3b6   :  { %v4300_v50 = vsub.f32 1.0, %v3596_v52  ;;  %v4556_v40 = vmul.f32 %v3596_v52, %v3596_v52  ;;  %v6319_v4 = vunpack.i.l.bf16 %v6318_v7  ;;  %v2821_v41 = vand.u32 2147483647, %v6645_v20 }
 0x3b7   :  { %v4491_v54 = vmul.f32 %v10479_v30, %v4427_v60  ;;  %v4747_v46 = vmul.f32 %v10488_v9, %v4683_v59  ;;  %v2204_v11 = vsub.f32 0.0, %v2140_v31  ;;  %v2828_v43 = vadd.f32 1.0, %v2827_v13 }
 0x3b8   :  { %v4364_v3 = vmul.f32 %v4300_v50, %v4300_v50  ;;  %v4620_v56 = vmul.f32 %v4556_v40, %v3340_v12  ;;  %v6651_v1 = vpop.eup %6650  ;;  %v2830_v27 = vand.u32 2147483647, %v6649_v49  ;;  %v4310_v51 = vsub.f32 1.0, %v10587_v53 }
 0x3b9   :  { %v4844_v10 = vsel %vm4780_vm6, %v4491_v54, 0.0  ;;  %v5124_v38 = vsel %vm4780_vm6, %v4747_v46, 0.0  ;;  %v2817_v9 = vmul.f32 0.6931472, %v6651_v1  ;;  %v2820_v12 = vmul.f32 %v6645_v20, %v2819_v26 }
 0x3ba   :  { %v4428_v0 = vmul.f32 %v4364_v3, %v3148_v63  ;;  %v4684_v22 = vmul.f32 %v4620_v56, %v10522_v14  ;;  %v4845_v52 = vadd.f32 %v4844_v10, %v10503_v62  ;;  %v5125_v30 = vadd.f32 %v5124_v38, %v10546_v5 }
 0x3bb   :  { %v6320_v60 = vunpack.i.h.bf16 %v6318_v7  ;;  %v6653_v37 = vpop.eup %6652  ;;  %vm2822_vm13 = vcmp.lt.f32.partialorder %v2821_v41, 0.0004427343  ;;  %v2139_v13 = vand.u32 2147483647, %v10566_v45  ;;  %v2829_v14 = vmul.f32 %v6649_v49, %v2828_v43  ;;  %v12455_v41 = vld [vmem:[#allocation71_spill] sm:$0xff] }
 0x3bc   :  { %v4492_v31 = vmul.f32 %v10482_v23, %v4428_v0  ;;  %v4748_v59 = vmul.f32 %v10497_v16, %v4684_v22  ;;  %v2823_v63 = vsel %vm2822_vm13, %v2820_v12, %v2817_v9  ;;  %v2826_v50 = vmul.f32 0.6931472, %v6653_v37  ;;  %v12459_v0 = vld [vmem:[#allocation21_spill] sm:$0xff]  ;;  %v12461_v9 = vld [vmem:[#allocation54_spill] sm:$0xff] }
 0x3bd   :  { %v2317_v40 = vmul.f32 1.442695, %v2204_v11  ;;  %vm10608_vm14 = vcmp.lt.f32.partialorder %v2830_v27, 0.0004427343  ;;  %v1681_v7 = vmul.f32 %v6319_v4, %v7928_v48  ;;  %v4566_v16 = vmul.f32 %v10587_v53, %v10587_v53  ;;  %v12456_v4 = vld [vmem:[#allocation72_spill] sm:$0xff] }
 0x3be   :  { %v4846_v62 = vsel %vm4780_vm6, %v4492_v31, 0.0  ;;  %v5126_v5 = vsel %vm4780_vm6, %v4748_v59, 0.0  ;;  %v2832_v54 = vsel %vm10608_vm14, %v2829_v14, %v2826_v50  ;;  %v4629_v49 = vmul.f32 %v4565_v34, %v10536_v15  ;;  %v10633_v34 = vld [vmem:[%s11866_s3 + $0x180] sm:$0xff]  ;;  %v12458_v15 = vld [vmem:[#allocation34_spill] sm:$0xff] }
 0x3bf   :  { %v4847_v23 = vadd.f32 %v4846_v62, %v4845_v52  ;;  %v5127_v20 = vadd.f32 %v5126_v5, %v5125_v30  ;;  %v10619_v46 = vadd.f32 %v2823_v63, %v10583_v39  ;;  %v2203_v26 = vsub.f32 0.0, %v2139_v13 }
 0x3c0   :  { %v1682_v3 = vmul.f32 %v6320_v60, %v7928_v48  ;;  %v4374_v56 = vmul.f32 %v4310_v51, %v4310_v51  ;;  %6654 = vpow2.f32 %v2317_v40  ;;  %v12457_v53 = vmin.f32 %v10515_v32, -0.000100005  ;;  %v12460_v32 = vld [vmem:[#allocation47_spill] sm:$0xff] }
 0x3c1   :  { %v4849_v11 = vadd.f32 %v12455_v41, %v4847_v23  ;;  %v5129_v10 = vadd.f32 %v12456_v4, %v5127_v20  ;;  %vm3679_vm15 = vcmp.eq.f32.partialorder %v10534_v58, 1.0  ;;  %v10628_v43 = vadd.f32 %v2832_v54, %v10591_v33 }
 0x3c2   :  { %v4437_v38 = vmul.f32 %v4373_v36, %v12457_v53  ;;  %v10636_v39 = vadd.f32 %v1681_v7, %v12458_v15  ;;  %v4630_v27 = vmul.f32 %v4566_v16, %v10563_v8  ;;  %v2315_v52 = vmul.f32 1.442695, %v2203_v26 }
 0x3c3   :  { %v10640_v22 = vadd.f32 %v12459_v0, %v4849_v11  ;;  %v10643_v36 = vadd.f32 %v12460_v32, %v5129_v10  ;;  %v4693_v33 = vmul.f32 %v4629_v49, %v10399_v42  ;;  %v4191_v30 = vmul.f32 %v10575_v19, %v10551_v6  ;;  %v1948_v42 = vld [vmem:[%s11866_s3 + $0x188] sm:$0xff]  ;;  %v6368_v32 = vpop.permute.xlu2 %6367 }
 0x3c4   :  { %v3039_v51 = vsub.f32 0.0, %v10619_v46  ;;  %v10650_v12 = vadd.f32 %v1682_v3, %v12461_v9  ;;  %v12462_v60 = vmin.f32 %v10529_v24, -0.000100005  ;;  %vm3680_vm0 = vcmp.eq.f32.partialorder %v10543_v25, 1.0 }
 0x3c5   :  { %v4192_v37 = vmul.f32 %v10579_v47, %v10554_v29  ;;  %v4059_v31 = vsub.f32 1.0, %v10633_v34  ;;  %v10664_v19 = vsel %vm3679_vm15, 1.0, %v12173_v35  ;;  %vm3871_vm1 = vcmp.lt.f32.partialorder %v10534_v58, 1.0 }
 0x3c6   :  { %v4438_v8 = vmul.f32 %v4374_v56, %v12462_v60  ;;  %12463 = vst [vmem:[#allocation15_spill] sm:$0xff] %v10664_v19  ;;  %v3040_v24 = vsub.f32 0.0, %v10628_v43  ;;  %v5589_v59 = vpack.c.bf16 %v10650_v12, %v10636_v39  ;;  %v10670_v13 = vpop.eup %6654  ;;  %v4501_v47 = vmul.f32 %v10408_v57, %v4437_v38 }
 0x3c7   :  { %v4694_v63 = vmul.f32 %v4630_v27, %v10403_v17  ;;  %vm3872_vm2 = vcmp.lt.f32.partialorder %v10543_v25, 1.0  ;;  %6656 = vpow2.f32 %v2315_v52  ;;  %v4757_v50 = vmul.f32 %v10418_v28, %v4693_v33 }
 0x3c8   :  { %v3475_v14 = vmul.f32 1.442695, %v3039_v51  ;;  %v10676_v40 = vsub.f32 1.0, %v1948_v42  ;;  %v2788_v58 = vadd.f32 1.0, %v10670_v13  ;;  %5700 = vst [vmem:[#allocation2 + $0x98] sm:$0xff] %v5589_v59   ;;  %v4502_v62 = vmul.f32 %v10413_v21, %v4438_v8 }
 0x3c9   :  { %v10683_v5 = vsel %vm3680_vm0, 1.0, %v12173_v35  ;;  %v10686_v17 = vsel %vm3871_vm1, 1.0, %v12173_v35  ;;  %v4123_v57 = vmul.f32 %v4059_v31, %v4059_v31  ;;  %v10689_v1 = vsel %vm3872_vm2, 1.0, %v12173_v35 }
 0x3ca   :  { %12464 = vst [vmem:[#allocation43_spill] sm:$0xff] %v10683_v5  ;;  %v10692_v28 = vmul.f32 %v4191_v30, %v10551_v6  ;;  %v3477_v7 = vmul.f32 1.442695, %v3040_v24  ;;  %v2129_v21 = vand.u32 2147483647, %v10636_v39  ;;  %v4758_v16 = vmul.f32 %v10423_v18, %v4694_v63 }
 0x3cb   :  { %v10699_v25 = vmul.f32 %v4192_v37, %v10554_v29  ;;  %v11949_v23 = vsub.f32 0.0, %v10560_v55  ;;  %6658 = vlog2.f32 %v2788_v58  ;;  %v10703_v20 = vsel %vm4780_vm6, %v4501_v47, 0.0 }
 0x3cc   :  { %v10706_v54 = vsel %vm4780_vm6, %v4757_v50, 0.0  ;;  %6660 = vpow2.f32 %v3475_v14  ;;  %v4124_v6 = vmul.f32 %v10676_v40, %v10676_v40  ;;  %v10713_v18 = vsel %vm4780_vm6, %v4502_v62, 0.0 }
 0x3cd   :  { %12465 = vst [vmem:[#allocation44_spill] sm:$0xff] %v10706_v54  ;;  %v10710_v49 = vpop.eup %6656  ;;  %vm3675_vm3 = vcmp.eq.f32.partialorder %v10633_v34, 1.0  ;;  %vm3676_vm4 = vcmp.eq.f32.partialorder %v1948_v42, 1.0  ;;  %v4187_v29 = vmul.f32 %v4123_v57, %v4059_v31  ;;  %6662 = vpow2.f32 %v3477_v7 }
 0x3ce   :  { %vm3867_vm5 = vcmp.lt.f32.partialorder %v10633_v34, 1.0  ;;  %v2791_v26 = vmul.f32 -0.5, %v10670_v13  ;;  %v2193_v3 = vsub.f32 0.0, %v2129_v21  ;;  %v10719_v56 = vsel %vm4780_vm6, %v4758_v16, 0.0 }
 0x3cf   :  { %12466 = vst [vmem:[#allocation41_spill] sm:$0xff] %v10719_v56  ;;  %v12467_v41 = vsub.f32 0.0, %v10342_v2  ;;  %v11948_v4 = vsub.f32 0.0, %v10566_v45  ;;  %v2076_v10 = vmax.f32 %v11949_v23, 0.0  ;;  %v10728_v53 = vsel %vm3675_vm3, 1.0, %v12173_v35 }
 0x3d0   :  { %vm3868_vm7 = vcmp.lt.f32.partialorder %v1948_v42, 1.0  ;;  %v4188_v38 = vmul.f32 %v4124_v6, %v10676_v40  ;;  %v2779_v34 = vadd.f32 1.0, %v10710_v49  ;;  %v10733_v27 = vsel %vm3676_vm4, 1.0, %v12173_v35 }
 0x3d1   :  { %v3231_v11 = vsub.f32 %v12467_v41, %v10619_v46  ;;  %v6659_v15 = vpop.eup %6658  ;;  %v10736_v2 = vsel %vm3867_vm5, 1.0, %v12173_v35  ;;  %v10738_v46 = vmul.f32 %v4187_v29, %v4059_v31  ;;  %v2130_v0 = vand.u32 2147483647, %v10650_v12  ;;  %v10771_v29 = vpop.permute.xlu0 %6357 }
 0x3d2   :  { %v6661_v52 = vpop.eup %6660  ;;  %v10741_v33 = vmax.f32 %v3039_v51, -9.2103405  ;;  %v12468_v30 = vsub.f32 0.0, %v10345_v61  ;;  %v2792_v60 = vadd.f32 1.0, %v2791_v26  ;;  %v2295_v8 = vmul.f32 1.442695, %v2193_v3 }
 0x3d3   :  { %v3295_v37 = vmax.f32 %v3231_v11, -9.2103405  ;;  %v10747_v42 = vsel %vm3868_vm7, 1.0, %v12173_v35  ;;  %v10751_v31 = vsel %vm4780_vm6, %v10728_v53, 0.0  ;;  %v2794_v59 = vand.u32 2147483647, %v10670_v13  ;;  %v6663_v47 = vpop.eup %6662 }
 0x3d4   :  { %v3232_v9 = vsub.f32 %v12468_v30, %v10628_v43  ;;  %12469 = vst [vmem:[#allocation65_spill] sm:$0xff] %v10751_v31  ;;  %6664 = vlog2.f32 %v2779_v34  ;;  %v2790_v51 = vmul.f32 0.6931472, %v6659_v15  ;;  %v6370_v63 = vunpack.i.h.bf16 %v6368_v32  ;;  %v10784_v15 = vld [vmem:[%s11866_s3 + $0x130] sm:$0xff] }
 0x3d5   :  { %v6369_v50 = vunpack.i.l.bf16 %v6368_v32  ;;  %v10756_v61 = vmax.f32 %v3040_v24, -9.2103405  ;;  %v3551_v14 = vmax.f32 %v6661_v52, 0.0001  ;;  %v10760_v58 = vsel %vm4780_vm6, %v10733_v27, 0.0 }
 0x3d6   :  { %12470 = vst [vmem:[#allocation27_spill] sm:$0xff] %v10760_v58  ;;  %v2194_v62 = vsub.f32 0.0, %v2130_v0  ;;  %v3167_v57 = vmin.f32 %v10741_v33, -0.000100005  ;;  %v3296_v7 = vmax.f32 %v3232_v9, -9.2103405  ;;  %v2793_v21 = vmul.f32 %v10670_v13, %v2792_v60 }
 0x3d7   :  { %6666 = vpow2.f32 %v2295_v8  ;;  %v3552_v16 = vmax.f32 %v6663_v47, 0.0001  ;;  %v2075_v6 = vmax.f32 %v11948_v4, 0.0  ;;  %v2782_v43 = vmul.f32 -0.5, %v10710_v49 }
 0x3d8   :  { %vm10767_vm8 = vcmp.lt.f32.partialorder %v2794_v59, 0.0004427343  ;;  %v11947_v3 = vsub.f32 0.0, %v10636_v39  ;;  %v1702_v13 = vmul.f32 %v6370_v63, %v7928_v48  ;;  %v1701_v41 = vmul.f32 %v6369_v50, %v7928_v48 }
 0x3d9   :  { %v2796_v26 = vsel %vm10767_vm8, %v2793_v21, %v2790_v51  ;;  %v3615_v11 = vmin.f32 %v3551_v14, 0.9999  ;;  %v10779_v34 = vmul.f32 %v4188_v38, %v10676_v40  ;;  %v11946_v0 = vsub.f32 0.0, %v10650_v12  ;;  %v12473_v14 = vld [vmem:[#allocation55_spill] sm:$0xff] }
 0x3da   :  { %v2297_v32 = vmul.f32 1.442695, %v2194_v62  ;;  %v6665_v52 = vpop.eup %6664  ;;  %v3168_v30 = vmin.f32 %v10756_v61, -0.000100005  ;;  %v3359_v9 = vmin.f32 %v3295_v37, -0.000100005  ;;  %v6360_v8 = vunpack.i.h.bf16 %v10771_v29 }
 0x3db   :  { %v2785_v60 = vand.u32 2147483647, %v10710_v49  ;;  %v3360_v59 = vmin.f32 %v3296_v7, -0.000100005  ;;  %v3616_v47 = vmin.f32 %v3552_v16, 0.9999  ;;  %v10790_v38 = vadd.f32 %v2796_v26, %v2076_v10 }
 0x3dc   :  { %v2783_v40 = vadd.f32 1.0, %v2782_v43  ;;  %v10793_v63 = vsub.f32 1.0, %v10784_v15  ;;  %v10797_v50 = vmax.f32 %v11947_v3, 0.0  ;;  %v10800_v61 = vadd.f32 %v1701_v41, %v12473_v14  ;;  %v12474_v37 = vld [vmem:[#allocation30_spill] sm:$0xff]  ;;  %v10808_v10 = vld [vmem:[%s11866_s3 + $0x138] sm:$0xff] }
 0x3dd   :  { %v6667_v51 = vpop.eup %6666  ;;  %v10803_v62 = vadd.f32 %v1702_v13, %v12474_v37  ;;  %v4319_v21 = vsub.f32 1.0, %v3615_v11  ;;  %v2781_v7 = vmul.f32 0.6931472, %v6665_v52  ;;  %v10812_v16 = vmax.f32 %v11946_v0, 0.0 }
 0x3de   :  { %6668 = vpow2.f32 %v2297_v32  ;;  %v4575_v43 = vmul.f32 %v3615_v11, %v3615_v11  ;;  %vm10814_vm9 = vcmp.lt.f32.partialorder %v2785_v60, 0.0004427343  ;;  %v10819_v26 = vmul.f32 %v6360_v8, %v7928_v48 }
 0x3df   :  { %v4320_v41 = vsub.f32 1.0, %v3616_v47  ;;  %v2784_v52 = vmul.f32 %v10710_v49, %v2783_v40  ;;  %v11950_v14 = vsub.f32 0.0, %v10790_v38  ;;  %v2689_v37 = vadd.f32 1.0, %v6667_v51 }
 0x3e0   :  { %v10825_v0 = vsub.f32 1.0, %v10808_v10  ;;  %v10829_v11 = vmul.f32 %v10793_v63, %v10793_v63  ;;  %v2692_v32 = vmul.f32 -0.5, %v6667_v51  ;;  %v5639_v60 = vpack.c.bf16 %v10803_v62, %v10800_v61 }
 0x3e1   :  { %v4383_v8 = vmul.f32 %v4319_v21, %v4319_v21  ;;  %v4576_v3 = vmul.f32 %v3616_v47, %v3616_v47  ;;  %v2787_v4 = vsel %vm10814_vm9, %v2784_v52, %v2781_v7  ;;  %6670 = vlog2.f32 %v2689_v37 }
 0x3e2   :  { %v4639_v49 = vmul.f32 %v4575_v43, %v3359_v9  ;;  %vm3665_vm10 = vcmp.eq.f32.partialorder %v10784_v15, 1.0  ;;  %vm3666_vm11 = vcmp.eq.f32.partialorder %v10808_v10, 1.0  ;;  %vm3857_vm12 = vcmp.lt.f32.partialorder %v10784_v15, 1.0  ;;  %5710 = vst [vmem:[#allocation2 + $0xe8] sm:$0xff] %v5639_v60   ;;  %v12482_v15 = vld [vmem:[#allocation26_spill] sm:$0xff] }
 0x3e3   :  { %v4384_v13 = vmul.f32 %v4320_v41, %v4320_v41  ;;  %v3469_v23 = vmul.f32 1.442695, %v11950_v14  ;;  %v2149_v21 = vand.u32 2147483647, %v10800_v61  ;;  %v2150_v47 = vand.u32 2147483647, %v10803_v62 }
 0x3e4   :  { %v6669_v40 = vpop.eup %6668  ;;  %v10842_v24 = vadd.f32 %v2787_v4, %v2075_v6  ;;  %v2693_v7 = vadd.f32 1.0, %v2692_v32  ;;  %v2695_v9 = vand.u32 2147483647, %v6667_v51  ;;  %v4447_v52 = vmul.f32 %v4383_v8, %v3167_v57 }
 0x3e5   :  { %v2698_v43 = vadd.f32 1.0, %v6669_v40  ;;  %v4640_v37 = vmul.f32 %v4576_v3, %v3360_v59  ;;  %v2701_v58 = vmul.f32 -0.5, %v6669_v40  ;;  %v2213_v60 = vsub.f32 0.0, %v2149_v21 }
 0x3e6   :  { %v4703_v41 = vmul.f32 %v4639_v49, %v10692_v28  ;;  %v10850_v14 = vsel %vm3665_vm10, 1.0, %v12173_v35  ;;  %v10855_v4 = vsel %vm3666_vm11, 1.0, %v12173_v35  ;;  %v4448_v32 = vmul.f32 %v4384_v13, %v3168_v30  ;;  %v12477_v49 = vld [vmem:[#allocation23_spill] sm:$0xff] }
 0x3e7   :  { %6672 = vlog2.f32 %v2698_v43  ;;  %v6671_v6 = vpop.eup %6670  ;;  %v4853_v33 = vadd.f32 %v10322_v44, %v10640_v22  ;;  %v2214_v57 = vsub.f32 0.0, %v2150_v47  ;;  %v3035_v28 = vsub.f32 0.0, %v10842_v24 }
 0x3e8   :  { %6674 = vpow2.f32 %v3469_v23  ;;  %v2691_v3 = vmul.f32 0.6931472, %v6671_v6  ;;  %v2694_v59 = vmul.f32 %v6667_v51, %v2693_v7  ;;  %vm2696_vm13 = vcmp.lt.f32.partialorder %v2695_v9, 0.0004427343 }
 0x3e9   :  { %v2702_v8 = vadd.f32 1.0, %v2701_v58  ;;  %v10861_v21 = vadd.f32 %v12477_v49, %v4853_v33  ;;  %v2335_v31 = vmul.f32 1.442695, %v2213_v60  ;;  %v2337_v56 = vmul.f32 1.442695, %v2214_v57  ;;  %v12484_v33 = vld [vmem:[#allocation18_spill] sm:$0xff] }
 0x3ea   :  { %v4704_v43 = vmul.f32 %v4640_v37, %v10699_v25  ;;  %vm3858_vm14 = vcmp.lt.f32.partialorder %v10808_v10, 1.0  ;;  %v2697_v23 = vsel %vm2696_vm13, %v2694_v59, %v2691_v3  ;;  %v2704_v30 = vand.u32 2147483647, %v6669_v40  ;;  %v12486_v59 = vld [vmem:[#allocation49_spill] sm:$0xff] }
 0x3eb   :  { %v10866_v44 = vmul.f32 %v10664_v19, %v4447_v52  ;;  %v12479_v22 = vsub.f32 0.0, %v10560_v55  ;;  %v10872_v58 = vadd.f32 %v2697_v23, %v10797_v50  ;;  %6676 = vpow2.f32 %v2335_v31  ;;  %v12488_v10 = vld [vmem:[#allocation17_spill] sm:$0xff] }
 0x3ec   :  { %v10875_v47 = vmul.f32 %v10683_v5, %v4448_v32  ;;  %v4767_v25 = vmul.f32 %v10686_v17, %v4703_v41  ;;  %v10881_v7 = vsel %vm3857_vm12, 1.0, %v12173_v35  ;;  %6678 = vpow2.f32 %v2337_v56  ;;  %v12483_v32 = vld [vmem:[#allocation9_spill] sm:$0xff] }
 0x3ed   :  { %12478 = vst [vmem:[#allocation38_spill] sm:$0xff] %v10866_v44  ;;  %v3228_v51 = vsub.f32 %v12479_v22, %v10790_v38  ;;  %v6673_v13 = vpop.eup %6672  ;;  %v3467_v55 = vmul.f32 1.442695, %v3035_v28  ;;  %v2703_v50 = vmul.f32 %v6669_v40, %v2702_v8  ;;  %v3025_v31 = vsub.f32 0.0, %v10872_v58 }
 0x3ee   :  { %12480 = vst [vmem:[#allocation63_spill] sm:$0xff] %v10875_v47  ;;  %v6675_v9 = vpop.eup %6674  ;;  %v2700_v52 = vmul.f32 0.6931472, %v6673_v13  ;;  %v10887_v37 = vmul.f32 %v10689_v1, %v4704_v43  ;;  %v12481_v60 = vsub.f32 0.0, %v10790_v38  ;;  %vm2705_vm15 = vcmp.lt.f32.partialorder %v2704_v30, 0.0004427343 }
 0x3ef   :  { %v5133_v41 = vadd.f32 %v12482_v15, %v10643_v36  ;;  %v3292_v56 = vmax.f32 %v3228_v51, -9.2103405  ;;  %v4114_v6 = vmul.f32 %v10825_v0, %v10825_v0  ;;  %v4993_v40 = vadd.f32 %v12484_v33, %v12483_v32 }
 0x3f0   :  { %v10891_v17 = vmax.f32 %v12481_v60, -9.2103405  ;;  %v2706_v57 = vsel %vm2705_vm15, %v2703_v50, %v2700_v52  ;;  %v10900_v3 = vsel %vm4780_vm6, %v4767_v25, 0.0  ;;  %v3447_v38 = vmul.f32 1.442695, %v3025_v31 }
 0x3f1   :  { %12485 = vst [vmem:[#allocation66_spill] sm:$0xff] %v10900_v3  ;;  %v2962_v1 = vadd.f32 %v2706_v57, %v10812_v16  ;;  %v10904_v8 = vadd.f32 %v12486_v59, %v5133_v41  ;;  %v10906_v49 = vpop.eup %6676  ;;  %6680 = vpow2.f32 %v3467_v55  ;;  %v3548_v36 = vmax.f32 %v6675_v9, 0.0001  ;;  %v12491_v57 = vld [vmem:[#allocation33_spill] sm:$0xff]  ;;  %v12492_v59 = vld [vmem:[#allocation32_spill] sm:$0xff] }
 0x3f2   :  { %v10911_v43 = vsel %vm3858_vm14, 1.0, %v12173_v35  ;;  %v4177_v23 = vmul.f32 %v10829_v11, %v10793_v63  ;;  %v10915_v30 = vpop.eup %6678  ;;  %6682 = vpow2.f32 %v3447_v38  ;;  %v12487_v51 = vunpack.i.l.bf16 %v10771_v29 }
 0x3f3   :  { %v3026_v22 = vsub.f32 0.0, %v2962_v1  ;;  %v10921_v25 = vmin.f32 %v3292_v56, -0.000100005  ;;  %v4178_v9 = vmul.f32 %v4114_v6, %v10825_v0  ;;  %v4995_v55 = vadd.f32 %v12488_v10, %v4993_v40 }
 0x3f4   :  { %v1697_v13 = vmul.f32 %v12487_v51, %v7928_v48  ;;  %v4996_v52 = vsel %vm4780_vm6, %v10850_v14, 0.0  ;;  %v11952_v50 = vsub.f32 0.0, %v10800_v61  ;;  %v11951_v60 = vsub.f32 0.0, %v10803_v62 }
 0x3f5   :  { %v3449_v11 = vmul.f32 1.442695, %v3026_v22  ;;  %v2869_v15 = vadd.f32 1.0, %v10906_v49  ;;  %v12489_v29 = vsub.f32 0.0, %v10566_v45  ;;  %v3612_v56 = vmin.f32 %v3548_v36, 0.9999 }
 0x3f6   :  { %v12490_v6 = vsub.f32 0.0, %v10636_v39  ;;  %v2878_v33 = vadd.f32 1.0, %v10915_v30  ;;  %v4241_v40 = vmul.f32 %v4177_v23, %v10793_v63  ;;  %v10941_v38 = vadd.f32 %v1697_v13, %v12491_v57 }
 0x3f7   :  { %v10933_v41 = vsub.f32 %v12489_v29, %v10842_v24  ;;  %6684 = vpow2.f32 %v3449_v11  ;;  %v10945_v51 = vadd.f32 %v10819_v26, %v12492_v59  ;;  %v10947_v45 = vpop.eup %6680  ;;  %v10951_v36 = vmax.f32 %v3035_v28, -9.2103405 }
 0x3f8   :  { %v3217_v32 = vsub.f32 %v12490_v6, %v10872_v58  ;;  %v4997_v39 = vadd.f32 %v4996_v52, %v4995_v55  ;;  %v4998_v58 = vsel %vm4780_vm6, %v10855_v4, 0.0  ;;  %v12493_v63 = vsub.f32 0.0, %v10650_v12  ;;  %v6683_v10 = vpop.eup %6682 }
 0x3f9   :  { %v4242_v13 = vmul.f32 %v4178_v9, %v10825_v0  ;;  %v10960_v26 = vmax.f32 %v11952_v50, 0.0  ;;  %v10964_v11 = vmax.f32 %v11951_v60, 0.0  ;;  %6686 = vlog2.f32 %v2869_v15 }
 0x3fa   :  { %v3218_v23 = vsub.f32 %v12493_v63, %v2962_v1  ;;  %v4316_v24 = vsub.f32 1.0, %v3612_v56  ;;  %v3281_v28 = vmax.f32 %v3217_v32, -9.2103405  ;;  %v3537_v55 = vmax.f32 %v6683_v10, 0.0001 }
 0x3fb   :  { %6688 = vlog2.f32 %v2878_v33  ;;  %v3089_v52 = vmax.f32 %v3025_v31, -9.2103405  ;;  %v3090_v29 = vmax.f32 %v3026_v22, -9.2103405  ;;  %v2872_v12 = vmul.f32 -0.5, %v10906_v49 }
 0x3fc   :  { %v5629_v0 = vpack.c.bf16 %v10945_v51, %v10941_v38  ;;  %v3547_v1 = vmax.f32 %v10947_v45, 0.0001  ;;  %v10970_v9 = vadd.f32 %v4998_v58, %v4997_v39  ;;  %v3282_v6 = vmax.f32 %v3218_v23, -9.2103405 }
 0x3fd   :  { %v3601_v57 = vmin.f32 %v3537_v55, 0.9999  ;;  %v6685_v59 = vpop.eup %6684  ;;  %v4572_v63 = vmul.f32 %v3612_v56, %v3612_v56  ;;  %v2875_v15 = vand.u32 2147483647, %v10906_v49  ;;  %v2881_v32 = vmul.f32 -0.5, %v10915_v30 }
 0x3fe   :  { %5708 = vst [vmem:[#allocation2 + $0xd8] sm:$0xff] %v5629_v0   ;;  %v2145_v31 = vand.u32 2147483647, %v10941_v38  ;;  %v3345_v22 = vmin.f32 %v3281_v28, -0.000100005  ;;  %v4380_v16 = vmul.f32 %v4316_v24, %v4316_v24  ;;  %v2873_v58 = vadd.f32 1.0, %v2872_v12 }
 0x3ff   :  { %v3538_v33 = vmax.f32 %v6685_v59, 0.0001  ;;  %v4305_v10 = vsub.f32 1.0, %v3601_v57  ;;  %v4561_v60 = vmul.f32 %v3601_v57, %v3601_v57  ;;  %v6687_v50 = vpop.eup %6686  ;;  %v3153_v45 = vmin.f32 %v3089_v52, -0.000100005  ;;  %v6333_v52 = vpop.permute.xlu1 %6332 }
 0x400   :  { %v3154_v39 = vmin.f32 %v3090_v29, -0.000100005  ;;  %v3346_v55 = vmin.f32 %v3282_v6, -0.000100005  ;;  %vm10975_vm0 = vcmp.lt.f32.partialorder %v2875_v15, 0.0004427343  ;;  %v2874_v12 = vmul.f32 %v10906_v49, %v2873_v58 }
 0x401   :  { %v6689_v23 = vpop.eup %6688  ;;  %v3602_v47 = vmin.f32 %v3538_v33, 0.9999  ;;  %v4369_v56 = vmul.f32 %v4305_v10, %v4305_v10  ;;  %v4625_v44 = vmul.f32 %v4561_v60, %v3345_v22  ;;  %v2882_v0 = vadd.f32 1.0, %v2881_v32 }
 0x402   :  { %v2146_v28 = vand.u32 2147483647, %v10945_v51  ;;  %v2209_v59 = vsub.f32 0.0, %v2145_v31  ;;  %v2871_v29 = vmul.f32 0.6931472, %v6687_v50  ;;  %v4636_v58 = vmul.f32 %v4572_v63, %v10921_v25  ;;  %v12499_v63 = vld [vmem:[#allocation60_spill] sm:$0xff] }
 0x403   :  { %v4306_v5 = vsub.f32 1.0, %v3602_v47  ;;  %v4433_v57 = vmul.f32 %v4369_v56, %v3153_v45  ;;  %v4562_v19 = vmul.f32 %v3602_v47, %v3602_v47  ;;  %v4689_v24 = vmul.f32 %v4625_v44, %v4241_v40 }
 0x404   :  { %v2880_v6 = vmul.f32 0.6931472, %v6689_v23  ;;  %v2884_v33 = vand.u32 2147483647, %v10915_v30  ;;  %v2883_v10 = vmul.f32 %v10915_v30, %v2882_v0  ;;  %v2210_v31 = vsub.f32 0.0, %v2146_v28 }
 0x405   :  { %v4370_v60 = vmul.f32 %v4306_v5, %v4306_v5  ;;  %v4497_v15 = vmul.f32 %v10850_v14, %v4433_v57  ;;  %v4626_v22 = vmul.f32 %v4562_v19, %v3346_v55  ;;  %v4753_v32 = vmul.f32 %v10881_v7, %v4689_v24 }
 0x406   :  { %v2327_v54 = vmul.f32 1.442695, %v2209_v59  ;;  %v6335_v45 = vunpack.i.h.bf16 %v6333_v52  ;;  %v2877_v19 = vsel %vm10975_vm0, %v2874_v12, %v2871_v29  ;;  %vm10991_vm1 = vcmp.lt.f32.partialorder %v2884_v33, 0.0004427343  ;;  %v12503_v29 = vld [vmem:[#allocation75_spill] sm:$0xff] }
 0x407   :  { %v4434_v47 = vmul.f32 %v4370_v60, %v3154_v39  ;;  %v4690_v44 = vmul.f32 %v4626_v22, %v4242_v13  ;;  %v4856_v50 = vsel %vm4780_vm6, %v4497_v15, 0.0  ;;  %v5136_v49 = vsel %vm4780_vm6, %v4753_v32, 0.0  ;;  %v12504_v60 = vld [vmem:[#allocation36_spill] sm:$0xff]  ;;  %v12506_v32 = vld [vmem:[#allocation25_spill] sm:$0xff] }
 0x408   :  { %v4857_v40 = vadd.f32 %v4856_v50, %v10861_v21  ;;  %v5137_v5 = vadd.f32 %v5136_v49, %v10904_v8  ;;  %v3611_v7 = vmin.f32 %v3547_v1, 0.9999  ;;  %v2886_v39 = vsel %vm10991_vm1, %v2883_v10, %v2880_v6  ;;  %v12505_v22 = vld [vmem:[#allocation16_spill] sm:$0xff] }
 0x409   :  { %v4498_v30 = vmul.f32 %v10855_v4, %v4434_v47  ;;  %v4754_v13 = vmul.f32 %v10911_v43, %v4690_v44  ;;  %6690 = vpow2.f32 %v2327_v54  ;;  %v2329_v21 = vmul.f32 1.442695, %v2210_v31  ;;  %v6373_v44 = vpop.permute.xlu0 %6372 }
 0x40a   :  { %v1688_v8 = vmul.f32 %v6335_v45, %v7928_v48  ;;  %v11004_v55 = vadd.f32 %v2877_v19, %v10960_v26  ;;  %v6334_v1 = vunpack.i.l.bf16 %v6333_v52  ;;  %v3291_v4 = vmax.f32 %v10933_v41, -9.2103405  ;;  %v12501_v26 = vld [vmem:[#allocation67_spill] sm:$0xff]  ;;  %v12502_v52 = vld [vmem:[#allocation74_spill] sm:$0xff] }
 0x40b   :  { %v4858_v3 = vsel %vm4780_vm6, %v4498_v30, 0.0  ;;  %v5138_v23 = vsel %vm4780_vm6, %v4754_v13, 0.0  ;;  %v11008_v0 = vadd.f32 %v2886_v39, %v10964_v11  ;;  %v4315_v25 = vsub.f32 1.0, %v3611_v7 }
 0x40c   :  { %v4859_v43 = vadd.f32 %v4858_v3, %v4857_v40  ;;  %v5139_v56 = vadd.f32 %v5138_v23, %v5137_v5  ;;  %6692 = vpow2.f32 %v2329_v21  ;;  %v1687_v54 = vmul.f32 %v6334_v1, %v7928_v48  ;;  %v11048_v5 = vld [vmem:[%s11866_s3 + $0x1b0] sm:$0xff] }
 0x40d   :  { %12498 = vst [vmem:[#allocation22_spill] sm:$0xff] %v11008_v0  ;;  %v11012_v28 = vadd.f32 %v1688_v8, %v12499_v63  ;;  %v12500_v59 = vmin.f32 %v10891_v17, -0.000100005  ;;  %v5001_v24 = vadd.f32 %v12501_v26, %v10970_v9  ;;  %v11022_v11 = vsel %vm4780_vm6, %v10887_v37, 0.0 }
 0x40e   :  { %v4861_v41 = vadd.f32 %v12502_v52, %v4859_v43  ;;  %v5141_v12 = vadd.f32 %v12503_v29, %v5139_v56  ;;  %v4700_v6 = vmul.f32 %v4636_v58, %v10779_v34  ;;  %v3045_v33 = vsub.f32 0.0, %v11004_v55 }
 0x40f   :  { %v4444_v57 = vmul.f32 %v4380_v16, %v12500_v59  ;;  %v11027_v15 = vadd.f32 %v1687_v54, %v12504_v60  ;;  %v6691_v17 = vpop.eup %6690  ;;  %v3163_v16 = vmin.f32 %v10951_v36, -0.000100005  ;;  %v11955_v31 = vsub.f32 0.0, %v11008_v0  ;;  %v12507_v36 = vld [vmem:[#allocation68_spill] sm:$0xff] }
 0x410   :  { %v11031_v9 = vadd.f32 %v12505_v22, %v4861_v41  ;;  %v11034_v10 = vadd.f32 %v12506_v32, %v5141_v12  ;;  %v4379_v37 = vmul.f32 %v4315_v25, %v4315_v25  ;;  %v4571_v45 = vmul.f32 %v3611_v7, %v3611_v7 }
 0x411   :  { %v2833_v47 = vadd.f32 1.0, %v6691_v17  ;;  %v5604_v34 = vpack.c.bf16 %v11012_v28, %v11027_v15  ;;  %v3355_v50 = vmin.f32 %v3291_v4, -0.000100005  ;;  %v11040_v49 = vmul.f32 %v10733_v27, %v4444_v57  ;;  %v11058_v27 = vld [vmem:[%s11866_s3 + $0x1b8] sm:$0xff] }
 0x412   :  { %v11043_v40 = vadd.f32 %v12507_v36, %v5001_v24  ;;  %v2836_v19 = vmul.f32 -0.5, %v6691_v17  ;;  %v6693_v14 = vpop.eup %6692  ;;  %v11051_v7 = vmul.f32 %v10747_v42, %v4700_v6  ;;  %v3487_v30 = vmul.f32 1.442695, %v3045_v33 }
 0x413   :  { %6694 = vlog2.f32 %v2833_v47  ;;  %5703 = vst [vmem:[#allocation2 + $0xb0] sm:$0xff] %v5604_v34   ;;  %v2135_v13 = vand.u32 2147483647, %v11027_v15  ;;  %v3489_v39 = vmul.f32 1.442695, %v11955_v31  ;;  %v2842_v58 = vadd.f32 1.0, %v6693_v14 }
 0x414   :  { %v2136_v21 = vand.u32 2147483647, %v11012_v28  ;;  %v6374_v42 = vunpack.i.l.bf16 %v6373_v44  ;;  %v4443_v8 = vmul.f32 %v4379_v37, %v3163_v16  ;;  %v4635_v3 = vmul.f32 %v4571_v45, %v3355_v50 }
 0x415   :  { %v11065_v23 = vsub.f32 1.0, %v11048_v5  ;;  %v2845_v1 = vmul.f32 -0.5, %v6693_v14  ;;  %v11068_v4 = vsub.f32 1.0, %v11058_v27  ;;  %v2837_v43 = vadd.f32 1.0, %v2836_v19 }
 0x416   :  { %6696 = vlog2.f32 %v2842_v58  ;;  %v6375_v56 = vunpack.i.h.bf16 %v6373_v44  ;;  %v2017_v25 = vsub.f32 0.0, %v10941_v38  ;;  %v2839_v54 = vand.u32 2147483647, %v6691_v17  ;;  %v12508_v44 = vld [vmem:[#allocation59_spill] sm:$0xff] }
 0x417   :  { %6698 = vpow2.f32 %v3487_v30  ;;  %v2199_v63 = vsub.f32 0.0, %v2135_v13  ;;  %v2018_v59 = vsub.f32 0.0, %v10945_v51  ;;  %v2200_v57 = vsub.f32 0.0, %v2136_v21  ;;  %v12510_v21 = vld [vmem:[#allocation58_spill] sm:$0xff] }
 0x418   :  { %6700 = vpow2.f32 %v3489_v39  ;;  %v1703_v26 = vmul.f32 %v6374_v42, %v7928_v48  ;;  %v4507_v52 = vmul.f32 %v10728_v53, %v4443_v8  ;;  %v4699_v41 = vmul.f32 %v4635_v3, %v10738_v46 }
 0x419   :  { %v6695_v24 = vpop.eup %6694  ;;  %v4129_v29 = vmul.f32 %v11065_v23, %v11065_v23  ;;  %v2846_v12 = vadd.f32 1.0, %v2845_v1  ;;  %v2838_v60 = vmul.f32 %v6691_v17, %v2837_v43  ;;  %v2848_v16 = vand.u32 2147483647, %v6693_v14 }
 0x41a   :  { %v2835_v6 = vmul.f32 0.6931472, %v6695_v24  ;;  %v1704_v22 = vmul.f32 %v6375_v56, %v7928_v48  ;;  %v4130_v32 = vmul.f32 %v11068_v4, %v11068_v4  ;;  %v2081_v37 = vmax.f32 %v2017_v25, 0.0 }
 0x41b   :  { %vm2840_vm2 = vcmp.lt.f32.partialorder %v2839_v54, 0.0004427343  ;;  %v2307_v45 = vmul.f32 1.442695, %v2199_v63  ;;  %v2082_v46 = vmax.f32 %v2018_v59, 0.0  ;;  %v11085_v50 = vadd.f32 %v1703_v26, %v12508_v44 }
 0x41c   :  { %v6697_v53 = vpop.eup %6696  ;;  %v2841_v47 = vsel %vm2840_vm2, %v2838_v60, %v2835_v6  ;;  %v2309_v34 = vmul.f32 1.442695, %v2200_v57  ;;  %v12509_v36 = vsub.f32 0.0, %v10800_v61  ;;  %v2847_v13 = vmul.f32 %v6693_v14, %v2846_v12 }
 0x41d   :  { %v6699_v17 = vpop.eup %6698  ;;  %v2844_v30 = vmul.f32 0.6931472, %v6697_v53  ;;  %6702 = vpow2.f32 %v2307_v45  ;;  %vm2849_vm3 = vcmp.lt.f32.partialorder %v2848_v16, 0.0004427343  ;;  %v11090_v58 = vadd.f32 %v2841_v47, %v2081_v37  ;;  %v11145_v47 = vpop.permute.xlu1 %6347 }
 0x41e   :  { %v3237_v19 = vsub.f32 %v12509_v36, %v11004_v55  ;;  %v6701_v39 = vpop.eup %6700  ;;  %6704 = vpow2.f32 %v2309_v34  ;;  %v11093_v42 = vadd.f32 %v1704_v22, %v12510_v21  ;;  %v4763_v8 = vmul.f32 %v10736_v2, %v4699_v41 }
 0x41f   :  { %v12511_v3 = vsub.f32 0.0, %v10803_v62  ;;  %vm3873_vm4 = vcmp.lt.f32.partialorder %v11048_v5, 1.0  ;;  %v2850_v61 = vsel %vm2849_vm3, %v2847_v13, %v2844_v30  ;;  %vm3874_vm5 = vcmp.lt.f32.partialorder %v11058_v27, 1.0  ;;  %v1943_v30 = vld [vmem:[%s11866_s3 + $0x160] sm:$0xff] }
 0x420   :  { %v4193_v14 = vmul.f32 %v4129_v29, %v11065_v23  ;;  %v11102_v43 = vadd.f32 %v2850_v61, %v2082_v46  ;;  %v5644_v56 = vpack.c.bf16 %v11093_v42, %v11085_v50  ;;  %v11108_v54 = vsel %vm4780_vm6, %v11040_v49, 0.0 }
 0x421   :  { %v3238_v1 = vsub.f32 %v12511_v3, %v11008_v0  ;;  %v11112_v2 = vsel %vm4780_vm6, %v11051_v7, 0.0  ;;  %v3557_v62 = vmax.f32 %v6699_v17, 0.0001  ;;  %v3558_v63 = vmax.f32 %v6701_v39, 0.0001  ;;  %v12515_v3 = vld [vmem:[#allocation14_spill] sm:$0xff] }
 0x422   :  { %v11115_v57 = vsel %vm4780_vm6, %v4507_v52, 0.0  ;;  %v3301_v26 = vmax.f32 %v3237_v19, -9.2103405  ;;  %v4194_v24 = vmul.f32 %v4130_v32, %v11068_v4  ;;  %v3041_v41 = vsub.f32 0.0, %v11090_v58  ;;  %5711 = vst [vmem:[#allocation2 + $0xf0] sm:$0xff] %v5644_v56  }
 0x423   :  { %v6703_v29 = vpop.eup %6702  ;;  %v11120_v12 = vsel %vm4780_vm6, %v4763_v8, 0.0  ;;  %v3302_v49 = vmax.f32 %v3238_v1, -9.2103405  ;;  %v11125_v7 = vsel %vm3873_vm4, 1.0, %v12173_v35  ;;  %v11130_v52 = vsel %vm3874_vm5, 1.0, %v12173_v35 }
 0x424   :  { %v6705_v6 = vpop.eup %6704  ;;  %v11134_v60 = vmax.f32 %v3045_v33, -9.2103405  ;;  %v11137_v16 = vmul.f32 %v4193_v14, %v11065_v23  ;;  %v11956_v22 = vsub.f32 0.0, %v11102_v43  ;;  %v11957_v32 = vsub.f32 0.0, %v11012_v28 }
 0x425   :  { %v11141_v37 = vmin.f32 %v3557_v62, 0.9999  ;;  %v11143_v45 = vmin.f32 %v3558_v63, 0.9999  ;;  %v2743_v53 = vadd.f32 1.0, %v6703_v29  ;;  %v2752_v46 = vadd.f32 1.0, %v6705_v6 }
 0x426   :  { %12512 = vst [vmem:[#allocation40_spill] sm:$0xff] %v11134_v60  ;;  %v3365_v34 = vmin.f32 %v3301_v26, -0.000100005  ;;  %v11148_v55 = vmul.f32 %v4194_v24, %v11068_v4  ;;  %v3479_v33 = vmul.f32 1.442695, %v3041_v41  ;;  %v2746_v23 = vmul.f32 -0.5, %v6703_v29 }
 0x427   :  { %12513 = vst [vmem:[#allocation70_spill] sm:$0xff] %v11141_v37  ;;  %v3366_v44 = vmin.f32 %v3302_v49, -0.000100005  ;;  %v11958_v17 = vsub.f32 0.0, %v11027_v15  ;;  %6706 = vlog2.f32 %v2743_v53  ;;  %v2755_v36 = vmul.f32 -0.5, %v6705_v6  ;;  %v11161_v4 = vld [vmem:[%s11866_s3 + $0x168] sm:$0xff] }
 0x428   :  { %12514 = vst [vmem:[#allocation31_spill] sm:$0xff] %v11143_v45  ;;  %v3481_v19 = vmul.f32 1.442695, %v11956_v22  ;;  %v2072_v13 = vmax.f32 %v11957_v32, 0.0  ;;  %6708 = vlog2.f32 %v2752_v46  ;;  %v4581_v21 = vmul.f32 %v11141_v37, %v11141_v37 }
 0x429   :  { %v4582_v8 = vmul.f32 %v11143_v45, %v11143_v45  ;;  %vm3671_vm7 = vcmp.eq.f32.partialorder %v1943_v30, 1.0  ;;  %vm3672_vm8 = vcmp.eq.f32.partialorder %v11161_v4, 1.0  ;;  %6710 = vpow2.f32 %v3479_v33 }
 0x42a   :  { %v5005_v1 = vadd.f32 %v12515_v3, %v11043_v40  ;;  %v2747_v61 = vadd.f32 1.0, %v2746_v23  ;;  %v4865_v14 = vadd.f32 %v10703_v20, %v11031_v9  ;;  %vm3863_vm9 = vcmp.lt.f32.partialorder %v1943_v30, 1.0 }
 0x42b   :  { %v2071_v56 = vmax.f32 %v11958_v17, 0.0  ;;  %v2749_v62 = vand.u32 2147483647, %v6703_v29  ;;  %v2756_v63 = vadd.f32 1.0, %v2755_v36  ;;  %6712 = vpow2.f32 %v3481_v19  ;;  %v12516_v36 = vld [vmem:[#allocation24_spill] sm:$0xff] }
 0x42c   :  { %v4055_v26 = vsub.f32 1.0, %v1943_v30  ;;  %v2758_v24 = vand.u32 2147483647, %v6705_v6  ;;  %v11178_v49 = vadd.f32 %v10713_v18, %v4865_v14  ;;  %v11180_v46 = vmul.f32 %v4581_v21, %v3365_v34 }
 0x42d   :  { %v6707_v53 = vpop.eup %6706  ;;  %v11184_v40 = vsel %vm3671_vm7, 1.0, %v12173_v35  ;;  %v11189_v20 = vsel %vm3672_vm8, 1.0, %v12173_v35  ;;  %v4056_v9 = vsub.f32 1.0, %v11161_v4  ;;  %v11192_v23 = vmul.f32 %v4582_v8, %v3366_v44 }
 0x42e   :  { %v6709_v33 = vpop.eup %6708  ;;  %v5007_v18 = vadd.f32 %v12516_v36, %v5005_v1  ;;  %v2745_v19 = vmul.f32 0.6931472, %v6707_v53  ;;  %v2748_v3 = vmul.f32 %v6703_v29, %v2747_v61  ;;  %v5008_v34 = vsel %vm4780_vm6, %v11184_v40, 0.0  ;;  %v12518_v36 = vld [vmem:[#allocation41_spill] sm:$0xff] }
 0x42f   :  { %vm2750_vm10 = vcmp.lt.f32.partialorder %v2749_v62, 0.0004427343  ;;  %v2754_v21 = vmul.f32 0.6931472, %v6709_v33  ;;  %v2757_v14 = vmul.f32 %v6705_v6, %v2756_v63  ;;  %v6711_v31 = vpop.eup %6710  ;;  %vm3864_vm11 = vcmp.lt.f32.partialorder %v11161_v4, 1.0  ;;  %v12517_v6 = vld [vmem:[#allocation44_spill] sm:$0xff] }
 0x430   :  { %v4119_v22 = vmul.f32 %v4055_v26, %v4055_v26  ;;  %v2751_v32 = vsel %vm2750_vm10, %v2748_v3, %v2745_v19  ;;  %vm2759_vm12 = vcmp.lt.f32.partialorder %v2758_v24, 0.0004427343  ;;  %v4120_v17 = vmul.f32 %v4056_v9, %v4056_v9  ;;  %v12520_v4 = vld [vmem:[#allocation61_spill] sm:$0xff] }
 0x431   :  { %v2760_v39 = vsel %vm2759_vm12, %v2757_v14, %v2754_v21  ;;  %v11198_v44 = vadd.f32 %v2751_v32, %v2071_v56  ;;  %v2151_v8 = vand.u32 2147483647, %v11085_v50  ;;  %v6713_v1 = vpop.eup %6712  ;;  %v11203_v29 = vsel %vm3863_vm9, 1.0, %v12173_v35 }
 0x432   :  { %v5009_v61 = vadd.f32 %v5008_v34, %v5007_v18  ;;  %v11205_v62 = vadd.f32 %v2760_v39, %v2072_v13  ;;  %v5145_v63 = vadd.f32 %v12517_v6, %v11034_v10  ;;  %v3553_v53 = vmax.f32 %v6711_v31, 0.0001 }
 0x433   :  { %v5010_v24 = vsel %vm4780_vm6, %v11189_v20, 0.0  ;;  %v3031_v32 = vsub.f32 0.0, %v11198_v44  ;;  %v2152_v56 = vand.u32 2147483647, %v11093_v42  ;;  %v3233_v30 = vsub.f32 %v2017_v25, %v11090_v58 }
 0x434   :  { %v3032_v33 = vsub.f32 0.0, %v11205_v62  ;;  %v11218_v13 = vadd.f32 %v12518_v36, %v5145_v63  ;;  %v6349_v39 = vunpack.i.l.bf16 %v11145_v47  ;;  %v3554_v10 = vmax.f32 %v6713_v1, 0.0001 }
 0x435   :  { %v4183_v31 = vmul.f32 %v4119_v22, %v4055_v26  ;;  %v4184_v18 = vmul.f32 %v4120_v17, %v4056_v9  ;;  %v2215_v19 = vsub.f32 0.0, %v2151_v8  ;;  %v11223_v3 = vmax.f32 %v3041_v41, -9.2103405 }
 0x436   :  { %v3234_v38 = vsub.f32 %v2018_v59, %v11102_v43  ;;  %v5011_v25 = vadd.f32 %v5010_v24, %v5009_v61  ;;  %v3459_v34 = vmul.f32 1.442695, %v3031_v32  ;;  %v3617_v21 = vmin.f32 %v3553_v53, 0.9999 }
 0x437   :  { %v11231_v14 = vsel %vm3864_vm11, 1.0, %v12173_v35  ;;  %v3461_v1 = vmul.f32 1.442695, %v3032_v33  ;;  %v2216_v22 = vsub.f32 0.0, %v2152_v56  ;;  %v3297_v17 = vmax.f32 %v3233_v30, -9.2103405 }
 0x438   :  { %6714 = vpow2.f32 %v3459_v34  ;;  %v12519_v58 = vunpack.i.h.bf16 %v11145_v47  ;;  %v1693_v8 = vmul.f32 %v6349_v39, %v7928_v48  ;;  %v3618_v51 = vmin.f32 %v3554_v10, 0.9999 }
 0x439   :  { %v11237_v59 = vmul.f32 %v4183_v31, %v4055_v26  ;;  %6716 = vpow2.f32 %v3461_v1  ;;  %v2339_v61 = vmul.f32 1.442695, %v2215_v19  ;;  %v3298_v6 = vmax.f32 %v3234_v38, -9.2103405  ;;  %v12523_v31 = vld [vmem:[#allocation56_spill] sm:$0xff] }
 0x43a   :  { %v1694_v41 = vmul.f32 %v12519_v58, %v7928_v48  ;;  %v4248_v63 = vmul.f32 %v4184_v18, %v4056_v9  ;;  %v5013_v53 = vadd.f32 %v12520_v4, %v5011_v25  ;;  %v11960_v24 = vsub.f32 0.0, %v11085_v50  ;;  %v12524_v9 = vld [vmem:[#allocation57_spill] sm:$0xff]  ;;  %v12526_v58 = vld [vmem:[#allocation62_spill] sm:$0xff] }
 0x43b   :  { %v4577_v30 = vmul.f32 %v3617_v21, %v3617_v21  ;;  %v12521_v47 = vsub.f32 0.0, %v11027_v15  ;;  %v2341_v34 = vmul.f32 1.442695, %v2216_v22  ;;  %v3361_v39 = vmin.f32 %v3297_v17, -0.000100005 }
 0x43c   :  { %v12522_v26 = vsub.f32 0.0, %v11012_v28  ;;  %v11249_v19 = vadd.f32 %v1693_v8, %v12523_v31  ;;  %v11252_v18 = vadd.f32 %v1694_v41, %v12524_v9  ;;  %v12525_v38 = vsub.f32 0.0, %v11102_v43 }
 0x43d   :  { %v3223_v36 = vsub.f32 %v12521_v47, %v11198_v44  ;;  %v4578_v1 = vmul.f32 %v3618_v51, %v3618_v51  ;;  %v11959_v15 = vsub.f32 0.0, %v11093_v42  ;;  %6718 = vpow2.f32 %v2339_v61 }
 0x43e   :  { %v3224_v10 = vsub.f32 %v12522_v26, %v11205_v62  ;;  %v11256_v25 = vmax.f32 %v12525_v38, -9.2103405  ;;  %v6715_v44 = vpop.eup %6714  ;;  %v3362_v22 = vmin.f32 %v3298_v6, -0.000100005  ;;  %v4321_v17 = vsub.f32 1.0, %v3617_v21  ;;  %v11270_v38 = vpop.permute.xlu1 %6362 }
 0x43f   :  { %v5015_v28 = vadd.f32 %v12526_v58, %v5013_v53  ;;  %v11262_v62 = vmax.f32 %v11960_v24, 0.0  ;;  %v6717_v8 = vpop.eup %6716  ;;  %v4641_v41 = vmul.f32 %v4577_v30, %v3361_v39  ;;  %v3287_v4 = vmax.f32 %v3223_v36, -9.2103405 }
 0x440   :  { %v3543_v47 = vmax.f32 %v6715_v44, 0.0001  ;;  %6720 = vpow2.f32 %v2341_v34  ;;  %v4322_v43 = vsub.f32 1.0, %v3618_v51  ;;  %v3288_v26 = vmax.f32 %v3224_v10, -9.2103405 }
 0x441   :  { %v3544_v31 = vmax.f32 %v6717_v8, 0.0001  ;;  %v5619_v61 = vpack.c.bf16 %v11252_v18, %v11249_v19  ;;  %v4642_v9 = vmul.f32 %v4578_v1, %v3362_v22  ;;  %v3095_v6 = vmax.f32 %v3031_v32, -9.2103405 }
 0x442   :  { %v3607_v21 = vmin.f32 %v3543_v47, 0.9999  ;;  %v11268_v53 = vmax.f32 %v11959_v15, 0.0  ;;  %v11272_v58 = vmul.f32 %v4321_v17, %v4321_v17  ;;  %v3096_v30 = vmax.f32 %v3032_v33, -9.2103405 }
 0x443   :  { %v3608_v36 = vmin.f32 %v3544_v31, 0.9999  ;;  %5706 = vst [vmem:[#allocation2 + $0xc8] sm:$0xff] %v5619_v61   ;;  %v11275_v34 = vpop.eup %6718  ;;  %v4705_v39 = vmul.f32 %v4641_v41, %v11137_v16  ;;  %v3351_v10 = vmin.f32 %v3287_v4, -0.000100005  ;;  %v11278_v44 = vmul.f32 %v4322_v43, %v4322_v43 }
 0x444   :  { %v4311_v32 = vsub.f32 1.0, %v3607_v21  ;;  %v4567_v1 = vmul.f32 %v3607_v21, %v3607_v21  ;;  %v3352_v22 = vmin.f32 %v3288_v26, -0.000100005  ;;  %v4706_v33 = vmul.f32 %v4642_v9, %v11148_v55  ;;  %v12528_v9 = vld [vmem:[#allocation65_spill] sm:$0xff] }
 0x445   :  { %12527 = vst [vmem:[#allocation52_spill] sm:$0xff] %v11278_v44  ;;  %v4312_v8 = vsub.f32 1.0, %v3608_v36  ;;  %v4568_v47 = vmul.f32 %v3608_v36, %v3608_v36  ;;  %v3159_v17 = vmin.f32 %v3095_v6, -0.000100005  ;;  %v3160_v15 = vmin.f32 %v3096_v30, -0.000100005 }
 0x446   :  { %v11280_v56 = vpop.eup %6720  ;;  %v4375_v31 = vmul.f32 %v4311_v32, %v4311_v32  ;;  %v4631_v61 = vmul.f32 %v4567_v1, %v3351_v10  ;;  %v2887_v16 = vadd.f32 1.0, %v11275_v34  ;;  %v11285_v41 = vmul.f32 %v11125_v7, %v4705_v39 }
 0x447   :  { %v4376_v51 = vmul.f32 %v4312_v8, %v4312_v8  ;;  %v4632_v24 = vmul.f32 %v4568_v47, %v3352_v22  ;;  %v2890_v26 = vmul.f32 -0.5, %v11275_v34  ;;  %v2896_v55 = vadd.f32 1.0, %v11280_v56 }
 0x448   :  { %v4439_v4 = vmul.f32 %v4375_v31, %v3159_v17  ;;  %v4695_v43 = vmul.f32 %v4631_v61, %v11237_v59  ;;  %v11291_v6 = vadd.f32 %v12528_v9, %v5015_v28  ;;  %v11294_v30 = vmul.f32 %v11130_v52, %v4706_v33 }
 0x449   :  { %v4440_v21 = vmul.f32 %v4376_v51, %v3160_v15  ;;  %v4696_v36 = vmul.f32 %v4632_v24, %v4248_v63  ;;  %v2893_v39 = vand.u32 2147483647, %v11275_v34  ;;  %6722 = vlog2.f32 %v2887_v16 }
 0x44a   :  { %v4503_v10 = vmul.f32 %v11184_v40, %v4439_v4  ;;  %v4759_v7 = vmul.f32 %v11203_v29, %v4695_v43  ;;  %v2899_v63 = vmul.f32 -0.5, %v11280_v56  ;;  %v2891_v28 = vadd.f32 1.0, %v2890_v26  ;;  %v1949_v40 = vld [vmem:[%s11866_s3 + $0x190] sm:$0xff]  ;;  %v6378_v29 = vpop.permute.xlu1 %6377 }
 0x44b   :  { %v4504_v59 = vmul.f32 %v11189_v20, %v4440_v21  ;;  %v4760_v32 = vmul.f32 %v11231_v14, %v4696_v36  ;;  %v2902_v52 = vand.u32 2147483647, %v11280_v56  ;;  %6724 = vlog2.f32 %v2896_v55  ;;  %v12529_v26 = vld [vmem:[#allocation42_spill] sm:$0xff]  ;;  %v12530_v36 = vld [vmem:[#allocation45_spill] sm:$0xff] }
 0x44c   :  { %v4868_v24 = vsel %vm4780_vm6, %v4503_v10, 0.0  ;;  %v5148_v15 = vsel %vm4780_vm6, %v4759_v7, 0.0  ;;  %vm3677_vm13 = vcmp.eq.f32.partialorder %v1949_v40, 1.0  ;;  %v2141_v22 = vand.u32 2147483647, %v11249_v19 }
 0x44d   :  { %v4869_v51 = vadd.f32 %v4868_v24, %v11178_v49  ;;  %v4870_v20 = vsel %vm4780_vm6, %v4504_v59, 0.0  ;;  %v5149_v14 = vadd.f32 %v5148_v15, %v11218_v13  ;;  %v5150_v1 = vsel %vm4780_vm6, %v4760_v32, 0.0  ;;  %v12531_v32 = vld [vmem:[#allocation13_spill] sm:$0xff] }
 0x44e   :  { %v2142_v8 = vand.u32 2147483647, %v11252_v18  ;;  %v6365_v47 = vunpack.i.h.bf16 %v11270_v38  ;;  %v6364_v31 = vunpack.i.l.bf16 %v11270_v38  ;;  %v6380_v61 = vunpack.i.h.bf16 %v6378_v29 }
 0x44f   :  { %v4871_v33 = vadd.f32 %v4870_v20, %v4869_v51  ;;  %v5151_v17 = vadd.f32 %v5150_v1, %v5149_v14  ;;  %v2205_v49 = vsub.f32 0.0, %v2141_v22  ;;  %v6379_v13 = vunpack.i.l.bf16 %v6378_v29  ;;  %v6723_v43 = vpop.eup %6722  ;;  %v12532_v51 = vld [vmem:[#allocation50_spill] sm:$0xff]  ;;  %v12533_v29 = vld [vmem:[#allocation51_spill] sm:$0xff] }
 0x450   :  { %v2206_v16 = vsub.f32 0.0, %v2142_v8  ;;  %v1700_v4 = vmul.f32 %v6365_v47, %v7928_v48  ;;  %v1699_v9 = vmul.f32 %v6364_v31, %v7928_v48  ;;  %v1706_v10 = vmul.f32 %v6380_v61, %v7928_v48  ;;  %v1950_v1 = vld [vmem:[%s11866_s3 + $0x198] sm:$0xff] }
 0x451   :  { %v4873_v21 = vadd.f32 %v12529_v26, %v4871_v33  ;;  %v5153_v55 = vadd.f32 %v12530_v36, %v5151_v17  ;;  %v2319_v7 = vmul.f32 1.442695, %v2205_v49  ;;  %v1705_v38 = vmul.f32 %v6379_v13, %v7928_v48  ;;  %v6725_v15 = vpop.eup %6724  ;;  %v12534_v22 = vld [vmem:[#allocation35_spill] sm:$0xff]  ;;  %v12536_v17 = vld [vmem:[#allocation46_spill] sm:$0xff] }
 0x452   :  { %v2321_v59 = vmul.f32 1.442695, %v2206_v16  ;;  %v11322_v24 = vadd.f32 %v1700_v4, %v12531_v32  ;;  %v11333_v8 = vadd.f32 %v1699_v9, %v12534_v22  ;;  %v12535_v47 = vld [vmem:[#allocation39_spill] sm:$0xff]  ;;  %vm3678_vm14 = vcmp.eq.f32.partialorder %v1950_v1, 1.0 }
 0x453   :  { %v4875_v20 = vadd.f32 %v12532_v51, %v4873_v21  ;;  %v11327_v14 = vadd.f32 %v12533_v29, %v5153_v55  ;;  %v11336_v33 = vadd.f32 %v1706_v10, %v12535_v47  ;;  %6726 = vpow2.f32 %v2319_v7  ;;  %v12541_v22 = vld [vmem:[#allocation27_spill] sm:$0xff] }
 0x454   :  { %v2148_v48 = vand.u32 2147483647, %v11322_v24  ;;  %v11340_v31 = vadd.f32 %v1705_v38, %v12536_v17  ;;  %v2900_v61 = vadd.f32 1.0, %v2899_v63  ;;  %6728 = vpow2.f32 %v2321_v59 }
 0x455   :  { %v5634_v49 = vpack.c.bf16 %v11322_v24, %v11333_v8  ;;  %v2147_v16 = vand.u32 2147483647, %v11333_v8  ;;  %vm11345_vm15 = vcmp.lt.f32.partialorder %v2893_v39, 0.0004427343  ;;  %vm11349_vm0 = vcmp.lt.f32.partialorder %v2902_v52, 0.0004427343 }
 0x456   :  { %v2212_v26 = vsub.f32 0.0, %v2148_v48  ;;  %v5649_v21 = vpack.c.bf16 %v11336_v33, %v11340_v31  ;;  %v2889_v36 = vmul.f32 0.6931472, %v6723_v43  ;;  %vm3869_vm1 = vcmp.lt.f32.partialorder %v1949_v40, 1.0 }
 0x457   :  { %v11355_v63 = vsub.f32 1.0, %v1949_v40  ;;  %5709 = vst [vmem:[#allocation2 + $0xe0] sm:$0xff] %v5634_v49   ;;  %v2211_v55 = vsub.f32 0.0, %v2147_v16  ;;  %v2892_v9 = vmul.f32 %v11275_v34, %v2891_v28  ;;  %v11360_v39 = vsel %vm3677_vm13, 1.0, %v12173_v35 }
 0x458   :  { %v11364_v52 = vsel %vm3678_vm14, 1.0, %v12173_v35  ;;  %v2333_v10 = vmul.f32 1.442695, %v2212_v26  ;;  %5712 = vst [vmem:[#allocation2 + $0xf8] sm:$0xff] %v5649_v21   ;;  %v2898_v7 = vmul.f32 0.6931472, %v6725_v15  ;;  %v2901_v43 = vmul.f32 %v11280_v56, %v2900_v61 }
 0x459   :  { %vm3870_vm2 = vcmp.lt.f32.partialorder %v1950_v1, 1.0  ;;  %v2331_v59 = vmul.f32 1.442695, %v2211_v55  ;;  %v6727_v32 = vpop.eup %6726  ;;  %v11368_v38 = vsel %vm3869_vm1, 1.0, %v12173_v35  ;;  %v11370_v34 = vsub.f32 1.0, %v1950_v1 }
 0x45a   :  { %6730 = vpow2.f32 %v2333_v10  ;;  %v2153_v28 = vand.u32 2147483647, %v11340_v31  ;;  %v6729_v40 = vpop.eup %6728  ;;  %v2895_v51 = vsel %vm11345_vm15, %v2892_v9, %v2889_v36  ;;  %v4125_v15 = vmul.f32 %v11355_v63, %v11355_v63  ;;  %5212 = dma.vmem_to_hbm [thread:$0]  %s5205_s6, 4096, %s5207_s29, [#allocation3], %s6813_s0, %s6813_s0, %s6814_s7  }
 0x45b   :  { %v2797_v29 = vadd.f32 1.0, %v6727_v32  ;;  %6732 = vpow2.f32 %v2331_v59  ;;  %v11378_v56 = vsel %vm3870_vm2, 1.0, %v12173_v35  ;;  %v5019_v47 = vadd.f32 %v12541_v22, %v11291_v6 }
 0x45c   :  { %v2800_v1 = vmul.f32 -0.5, %v6727_v32  ;;  %v2806_v48 = vadd.f32 1.0, %v6729_v40  ;;  %v2904_v17 = vsel %vm11349_vm0, %v2901_v43, %v2898_v7  ;;  %v5020_v61 = vsel %vm4780_vm6, %v11360_v39, 0.0 }
 0x45d   :  { %6734 = vlog2.f32 %v2797_v29  ;;  %v2809_v49 = vmul.f32 -0.5, %v6729_v40  ;;  %v11387_v16 = vadd.f32 %v2895_v51, %v11262_v62  ;;  %v4126_v4 = vmul.f32 %v11370_v34, %v11370_v34 }
 0x45e   :  { %6736 = vlog2.f32 %v2806_v48  ;;  %v2217_v26 = vsub.f32 0.0, %v2153_v28  ;;  %v4189_v6 = vmul.f32 %v4125_v15, %v11355_v63  ;;  %v11394_v21 = vsel %vm4780_vm6, %v11364_v52, 0.0 }
 0x45f   :  { %12542 = vst [vmem:[#allocation64_spill] sm:$0xff] %v11387_v16  ;;  %v11961_v13 = vsub.f32 0.0, %v11249_v19  ;;  %v4877_v36 = vadd.f32 %v11115_v57, %v4875_v20  ;;  %v11399_v9 = vadd.f32 %v2904_v17, %v11268_v53  ;;  %v11401_v62 = vadd.f32 %v5020_v61, %v5019_v47 }
 0x460   :  { %v6731_v55 = vpop.eup %6730  ;;  %v2801_v10 = vadd.f32 1.0, %v2800_v1  ;;  %v2803_v7 = vand.u32 2147483647, %v6727_v32  ;;  %v2810_v59 = vadd.f32 1.0, %v2809_v49  ;;  %v5157_v51 = vadd.f32 %v11120_v12, %v11327_v14 }
 0x461   :  { %12543 = vst [vmem:[#allocation53_spill] sm:$0xff] %v11399_v9  ;;  %v6733_v43 = vpop.eup %6732  ;;  %v11404_v28 = vadd.f32 %v11108_v54, %v4877_v36  ;;  %v2860_v15 = vadd.f32 1.0, %v6731_v55  ;;  %v12544_v57 = vsub.f32 0.0, %v11085_v50  ;;  %v2812_v53 = vand.u32 2147483647, %v6729_v40 }
 0x462   :  { %v2851_v29 = vadd.f32 1.0, %v6733_v43  ;;  %v2343_v22 = vmul.f32 1.442695, %v2217_v26  ;;  %v2077_v1 = vmax.f32 %v11961_v13, 0.0  ;;  %v11416_v48 = vadd.f32 %v11112_v2, %v5157_v51 }
 0x463   :  { %v11411_v20 = vsub.f32 %v12544_v57, %v11387_v16  ;;  %v6735_v47 = vpop.eup %6734  ;;  %6738 = vlog2.f32 %v2860_v15  ;;  %v2863_v54 = vmul.f32 -0.5, %v6731_v55  ;;  %v12545_v12 = vsub.f32 0.0, %v11252_v18 }
 0x464   :  { %v6737_v17 = vpop.eup %6736  ;;  %v2799_v61 = vmul.f32 0.6931472, %v6735_v47  ;;  %v2802_v50 = vmul.f32 %v6727_v32, %v2801_v10  ;;  %6740 = vlog2.f32 %v2851_v29  ;;  %vm2804_vm3 = vcmp.lt.f32.partialorder %v2803_v7, 0.0004427343 }
 0x465   :  { %v2078_v14 = vmax.f32 %v12545_v12, 0.0  ;;  %v2808_v49 = vmul.f32 0.6931472, %v6737_v17  ;;  %v2811_v36 = vmul.f32 %v6729_v40, %v2810_v59  ;;  %v2854_v26 = vmul.f32 -0.5, %v6733_v43 }
 0x466   :  { %v2805_v57 = vsel %vm2804_vm3, %v2802_v50, %v2799_v61  ;;  %vm2813_vm4 = vcmp.lt.f32.partialorder %v2812_v53, 0.0004427343  ;;  %v2864_v60 = vadd.f32 1.0, %v2863_v54  ;;  %6742 = vpow2.f32 %v2343_v22 }
 0x467   :  { %v12546_v2 = vsub.f32 0.0, %v11093_v42  ;;  %v2814_v15 = vsel %vm2813_vm4, %v2811_v36, %v2808_v49  ;;  %v11423_v13 = vadd.f32 %v2805_v57, %v2077_v1  ;;  %v2866_v45 = vand.u32 2147483647, %v6731_v55  ;;  %v11445_v36 = vld [vmem:[%s11866_s3 + $0x1c0] sm:$0xff] }
 0x468   :  { %v11965_v47 = vsub.f32 0.0, %v11387_v16  ;;  %v4190_v32 = vmul.f32 %v4126_v4, %v11370_v34  ;;  %v11427_v10 = vadd.f32 %v2814_v15, %v2078_v14  ;;  %v11963_v40 = vsub.f32 0.0, %v11322_v24 }
 0x469   :  { %v3240_v51 = vsub.f32 %v12546_v2, %v11399_v9  ;;  %v6739_v7 = vpop.eup %6738  ;;  %v3303_v59 = vmax.f32 %v11411_v20, -9.2103405  ;;  %v3037_v53 = vsub.f32 0.0, %v11423_v13  ;;  %v11966_v42 = vsub.f32 0.0, %v11333_v8 }
 0x46a   :  { %v2855_v29 = vadd.f32 1.0, %v2854_v26  ;;  %v6741_v22 = vpop.eup %6740  ;;  %v11967_v1 = vsub.f32 0.0, %v11427_v10  ;;  %v2857_v54 = vand.u32 2147483647, %v6733_v43  ;;  %v2862_v17 = vmul.f32 0.6931472, %v6739_v7 }
 0x46b   :  { %v2865_v12 = vmul.f32 %v6731_v55, %v2864_v60  ;;  %v3304_v61 = vmax.f32 %v3240_v51, -9.2103405  ;;  %v11435_v4 = vmul.f32 %v4189_v6, %v11355_v63  ;;  %v3471_v14 = vmul.f32 1.442695, %v3037_v53  ;;  %v11450_v60 = vld [vmem:[%s11866_s3 + $0x1c8] sm:$0xff] }
 0x46c   :  { %vm2867_vm5 = vcmp.lt.f32.partialorder %v2866_v45, 0.0004427343  ;;  %v11437_v50 = vpop.eup %6742  ;;  %v11964_v20 = vsub.f32 0.0, %v11399_v9  ;;  %v3473_v49 = vmul.f32 1.442695, %v11967_v1  ;;  %v2084_v45 = vmax.f32 %v11963_v40, 0.0 }
 0x46d   :  { %v2868_v63 = vsel %vm2867_vm5, %v2865_v12, %v2862_v17  ;;  %6744 = vpow2.f32 %v3471_v14  ;;  %v2853_v6 = vmul.f32 0.6931472, %v6741_v22  ;;  %v2856_v55 = vmul.f32 %v6733_v43, %v2855_v29 }
 0x46e   :  { %v11968_v26 = vsub.f32 0.0, %v11340_v31  ;;  %6746 = vpow2.f32 %v3473_v49  ;;  %v2083_v57 = vmax.f32 %v11966_v42, 0.0  ;;  %vm2858_vm7 = vcmp.lt.f32.partialorder %v2857_v54, 0.0004427343 }
 0x46f   :  { %v11457_v2 = vadd.f32 %v2868_v63, %v2084_v45  ;;  %v4067_v51 = vsub.f32 1.0, %v11445_v36  ;;  %v4068_v15 = vsub.f32 1.0, %v11450_v60  ;;  %v2859_v7 = vsel %vm2858_vm7, %v2856_v55, %v2853_v6 }
 0x470   :  { %v2905_v40 = vadd.f32 1.0, %v11437_v50  ;;  %v3491_v22 = vmul.f32 1.442695, %v11965_v47  ;;  %v12547_v43 = vsub.f32 0.0, %v11249_v19  ;;  %v11467_v17 = vadd.f32 %v2859_v7, %v2083_v57 }
 0x471   :  { %v11969_v54 = vsub.f32 0.0, %v11457_v2  ;;  %v11472_v12 = vmul.f32 1.442695, %v11964_v20  ;;  %v4254_v14 = vmul.f32 %v4190_v32, %v11370_v34  ;;  %v12548_v49 = vsub.f32 0.0, %v11252_v18 }
 0x472   :  { %v3229_v29 = vsub.f32 %v12547_v43, %v11423_v13  ;;  %v2154_v63 = vand.u32 2147483647, %v11336_v33  ;;  %v11479_v6 = vmin.f32 %v3303_v59, -0.000100005  ;;  %v11481_v19 = vmin.f32 %v3304_v61, -0.000100005 }
 0x473   :  { %v3230_v45 = vsub.f32 %v12548_v49, %v11427_v10  ;;  %v11970_v13 = vsub.f32 0.0, %v11336_v33  ;;  %6748 = vlog2.f32 %v2905_v40  ;;  %v6745_v55 = vpop.eup %6744  ;;  %v4131_v57 = vmul.f32 %v4067_v51, %v4067_v51 }
 0x474   :  { %v4132_v7 = vmul.f32 %v4068_v15, %v4068_v15  ;;  %v11487_v34 = vmax.f32 %v11968_v26, 0.0  ;;  %v6747_v18 = vpop.eup %6746  ;;  %6750 = vpow2.f32 %v3491_v22  ;;  %v3293_v32 = vmax.f32 %v3229_v29, -9.2103405 }
 0x475   :  { %v3549_v49 = vmax.f32 %v6745_v55, 0.0001  ;;  %v3485_v59 = vmul.f32 1.442695, %v11969_v54  ;;  %v3294_v61 = vmax.f32 %v3230_v45, -9.2103405  ;;  %v4195_v22 = vmul.f32 %v4131_v57, %v4067_v51 }
 0x476   :  { %v3550_v20 = vmax.f32 %v6747_v18, 0.0001  ;;  %v2218_v47 = vsub.f32 0.0, %v2154_v63  ;;  %v2908_v40 = vmul.f32 -0.5, %v11437_v50  ;;  %v3101_v42 = vmax.f32 %v3037_v53, -9.2103405 }
 0x477   :  { %v3613_v1 = vmin.f32 %v3549_v49, 0.9999  ;;  %v11494_v43 = vmax.f32 %v11970_v13, 0.0  ;;  %vm3681_vm8 = vcmp.eq.f32.partialorder %v11048_v5, 1.0  ;;  %v4196_v29 = vmul.f32 %v4132_v7, %v4068_v15 }
 0x478   :  { %v11497_v26 = vmin.f32 %v3550_v20, 0.9999  ;;  %v12549_v55 = vsub.f32 0.0, %v11467_v17  ;;  %vm3682_vm9 = vcmp.eq.f32.partialorder %v11058_v27, 1.0  ;;  %v3357_v63 = vmin.f32 %v3293_v32, -0.000100005 }
 0x479   :  { %v6749_v45 = vpop.eup %6748  ;;  %v4317_v18 = vsub.f32 1.0, %v3613_v1  ;;  %v4573_v53 = vmul.f32 %v3613_v1, %v3613_v1  ;;  %6752 = vpow2.f32 %v3485_v59  ;;  %v3358_v49 = vmin.f32 %v3294_v61, -0.000100005  ;;  %v11512_v1 = vld [vmem:[%s11866_s3 + $0x1d0] sm:$0xff] }
 0x47a   :  { %v3483_v54 = vmul.f32 1.442695, %v12549_v55  ;;  %v4574_v13 = vmul.f32 %v11497_v26, %v11497_v26  ;;  %v2345_v9 = vmul.f32 1.442695, %v2218_v47  ;;  %v2909_v16 = vadd.f32 1.0, %v2908_v40  ;;  %v11504_v20 = vpop.eup %6750  ;;  %v11517_v47 = vld [vmem:[%s11866_s3 + $0x1d8] sm:$0xff] }
 0x47b   :  { %v3165_v57 = vmin.f32 %v3101_v42, -0.000100005  ;;  %v4381_v7 = vmul.f32 %v4317_v18, %v4317_v18  ;;  %v4637_v0 = vmul.f32 %v4573_v53, %v3357_v63  ;;  %v2911_v55 = vand.u32 2147483647, %v11437_v50 }
 0x47c   :  { %v4638_v37 = vmul.f32 %v4574_v13, %v3358_v49  ;;  %v11507_v44 = vmul.f32 %v4195_v22, %v4067_v51  ;;  %6754 = vpow2.f32 %v3483_v54  ;;  %v2907_v32 = vmul.f32 0.6931472, %v6749_v45  ;;  %v11532_v22 = vld [vmem:[%s11866_s3 + $0x1e0] sm:$0xff] }
 0x47d   :  { %v12550_v42 = vsub.f32 0.0, %v11427_v10  ;;  %v4445_v61 = vmul.f32 %v4381_v7, %v3165_v57  ;;  %v4701_v51 = vmul.f32 %v4637_v0, %v11435_v4  ;;  %v11524_v13 = vmul.f32 %v4196_v29, %v4068_v15 }
 0x47e   :  { %vm3685_vm10 = vcmp.eq.f32.partialorder %v11512_v1, 1.0  ;;  %vm3686_vm11 = vcmp.eq.f32.partialorder %v11517_v47, 1.0  ;;  %v4702_v54 = vmul.f32 %v4638_v37, %v4254_v14  ;;  %6756 = vpow2.f32 %v2345_v9 }
 0x47f   :  { %v11521_v59 = vmax.f32 %v12550_v42, -9.2103405  ;;  %v2910_v40 = vmul.f32 %v11437_v50, %v2909_v16  ;;  %vm3683_vm12 = vcmp.eq.f32.partialorder %v11445_v36, 1.0  ;;  %v6753_v10 = vpop.eup %6752  ;;  %v4509_v0 = vmul.f32 %v11360_v39, %v4445_v61  ;;  %v12558_v61 = vld [vmem:[#allocation43_spill] sm:$0xff] }
 0x480   :  { %v4765_v4 = vmul.f32 %v11368_v38, %v4701_v51  ;;  %v12551_v15 = vsub.f32 0.0, %v11322_v24  ;;  %vm11540_vm13 = vcmp.lt.f32.partialorder %v2911_v55, 0.0004427343  ;;  %vm3687_vm14 = vcmp.eq.f32.partialorder %v11532_v22, 1.0  ;;  %v11554_v24 = vld [vmem:[%s11866_s3 + $0x1e8] sm:$0xff]  ;;  %v11559_v38 = vld [vmem:[%s11866_s3 + $0x1f0] sm:$0xff] }
 0x481   :  { %v4766_v16 = vmul.f32 %v11378_v56, %v4702_v54  ;;  %v12554_v9 = vsub.f32 0.0, %v11333_v8  ;;  %v2913_v39 = vsel %vm11540_vm13, %v2910_v40, %v2907_v32  ;;  %v11564_v56 = vld [vmem:[%s11866_s3 + $0x1f8] sm:$0xff]  ;;  %vm3684_vm15 = vcmp.eq.f32.partialorder %v11450_v60, 1.0 }
 0x482   :  { %v3236_v29 = vsub.f32 %v12551_v15, %v11457_v2  ;;  %v3166_v8 = vmin.f32 %v11521_v59, -0.000100005  ;;  %v4880_v14 = vsel %vm4780_vm6, %v4509_v0, 0.0  ;;  %v5160_v45 = vsel %vm4780_vm6, %v4765_v4, 0.0  ;;  %v6755_v18 = vpop.eup %6754  ;;  %v12557_v59 = vld [vmem:[#allocation15_spill] sm:$0xff] }
 0x483   :  { %v3235_v50 = vsub.f32 %v12554_v9, %v11467_v17  ;;  %vm3688_vm0 = vcmp.eq.f32.partialorder %v11554_v24, 1.0  ;;  %vm3689_vm1 = vcmp.eq.f32.partialorder %v11559_v38, 1.0  ;;  %vm3690_vm2 = vcmp.eq.f32.partialorder %v11564_v56, 1.0 }
 0x484   :  { %v5023_v63 = vadd.f32 %v11394_v21, %v11401_v62  ;;  %v11576_v53 = vadd.f32 %v4880_v14, %v11404_v28  ;;  %v5161_v49 = vadd.f32 %v5160_v45, %v11416_v48  ;;  %v3556_v57 = vmax.f32 %v6753_v10, 0.0001  ;;  %v11593_v62 = vpop.eup %6756 }
 0x485   :  { %v11582_v7 = vsel %vm3681_vm8, 1.0, %v12173_v35  ;;  %v5162_v55 = vsel %vm4780_vm6, %v4766_v16, 0.0  ;;  %v3300_v32 = vmax.f32 %v3236_v29, -9.2103405  ;;  %v11586_v42 = vadd.f32 %v2913_v39, %v11487_v34 }
 0x486   :  { %v11591_v21 = vsel %vm3682_vm9, 1.0, %v12173_v35  ;;  %v11595_v28 = vadd.f32 %v5162_v55, %v5161_v49  ;;  %v3299_v48 = vmax.f32 %v3235_v50, -9.2103405  ;;  %v5024_v5 = vsel %vm4780_vm6, %v12557_v59, 0.0 }
 0x487   :  { %12555 = vst [vmem:[#allocation28_spill] sm:$0xff] %v11586_v42  ;;  %v5026_v51 = vsel %vm4780_vm6, %v12558_v61, 0.0  ;;  %v4318_v54 = vsub.f32 1.0, %v11497_v26  ;;  %v12559_v34 = vsub.f32 0.0, %v11457_v2  ;;  %v3555_v27 = vmax.f32 %v6755_v18, 0.0001 }
 0x488   :  { %12556 = vst [vmem:[#allocation12_spill] sm:$0xff] %v11591_v21  ;;  %v5025_v10 = vadd.f32 %v5024_v5, %v5023_v63  ;;  %v11606_v0 = vmin.f32 %v3556_v57, 0.9999  ;;  %v11611_v4 = vsel %vm3683_vm12, 1.0, %v12173_v35  ;;  %v11616_v15 = vsel %vm3684_vm15, 1.0, %v12173_v35 }
 0x489   :  { %v11604_v40 = vmax.f32 %v12559_v34, -9.2103405  ;;  %12560 = vst [vmem:[#allocation69_spill] sm:$0xff] %v11611_v4  ;;  %v5028_v26 = vsel %vm4780_vm6, %v11582_v7, 0.0  ;;  %v3364_v2 = vmin.f32 %v3300_v32, -0.000100005  ;;  %6758 = vpow2.f32 %v11472_v12 }
 0x48a   :  { %12561 = vst [vmem:[#allocation8_spill] sm:$0xff] %v11616_v15  ;;  %v11975_v29 = vsub.f32 0.0, %v11586_v42  ;;  %v5027_v37 = vadd.f32 %v5026_v51, %v5025_v10  ;;  %v3363_v16 = vmin.f32 %v3299_v48, -0.000100005  ;;  %v11625_v9 = vsel %vm3685_vm10, 1.0, %v12173_v35 }
 0x48b   :  { %12562 = vst [vmem:[#allocation20_spill] sm:$0xff] %v11625_v9  ;;  %v11630_v50 = vsel %vm3686_vm11, 1.0, %v12173_v35  ;;  %v5030_v39 = vsel %vm4780_vm6, %v11591_v21, 0.0  ;;  %v4382_v14 = vmul.f32 %v4318_v54, %v4318_v54  ;;  %v11634_v45 = vmin.f32 %v3555_v27, 0.9999 }
 0x48c   :  { %12563 = vst [vmem:[#allocation48_spill] sm:$0xff] %v11630_v50  ;;  %v5029_v63 = vadd.f32 %v5028_v26, %v5027_v37  ;;  %v2914_v12 = vadd.f32 1.0, %v11593_v62  ;;  %v4580_v18 = vmul.f32 %v11606_v0, %v11606_v0  ;;  %v11642_v49 = vsel %vm3687_vm14, 1.0, %v12173_v35 }
 0x48d   :  { %12564 = vst [vmem:[#allocation19_spill] sm:$0xff] %v11642_v49  ;;  %v5032_v57 = vsel %vm4780_vm6, %v11611_v4, 0.0  ;;  %v2917_v55 = vmul.f32 -0.5, %v11593_v62  ;;  %v12565_v32 = vsub.f32 0.0, %v11340_v31  ;;  %v3495_v5 = vmul.f32 1.442695, %v11975_v29 }
 0x48e   :  { %v5031_v59 = vadd.f32 %v5030_v39, %v5029_v63  ;;  %6760 = vlog2.f32 %v2914_v12  ;;  %v11655_v61 = vsel %vm3688_vm0, 1.0, %v12173_v35  ;;  %v11660_v51 = vsel %vm3689_vm1, 1.0, %v12173_v35 }
 0x48f   :  { %v3241_v48 = vsub.f32 %v12565_v32, %v11586_v42  ;;  %v11665_v31 = vsel %vm3690_vm2, 1.0, %v12173_v35  ;;  %v5034_v54 = vsel %vm4780_vm6, %v11616_v15, 0.0  ;;  %v6759_v34 = vpop.eup %6758  ;;  %v11669_v27 = vmul.f32 %v4382_v14, %v3166_v8 }
 0x490   :  { %v4579_v10 = vmul.f32 %v11634_v45, %v11634_v45  ;;  %v4069_v26 = vsub.f32 1.0, %v11512_v1  ;;  %v5033_v37 = vadd.f32 %v5032_v57, %v5031_v59  ;;  %v4644_v39 = vmul.f32 %v4580_v18, %v3364_v2 }
 0x491   :  { %v5036_v63 = vsel %vm4780_vm6, %v11625_v9, 0.0  ;;  %v2918_v12 = vadd.f32 1.0, %v2917_v55  ;;  %6762 = vpow2.f32 %v3495_v5  ;;  %v3305_v32 = vmax.f32 %v3241_v48, -9.2103405 }
 0x492   :  { %v4070_v29 = vsub.f32 1.0, %v11517_v47  ;;  %v5035_v42 = vadd.f32 %v5034_v54, %v5033_v37  ;;  %v2920_v15 = vand.u32 2147483647, %v11593_v62  ;;  %v11679_v8 = vsub.f32 1.0, %v11532_v22 }
 0x493   :  { %v11682_v14 = vsub.f32 1.0, %v11554_v24  ;;  %v11685_v57 = vsub.f32 1.0, %v11559_v38  ;;  %v5038_v2 = vsel %vm4780_vm6, %v11630_v50, 0.0  ;;  %v4643_v48 = vmul.f32 %v4579_v10, %v3363_v16 }
 0x494   :  { %v6761_v18 = vpop.eup %6760  ;;  %v11691_v59 = vsub.f32 1.0, %v11564_v56  ;;  %v5037_v5 = vadd.f32 %v5036_v63, %v5035_v42  ;;  %v11694_v54 = vmul.f32 %v4644_v39, %v11524_v13  ;;  %v5040_v37 = vsel %vm4780_vm6, %v11642_v49, 0.0 }
 0x495   :  { %v2916_v9 = vmul.f32 0.6931472, %v6761_v18  ;;  %v2919_v4 = vmul.f32 %v11593_v62, %v2918_v12  ;;  %v5042_v50 = vsel %vm4780_vm6, %v11655_v61, 0.0  ;;  %v5044_v16 = vsel %vm4780_vm6, %v11660_v51, 0.0 }
 0x496   :  { %v5039_v21 = vadd.f32 %v5038_v2, %v5037_v5  ;;  %vm2921_vm3 = vcmp.lt.f32.partialorder %v2920_v15, 0.0004427343  ;;  %v3559_v42 = vmax.f32 %v11504_v20, 0.0001  ;;  %v3560_v13 = vmax.f32 %v6759_v34, 0.0001 }
 0x497   :  { %v6763_v10 = vpop.eup %6762  ;;  %v2922_v55 = vsel %vm2921_vm3, %v2919_v4, %v2916_v9  ;;  %v4133_v39 = vmul.f32 %v4069_v26, %v4069_v26  ;;  %v4707_v63 = vmul.f32 %v4643_v48, %v11507_v44  ;;  %v4134_v62 = vmul.f32 %v4070_v29, %v4070_v29 }
 0x498   :  { %v5041_v49 = vadd.f32 %v5040_v37, %v5039_v21  ;;  %v11706_v18 = vadd.f32 %v2922_v55, %v11494_v43  ;;  %v5046_v12 = vsel %vm4780_vm6, %v11665_v31, 0.0  ;;  %v3369_v2 = vmin.f32 %v3305_v32, -0.000100005 }
 0x499   :  { %vm3875_vm4 = vcmp.lt.f32.partialorder %v11445_v36, 1.0  ;;  %vm3876_vm5 = vcmp.lt.f32.partialorder %v11450_v60, 1.0  ;;  %v3561_v15 = vmax.f32 %v6763_v10, 0.0001  ;;  %v4135_v44 = vmul.f32 %v11679_v8, %v11679_v8 }
 0x49a   :  { %v5043_v4 = vadd.f32 %v5042_v50, %v5041_v49  ;;  %v3050_v20 = vsub.f32 0.0, %v11706_v18  ;;  %v11715_v21 = vmin.f32 %v3559_v42, 0.9999  ;;  %v11717_v43 = vmin.f32 %v3560_v13, 0.9999 }
 0x49b   :  { %vm3877_vm7 = vcmp.lt.f32.partialorder %v11512_v1, 1.0  ;;  %v4197_v9 = vmul.f32 %v4133_v39, %v4069_v26  ;;  %v4136_v50 = vmul.f32 %v11682_v14, %v11682_v14  ;;  %v4198_v49 = vmul.f32 %v4134_v62, %v4070_v29 }
 0x49c   :  { %v5045_v34 = vadd.f32 %v5044_v16, %v5043_v4  ;;  %v3497_v32 = vmul.f32 1.442695, %v3050_v20  ;;  %vm3878_vm8 = vcmp.lt.f32.partialorder %v11517_v47, 1.0  ;;  %vm3879_vm9 = vcmp.lt.f32.partialorder %v11532_v22, 1.0 }
 0x49d   :  { %v4137_v55 = vmul.f32 %v11685_v57, %v11685_v57  ;;  %v4138_v48 = vmul.f32 %v11691_v59, %v11691_v59  ;;  %v11730_v37 = vmin.f32 %v3561_v15, 0.9999  ;;  %v4199_v16 = vmul.f32 %v4135_v44, %v11679_v8  ;;  %v12567_v15 = vld [vmem:[#allocation66_spill] sm:$0xff] }
 0x49e   :  { %v5047_v5 = vadd.f32 %v5046_v12, %v5045_v34  ;;  %6764 = vpow2.f32 %v3497_v32  ;;  %vm3880_vm10 = vcmp.lt.f32.partialorder %v11554_v24, 1.0  ;;  %v5353_v10 = vsel %vm3875_vm4, 1.0, %v12173_v35 }
 0x49f   :  { %v4261_v42 = vmul.f32 %v4197_v9, %v4069_v26  ;;  %v4583_v13 = vmul.f32 %v11715_v21, %v11715_v21  ;;  %v12566_v39 = vsub.f32 0.0, %v11336_v33  ;;  %vm3881_vm11 = vcmp.lt.f32.partialorder %v11559_v38, 1.0 }
 0x4a0   :  { %5048 = vadd.xlane.f32.xlu0 %v5047_v5  ;;  %v4200_v12 = vmul.f32 %v4136_v50, %v11682_v14  ;;  %v4262_v4 = vmul.f32 %v4198_v49, %v4070_v29  ;;  %v5165_v44 = vadd.f32 %v12567_v15, %v11595_v28  ;;  %v5354_v36 = vsel %vm3876_vm5, 1.0, %v12173_v35 }
 0x4a1   :  { %v3242_v62 = vsub.f32 %v12566_v39, %v11706_v18  ;;  %v5355_v26 = vsel %vm3877_vm7, 1.0, %v12173_v35  ;;  %v4201_v9 = vmul.f32 %v4137_v55, %v11685_v57  ;;  %v4584_v33 = vmul.f32 %v11717_v43, %v11717_v43 }
 0x4a2   :  { %v4202_v34 = vmul.f32 %v4138_v48, %v11691_v59  ;;  %v4263_v29 = vmul.f32 %v4199_v16, %v11679_v8  ;;  %v4585_v28 = vmul.f32 %v11730_v37, %v11730_v37  ;;  %v5167_v32 = vadd.f32 %v11022_v11, %v5165_v44 }
 0x4a3   :  { %v4647_v60 = vmul.f32 %v4583_v13, %v11479_v6  ;;  %v4709_v50 = vmul.f32 %v11180_v46, %v4261_v42  ;;  %v4771_v1 = vmul.f32 %v5353_v10, %v4707_v63  ;;  %v5168_v49 = vsel %vm4780_vm6, %v11285_v41, 0.0 }
 0x4a4   :  { %v6765_v55 = vpop.eup %6764  ;;  %v3306_v5 = vmax.f32 %v3242_v62, -9.2103405  ;;  %v4264_v39 = vmul.f32 %v4200_v12, %v11682_v14  ;;  %v4710_v48 = vmul.f32 %v11192_v23, %v4262_v4  ;;  %v5169_v8 = vadd.f32 %v5168_v49, %v5167_v32 }
 0x4a5   :  { %v3562_v16 = vmax.f32 %v6765_v55, 0.0001  ;;  %v4648_v15 = vmul.f32 %v4584_v33, %v11481_v19  ;;  %v4772_v11 = vmul.f32 %v5354_v36, %v11694_v54  ;;  %v5170_v6 = vsel %vm4780_vm6, %v11294_v30, 0.0 }
 0x4a6   :  { %v5356_v46 = vsel %vm3878_vm8, 1.0, %v12173_v35  ;;  %v4265_v41 = vmul.f32 %v4201_v9, %v11685_v57  ;;  %v4649_v63 = vmul.f32 %v4585_v28, %v3369_v2  ;;  %v5171_v10 = vadd.f32 %v5170_v6, %v5169_v8 }
 0x4a7   :  { %v11774_v14 = vmin.f32 %v3562_v16, 0.9999  ;;  %v4711_v23 = vmul.f32 %v4647_v60, %v4263_v29  ;;  %v4773_v42 = vmul.f32 %v5355_v26, %v4709_v50  ;;  %v5172_v13 = vsel %vm4780_vm6, %v4771_v1, 0.0 }
 0x4a8   :  { %v3370_v19 = vmin.f32 %v3306_v5, -0.000100005  ;;  %v5357_v54 = vsel %vm3879_vm9, 1.0, %v12173_v35  ;;  %v4266_v30 = vmul.f32 %v4202_v34, %v11691_v59  ;;  %v5173_v62 = vadd.f32 %v5172_v13, %v5171_v10  ;;  %v12576_v10 = vld [vmem:[#allocation64_spill] sm:$0xff] }
 0x4a9   :  { %v4586_v47 = vmul.f32 %v11774_v14, %v11774_v14  ;;  %v4712_v57 = vmul.f32 %v4648_v15, %v4264_v39  ;;  %v4774_v2 = vmul.f32 %v5356_v46, %v4710_v48  ;;  %v5174_v12 = vsel %vm4780_vm6, %v4772_v11, 0.0 }
 0x4aa   :  { %vm3882_vm12 = vcmp.lt.f32.partialorder %v11564_v56, 1.0  ;;  %v5358_v4 = vsel %vm3880_vm10, 1.0, %v12173_v35  ;;  %v4713_v44 = vmul.f32 %v4649_v63, %v4265_v41  ;;  %v5175_v36 = vadd.f32 %v5174_v12, %v5173_v62  ;;  %v12572_v56 = vld [vmem:[#allocation70_spill] sm:$0xff]  ;;  %v12575_v41 = vld [vmem:[#allocation31_spill] sm:$0xff] }
 0x4ab   :  { %v5359_v22 = vsel %vm3881_vm11, 1.0, %v12173_v35  ;;  %v4650_v59 = vmul.f32 %v4586_v47, %v3370_v19  ;;  %v4775_v26 = vmul.f32 %v5357_v54, %v4711_v23  ;;  %v5176_v9 = vsel %vm4780_vm6, %v4773_v42, 0.0  ;;  %v12578_v19 = vld [vmem:[#allocation40_spill] sm:$0xff] }
 0x4ac   :  { %v3170_v33 = vmin.f32 %v11256_v25, -0.000100005  ;;  %v4510_v34 = vmul.f32 %v11364_v52, %v11669_v27  ;;  %v12568_v29 = vsub.f32 0.0, %v11467_v17  ;;  %v5177_v24 = vadd.f32 %v5176_v9, %v5175_v36  ;;  %v12570_v27 = vld [vmem:[#allocation52_spill] sm:$0xff] }
 0x4ad   :  { %v12569_v32 = vmin.f32 %v11223_v3, -0.000100005  ;;  %v4714_v50 = vmul.f32 %v4650_v59, %v4266_v30  ;;  %v4776_v38 = vmul.f32 %v5358_v4, %v4712_v57  ;;  %v5178_v1 = vsel %vm4780_vm6, %v4774_v2, 0.0  ;;  %v12579_v4 = vld [vmem:[#allocation38_spill] sm:$0xff] }
 0x4ae   :  { %v3107_v28 = vmax.f32 %v12568_v29, -9.2103405  ;;  %v5360_v49 = vsel %vm3882_vm12, 1.0, %v12173_v35  ;;  %v4777_v25 = vmul.f32 %v5359_v22, %v4713_v44  ;;  %v5179_v55 = vadd.f32 %v5178_v1, %v5177_v24  ;;  %v12581_v29 = vld [vmem:[#allocation63_spill] sm:$0xff] }
 0x4af   :  { %v4449_v60 = vmul.f32 %v11272_v58, %v12569_v32  ;;  %v4324_v52 = vsub.f32 1.0, %v11606_v0  ;;  %v4450_v17 = vmul.f32 %v12570_v27, %v3170_v33  ;;  %v3172_v5 = vmin.f32 %v11604_v40, -0.000100005  ;;  %v12573_v0 = vld [vmem:[#allocation22_spill] sm:$0xff] }
 0x4b0   :  { %v12571_v3 = vsub.f32 1.0, %v11634_v45  ;;  %v5180_v39 = vsel %vm4780_vm6, %v4775_v26, 0.0  ;;  %v4882_v48 = vsel %vm4780_vm6, %v4510_v34, 0.0  ;;  %v3171_v8 = vmin.f32 %v3107_v28, -0.000100005  ;;  %v12580_v34 = vld [vmem:[#allocation12_spill] sm:$0xff] }
 0x4b1   :  { %v5181_v16 = vadd.f32 %v5180_v39, %v5179_v55  ;;  %v4325_v35 = vsub.f32 1.0, %v12572_v56  ;;  %v4778_v15 = vmul.f32 %v5360_v49, %v4714_v50  ;;  %v5182_v11 = vsel %vm4780_vm6, %v4776_v38, 0.0  ;;  %v12582_v28 = vld [vmem:[#allocation53_spill] sm:$0xff]  ;;  %v12585_v55 = vld [vmem:[#allocation28_spill] sm:$0xff] }
 0x4b2   :  { %v4387_v58 = vmul.f32 %v12571_v3, %v12571_v3  ;;  %v12574_v6 = vsub.f32 0.0, %v12573_v0  ;;  %v4326_v40 = vsub.f32 1.0, %v12575_v41  ;;  %v5184_v45 = vsel %vm4780_vm6, %v4777_v25, 0.0  ;;  %v12588_v0 = vld [vmem:[#allocation20_spill] sm:$0xff] }
 0x4b3   :  { %v5183_v63 = vadd.f32 %v5182_v11, %v5181_v16  ;;  %v12577_v23 = vsub.f32 0.0, %v12576_v10  ;;  %v4388_v13 = vmul.f32 %v4324_v52, %v4324_v52  ;;  %v3173_v54 = vmin.f32 %v12578_v19, -0.000100005 }
 0x4b4   :  { %v3110_v46 = vmax.f32 %v12574_v6, -9.2103405  ;;  %v4327_v30 = vsub.f32 1.0, %v11715_v21  ;;  %v4451_v62 = vmul.f32 %v4387_v58, %v3171_v8  ;;  %v4883_v47 = vadd.f32 %v4882_v48, %v11576_v53  ;;  %v12587_v48 = vld [vmem:[#allocation8_spill] sm:$0xff] }
 0x4b5   :  { %v3111_v42 = vmax.f32 %v12577_v23, -9.2103405  ;;  %v5185_v57 = vadd.f32 %v5184_v45, %v5183_v63  ;;  %v4389_v2 = vmul.f32 %v4325_v35, %v4325_v35  ;;  %v4513_v12 = vmul.f32 %v11582_v7, %v4449_v60  ;;  %v12589_v45 = vld [vmem:[#allocation48_spill] sm:$0xff] }
 0x4b6   :  { %v4884_v44 = vsel %vm4780_vm6, %v12579_v4, 0.0  ;;  %v5186_v36 = vsel %vm4780_vm6, %v4778_v15, 0.0  ;;  %v4328_v22 = vsub.f32 1.0, %v11717_v43  ;;  %v4390_v59 = vmul.f32 %v4326_v40, %v4326_v40  ;;  %v12584_v43 = vld [vmem:[#allocation69_spill] sm:$0xff] }
 0x4b7   :  { %v4885_v26 = vadd.f32 %v4884_v44, %v4883_v47  ;;  %v5187_v9 = vadd.f32 %v5186_v36, %v5185_v57  ;;  %v4452_v33 = vmul.f32 %v4388_v13, %v3172_v5  ;;  %v4514_v21 = vmul.f32 %v12580_v34, %v4450_v17 }
 0x4b8   :  { %v4886_v53 = vsel %vm4780_vm6, %v12581_v29, 0.0  ;;  %v12583_v24 = vsub.f32 0.0, %v12582_v28  ;;  %v3174_v7 = vmin.f32 %v3110_v46, -0.000100005  ;;  %v4329_v60 = vsub.f32 1.0, %v11730_v37 }
 0x4b9   :  { %v4887_v50 = vadd.f32 %v4886_v53, %v4885_v26  ;;  %5188 = vadd.xlane.f32.xlu1 %v5187_v9  ;;  %v4391_v38 = vmul.f32 %v4327_v30, %v4327_v30  ;;  %v4453_v1 = vmul.f32 %v4389_v2, %v3173_v54  ;;  %v4515_v49 = vmul.f32 %v12584_v43, %v4451_v62 }
 0x4ba   :  { %v3112_v32 = vmax.f32 %v12583_v24, -9.2103405  ;;  %v4888_v25 = vsel %vm4780_vm6, %v4513_v12, 0.0  ;;  %v12586_v52 = vsub.f32 0.0, %v12585_v55  ;;  %v3175_v17 = vmin.f32 %v3111_v42, -0.000100005 }
 0x4bb   :  { %v4330_v5 = vsub.f32 1.0, %v11774_v14  ;;  %v4889_v3 = vadd.f32 %v4888_v25, %v4887_v50  ;;  %v4392_v58 = vmul.f32 %v4328_v22, %v4328_v22  ;;  %v4454_v39 = vmul.f32 %v4390_v59, %v3174_v7 }
 0x4bc   :  { %v3113_v27 = vmax.f32 %v12586_v52, -9.2103405  ;;  %v4516_v8 = vmul.f32 %v12587_v48, %v4452_v33  ;;  %v4890_v37 = vsel %vm4780_vm6, %v4514_v21, 0.0  ;;  %v3114_v16 = vmax.f32 %v3050_v20, -9.2103405  ;;  %v12590_v20 = vld [vmem:[#allocation19_spill] sm:$0xff] }
 0x4bd   :  { %v3176_v56 = vmin.f32 %v3112_v32, -0.000100005  ;;  %v4891_v35 = vadd.f32 %v4890_v37, %v4889_v3  ;;  %v4393_v15 = vmul.f32 %v4329_v60, %v4329_v60  ;;  %v4455_v11 = vmul.f32 %v4391_v38, %v3175_v17 }
 0x4be   :  { %v4517_v6 = vmul.f32 %v12588_v0, %v4453_v1  ;;  %v4892_v46 = vsel %vm4780_vm6, %v4515_v49, 0.0  ;;  %v3177_v41 = vmin.f32 %v3113_v27, -0.000100005  ;;  %v4394_v40 = vmul.f32 %v4330_v5, %v4330_v5 }
 0x4bf   :  { %v4893_v14 = vadd.f32 %v4892_v46, %v4891_v35  ;;  %v4456_v63 = vmul.f32 %v4392_v58, %v3176_v56  ;;  %v4518_v10 = vmul.f32 %v12589_v45, %v4454_v39  ;;  %v4894_v23 = vsel %vm4780_vm6, %v4516_v8, 0.0 }
 0x4c0   :  { %v3178_v13 = vmin.f32 %v3114_v16, -0.000100005  ;;  %v4457_v18 = vmul.f32 %v4393_v15, %v3177_v41  ;;  %v4519_v19 = vmul.f32 %v12590_v20, %v4455_v11  ;;  %v4896_v54 = vsel %vm4780_vm6, %v4517_v6, 0.0 }
 0x4c1   :  { %v4895_v42 = vadd.f32 %v4894_v23, %v4893_v14  ;;  %v4520_v47 = vmul.f32 %v11655_v61, %v4456_v63  ;;  %v4898_v57 = vsel %vm4780_vm6, %v4518_v10, 0.0 }
 0x4c2   :  { %v4458_v62 = vmul.f32 %v4394_v40, %v3178_v13  ;;  %v4521_v12 = vmul.f32 %v11660_v51, %v4457_v18  ;;  %v4900_v4 = vsel %vm4780_vm6, %v4519_v19, 0.0 }
 0x4c3   :  { %v4897_v30 = vadd.f32 %v4896_v54, %v4895_v42  ;;  %v4902_v22 = vsel %vm4780_vm6, %v4520_v47, 0.0 }
 0x4c4   :  { %v4522_v36 = vmul.f32 %v11665_v31, %v4458_v62  ;;  %v4904_v26 = vsel %vm4780_vm6, %v4521_v12, 0.0 }
 0x4c5   :  { %v4899_v2 = vadd.f32 %v4898_v57, %v4897_v30 }
 0x4c6   :  { %v4906_v33 = vsel %vm4780_vm6, %v4522_v36, 0.0 }
 0x4c7   :  { %v4901_v44 = vadd.f32 %v4900_v4, %v4899_v2 }
 0x4c9   :  { %v4903_v59 = vadd.f32 %v4902_v22, %v4901_v44 }
 0x4cb   :  { %v4905_v9 = vadd.f32 %v4904_v26, %v4903_v59 }
 0x4cd   :  { %v4907_v34 = vadd.f32 %v4906_v33, %v4905_v9 }
 0x4cf   :  { %4908 = vadd.xlane.f32.xlu2 %v4907_v34 }
 0x513   :  { %v5049_v51 = vpop.xlane.xlu0 %5048 }
 0x514   :  { %v5050_v21 = vrot.slane %v5049_v51, 4 }
 0x516   :  { %v5051_v53 = vadd.f32 %v5050_v21, %v5049_v51 }
 0x518   :  { %v5052_v24 = vrot.slane %v5051_v53, 2 }
 0x51a   :  { %v5053_v38 = vadd.f32 %v5052_v24, %v5051_v53 }
 0x51c   :  { %v5054_v25 = vrot.slane %v5053_v38, 1 }
 0x51e   :  { %v5055_v17 = vadd.f32 %v5054_v25, %v5053_v38 }
 0x52c   :  { %v5189_v61 = vpop.xlane.xlu1 %5188 }
 0x52d   :  { %v5190_v31 = vrot.slane %v5189_v61, 4 }
 0x52f   :  { %v5191_v29 = vadd.f32 %v5190_v31, %v5189_v61 }
 0x531   :  { %v5192_v28 = vrot.slane %v5191_v29, 2 }
 0x533   :  { %v5193_v60 = vadd.f32 %v5192_v28, %v5191_v29 }
 0x535   :  { %v5194_v49 = vrot.slane %v5193_v60, 1 }
 0x537   :  { %v5195_v27 = vadd.f32 %v5194_v49, %v5193_v60 }
 0x542   :  { %v4909_v32 = vpop.xlane.xlu2 %4908 }
 0x543   :  { %v4910_v7 = vrot.slane %v4909_v32, 4 }
 0x545   :  { %v4911_v50 = vadd.f32 %v4910_v7, %v4909_v32 }
 0x547   :  { %v4912_v1 = vrot.slane %v4911_v50, 2 }
 0x549   :  { %v4913_v43 = vadd.f32 %v4912_v1, %v4911_v50 }
 0x54b   :  { %v4914_v55 = vrot.slane %v4913_v43, 1 }
 0x54d   :  { %v4915_v52 = vadd.f32 %v4914_v55, %v4913_v43 }
 0x54f   :  { %5713 = vpush %v4915_v52 }
 0x550   :  { %5715 = vpush %v5055_v17 }
 0x551   :  { %5717 = vpush %v5195_v27 }
 0x580   :  { %s5714_s4 = spop %5713 }
 0x581   :  { %s5716_s11 = spop %5715  ;;  %4919 = sst [smem:[#allocation5]] %s5714_s4 }
 0x582   :  { %s5718_s1 = spop %5717  ;;  %5059 = sst [smem:[#allocation5 + $0x2]] %s5716_s11 }
 0x583   :  { %5199 = sst [smem:[#allocation5 + $0x1]] %s5718_s1 }
 0x584   :  { %5221 = dma.smem_to_hbm %s6815_s12, 16, %s5219_s10, [#allocation4]  }
 0x585   :  { %6803 = dma.done.wait [#allocation3], 4096  }
 0x586   :  { %6804 = vsyncadd [#allocation3], 4294963200 }
 0x587   :  { %6805 = dma.done.wait [#allocation4], 16  }
 0x588   :  { %6806 = vsyncadd [#allocation4], 4294967280 }
 0x589   :  { %5230 = sfence }
 0x58a   :  { %5231 = vsyncpa [#allocation3], 1 }
 0x58b   :  { %5232 = vsyncpa [#allocation4], 1 }

</bundles_post_ra>
